<compile_context>
chip_gen: v5e
topology: v5e:2x2
jax: 0.10.0
libtpu: 0.0.40
codegen_flags: <defaults>
</compile_context>

<pallas_src>
import functools
import numpy as np

import jax
import jax.numpy as jnp
from jax.experimental import pallas as pl
from jax.experimental.pallas import tpu as pltpu


_MARGIN = 128   # left zero margin (lanes) in the conv scratch; needs >= W + 1
_TAIL = 32      # zero tail written after staging a pooled image; >= max(pool)+1


# ---------------------------------------------------------------------------
# Host-side constant operators (pooling / bilinear upsample / broadcast)
# ---------------------------------------------------------------------------

def adaptive_pool_matrix(in_size, out_size):
    """Row-stochastic (out, in) matrix with PyTorch AdaptiveAvgPool semantics."""
    P = np.zeros((out_size, in_size), np.float32)
    for i in range(out_size):
        s = (i * in_size) // out_size
        e = -((-(i + 1) * in_size) // out_size)           # ceil((i+1)*in/out)
        P[i, s:e] = 1.0 / (e - s)
    return P


def bilinear_matrix(in_size, out_size):
    """1-D bilinear interpolation matrix, align_corners=True (PyTorch)."""
    B = np.zeros((out_size, in_size), np.float32)
    if in_size == 1:
        B[:, 0] = 1.0                                     # pure broadcast
        return B
    scale = (in_size - 1) / (out_size - 1) if out_size > 1 else 0.0
    for o in range(out_size):
        src = o * scale
        i0 = min(int(np.floor(src)), in_size - 1)
        i1 = min(i0 + 1, in_size - 1)
        f = src - i0
        B[o, i0] += 1.0 - f
        B[o, i1] += f
    return B


def _kron_t(Rh, Rw):
    """(Hin*Win, Hout*Wout) matrix K with flat_out = flat_in @ K for Y = Rh X Rw^T."""
    return np.kron(Rh, Rw).T.astype(np.float32)


# ---------------------------------------------------------------------------
# Fused kernel
# ---------------------------------------------------------------------------

def _strip_pool_kernel(H, W, p1s, p2s, L, Lp,
                       x_ref, w1112_ref, w20_ref, w21_ref, w22_ref,
                       w23_ref, w24_ref, w56_ref, w3_ref,
                       kpool1_ref, kup1_ref, kpool2_ref, kup2_ref,
                       kpoolh_ref, kbh_ref, kpoolw_ref, kbw_ref,
                       o_ref, xbuf_ref, col_ref):
    mm = lambda a, b: jnp.dot(a, b, preferred_element_type=jnp.float32)
    inter = w20_ref.shape[0]

    # Zero the margined scratch ONCE; the margins / overhang region are never
    # written afterwards, so they stay zero for every conv in this grid step.
    xbuf_ref[...] = jnp.zeros_like(xbuf_ref)

    x = x_ref[0]                                          # (C, Lp), pad lanes 0
    x12 = jnp.maximum(mm(w1112_ref[...], x), 0.0)         # conv1_1 | conv1_2 + ReLU
    x1, x2 = x12[:inter], x12[inter:]

    # Hoisted helpers shared by the three full-resolution 3x3 convs.
    lane = jax.lax.broadcasted_iota(jnp.int32, (inter, Lp), 1)
    colf = lane % W
    full_masks = {-1: colf >= 1, 1: colf < (W - 1)}       # row-wrap masks
    lane_valid = lane < L                                 # pad-lane mask

    def stage(xin, row0, h, w, kh, kw, Lout, masks):
        """im2col: write the kh*kw shifted taps of xin into col_ref rows
        [row0, row0 + kh*kw*inter), each Lout lanes wide."""
        l = h * w
        if Lout > l:
            # full-resolution path: xin is (inter, Lp); zero its pad lanes so
            # vertical taps of the last image row read zeros, not garbage.
            xbuf_ref[:, pl.ds(_MARGIN, Lout)] = jnp.where(lane_valid, xin, 0.0)
        else:
            # pooled path: stage exactly l lanes and clear a small tail that a
            # previous (larger) conv may have left dirty.
            xbuf_ref[:, pl.ds(_MARGIN, l)] = xin
            xbuf_ref[:, pl.ds(_MARGIN + l, _TAIL)] = jnp.zeros(
                (inter, _TAIL), jnp.float32)
        if masks is None and kw > 1 and h > 1:
            cc = jax.lax.broadcasted_iota(jnp.int32, (inter, Lout), 1) % w
            masks = {-1: cc >= 1, 1: cc < (w - 1)}
        for t in range(kh * kw):
            ry, rx = t // kw - kh // 2, t % kw - kw // 2
            tap = xbuf_ref[:, pl.ds(_MARGIN + ry * w + rx, Lout)]
            if rx != 0 and h > 1:                         # kill row-wrapped samples
                tap = jnp.where(masks[rx], tap, 0.0)
            col_ref[pl.ds(row0 + t * inter, inter), pl.ds(0, Lout)] = tap

    def conv(w_ref, K, Lout, relu=False):
        out = mm(w_ref[...], col_ref[pl.ds(0, K), pl.ds(0, Lout)])
        return jnp.maximum(out, 0.0) if relu else out

    # branch 1: plain 3x3 conv at full resolution
    stage(x1, 0, H, W, 3, 3, Lp, full_masks)
    x2_1 = conv(w20_ref, 9 * inter, Lp)

    # branch 2: adaptive pool (p1s x p1s) -> 3x3 conv -> bilinear upsample
    p1 = mm(x1, kpool1_ref[...])
    stage(p1, 0, p1s, p1s, 3, 3, p1s * p1s, None)
    x2_2 = mm(conv(w21_ref, 9 * inter, p1s * p1s), kup1_ref[...])

    # branch 3: adaptive pool (p2s x p2s) -> 3x3 conv -> bilinear upsample
    p2 = mm(x1, kpool2_ref[...])
    stage(p2, 0, p2s, p2s, 3, 3, p2s * p2s, None)
    x2_3 = mm(conv(w22_ref, 9 * inter, p2s * p2s), kup2_ref[...])

    # branch 4: H-strip pool (1, W) -> (1,3) conv -> broadcast over H
    p3 = mm(x2, kpoolh_ref[...])
    stage(p3, 0, 1, W, 1, 3, W, None)
    x2_4 = mm(conv(w23_ref, 3 * inter, W), kbh_ref[...])

    # branch 5: W-strip pool (H, 1) -> (3,1) conv -> broadcast over W
    p4 = mm(x2, kpoolw_ref[...])
    stage(p4, 0, H, 1, 3, 1, H, None)
    x2_5 = mm(conv(w24_ref, 3 * inter, H), kbw_ref[...])

    # fused add + ReLU; conv2_5 & conv2_6 as ONE block-diagonal matmul
    t1 = jnp.maximum(x2_1 + x2_2 + x2_3, 0.0)
    t2 = jnp.maximum(x2_4 + x2_5, 0.0)
    stage(t1, 0, H, W, 3, 3, Lp, full_masks)
    stage(t2, 9 * inter, H, W, 3, 3, Lp, full_masks)
    y12 = conv(w56_ref, 18 * inter, Lp, relu=True)        # stacked [y1 ; y2]

    # conv3 on cat([y1, y2], dim=C) + final ReLU
    o_ref[0] = jnp.maximum(mm(w3_ref[...], y12), 0.0).astype(o_ref.dtype)


# ---------------------------------------------------------------------------
# Fused forward wrapper
# ---------------------------------------------------------------------------

def strip_pooling_forward(x, params, pool_size=(20, 12)):
    N, C, H, W = x.shape
    inter = params['w1_1'].shape[0]
    L = H * W
    Lp = ((L + 127) // 128) * 128                 # lane-dense activation width
    if Lp - L < W + 1:                            # keep a zero tail for vertical taps
        Lp += 128
    p1s, p2s = pool_size

    assert W + 1 <= _MARGIN, "conv scratch margin too small for this W"
    assert max(p1s, p2s) + 1 <= _TAIL, "conv scratch tail too small for pool sizes"

    # --- constant pooling / upsampling operators (host-side numpy) ----------
    def pad_rows(m): return np.pad(m, ((0, Lp - m.shape[0]), (0, 0)))
    def pad_cols(m): return np.pad(m, ((0, 0), (0, Lp - m.shape[1])))

    eye_h = np.eye(H, dtype=np.float32)
    eye_w = np.eye(W, dtype=np.float32)

    kpool1 = pad_rows(_kron_t(adaptive_pool_matrix(H, p1s), adaptive_pool_matrix(W, p1s)))
    kup1 = pad_cols(_kron_t(bilinear_matrix(p1s, H), bilinear_matrix(p1s, W)))
    kpool2 = pad_rows(_kron_t(adaptive_pool_matrix(H, p2s), adaptive_pool_matrix(W, p2s)))
    kup2 = pad_cols(_kron_t(bilinear_matrix(p2s, H), bilinear_matrix(p2s, W)))
    kpoolh = pad_rows(_kron_t(adaptive_pool_matrix(H, 1), eye_w))      # (Lp, W)
    kpoolw = pad_rows(_kron_t(eye_h, adaptive_pool_matrix(W, 1)))      # (Lp, H)
    # align_corners upsample of a strip == identity on kept axis + broadcast
    kbh = pad_cols(_kron_t(np.ones((H, 1), np.float32), eye_w))        # (W, Lp)
    kbw = pad_cols(_kron_t(eye_h, np.ones((W, 1), np.float32)))        # (H, Lp)

    # --- conv weights flattened for im2col matmuls ---------------------------
    def flat_conv(w):                 # (Cout, Cin, kh, kw) -> (Cout, kh*kw*Cin)
        cout, cin, kh, kw = w.shape
        return jnp.transpose(w, (0, 2, 3, 1)).reshape(cout, kh * kw * cin)

    w1112 = jnp.concatenate([params['w1_1'].reshape(inter, C),
                             params['w1_2'].reshape(inter, C)], axis=0)
    w20f = flat_conv(params['w2_0'])
    w21f = flat_conv(params['w2_1'])
    w22f = flat_conv(params['w2_2'])
    w23f = flat_conv(params['w2_3'])
    w24f = flat_conv(params['w2_4'])
    w25f = flat_conv(params['w2_5'])
    w26f = flat_conv(params['w2_6'])
    z = jnp.zeros_like(w25f)
    w56f = jnp.block([[w25f, z], [z, w26f]])      # block-diag (2*inter, 2*9*inter)
    w3f = params['w3'].reshape(C, 2 * inter)

    xp = jnp.pad(x.reshape(N, C, L), ((0, 0), (0, 0), (0, Lp - L)))

    inputs = [xp, w1112, w20f, w21f, w22f, w23f, w24f, w56f, w3f,
              kpool1, kup1, kpool2, kup2, kpoolh, kbh, kpoolw, kbw]

    def rep_spec(a):
        nd = np.ndim(a)
        return pl.BlockSpec(np.shape(a), lambda b, _nd=nd: (0,) * _nd)

    in_specs = [pl.BlockSpec((1, C, Lp), lambda b: (b, 0, 0))]
    in_specs += [rep_spec(a) for a in inputs[1:]]

    # advisory cost estimate: one (m, k, n) per matmul per batch item
    mats = [(2 * inter, C, Lp), (inter, 9 * inter, Lp),
            (inter, Lp, p1s * p1s), (inter, 9 * inter, p1s * p1s), (inter, p1s * p1s, Lp),
            (inter, Lp, p2s * p2s), (inter, 9 * inter, p2s * p2s), (inter, p2s * p2s, Lp),
            (inter, Lp, W), (inter, 3 * inter, W), (inter, W, Lp),
            (inter, Lp, H), (inter, 3 * inter, H), (inter, H, Lp),
            (2 * inter, 18 * inter, Lp), (C, 2 * inter, Lp)]
    flops = int(N * sum(2 * m * k * n for m, k, n in mats))
    bytes_accessed = int(sum(int(np.prod(np.shape(a))) for a in inputs) * 4
                         + N * C * Lp * 4)

    kernel = functools.partial(_strip_pool_kernel, H, W, p1s, p2s, L, Lp)
    out = pl.pallas_call(
        kernel,
        out_shape=jax.ShapeDtypeStruct((N, C, Lp), jnp.float32),
        grid=(N,),
        in_specs=in_specs,
        out_specs=pl.BlockSpec((1, C, Lp), lambda b: (b, 0, 0)),
        scratch_shapes=[
            pltpu.VMEM((inter, _MARGIN + Lp + _MARGIN), jnp.float32),   # margined image
            pltpu.VMEM((2 * 9 * inter, Lp), jnp.float32),               # im2col
        ],
        compiler_params=pltpu.CompilerParams(
            dimension_semantics=("parallel",)),
        cost_estimate=pl.CostEstimate(flops=flops, transcendentals=0,
                                      bytes_accessed=bytes_accessed),
    )(*inputs)
    return out[:, :, :L].reshape(N, C, H, W)


# ---------------------------------------------------------------------------
# Pure-XLA reference (no Pallas) -- used only for the self-check in __main__
# ---------------------------------------------------------------------------

def _reference_forward(x, params, pool_size):
    N, C, H, W = x.shape
    hi = jax.lax.Precision.HIGHEST
    relu = lambda t: jnp.maximum(t, 0.0)

    def conv(v, w):
        kh, kw = int(w.shape[2]), int(w.shape[3])
        return jax.lax.conv_general_dilated(
            v, w, (1, 1), [(kh // 2, kh // 2), (kw // 2, kw // 2)],
            dimension_numbers=("NCHW", "OIHW", "NCHW"), precision=hi)

    def apply_hw(v, Rh, Rw):
        return jnp.einsum("nchw,ph,qw->ncpq", v,
                          jnp.asarray(Rh), jnp.asarray(Rw), precision=hi)

    p1s, p2s = pool_size
    x1 = relu(conv(x, params['w1_1']))
    x2 = relu(conv(x, params['w1_2']))
    x2_1 = conv(x1, params['w2_0'])
    x2_2 = apply_hw(conv(apply_hw(x1, adaptive_pool_matrix(H, p1s),
                                  adaptive_pool_matrix(W, p1s)), params['w2_1']),
                    bilinear_matrix(p1s, H), bilinear_matrix(p1s, W))
    x2_3 = apply_hw(conv(apply_hw(x1, adaptive_pool_matrix(H, p2s),
                                  adaptive_pool_matrix(W, p2s)), params['w2_2']),
                    bilinear_matrix(p2s, H), bilinear_matrix(p2s, W))
    x2_4 = apply_hw(conv(apply_hw(x2, adaptive_pool_matrix(H, 1),
                                  np.eye(W, dtype=np.float32)), params['w2_3']),
                    np.ones((H, 1), np.float32), np.eye(W, dtype=np.float32))
    x2_5 = apply_hw(conv(apply_hw(x2, np.eye(H, dtype=np.float32),
                                  adaptive_pool_matrix(W, 1)), params['w2_4']),
                    np.eye(H, dtype=np.float32), np.ones((W, 1), np.float32))
    y1 = relu(conv(relu(x2_1 + x2_2 + x2_3), params['w2_5']))
    y2 = relu(conv(relu(x2_4 + x2_5), params['w2_6']))
    return relu(conv(jnp.concatenate([y1, y2], axis=1), params['w3']))


# ---------------------------------------------------------------------------
# Main
# ---------------------------------------------------------------------------

if __name__ == "__main__":
    N, Cin, H, W = 2, 16, 24, 24
    inter = Cin // 4

    key = jax.random.PRNGKey(0)
    keys = jax.random.split(key, 11)

    def init(k, shape):
        return 0.1 * jax.random.normal(k, shape, jnp.float32)

    params = {
        'w1_1': init(keys[0], (inter, Cin, 1, 1)),
        'w1_2': init(keys[1], (inter, Cin, 1, 1)),
        'w2_0': init(keys[2], (inter, inter, 3, 3)),
        'w2_1': init(keys[3], (inter, inter, 3, 3)),
        'w2_2': init(keys[4], (inter, inter, 3, 3)),
        'w2_3': init(keys[5], (inter, inter, 1, 3)),
        'w2_4': init(keys[6], (inter, inter, 3, 1)),
        'w2_5': init(keys[7], (inter, inter, 3, 3)),
        'w2_6': init(keys[8], (inter, inter, 3, 3)),
        'w3':   init(keys[9], (Cin, 2 * inter, 1, 1)),
    }
    x = jax.random.normal(keys[10], (N, Cin, H, W), jnp.float32)

    out = jax.block_until_ready(jax.jit(strip_pooling_forward)(x, params))

    assert out.shape == (N, Cin, H, W)
    assert bool(jnp.all(jnp.isfinite(out)))
    assert bool(jnp.all(out >= 0.0))                     # final ReLU

    ref = jax.block_until_ready(_reference_forward(x, params, (20, 12)))
    assert bool(jnp.allclose(out, ref, rtol=2e-3, atol=2e-3))

    print("KERNEL_OK")
</pallas_src>

<mosaic_0001>
module attributes {stable_mosaic.version = 11 : i64} {
  func.func @_strip_pool_kernel(%arg0: i32, %arg1: memref<1x16x640xf32, #tpu.memory_space<vmem>>, %arg2: memref<8x16xf32, #tpu.memory_space<vmem>>, %arg3: memref<4x36xf32, #tpu.memory_space<vmem>>, %arg4: memref<4x36xf32, #tpu.memory_space<vmem>>, %arg5: memref<4x36xf32, #tpu.memory_space<vmem>>, %arg6: memref<4x12xf32, #tpu.memory_space<vmem>>, %arg7: memref<4x12xf32, #tpu.memory_space<vmem>>, %arg8: memref<8x72xf32, #tpu.memory_space<vmem>>, %arg9: memref<16x8xf32, #tpu.memory_space<vmem>>, %arg10: memref<640x400xf32, #tpu.memory_space<vmem>>, %arg11: memref<400x640xf32, #tpu.memory_space<vmem>>, %arg12: memref<640x144xf32, #tpu.memory_space<vmem>>, %arg13: memref<144x640xf32, #tpu.memory_space<vmem>>, %arg14: memref<640x24xf32, #tpu.memory_space<vmem>>, %arg15: memref<24x640xf32, #tpu.memory_space<vmem>>, %arg16: memref<640x24xf32, #tpu.memory_space<vmem>>, %arg17: memref<24x640xf32, #tpu.memory_space<vmem>>, %arg18: memref<1x16x640xf32, #tpu.memory_space<vmem>>, %arg19: memref<4x896xf32, #tpu.memory_space<vmem>>, %arg20: memref<72x640xf32, #tpu.memory_space<vmem>>) attributes {dimension_semantics = [#tpu.dimension_semantics<parallel>], iteration_bounds = array<i64: 2>, scalar_prefetch = 0 : i64, scratch_operands = 2 : i64, tpu.core_type = #tpu.core_type<tc>, window_params = [{transform_indices = @transform_0, window_bounds = array<i64: 1, 16, 640>}, {pipeline_mode = #tpu.pipeline_mode<synchronous>, transform_indices = @transform_1, window_bounds = array<i64: 8, 16>}, {pipeline_mode = #tpu.pipeline_mode<synchronous>, transform_indices = @transform_2, window_bounds = array<i64: 4, 36>}, {pipeline_mode = #tpu.pipeline_mode<synchronous>, transform_indices = @transform_3, window_bounds = array<i64: 4, 36>}, {pipeline_mode = #tpu.pipeline_mode<synchronous>, transform_indices = @transform_4, window_bounds = array<i64: 4, 36>}, {pipeline_mode = #tpu.pipeline_mode<synchronous>, transform_indices = @transform_5, window_bounds = array<i64: 4, 12>}, {pipeline_mode = #tpu.pipeline_mode<synchronous>, transform_indices = @transform_6, window_bounds = array<i64: 4, 12>}, {pipeline_mode = #tpu.pipeline_mode<synchronous>, transform_indices = @transform_7, window_bounds = array<i64: 8, 72>}, {pipeline_mode = #tpu.pipeline_mode<synchronous>, transform_indices = @transform_8, window_bounds = array<i64: 16, 8>}, {pipeline_mode = #tpu.pipeline_mode<synchronous>, transform_indices = @transform_9, window_bounds = array<i64: 640, 400>}, {pipeline_mode = #tpu.pipeline_mode<synchronous>, transform_indices = @transform_10, window_bounds = array<i64: 400, 640>}, {pipeline_mode = #tpu.pipeline_mode<synchronous>, transform_indices = @transform_11, window_bounds = array<i64: 640, 144>}, {pipeline_mode = #tpu.pipeline_mode<synchronous>, transform_indices = @transform_12, window_bounds = array<i64: 144, 640>}, {pipeline_mode = #tpu.pipeline_mode<synchronous>, transform_indices = @transform_13, window_bounds = array<i64: 640, 24>}, {pipeline_mode = #tpu.pipeline_mode<synchronous>, transform_indices = @transform_14, window_bounds = array<i64: 24, 640>}, {pipeline_mode = #tpu.pipeline_mode<synchronous>, transform_indices = @transform_15, window_bounds = array<i64: 640, 24>}, {pipeline_mode = #tpu.pipeline_mode<synchronous>, transform_indices = @transform_16, window_bounds = array<i64: 24, 640>}, {transform_indices = @transform_17, window_bounds = array<i64: 1, 16, 640>}]} {
    %cst = arith.constant 0.000000e+00 : f32
    %0 = vector.broadcast %cst : f32 to vector<4x896xf32>
    %c0 = arith.constant 0 : index
    %c0_0 = arith.constant 0 : index
    %1 = vector.load %arg19[%c0, %c0_0] : memref<4x896xf32, #tpu.memory_space<vmem>>, vector<4x896xf32>
    tpu.vector_store %arg19[%c0, %c0_0], %0 {strides = array<i32>} : memref<4x896xf32, #tpu.memory_space<vmem>>, vector<4x896xf32>,
    %c0_1 = arith.constant 0 : index
    %c0_2 = arith.constant 0 : index
    %c0_3 = arith.constant 0 : index
    %2 = vector.load %arg1[%c0_1, %c0_2, %c0_3] : memref<1x16x640xf32, #tpu.memory_space<vmem>>, vector<1x16x640xf32>
    %3 = vector.shape_cast %2 : vector<1x16x640xf32> to vector<16x640xf32>
    %c0_4 = arith.constant 0 : index
    %c0_5 = arith.constant 0 : index
    %4 = vector.load %arg2[%c0_4, %c0_5] : memref<8x16xf32, #tpu.memory_space<vmem>>, vector<8x16xf32>
    %cst_6 = arith.constant dense<0.000000e+00> : vector<8x640xf32>
    %5 = tpu.matmul %4, %3, %cst_6 {dimension_numbers = #tpu.dot_dimension_numbers<[1], [0], [0], [1], [0, 0, 1, 1], [], []>} : vector<8x16xf32>, vector<16x640xf32>, vector<8x640xf32> -> vector<8x640xf32>
    %cst_7 = arith.constant 0.000000e+00 : f32
    %6 = vector.broadcast %cst_7 : f32 to vector<8x640xf32>
    %7 = arith.maximumf %5, %6 : vector<8x640xf32>
    %8 = vector.extract_strided_slice %7 {offsets = [0, 0], sizes = [4, 640], strides = [1, 1]} : vector<8x640xf32> to vector<4x640xf32>
    %9 = vector.extract_strided_slice %7 {offsets = [4, 0], sizes = [4, 640], strides = [1, 1]} : vector<8x640xf32> to vector<4x640xf32>
    %10 = tpu.iota {dimensions = array<i32: 1>} : vector<4x640xi32>
    %c24_i32 = arith.constant 24 : i32
    %c0_i32 = arith.constant 0 : i32
    %11 = arith.cmpi eq, %c24_i32, %c0_i32 : i32
    %c1_i32 = arith.constant 1 : i32
    %12 = arith.select %11, %c1_i32, %c24_i32 : i32
    %13 = vector.broadcast %12 : i32 to vector<4x640xi32>
    %14 = arith.remsi %10, %13 : vector<4x640xi32>
    %c0_i32_8 = arith.constant 0 : i32
    %15 = vector.broadcast %c0_i32_8 : i32 to vector<4x640xi32>
    %16 = arith.cmpi ne, %14, %15 : vector<4x640xi32>
    %c0_i32_9 = arith.constant 0 : i32
    %17 = vector.broadcast %c0_i32_9 : i32 to vector<4x640xi32>
    %18 = arith.cmpi slt, %14, %17 : vector<4x640xi32>
    %c0_i32_10 = arith.constant 0 : i32
    %19 = arith.cmpi slt, %12, %c0_i32_10 : i32
    %20 = vector.broadcast %19 : i1 to vector<4x640xi1>
    %21 = vector.broadcast %20 : vector<4x640xi1> to vector<4x640xi1>
    %22 = arith.xori %18, %21 : vector<4x640xi1>
    %23 = arith.andi %22, %16 : vector<4x640xi1>
    %24 = vector.broadcast %12 : i32 to vector<4x640xi32>
    %25 = arith.addi %14, %24 : vector<4x640xi32>
    %26 = arith.select %23, %25, %14 : vector<4x640xi1>, vector<4x640xi32>
    %c1_i32_11 = arith.constant 1 : i32
    %27 = vector.broadcast %c1_i32_11 : i32 to vector<4x640xi32>
    %28 = arith.cmpi sge, %26, %27 : vector<4x640xi32>
    %c23_i32 = arith.constant 23 : i32
    %29 = vector.broadcast %c23_i32 : i32 to vector<4x640xi32>
    %30 = arith.cmpi slt, %26, %29 : vector<4x640xi32>
    %c576_i32 = arith.constant 576 : i32
    %31 = vector.broadcast %c576_i32 : i32 to vector<4x640xi32>
    %32 = arith.cmpi slt, %10, %31 : vector<4x640xi32>
    %cst_12 = arith.constant 0.000000e+00 : f32
    %33 = vector.broadcast %cst_12 : f32 to vector<4x640xf32>
    %34 = arith.select %32, %8, %33 : vector<4x640xi1>, vector<4x640xf32>
    %c0_13 = arith.constant 0 : index
    %c128 = arith.constant 128 : index
    %35 = vector.load %arg19[%c0_13, %c128] : memref<4x896xf32, #tpu.memory_space<vmem>>, vector<4x640xf32>
    tpu.vector_store %arg19[%c0_13, %c128], %34 {strides = array<i32>} : memref<4x896xf32, #tpu.memory_space<vmem>>, vector<4x640xf32>,
    %c0_14 = arith.constant 0 : index
    %c103 = arith.constant 103 : index
    %36 = vector.load %arg19[%c0_14, %c103] : memref<4x896xf32, #tpu.memory_space<vmem>>, vector<4x640xf32>
    %cst_15 = arith.constant 0.000000e+00 : f32
    %37 = vector.broadcast %cst_15 : f32 to vector<4x640xf32>
    %38 = arith.select %28, %36, %37 : vector<4x640xi1>, vector<4x640xf32>
    %c0_16 = arith.constant 0 : index
    %c0_17 = arith.constant 0 : index
    %39 = vector.load %arg20[%c0_16, %c0_17] : memref<72x640xf32, #tpu.memory_space<vmem>>, vector<4x640xf32>
    tpu.vector_store %arg20[%c0_16, %c0_17], %38 {strides = array<i32>} : memref<72x640xf32, #tpu.memory_space<vmem>>, vector<4x640xf32>,
    %c0_18 = arith.constant 0 : index
    %c104 = arith.constant 104 : index
    %40 = vector.load %arg19[%c0_18, %c104] : memref<4x896xf32, #tpu.memory_space<vmem>>, vector<4x640xf32>
    %c4 = arith.constant 4 : index
    %c0_19 = arith.constant 0 : index
    %41 = vector.load %arg20[%c4, %c0_19] : memref<72x640xf32, #tpu.memory_space<vmem>>, vector<4x640xf32>
    tpu.vector_store %arg20[%c4, %c0_19], %40 {strides = array<i32>} : memref<72x640xf32, #tpu.memory_space<vmem>>, vector<4x640xf32>,
    %c0_20 = arith.constant 0 : index
    %c105 = arith.constant 105 : index
    %42 = vector.load %arg19[%c0_20, %c105] : memref<4x896xf32, #tpu.memory_space<vmem>>, vector<4x640xf32>
    %cst_21 = arith.constant 0.000000e+00 : f32
    %43 = vector.broadcast %cst_21 : f32 to vector<4x640xf32>
    %44 = arith.select %30, %42, %43 : vector<4x640xi1>, vector<4x640xf32>
    %c8 = arith.constant 8 : index
    %c0_22 = arith.constant 0 : index
    %45 = vector.load %arg20[%c8, %c0_22] : memref<72x640xf32, #tpu.memory_space<vmem>>, vector<4x640xf32>
    tpu.vector_store %arg20[%c8, %c0_22], %44 {strides = array<i32>} : memref<72x640xf32, #tpu.memory_space<vmem>>, vector<4x640xf32>,
    %c0_23 = arith.constant 0 : index
    %c127 = arith.constant 127 : index
    %46 = vector.load %arg19[%c0_23, %c127] : memref<4x896xf32, #tpu.memory_space<vmem>>, vector<4x640xf32>
    %cst_24 = arith.constant 0.000000e+00 : f32
    %47 = vector.broadcast %cst_24 : f32 to vector<4x640xf32>
    %48 = arith.select %28, %46, %47 : vector<4x640xi1>, vector<4x640xf32>
    %c12 = arith.constant 12 : index
    %c0_25 = arith.constant 0 : index
    %49 = vector.load %arg20[%c12, %c0_25] : memref<72x640xf32, #tpu.memory_space<vmem>>, vector<4x640xf32>
    tpu.vector_store %arg20[%c12, %c0_25], %48 {strides = array<i32>} : memref<72x640xf32, #tpu.memory_space<vmem>>, vector<4x640xf32>,
    %c0_26 = arith.constant 0 : index
    %c128_27 = arith.constant 128 : index
    %50 = vector.load %arg19[%c0_26, %c128_27] : memref<4x896xf32, #tpu.memory_space<vmem>>, vector<4x640xf32>
    %c16 = arith.constant 16 : index
    %c0_28 = arith.constant 0 : index
    %51 = vector.load %arg20[%c16, %c0_28] : memref<72x640xf32, #tpu.memory_space<vmem>>, vector<4x640xf32>
    tpu.vector_store %arg20[%c16, %c0_28], %50 {strides = array<i32>} : memref<72x640xf32, #tpu.memory_space<vmem>>, vector<4x640xf32>,
    %c0_29 = arith.constant 0 : index
    %c129 = arith.constant 129 : index
    %52 = vector.load %arg19[%c0_29, %c129] : memref<4x896xf32, #tpu.memory_space<vmem>>, vector<4x640xf32>
    %cst_30 = arith.constant 0.000000e+00 : f32
    %53 = vector.broadcast %cst_30 : f32 to vector<4x640xf32>
    %54 = arith.select %30, %52, %53 : vector<4x640xi1>, vector<4x640xf32>
    %c20 = arith.constant 20 : index
    %c0_31 = arith.constant 0 : index
    %55 = vector.load %arg20[%c20, %c0_31] : memref<72x640xf32, #tpu.memory_space<vmem>>, vector<4x640xf32>
    tpu.vector_store %arg20[%c20, %c0_31], %54 {strides = array<i32>} : memref<72x640xf32, #tpu.memory_space<vmem>>, vector<4x640xf32>,
    %c0_32 = arith.constant 0 : index
    %c151 = arith.constant 151 : index
    %56 = vector.load %arg19[%c0_32, %c151] : memref<4x896xf32, #tpu.memory_space<vmem>>, vector<4x640xf32>
    %cst_33 = arith.constant 0.000000e+00 : f32
    %57 = vector.broadcast %cst_33 : f32 to vector<4x640xf32>
    %58 = arith.select %28, %56, %57 : vector<4x640xi1>, vector<4x640xf32>
    %c24 = arith.constant 24 : index
    %c0_34 = arith.constant 0 : index
    %59 = vector.load %arg20[%c24, %c0_34] : memref<72x640xf32, #tpu.memory_space<vmem>>, vector<4x640xf32>
    tpu.vector_store %arg20[%c24, %c0_34], %58 {strides = array<i32>} : memref<72x640xf32, #tpu.memory_space<vmem>>, vector<4x640xf32>,
    %c0_35 = arith.constant 0 : index
    %c152 = arith.constant 152 : index
    %60 = vector.load %arg19[%c0_35, %c152] : memref<4x896xf32, #tpu.memory_space<vmem>>, vector<4x640xf32>
    %c28 = arith.constant 28 : index
    %c0_36 = arith.constant 0 : index
    %61 = vector.load %arg20[%c28, %c0_36] : memref<72x640xf32, #tpu.memory_space<vmem>>, vector<4x640xf32>
    tpu.vector_store %arg20[%c28, %c0_36], %60 {strides = array<i32>} : memref<72x640xf32, #tpu.memory_space<vmem>>, vector<4x640xf32>,
    %c0_37 = arith.constant 0 : index
    %c153 = arith.constant 153 : index
    %62 = vector.load %arg19[%c0_37, %c153] : memref<4x896xf32, #tpu.memory_space<vmem>>, vector<4x640xf32>
    %cst_38 = arith.constant 0.000000e+00 : f32
    %63 = vector.broadcast %cst_38 : f32 to vector<4x640xf32>
    %64 = arith.select %30, %62, %63 : vector<4x640xi1>, vector<4x640xf32>
    %c32 = arith.constant 32 : index
    %c0_39 = arith.constant 0 : index
    %65 = vector.load %arg20[%c32, %c0_39] : memref<72x640xf32, #tpu.memory_space<vmem>>, vector<4x640xf32>
    tpu.vector_store %arg20[%c32, %c0_39], %64 {strides = array<i32>} : memref<72x640xf32, #tpu.memory_space<vmem>>, vector<4x640xf32>,
    %c0_40 = arith.constant 0 : index
    %c0_41 = arith.constant 0 : index
    %66 = vector.load %arg3[%c0_40, %c0_41] : memref<4x36xf32, #tpu.memory_space<vmem>>, vector<4x36xf32>
    %c0_42 = arith.constant 0 : index
    %c0_43 = arith.constant 0 : index
    %67 = vector.load %arg20[%c0_42, %c0_43] : memref<72x640xf32, #tpu.memory_space<vmem>>, vector<36x640xf32>
    %cst_44 = arith.constant dense<0.000000e+00> : vector<4x640xf32>
    %68 = tpu.matmul %66, %67, %cst_44 {dimension_numbers = #tpu.dot_dimension_numbers<[1], [0], [0], [1], [0, 0, 1, 1], [], []>} : vector<4x36xf32>, vector<36x640xf32>, vector<4x640xf32> -> vector<4x640xf32>
    %c0_45 = arith.constant 0 : index
    %c0_46 = arith.constant 0 : index
    %69 = vector.load %arg10[%c0_45, %c0_46] : memref<640x400xf32, #tpu.memory_space<vmem>>, vector<640x400xf32>
    %cst_47 = arith.constant dense<0.000000e+00> : vector<4x400xf32>
    %70 = tpu.matmul %8, %69, %cst_47 {dimension_numbers = #tpu.dot_dimension_numbers<[1], [0], [0], [1], [0, 0, 1, 1], [], []>} : vector<4x640xf32>, vector<640x400xf32>, vector<4x400xf32> -> vector<4x400xf32>
    %c0_48 = arith.constant 0 : index
    %c128_49 = arith.constant 128 : index
    %71 = vector.load %arg19[%c0_48, %c128_49] : memref<4x896xf32, #tpu.memory_space<vmem>>, vector<4x400xf32>
    tpu.vector_store %arg19[%c0_48, %c128_49], %70 {strides = array<i32>} : memref<4x896xf32, #tpu.memory_space<vmem>>, vector<4x400xf32>,
    %cst_50 = arith.constant 0.000000e+00 : f32
    %72 = vector.broadcast %cst_50 : f32 to vector<4x32xf32>
    %c0_51 = arith.constant 0 : index
    %c528 = arith.constant 528 : index
    %73 = vector.load %arg19[%c0_51, %c528] : memref<4x896xf32, #tpu.memory_space<vmem>>, vector<4x32xf32>
    tpu.vector_store %arg19[%c0_51, %c528], %72 {strides = array<i32>} : memref<4x896xf32, #tpu.memory_space<vmem>>, vector<4x32xf32>,
    %74 = tpu.iota {dimensions = array<i32: 1>} : vector<4x400xi32>
    %c20_i32 = arith.constant 20 : i32
    %c0_i32_52 = arith.constant 0 : i32
    %75 = arith.cmpi eq, %c20_i32, %c0_i32_52 : i32
    %c1_i32_53 = arith.constant 1 : i32
    %76 = arith.select %75, %c1_i32_53, %c20_i32 : i32
    %77 = vector.broadcast %76 : i32 to vector<4x400xi32>
    %78 = arith.remsi %74, %77 : vector<4x400xi32>
    %c0_i32_54 = arith.constant 0 : i32
    %79 = vector.broadcast %c0_i32_54 : i32 to vector<4x400xi32>
    %80 = arith.cmpi ne, %78, %79 : vector<4x400xi32>
    %c0_i32_55 = arith.constant 0 : i32
    %81 = vector.broadcast %c0_i32_55 : i32 to vector<4x400xi32>
    %82 = arith.cmpi slt, %78, %81 : vector<4x400xi32>
    %c0_i32_56 = arith.constant 0 : i32
    %83 = arith.cmpi slt, %76, %c0_i32_56 : i32
    %84 = vector.broadcast %83 : i1 to vector<4x400xi1>
    %85 = vector.broadcast %84 : vector<4x400xi1> to vector<4x400xi1>
    %86 = arith.xori %82, %85 : vector<4x400xi1>
    %87 = arith.andi %86, %80 : vector<4x400xi1>
    %88 = vector.broadcast %76 : i32 to vector<4x400xi32>
    %89 = arith.addi %78, %88 : vector<4x400xi32>
    %90 = arith.select %87, %89, %78 : vector<4x400xi1>, vector<4x400xi32>
    %c1_i32_57 = arith.constant 1 : i32
    %91 = vector.broadcast %c1_i32_57 : i32 to vector<4x400xi32>
    %92 = arith.cmpi sge, %90, %91 : vector<4x400xi32>
    %c19_i32 = arith.constant 19 : i32
    %93 = vector.broadcast %c19_i32 : i32 to vector<4x400xi32>
    %94 = arith.cmpi slt, %90, %93 : vector<4x400xi32>
    %c0_58 = arith.constant 0 : index
    %c107 = arith.constant 107 : index
    %95 = vector.load %arg19[%c0_58, %c107] : memref<4x896xf32, #tpu.memory_space<vmem>>, vector<4x400xf32>
    %cst_59 = arith.constant 0.000000e+00 : f32
    %96 = vector.broadcast %cst_59 : f32 to vector<4x400xf32>
    %97 = arith.select %92, %95, %96 : vector<4x400xi1>, vector<4x400xf32>
    %c0_60 = arith.constant 0 : index
    %c0_61 = arith.constant 0 : index
    %98 = vector.load %arg20[%c0_60, %c0_61] : memref<72x640xf32, #tpu.memory_space<vmem>>, vector<4x400xf32>
    tpu.vector_store %arg20[%c0_60, %c0_61], %97 {strides = array<i32>} : memref<72x640xf32, #tpu.memory_space<vmem>>, vector<4x400xf32>,
    %c0_62 = arith.constant 0 : index
    %c108 = arith.constant 108 : index
    %99 = vector.load %arg19[%c0_62, %c108] : memref<4x896xf32, #tpu.memory_space<vmem>>, vector<4x400xf32>
    %c4_63 = arith.constant 4 : index
    %c0_64 = arith.constant 0 : index
    %100 = vector.load %arg20[%c4_63, %c0_64] : memref<72x640xf32, #tpu.memory_space<vmem>>, vector<4x400xf32>
    tpu.vector_store %arg20[%c4_63, %c0_64], %99 {strides = array<i32>} : memref<72x640xf32, #tpu.memory_space<vmem>>, vector<4x400xf32>,
    %c0_65 = arith.constant 0 : index
    %c109 = arith.constant 109 : index
    %101 = vector.load %arg19[%c0_65, %c109] : memref<4x896xf32, #tpu.memory_space<vmem>>, vector<4x400xf32>
    %cst_66 = arith.constant 0.000000e+00 : f32
    %102 = vector.broadcast %cst_66 : f32 to vector<4x400xf32>
    %103 = arith.select %94, %101, %102 : vector<4x400xi1>, vector<4x400xf32>
    %c8_67 = arith.constant 8 : index
    %c0_68 = arith.constant 0 : index
    %104 = vector.load %arg20[%c8_67, %c0_68] : memref<72x640xf32, #tpu.memory_space<vmem>>, vector<4x400xf32>
    tpu.vector_store %arg20[%c8_67, %c0_68], %103 {strides = array<i32>} : memref<72x640xf32, #tpu.memory_space<vmem>>, vector<4x400xf32>,
    %c0_69 = arith.constant 0 : index
    %c127_70 = arith.constant 127 : index
    %105 = vector.load %arg19[%c0_69, %c127_70] : memref<4x896xf32, #tpu.memory_space<vmem>>, vector<4x400xf32>
    %cst_71 = arith.constant 0.000000e+00 : f32
    %106 = vector.broadcast %cst_71 : f32 to vector<4x400xf32>
    %107 = arith.select %92, %105, %106 : vector<4x400xi1>, vector<4x400xf32>
    %c12_72 = arith.constant 12 : index
    %c0_73 = arith.constant 0 : index
    %108 = vector.load %arg20[%c12_72, %c0_73] : memref<72x640xf32, #tpu.memory_space<vmem>>, vector<4x400xf32>
    tpu.vector_store %arg20[%c12_72, %c0_73], %107 {strides = array<i32>} : memref<72x640xf32, #tpu.memory_space<vmem>>, vector<4x400xf32>,
    %c0_74 = arith.constant 0 : index
    %c128_75 = arith.constant 128 : index
    %109 = vector.load %arg19[%c0_74, %c128_75] : memref<4x896xf32, #tpu.memory_space<vmem>>, vector<4x400xf32>
    %c16_76 = arith.constant 16 : index
    %c0_77 = arith.constant 0 : index
    %110 = vector.load %arg20[%c16_76, %c0_77] : memref<72x640xf32, #tpu.memory_space<vmem>>, vector<4x400xf32>
    tpu.vector_store %arg20[%c16_76, %c0_77], %109 {strides = array<i32>} : memref<72x640xf32, #tpu.memory_space<vmem>>, vector<4x400xf32>,
    %c0_78 = arith.constant 0 : index
    %c129_79 = arith.constant 129 : index
    %111 = vector.load %arg19[%c0_78, %c129_79] : memref<4x896xf32, #tpu.memory_space<vmem>>, vector<4x400xf32>
    %cst_80 = arith.constant 0.000000e+00 : f32
    %112 = vector.broadcast %cst_80 : f32 to vector<4x400xf32>
    %113 = arith.select %94, %111, %112 : vector<4x400xi1>, vector<4x400xf32>
    %c20_81 = arith.constant 20 : index
    %c0_82 = arith.constant 0 : index
    %114 = vector.load %arg20[%c20_81, %c0_82] : memref<72x640xf32, #tpu.memory_space<vmem>>, vector<4x400xf32>
    tpu.vector_store %arg20[%c20_81, %c0_82], %113 {strides = array<i32>} : memref<72x640xf32, #tpu.memory_space<vmem>>, vector<4x400xf32>,
    %c0_83 = arith.constant 0 : index
    %c147 = arith.constant 147 : index
    %115 = vector.load %arg19[%c0_83, %c147] : memref<4x896xf32, #tpu.memory_space<vmem>>, vector<4x400xf32>
    %cst_84 = arith.constant 0.000000e+00 : f32
    %116 = vector.broadcast %cst_84 : f32 to vector<4x400xf32>
    %117 = arith.select %92, %115, %116 : vector<4x400xi1>, vector<4x400xf32>
    %c24_85 = arith.constant 24 : index
    %c0_86 = arith.constant 0 : index
    %118 = vector.load %arg20[%c24_85, %c0_86] : memref<72x640xf32, #tpu.memory_space<vmem>>, vector<4x400xf32>
    tpu.vector_store %arg20[%c24_85, %c0_86], %117 {strides = array<i32>} : memref<72x640xf32, #tpu.memory_space<vmem>>, vector<4x400xf32>,
    %c0_87 = arith.constant 0 : index
    %c148 = arith.constant 148 : index
    %119 = vector.load %arg19[%c0_87, %c148] : memref<4x896xf32, #tpu.memory_space<vmem>>, vector<4x400xf32>
    %c28_88 = arith.constant 28 : index
    %c0_89 = arith.constant 0 : index
    %120 = vector.load %arg20[%c28_88, %c0_89] : memref<72x640xf32, #tpu.memory_space<vmem>>, vector<4x400xf32>
    tpu.vector_store %arg20[%c28_88, %c0_89], %119 {strides = array<i32>} : memref<72x640xf32, #tpu.memory_space<vmem>>, vector<4x400xf32>,
    %c0_90 = arith.constant 0 : index
    %c149 = arith.constant 149 : index
    %121 = vector.load %arg19[%c0_90, %c149] : memref<4x896xf32, #tpu.memory_space<vmem>>, vector<4x400xf32>
    %cst_91 = arith.constant 0.000000e+00 : f32
    %122 = vector.broadcast %cst_91 : f32 to vector<4x400xf32>
    %123 = arith.select %94, %121, %122 : vector<4x400xi1>, vector<4x400xf32>
    %c32_92 = arith.constant 32 : index
    %c0_93 = arith.constant 0 : index
    %124 = vector.load %arg20[%c32_92, %c0_93] : memref<72x640xf32, #tpu.memory_space<vmem>>, vector<4x400xf32>
    tpu.vector_store %arg20[%c32_92, %c0_93], %123 {strides = array<i32>} : memref<72x640xf32, #tpu.memory_space<vmem>>, vector<4x400xf32>,
    %c0_94 = arith.constant 0 : index
    %c0_95 = arith.constant 0 : index
    %125 = vector.load %arg4[%c0_94, %c0_95] : memref<4x36xf32, #tpu.memory_space<vmem>>, vector<4x36xf32>
    %c0_96 = arith.constant 0 : index
    %c0_97 = arith.constant 0 : index
    %126 = vector.load %arg20[%c0_96, %c0_97] : memref<72x640xf32, #tpu.memory_space<vmem>>, vector<36x400xf32>
    %cst_98 = arith.constant dense<0.000000e+00> : vector<4x400xf32>
    %127 = tpu.matmul %125, %126, %cst_98 {dimension_numbers = #tpu.dot_dimension_numbers<[1], [0], [0], [1], [0, 0, 1, 1], [], []>} : vector<4x36xf32>, vector<36x400xf32>, vector<4x400xf32> -> vector<4x400xf32>
    %c0_99 = arith.constant 0 : index
    %c0_100 = arith.constant 0 : index
    %128 = vector.load %arg11[%c0_99, %c0_100] : memref<400x640xf32, #tpu.memory_space<vmem>>, vector<400x640xf32>
    %cst_101 = arith.constant dense<0.000000e+00> : vector<4x640xf32>
    %129 = tpu.matmul %127, %128, %cst_101 {dimension_numbers = #tpu.dot_dimension_numbers<[1], [0], [0], [1], [0, 0, 1, 1], [], []>} : vector<4x400xf32>, vector<400x640xf32>, vector<4x640xf32> -> vector<4x640xf32>
    %c0_102 = arith.constant 0 : index
    %c0_103 = arith.constant 0 : index
    %130 = vector.load %arg12[%c0_102, %c0_103] : memref<640x144xf32, #tpu.memory_space<vmem>>, vector<640x144xf32>
    %cst_104 = arith.constant dense<0.000000e+00> : vector<4x144xf32>
    %131 = tpu.matmul %8, %130, %cst_104 {dimension_numbers = #tpu.dot_dimension_numbers<[1], [0], [0], [1], [0, 0, 1, 1], [], []>} : vector<4x640xf32>, vector<640x144xf32>, vector<4x144xf32> -> vector<4x144xf32>
    %c0_105 = arith.constant 0 : index
    %c128_106 = arith.constant 128 : index
    %132 = vector.load %arg19[%c0_105, %c128_106] : memref<4x896xf32, #tpu.memory_space<vmem>>, vector<4x144xf32>
    tpu.vector_store %arg19[%c0_105, %c128_106], %131 {strides = array<i32>} : memref<4x896xf32, #tpu.memory_space<vmem>>, vector<4x144xf32>,
    %cst_107 = arith.constant 0.000000e+00 : f32
    %133 = vector.broadcast %cst_107 : f32 to vector<4x32xf32>
    %c0_108 = arith.constant 0 : index
    %c272 = arith.constant 272 : index
    %134 = vector.load %arg19[%c0_108, %c272] : memref<4x896xf32, #tpu.memory_space<vmem>>, vector<4x32xf32>
    tpu.vector_store %arg19[%c0_108, %c272], %133 {strides = array<i32>} : memref<4x896xf32, #tpu.memory_space<vmem>>, vector<4x32xf32>,
    %135 = tpu.iota {dimensions = array<i32: 1>} : vector<4x144xi32>
    %c12_i32 = arith.constant 12 : i32
    %c0_i32_109 = arith.constant 0 : i32
    %136 = arith.cmpi eq, %c12_i32, %c0_i32_109 : i32
    %c1_i32_110 = arith.constant 1 : i32
    %137 = arith.select %136, %c1_i32_110, %c12_i32 : i32
    %138 = vector.broadcast %137 : i32 to vector<4x144xi32>
    %139 = arith.remsi %135, %138 : vector<4x144xi32>
    %c0_i32_111 = arith.constant 0 : i32
    %140 = vector.broadcast %c0_i32_111 : i32 to vector<4x144xi32>
    %141 = arith.cmpi ne, %139, %140 : vector<4x144xi32>
    %c0_i32_112 = arith.constant 0 : i32
    %142 = vector.broadcast %c0_i32_112 : i32 to vector<4x144xi32>
    %143 = arith.cmpi slt, %139, %142 : vector<4x144xi32>
    %c0_i32_113 = arith.constant 0 : i32
    %144 = arith.cmpi slt, %137, %c0_i32_113 : i32
    %145 = vector.broadcast %144 : i1 to vector<4x144xi1>
    %146 = vector.broadcast %145 : vector<4x144xi1> to vector<4x144xi1>
    %147 = arith.xori %143, %146 : vector<4x144xi1>
    %148 = arith.andi %147, %141 : vector<4x144xi1>
    %149 = vector.broadcast %137 : i32 to vector<4x144xi32>
    %150 = arith.addi %139, %149 : vector<4x144xi32>
    %151 = arith.select %148, %150, %139 : vector<4x144xi1>, vector<4x144xi32>
    %c1_i32_114 = arith.constant 1 : i32
    %152 = vector.broadcast %c1_i32_114 : i32 to vector<4x144xi32>
    %153 = arith.cmpi sge, %151, %152 : vector<4x144xi32>
    %c11_i32 = arith.constant 11 : i32
    %154 = vector.broadcast %c11_i32 : i32 to vector<4x144xi32>
    %155 = arith.cmpi slt, %151, %154 : vector<4x144xi32>
    %c0_115 = arith.constant 0 : index
    %c115 = arith.constant 115 : index
    %156 = vector.load %arg19[%c0_115, %c115] : memref<4x896xf32, #tpu.memory_space<vmem>>, vector<4x144xf32>
    %cst_116 = arith.constant 0.000000e+00 : f32
    %157 = vector.broadcast %cst_116 : f32 to vector<4x144xf32>
    %158 = arith.select %153, %156, %157 : vector<4x144xi1>, vector<4x144xf32>
    %c0_117 = arith.constant 0 : index
    %c0_118 = arith.constant 0 : index
    %159 = vector.load %arg20[%c0_117, %c0_118] : memref<72x640xf32, #tpu.memory_space<vmem>>, vector<4x144xf32>
    tpu.vector_store %arg20[%c0_117, %c0_118], %158 {strides = array<i32>} : memref<72x640xf32, #tpu.memory_space<vmem>>, vector<4x144xf32>,
    %c0_119 = arith.constant 0 : index
    %c116 = arith.constant 116 : index
    %160 = vector.load %arg19[%c0_119, %c116] : memref<4x896xf32, #tpu.memory_space<vmem>>, vector<4x144xf32>
    %c4_120 = arith.constant 4 : index
    %c0_121 = arith.constant 0 : index
    %161 = vector.load %arg20[%c4_120, %c0_121] : memref<72x640xf32, #tpu.memory_space<vmem>>, vector<4x144xf32>
    tpu.vector_store %arg20[%c4_120, %c0_121], %160 {strides = array<i32>} : memref<72x640xf32, #tpu.memory_space<vmem>>, vector<4x144xf32>,
    %c0_122 = arith.constant 0 : index
    %c117 = arith.constant 117 : index
    %162 = vector.load %arg19[%c0_122, %c117] : memref<4x896xf32, #tpu.memory_space<vmem>>, vector<4x144xf32>
    %cst_123 = arith.constant 0.000000e+00 : f32
    %163 = vector.broadcast %cst_123 : f32 to vector<4x144xf32>
    %164 = arith.select %155, %162, %163 : vector<4x144xi1>, vector<4x144xf32>
    %c8_124 = arith.constant 8 : index
    %c0_125 = arith.constant 0 : index
    %165 = vector.load %arg20[%c8_124, %c0_125] : memref<72x640xf32, #tpu.memory_space<vmem>>, vector<4x144xf32>
    tpu.vector_store %arg20[%c8_124, %c0_125], %164 {strides = array<i32>} : memref<72x640xf32, #tpu.memory_space<vmem>>, vector<4x144xf32>,
    %c0_126 = arith.constant 0 : index
    %c127_127 = arith.constant 127 : index
    %166 = vector.load %arg19[%c0_126, %c127_127] : memref<4x896xf32, #tpu.memory_space<vmem>>, vector<4x144xf32>
    %cst_128 = arith.constant 0.000000e+00 : f32
    %167 = vector.broadcast %cst_128 : f32 to vector<4x144xf32>
    %168 = arith.select %153, %166, %167 : vector<4x144xi1>, vector<4x144xf32>
    %c12_129 = arith.constant 12 : index
    %c0_130 = arith.constant 0 : index
    %169 = vector.load %arg20[%c12_129, %c0_130] : memref<72x640xf32, #tpu.memory_space<vmem>>, vector<4x144xf32>
    tpu.vector_store %arg20[%c12_129, %c0_130], %168 {strides = array<i32>} : memref<72x640xf32, #tpu.memory_space<vmem>>, vector<4x144xf32>,
    %c0_131 = arith.constant 0 : index
    %c128_132 = arith.constant 128 : index
    %170 = vector.load %arg19[%c0_131, %c128_132] : memref<4x896xf32, #tpu.memory_space<vmem>>, vector<4x144xf32>
    %c16_133 = arith.constant 16 : index
    %c0_134 = arith.constant 0 : index
    %171 = vector.load %arg20[%c16_133, %c0_134] : memref<72x640xf32, #tpu.memory_space<vmem>>, vector<4x144xf32>
    tpu.vector_store %arg20[%c16_133, %c0_134], %170 {strides = array<i32>} : memref<72x640xf32, #tpu.memory_space<vmem>>, vector<4x144xf32>,
    %c0_135 = arith.constant 0 : index
    %c129_136 = arith.constant 129 : index
    %172 = vector.load %arg19[%c0_135, %c129_136] : memref<4x896xf32, #tpu.memory_space<vmem>>, vector<4x144xf32>
    %cst_137 = arith.constant 0.000000e+00 : f32
    %173 = vector.broadcast %cst_137 : f32 to vector<4x144xf32>
    %174 = arith.select %155, %172, %173 : vector<4x144xi1>, vector<4x144xf32>
    %c20_138 = arith.constant 20 : index
    %c0_139 = arith.constant 0 : index
    %175 = vector.load %arg20[%c20_138, %c0_139] : memref<72x640xf32, #tpu.memory_space<vmem>>, vector<4x144xf32>
    tpu.vector_store %arg20[%c20_138, %c0_139], %174 {strides = array<i32>} : memref<72x640xf32, #tpu.memory_space<vmem>>, vector<4x144xf32>,
    %c0_140 = arith.constant 0 : index
    %c139 = arith.constant 139 : index
    %176 = vector.load %arg19[%c0_140, %c139] : memref<4x896xf32, #tpu.memory_space<vmem>>, vector<4x144xf32>
    %cst_141 = arith.constant 0.000000e+00 : f32
    %177 = vector.broadcast %cst_141 : f32 to vector<4x144xf32>
    %178 = arith.select %153, %176, %177 : vector<4x144xi1>, vector<4x144xf32>
    %c24_142 = arith.constant 24 : index
    %c0_143 = arith.constant 0 : index
    %179 = vector.load %arg20[%c24_142, %c0_143] : memref<72x640xf32, #tpu.memory_space<vmem>>, vector<4x144xf32>
    tpu.vector_store %arg20[%c24_142, %c0_143], %178 {strides = array<i32>} : memref<72x640xf32, #tpu.memory_space<vmem>>, vector<4x144xf32>,
    %c0_144 = arith.constant 0 : index
    %c140 = arith.constant 140 : index
    %180 = vector.load %arg19[%c0_144, %c140] : memref<4x896xf32, #tpu.memory_space<vmem>>, vector<4x144xf32>
    %c28_145 = arith.constant 28 : index
    %c0_146 = arith.constant 0 : index
    %181 = vector.load %arg20[%c28_145, %c0_146] : memref<72x640xf32, #tpu.memory_space<vmem>>, vector<4x144xf32>
    tpu.vector_store %arg20[%c28_145, %c0_146], %180 {strides = array<i32>} : memref<72x640xf32, #tpu.memory_space<vmem>>, vector<4x144xf32>,
    %c0_147 = arith.constant 0 : index
    %c141 = arith.constant 141 : index
    %182 = vector.load %arg19[%c0_147, %c141] : memref<4x896xf32, #tpu.memory_space<vmem>>, vector<4x144xf32>
    %cst_148 = arith.constant 0.000000e+00 : f32
    %183 = vector.broadcast %cst_148 : f32 to vector<4x144xf32>
    %184 = arith.select %155, %182, %183 : vector<4x144xi1>, vector<4x144xf32>
    %c32_149 = arith.constant 32 : index
    %c0_150 = arith.constant 0 : index
    %185 = vector.load %arg20[%c32_149, %c0_150] : memref<72x640xf32, #tpu.memory_space<vmem>>, vector<4x144xf32>
    tpu.vector_store %arg20[%c32_149, %c0_150], %184 {strides = array<i32>} : memref<72x640xf32, #tpu.memory_space<vmem>>, vector<4x144xf32>,
    %c0_151 = arith.constant 0 : index
    %c0_152 = arith.constant 0 : index
    %186 = vector.load %arg5[%c0_151, %c0_152] : memref<4x36xf32, #tpu.memory_space<vmem>>, vector<4x36xf32>
    %c0_153 = arith.constant 0 : index
    %c0_154 = arith.constant 0 : index
    %187 = vector.load %arg20[%c0_153, %c0_154] : memref<72x640xf32, #tpu.memory_space<vmem>>, vector<36x144xf32>
    %cst_155 = arith.constant dense<0.000000e+00> : vector<4x144xf32>
    %188 = tpu.matmul %186, %187, %cst_155 {dimension_numbers = #tpu.dot_dimension_numbers<[1], [0], [0], [1], [0, 0, 1, 1], [], []>} : vector<4x36xf32>, vector<36x144xf32>, vector<4x144xf32> -> vector<4x144xf32>
    %c0_156 = arith.constant 0 : index
    %c0_157 = arith.constant 0 : index
    %189 = vector.load %arg13[%c0_156, %c0_157] : memref<144x640xf32, #tpu.memory_space<vmem>>, vector<144x640xf32>
    %cst_158 = arith.constant dense<0.000000e+00> : vector<4x640xf32>
    %190 = tpu.matmul %188, %189, %cst_158 {dimension_numbers = #tpu.dot_dimension_numbers<[1], [0], [0], [1], [0, 0, 1, 1], [], []>} : vector<4x144xf32>, vector<144x640xf32>, vector<4x640xf32> -> vector<4x640xf32>
    %c0_159 = arith.constant 0 : index
    %c0_160 = arith.constant 0 : index
    %191 = vector.load %arg14[%c0_159, %c0_160] : memref<640x24xf32, #tpu.memory_space<vmem>>, vector<640x24xf32>
    %cst_161 = arith.constant dense<0.000000e+00> : vector<4x24xf32>
    %192 = tpu.matmul %9, %191, %cst_161 {dimension_numbers = #tpu.dot_dimension_numbers<[1], [0], [0], [1], [0, 0, 1, 1], [], []>} : vector<4x640xf32>, vector<640x24xf32>, vector<4x24xf32> -> vector<4x24xf32>
    %c0_162 = arith.constant 0 : index
    %c128_163 = arith.constant 128 : index
    %193 = vector.load %arg19[%c0_162, %c128_163] : memref<4x896xf32, #tpu.memory_space<vmem>>, vector<4x24xf32>
    tpu.vector_store %arg19[%c0_162, %c128_163], %192 {strides = array<i32>} : memref<4x896xf32, #tpu.memory_space<vmem>>, vector<4x24xf32>,
    %cst_164 = arith.constant 0.000000e+00 : f32
    %194 = vector.broadcast %cst_164 : f32 to vector<4x32xf32>
    %c0_165 = arith.constant 0 : index
    %c152_166 = arith.constant 152 : index
    %195 = vector.load %arg19[%c0_165, %c152_166] : memref<4x896xf32, #tpu.memory_space<vmem>>, vector<4x32xf32>
    tpu.vector_store %arg19[%c0_165, %c152_166], %194 {strides = array<i32>} : memref<4x896xf32, #tpu.memory_space<vmem>>, vector<4x32xf32>,
    %c0_167 = arith.constant 0 : index
    %c127_168 = arith.constant 127 : index
    %196 = vector.load %arg19[%c0_167, %c127_168] : memref<4x896xf32, #tpu.memory_space<vmem>>, vector<4x24xf32>
    %c0_169 = arith.constant 0 : index
    %c0_170 = arith.constant 0 : index
    %197 = vector.load %arg20[%c0_169, %c0_170] : memref<72x640xf32, #tpu.memory_space<vmem>>, vector<4x24xf32>
    tpu.vector_store %arg20[%c0_169, %c0_170], %196 {strides = array<i32>} : memref<72x640xf32, #tpu.memory_space<vmem>>, vector<4x24xf32>,
    %c0_171 = arith.constant 0 : index
    %c128_172 = arith.constant 128 : index
    %198 = vector.load %arg19[%c0_171, %c128_172] : memref<4x896xf32, #tpu.memory_space<vmem>>, vector<4x24xf32>
    %c4_173 = arith.constant 4 : index
    %c0_174 = arith.constant 0 : index
    %199 = vector.load %arg20[%c4_173, %c0_174] : memref<72x640xf32, #tpu.memory_space<vmem>>, vector<4x24xf32>
    tpu.vector_store %arg20[%c4_173, %c0_174], %198 {strides = array<i32>} : memref<72x640xf32, #tpu.memory_space<vmem>>, vector<4x24xf32>,
    %c0_175 = arith.constant 0 : index
    %c129_176 = arith.constant 129 : index
    %200 = vector.load %arg19[%c0_175, %c129_176] : memref<4x896xf32, #tpu.memory_space<vmem>>, vector<4x24xf32>
    %c8_177 = arith.constant 8 : index
    %c0_178 = arith.constant 0 : index
    %201 = vector.load %arg20[%c8_177, %c0_178] : memref<72x640xf32, #tpu.memory_space<vmem>>, vector<4x24xf32>
    tpu.vector_store %arg20[%c8_177, %c0_178], %200 {strides = array<i32>} : memref<72x640xf32, #tpu.memory_space<vmem>>, vector<4x24xf32>,
    %c0_179 = arith.constant 0 : index
    %c0_180 = arith.constant 0 : index
    %202 = vector.load %arg6[%c0_179, %c0_180] : memref<4x12xf32, #tpu.memory_space<vmem>>, vector<4x12xf32>
    %c0_181 = arith.constant 0 : index
    %c0_182 = arith.constant 0 : index
    %203 = vector.load %arg20[%c0_181, %c0_182] : memref<72x640xf32, #tpu.memory_space<vmem>>, vector<12x24xf32>
    %cst_183 = arith.constant dense<0.000000e+00> : vector<4x24xf32>
    %204 = tpu.matmul %202, %203, %cst_183 {dimension_numbers = #tpu.dot_dimension_numbers<[1], [0], [0], [1], [0, 0, 1, 1], [], []>} : vector<4x12xf32>, vector<12x24xf32>, vector<4x24xf32> -> vector<4x24xf32>
    %c0_184 = arith.constant 0 : index
    %c0_185 = arith.constant 0 : index
    %205 = vector.load %arg15[%c0_184, %c0_185] : memref<24x640xf32, #tpu.memory_space<vmem>>, vector<24x640xf32>
    %cst_186 = arith.constant dense<0.000000e+00> : vector<4x640xf32>
    %206 = tpu.matmul %204, %205, %cst_186 {dimension_numbers = #tpu.dot_dimension_numbers<[1], [0], [0], [1], [0, 0, 1, 1], [], []>} : vector<4x24xf32>, vector<24x640xf32>, vector<4x640xf32> -> vector<4x640xf32>
    %c0_187 = arith.constant 0 : index
    %c0_188 = arith.constant 0 : index
    %207 = vector.load %arg16[%c0_187, %c0_188] : memref<640x24xf32, #tpu.memory_space<vmem>>, vector<640x24xf32>
    %cst_189 = arith.constant dense<0.000000e+00> : vector<4x24xf32>
    %208 = tpu.matmul %9, %207, %cst_189 {dimension_numbers = #tpu.dot_dimension_numbers<[1], [0], [0], [1], [0, 0, 1, 1], [], []>} : vector<4x640xf32>, vector<640x24xf32>, vector<4x24xf32> -> vector<4x24xf32>
    %c0_190 = arith.constant 0 : index
    %c128_191 = arith.constant 128 : index
    %209 = vector.load %arg19[%c0_190, %c128_191] : memref<4x896xf32, #tpu.memory_space<vmem>>, vector<4x24xf32>
    tpu.vector_store %arg19[%c0_190, %c128_191], %208 {strides = array<i32>} : memref<4x896xf32, #tpu.memory_space<vmem>>, vector<4x24xf32>,
    %cst_192 = arith.constant 0.000000e+00 : f32
    %210 = vector.broadcast %cst_192 : f32 to vector<4x32xf32>
    %c0_193 = arith.constant 0 : index
    %c152_194 = arith.constant 152 : index
    %211 = vector.load %arg19[%c0_193, %c152_194] : memref<4x896xf32, #tpu.memory_space<vmem>>, vector<4x32xf32>
    tpu.vector_store %arg19[%c0_193, %c152_194], %210 {strides = array<i32>} : memref<4x896xf32, #tpu.memory_space<vmem>>, vector<4x32xf32>,
    %c0_195 = arith.constant 0 : index
    %c127_196 = arith.constant 127 : index
    %212 = vector.load %arg19[%c0_195, %c127_196] : memref<4x896xf32, #tpu.memory_space<vmem>>, vector<4x24xf32>
    %c0_197 = arith.constant 0 : index
    %c0_198 = arith.constant 0 : index
    %213 = vector.load %arg20[%c0_197, %c0_198] : memref<72x640xf32, #tpu.memory_space<vmem>>, vector<4x24xf32>
    tpu.vector_store %arg20[%c0_197, %c0_198], %212 {strides = array<i32>} : memref<72x640xf32, #tpu.memory_space<vmem>>, vector<4x24xf32>,
    %c0_199 = arith.constant 0 : index
    %c128_200 = arith.constant 128 : index
    %214 = vector.load %arg19[%c0_199, %c128_200] : memref<4x896xf32, #tpu.memory_space<vmem>>, vector<4x24xf32>
    %c4_201 = arith.constant 4 : index
    %c0_202 = arith.constant 0 : index
    %215 = vector.load %arg20[%c4_201, %c0_202] : memref<72x640xf32, #tpu.memory_space<vmem>>, vector<4x24xf32>
    tpu.vector_store %arg20[%c4_201, %c0_202], %214 {strides = array<i32>} : memref<72x640xf32, #tpu.memory_space<vmem>>, vector<4x24xf32>,
    %c0_203 = arith.constant 0 : index
    %c129_204 = arith.constant 129 : index
    %216 = vector.load %arg19[%c0_203, %c129_204] : memref<4x896xf32, #tpu.memory_space<vmem>>, vector<4x24xf32>
    %c8_205 = arith.constant 8 : index
    %c0_206 = arith.constant 0 : index
    %217 = vector.load %arg20[%c8_205, %c0_206] : memref<72x640xf32, #tpu.memory_space<vmem>>, vector<4x24xf32>
    tpu.vector_store %arg20[%c8_205, %c0_206], %216 {strides = array<i32>} : memref<72x640xf32, #tpu.memory_space<vmem>>, vector<4x24xf32>,
    %c0_207 = arith.constant 0 : index
    %c0_208 = arith.constant 0 : index
    %218 = vector.load %arg7[%c0_207, %c0_208] : memref<4x12xf32, #tpu.memory_space<vmem>>, vector<4x12xf32>
    %c0_209 = arith.constant 0 : index
    %c0_210 = arith.constant 0 : index
    %219 = vector.load %arg20[%c0_209, %c0_210] : memref<72x640xf32, #tpu.memory_space<vmem>>, vector<12x24xf32>
    %cst_211 = arith.constant dense<0.000000e+00> : vector<4x24xf32>
    %220 = tpu.matmul %218, %219, %cst_211 {dimension_numbers = #tpu.dot_dimension_numbers<[1], [0], [0], [1], [0, 0, 1, 1], [], []>} : vector<4x12xf32>, vector<12x24xf32>, vector<4x24xf32> -> vector<4x24xf32>
    %c0_212 = arith.constant 0 : index
    %c0_213 = arith.constant 0 : index
    %221 = vector.load %arg17[%c0_212, %c0_213] : memref<24x640xf32, #tpu.memory_space<vmem>>, vector<24x640xf32>
    %cst_214 = arith.constant dense<0.000000e+00> : vector<4x640xf32>
    %222 = tpu.matmul %220, %221, %cst_214 {dimension_numbers = #tpu.dot_dimension_numbers<[1], [0], [0], [1], [0, 0, 1, 1], [], []>} : vector<4x24xf32>, vector<24x640xf32>, vector<4x640xf32> -> vector<4x640xf32>
    %223 = arith.addf %68, %129 : vector<4x640xf32>
    %224 = arith.addf %223, %190 : vector<4x640xf32>
    %cst_215 = arith.constant 0.000000e+00 : f32
    %225 = vector.broadcast %cst_215 : f32 to vector<4x640xf32>
    %226 = arith.maximumf %224, %225 : vector<4x640xf32>
    %227 = arith.addf %206, %222 : vector<4x640xf32>
    %cst_216 = arith.constant 0.000000e+00 : f32
    %228 = vector.broadcast %cst_216 : f32 to vector<4x640xf32>
    %229 = arith.maximumf %227, %228 : vector<4x640xf32>
    %cst_217 = arith.constant 0.000000e+00 : f32
    %230 = vector.broadcast %cst_217 : f32 to vector<4x640xf32>
    %231 = arith.select %32, %226, %230 : vector<4x640xi1>, vector<4x640xf32>
    %c0_218 = arith.constant 0 : index
    %c128_219 = arith.constant 128 : index
    %232 = vector.load %arg19[%c0_218, %c128_219] : memref<4x896xf32, #tpu.memory_space<vmem>>, vector<4x640xf32>
    tpu.vector_store %arg19[%c0_218, %c128_219], %231 {strides = array<i32>} : memref<4x896xf32, #tpu.memory_space<vmem>>, vector<4x640xf32>,
    %c0_220 = arith.constant 0 : index
    %c103_221 = arith.constant 103 : index
    %233 = vector.load %arg19[%c0_220, %c103_221] : memref<4x896xf32, #tpu.memory_space<vmem>>, vector<4x640xf32>
    %cst_222 = arith.constant 0.000000e+00 : f32
    %234 = vector.broadcast %cst_222 : f32 to vector<4x640xf32>
    %235 = arith.select %28, %233, %234 : vector<4x640xi1>, vector<4x640xf32>
    %c0_223 = arith.constant 0 : index
    %c0_224 = arith.constant 0 : index
    %236 = vector.load %arg20[%c0_223, %c0_224] : memref<72x640xf32, #tpu.memory_space<vmem>>, vector<4x640xf32>
    tpu.vector_store %arg20[%c0_223, %c0_224], %235 {strides = array<i32>} : memref<72x640xf32, #tpu.memory_space<vmem>>, vector<4x640xf32>,
    %c0_225 = arith.constant 0 : index
    %c104_226 = arith.constant 104 : index
    %237 = vector.load %arg19[%c0_225, %c104_226] : memref<4x896xf32, #tpu.memory_space<vmem>>, vector<4x640xf32>
    %c4_227 = arith.constant 4 : index
    %c0_228 = arith.constant 0 : index
    %238 = vector.load %arg20[%c4_227, %c0_228] : memref<72x640xf32, #tpu.memory_space<vmem>>, vector<4x640xf32>
    tpu.vector_store %arg20[%c4_227, %c0_228], %237 {strides = array<i32>} : memref<72x640xf32, #tpu.memory_space<vmem>>, vector<4x640xf32>,
    %c0_229 = arith.constant 0 : index
    %c105_230 = arith.constant 105 : index
    %239 = vector.load %arg19[%c0_229, %c105_230] : memref<4x896xf32, #tpu.memory_space<vmem>>, vector<4x640xf32>
    %cst_231 = arith.constant 0.000000e+00 : f32
    %240 = vector.broadcast %cst_231 : f32 to vector<4x640xf32>
    %241 = arith.select %30, %239, %240 : vector<4x640xi1>, vector<4x640xf32>
    %c8_232 = arith.constant 8 : index
    %c0_233 = arith.constant 0 : index
    %242 = vector.load %arg20[%c8_232, %c0_233] : memref<72x640xf32, #tpu.memory_space<vmem>>, vector<4x640xf32>
    tpu.vector_store %arg20[%c8_232, %c0_233], %241 {strides = array<i32>} : memref<72x640xf32, #tpu.memory_space<vmem>>, vector<4x640xf32>,
    %c0_234 = arith.constant 0 : index
    %c127_235 = arith.constant 127 : index
    %243 = vector.load %arg19[%c0_234, %c127_235] : memref<4x896xf32, #tpu.memory_space<vmem>>, vector<4x640xf32>
    %cst_236 = arith.constant 0.000000e+00 : f32
    %244 = vector.broadcast %cst_236 : f32 to vector<4x640xf32>
    %245 = arith.select %28, %243, %244 : vector<4x640xi1>, vector<4x640xf32>
    %c12_237 = arith.constant 12 : index
    %c0_238 = arith.constant 0 : index
    %246 = vector.load %arg20[%c12_237, %c0_238] : memref<72x640xf32, #tpu.memory_space<vmem>>, vector<4x640xf32>
    tpu.vector_store %arg20[%c12_237, %c0_238], %245 {strides = array<i32>} : memref<72x640xf32, #tpu.memory_space<vmem>>, vector<4x640xf32>,
    %c0_239 = arith.constant 0 : index
    %c128_240 = arith.constant 128 : index
    %247 = vector.load %arg19[%c0_239, %c128_240] : memref<4x896xf32, #tpu.memory_space<vmem>>, vector<4x640xf32>
    %c16_241 = arith.constant 16 : index
    %c0_242 = arith.constant 0 : index
    %248 = vector.load %arg20[%c16_241, %c0_242] : memref<72x640xf32, #tpu.memory_space<vmem>>, vector<4x640xf32>
    tpu.vector_store %arg20[%c16_241, %c0_242], %247 {strides = array<i32>} : memref<72x640xf32, #tpu.memory_space<vmem>>, vector<4x640xf32>,
    %c0_243 = arith.constant 0 : index
    %c129_244 = arith.constant 129 : index
    %249 = vector.load %arg19[%c0_243, %c129_244] : memref<4x896xf32, #tpu.memory_space<vmem>>, vector<4x640xf32>
    %cst_245 = arith.constant 0.000000e+00 : f32
    %250 = vector.broadcast %cst_245 : f32 to vector<4x640xf32>
    %251 = arith.select %30, %249, %250 : vector<4x640xi1>, vector<4x640xf32>
    %c20_246 = arith.constant 20 : index
    %c0_247 = arith.constant 0 : index
    %252 = vector.load %arg20[%c20_246, %c0_247] : memref<72x640xf32, #tpu.memory_space<vmem>>, vector<4x640xf32>
    tpu.vector_store %arg20[%c20_246, %c0_247], %251 {strides = array<i32>} : memref<72x640xf32, #tpu.memory_space<vmem>>, vector<4x640xf32>,
    %c0_248 = arith.constant 0 : index
    %c151_249 = arith.constant 151 : index
    %253 = vector.load %arg19[%c0_248, %c151_249] : memref<4x896xf32, #tpu.memory_space<vmem>>, vector<4x640xf32>
    %cst_250 = arith.constant 0.000000e+00 : f32
    %254 = vector.broadcast %cst_250 : f32 to vector<4x640xf32>
    %255 = arith.select %28, %253, %254 : vector<4x640xi1>, vector<4x640xf32>
    %c24_251 = arith.constant 24 : index
    %c0_252 = arith.constant 0 : index
    %256 = vector.load %arg20[%c24_251, %c0_252] : memref<72x640xf32, #tpu.memory_space<vmem>>, vector<4x640xf32>
    tpu.vector_store %arg20[%c24_251, %c0_252], %255 {strides = array<i32>} : memref<72x640xf32, #tpu.memory_space<vmem>>, vector<4x640xf32>,
    %c0_253 = arith.constant 0 : index
    %c152_254 = arith.constant 152 : index
    %257 = vector.load %arg19[%c0_253, %c152_254] : memref<4x896xf32, #tpu.memory_space<vmem>>, vector<4x640xf32>
    %c28_255 = arith.constant 28 : index
    %c0_256 = arith.constant 0 : index
    %258 = vector.load %arg20[%c28_255, %c0_256] : memref<72x640xf32, #tpu.memory_space<vmem>>, vector<4x640xf32>
    tpu.vector_store %arg20[%c28_255, %c0_256], %257 {strides = array<i32>} : memref<72x640xf32, #tpu.memory_space<vmem>>, vector<4x640xf32>,
    %c0_257 = arith.constant 0 : index
    %c153_258 = arith.constant 153 : index
    %259 = vector.load %arg19[%c0_257, %c153_258] : memref<4x896xf32, #tpu.memory_space<vmem>>, vector<4x640xf32>
    %cst_259 = arith.constant 0.000000e+00 : f32
    %260 = vector.broadcast %cst_259 : f32 to vector<4x640xf32>
    %261 = arith.select %30, %259, %260 : vector<4x640xi1>, vector<4x640xf32>
    %c32_260 = arith.constant 32 : index
    %c0_261 = arith.constant 0 : index
    %262 = vector.load %arg20[%c32_260, %c0_261] : memref<72x640xf32, #tpu.memory_space<vmem>>, vector<4x640xf32>
    tpu.vector_store %arg20[%c32_260, %c0_261], %261 {strides = array<i32>} : memref<72x640xf32, #tpu.memory_space<vmem>>, vector<4x640xf32>,
    %cst_262 = arith.constant 0.000000e+00 : f32
    %263 = vector.broadcast %cst_262 : f32 to vector<4x640xf32>
    %264 = arith.select %32, %229, %263 : vector<4x640xi1>, vector<4x640xf32>
    %c0_263 = arith.constant 0 : index
    %c128_264 = arith.constant 128 : index
    %265 = vector.load %arg19[%c0_263, %c128_264] : memref<4x896xf32, #tpu.memory_space<vmem>>, vector<4x640xf32>
    tpu.vector_store %arg19[%c0_263, %c128_264], %264 {strides = array<i32>} : memref<4x896xf32, #tpu.memory_space<vmem>>, vector<4x640xf32>,
    %c0_265 = arith.constant 0 : index
    %c103_266 = arith.constant 103 : index
    %266 = vector.load %arg19[%c0_265, %c103_266] : memref<4x896xf32, #tpu.memory_space<vmem>>, vector<4x640xf32>
    %cst_267 = arith.constant 0.000000e+00 : f32
    %267 = vector.broadcast %cst_267 : f32 to vector<4x640xf32>
    %268 = arith.select %28, %266, %267 : vector<4x640xi1>, vector<4x640xf32>
    %c36 = arith.constant 36 : index
    %c0_268 = arith.constant 0 : index
    %269 = vector.load %arg20[%c36, %c0_268] : memref<72x640xf32, #tpu.memory_space<vmem>>, vector<4x640xf32>
    tpu.vector_store %arg20[%c36, %c0_268], %268 {strides = array<i32>} : memref<72x640xf32, #tpu.memory_space<vmem>>, vector<4x640xf32>,
    %c0_269 = arith.constant 0 : index
    %c104_270 = arith.constant 104 : index
    %270 = vector.load %arg19[%c0_269, %c104_270] : memref<4x896xf32, #tpu.memory_space<vmem>>, vector<4x640xf32>
    %c40 = arith.constant 40 : index
    %c0_271 = arith.constant 0 : index
    %271 = vector.load %arg20[%c40, %c0_271] : memref<72x640xf32, #tpu.memory_space<vmem>>, vector<4x640xf32>
    tpu.vector_store %arg20[%c40, %c0_271], %270 {strides = array<i32>} : memref<72x640xf32, #tpu.memory_space<vmem>>, vector<4x640xf32>,
    %c0_272 = arith.constant 0 : index
    %c105_273 = arith.constant 105 : index
    %272 = vector.load %arg19[%c0_272, %c105_273] : memref<4x896xf32, #tpu.memory_space<vmem>>, vector<4x640xf32>
    %cst_274 = arith.constant 0.000000e+00 : f32
    %273 = vector.broadcast %cst_274 : f32 to vector<4x640xf32>
    %274 = arith.select %30, %272, %273 : vector<4x640xi1>, vector<4x640xf32>
    %c44 = arith.constant 44 : index
    %c0_275 = arith.constant 0 : index
    %275 = vector.load %arg20[%c44, %c0_275] : memref<72x640xf32, #tpu.memory_space<vmem>>, vector<4x640xf32>
    tpu.vector_store %arg20[%c44, %c0_275], %274 {strides = array<i32>} : memref<72x640xf32, #tpu.memory_space<vmem>>, vector<4x640xf32>,
    %c0_276 = arith.constant 0 : index
    %c127_277 = arith.constant 127 : index
    %276 = vector.load %arg19[%c0_276, %c127_277] : memref<4x896xf32, #tpu.memory_space<vmem>>, vector<4x640xf32>
    %cst_278 = arith.constant 0.000000e+00 : f32
    %277 = vector.broadcast %cst_278 : f32 to vector<4x640xf32>
    %278 = arith.select %28, %276, %277 : vector<4x640xi1>, vector<4x640xf32>
    %c48 = arith.constant 48 : index
    %c0_279 = arith.constant 0 : index
    %279 = vector.load %arg20[%c48, %c0_279] : memref<72x640xf32, #tpu.memory_space<vmem>>, vector<4x640xf32>
    tpu.vector_store %arg20[%c48, %c0_279], %278 {strides = array<i32>} : memref<72x640xf32, #tpu.memory_space<vmem>>, vector<4x640xf32>,
    %c0_280 = arith.constant 0 : index
    %c128_281 = arith.constant 128 : index
    %280 = vector.load %arg19[%c0_280, %c128_281] : memref<4x896xf32, #tpu.memory_space<vmem>>, vector<4x640xf32>
    %c52 = arith.constant 52 : index
    %c0_282 = arith.constant 0 : index
    %281 = vector.load %arg20[%c52, %c0_282] : memref<72x640xf32, #tpu.memory_space<vmem>>, vector<4x640xf32>
    tpu.vector_store %arg20[%c52, %c0_282], %280 {strides = array<i32>} : memref<72x640xf32, #tpu.memory_space<vmem>>, vector<4x640xf32>,
    %c0_283 = arith.constant 0 : index
    %c129_284 = arith.constant 129 : index
    %282 = vector.load %arg19[%c0_283, %c129_284] : memref<4x896xf32, #tpu.memory_space<vmem>>, vector<4x640xf32>
    %cst_285 = arith.constant 0.000000e+00 : f32
    %283 = vector.broadcast %cst_285 : f32 to vector<4x640xf32>
    %284 = arith.select %30, %282, %283 : vector<4x640xi1>, vector<4x640xf32>
    %c56 = arith.constant 56 : index
    %c0_286 = arith.constant 0 : index
    %285 = vector.load %arg20[%c56, %c0_286] : memref<72x640xf32, #tpu.memory_space<vmem>>, vector<4x640xf32>
    tpu.vector_store %arg20[%c56, %c0_286], %284 {strides = array<i32>} : memref<72x640xf32, #tpu.memory_space<vmem>>, vector<4x640xf32>,
    %c0_287 = arith.constant 0 : index
    %c151_288 = arith.constant 151 : index
    %286 = vector.load %arg19[%c0_287, %c151_288] : memref<4x896xf32, #tpu.memory_space<vmem>>, vector<4x640xf32>
    %cst_289 = arith.constant 0.000000e+00 : f32
    %287 = vector.broadcast %cst_289 : f32 to vector<4x640xf32>
    %288 = arith.select %28, %286, %287 : vector<4x640xi1>, vector<4x640xf32>
    %c60 = arith.constant 60 : index
    %c0_290 = arith.constant 0 : index
    %289 = vector.load %arg20[%c60, %c0_290] : memref<72x640xf32, #tpu.memory_space<vmem>>, vector<4x640xf32>
    tpu.vector_store %arg20[%c60, %c0_290], %288 {strides = array<i32>} : memref<72x640xf32, #tpu.memory_space<vmem>>, vector<4x640xf32>,
    %c0_291 = arith.constant 0 : index
    %c152_292 = arith.constant 152 : index
    %290 = vector.load %arg19[%c0_291, %c152_292] : memref<4x896xf32, #tpu.memory_space<vmem>>, vector<4x640xf32>
    %c64 = arith.constant 64 : index
    %c0_293 = arith.constant 0 : index
    %291 = vector.load %arg20[%c64, %c0_293] : memref<72x640xf32, #tpu.memory_space<vmem>>, vector<4x640xf32>
    tpu.vector_store %arg20[%c64, %c0_293], %290 {strides = array<i32>} : memref<72x640xf32, #tpu.memory_space<vmem>>, vector<4x640xf32>,
    %c0_294 = arith.constant 0 : index
    %c153_295 = arith.constant 153 : index
    %292 = vector.load %arg19[%c0_294, %c153_295] : memref<4x896xf32, #tpu.memory_space<vmem>>, vector<4x640xf32>
    %cst_296 = arith.constant 0.000000e+00 : f32
    %293 = vector.broadcast %cst_296 : f32 to vector<4x640xf32>
    %294 = arith.select %30, %292, %293 : vector<4x640xi1>, vector<4x640xf32>
    %c68 = arith.constant 68 : index
    %c0_297 = arith.constant 0 : index
    %295 = vector.load %arg20[%c68, %c0_297] : memref<72x640xf32, #tpu.memory_space<vmem>>, vector<4x640xf32>
    tpu.vector_store %arg20[%c68, %c0_297], %294 {strides = array<i32>} : memref<72x640xf32, #tpu.memory_space<vmem>>, vector<4x640xf32>,
    %c0_298 = arith.constant 0 : index
    %c0_299 = arith.constant 0 : index
    %296 = vector.load %arg8[%c0_298, %c0_299] : memref<8x72xf32, #tpu.memory_space<vmem>>, vector<8x72xf32>
    %c0_300 = arith.constant 0 : index
    %c0_301 = arith.constant 0 : index
    %297 = vector.load %arg20[%c0_300, %c0_301] : memref<72x640xf32, #tpu.memory_space<vmem>>, vector<72x640xf32>
    %cst_302 = arith.constant dense<0.000000e+00> : vector<8x640xf32>
    %298 = tpu.matmul %296, %297, %cst_302 {dimension_numbers = #tpu.dot_dimension_numbers<[1], [0], [0], [1], [0, 0, 1, 1], [], []>} : vector<8x72xf32>, vector<72x640xf32>, vector<8x640xf32> -> vector<8x640xf32>
    %cst_303 = arith.constant 0.000000e+00 : f32
    %299 = vector.broadcast %cst_303 : f32 to vector<8x640xf32>
    %300 = arith.maximumf %298, %299 : vector<8x640xf32>
    %c0_304 = arith.constant 0 : index
    %c0_305 = arith.constant 0 : index
    %301 = vector.load %arg9[%c0_304, %c0_305] : memref<16x8xf32, #tpu.memory_space<vmem>>, vector<16x8xf32>
    %cst_306 = arith.constant dense<0.000000e+00> : vector<16x640xf32>
    %302 = tpu.matmul %301, %300, %cst_306 {dimension_numbers = #tpu.dot_dimension_numbers<[1], [0], [0], [1], [0, 0, 1, 1], [], []>} : vector<16x8xf32>, vector<8x640xf32>, vector<16x640xf32> -> vector<16x640xf32>
    %cst_307 = arith.constant 0.000000e+00 : f32
    %303 = vector.broadcast %cst_307 : f32 to vector<16x640xf32>
    %304 = arith.maximumf %302, %303 : vector<16x640xf32>
    %c0_308 = arith.constant 0 : index
    %c0_309 = arith.constant 0 : index
    %c0_310 = arith.constant 0 : index
    %305 = vector.load %arg18[%c0_308, %c0_309, %c0_310] : memref<1x16x640xf32, #tpu.memory_space<vmem>>, vector<1x16x640xf32>
    %306 = vector.shape_cast %305 : vector<1x16x640xf32> to vector<16x640xf32>
    %307 = vector.shape_cast %304 : vector<16x640xf32> to vector<1x16x640xf32>
    tpu.vector_store %arg18[%c0_308, %c0_309, %c0_310], %307 {strides = array<i32>} : memref<1x16x640xf32, #tpu.memory_space<vmem>>, vector<1x16x640xf32>,
    return
  }
  func.func @transform_0(%arg0: i32) -> (i32, i32, i32) {
    %c0_i32 = arith.constant 0 : i32
    %c0_i32_0 = arith.constant 0 : i32
    %c0_i32_1 = arith.constant 0 : i32
    return %arg0, %c0_i32, %c0_i32_0 : i32, i32, i32
  }
  func.func @transform_1(%arg0: i32) -> (i32, i32) {
    %c0_i32 = arith.constant 0 : i32
    %c0_i32_0 = arith.constant 0 : i32
    %c0_i32_1 = arith.constant 0 : i32
    return %c0_i32, %c0_i32_0 : i32, i32
  }
  func.func @transform_2(%arg0: i32) -> (i32, i32) {
    %c0_i32 = arith.constant 0 : i32
    %c0_i32_0 = arith.constant 0 : i32
    %c0_i32_1 = arith.constant 0 : i32
    return %c0_i32, %c0_i32_0 : i32, i32
  }
  func.func @transform_3(%arg0: i32) -> (i32, i32) {
    %c0_i32 = arith.constant 0 : i32
    %c0_i32_0 = arith.constant 0 : i32
    %c0_i32_1 = arith.constant 0 : i32
    return %c0_i32, %c0_i32_0 : i32, i32
  }
  func.func @transform_4(%arg0: i32) -> (i32, i32) {
    %c0_i32 = arith.constant 0 : i32
    %c0_i32_0 = arith.constant 0 : i32
    %c0_i32_1 = arith.constant 0 : i32
    return %c0_i32, %c0_i32_0 : i32, i32
  }
  func.func @transform_5(%arg0: i32) -> (i32, i32) {
    %c0_i32 = arith.constant 0 : i32
    %c0_i32_0 = arith.constant 0 : i32
    %c0_i32_1 = arith.constant 0 : i32
    return %c0_i32, %c0_i32_0 : i32, i32
  }
  func.func @transform_6(%arg0: i32) -> (i32, i32) {
    %c0_i32 = arith.constant 0 : i32
    %c0_i32_0 = arith.constant 0 : i32
    %c0_i32_1 = arith.constant 0 : i32
    return %c0_i32, %c0_i32_0 : i32, i32
  }
  func.func @transform_7(%arg0: i32) -> (i32, i32) {
    %c0_i32 = arith.constant 0 : i32
    %c0_i32_0 = arith.constant 0 : i32
    %c0_i32_1 = arith.constant 0 : i32
    return %c0_i32, %c0_i32_0 : i32, i32
  }
  func.func @transform_8(%arg0: i32) -> (i32, i32) {
    %c0_i32 = arith.constant 0 : i32
    %c0_i32_0 = arith.constant 0 : i32
    %c0_i32_1 = arith.constant 0 : i32
    return %c0_i32, %c0_i32_0 : i32, i32
  }
  func.func @transform_9(%arg0: i32) -> (i32, i32) {
    %c0_i32 = arith.constant 0 : i32
    %c0_i32_0 = arith.constant 0 : i32
    %c0_i32_1 = arith.constant 0 : i32
    return %c0_i32, %c0_i32_0 : i32, i32
  }
  func.func @transform_10(%arg0: i32) -> (i32, i32) {
    %c0_i32 = arith.constant 0 : i32
    %c0_i32_0 = arith.constant 0 : i32
    %c0_i32_1 = arith.constant 0 : i32
    return %c0_i32, %c0_i32_0 : i32, i32
  }
  func.func @transform_11(%arg0: i32) -> (i32, i32) {
    %c0_i32 = arith.constant 0 : i32
    %c0_i32_0 = arith.constant 0 : i32
    %c0_i32_1 = arith.constant 0 : i32
    return %c0_i32, %c0_i32_0 : i32, i32
  }
  func.func @transform_12(%arg0: i32) -> (i32, i32) {
    %c0_i32 = arith.constant 0 : i32
    %c0_i32_0 = arith.constant 0 : i32
    %c0_i32_1 = arith.constant 0 : i32
    return %c0_i32, %c0_i32_0 : i32, i32
  }
  func.func @transform_13(%arg0: i32) -> (i32, i32) {
    %c0_i32 = arith.constant 0 : i32
    %c0_i32_0 = arith.constant 0 : i32
    %c0_i32_1 = arith.constant 0 : i32
    return %c0_i32, %c0_i32_0 : i32, i32
  }
  func.func @transform_14(%arg0: i32) -> (i32, i32) {
    %c0_i32 = arith.constant 0 : i32
    %c0_i32_0 = arith.constant 0 : i32
    %c0_i32_1 = arith.constant 0 : i32
    return %c0_i32, %c0_i32_0 : i32, i32
  }
  func.func @transform_15(%arg0: i32) -> (i32, i32) {
    %c0_i32 = arith.constant 0 : i32
    %c0_i32_0 = arith.constant 0 : i32
    %c0_i32_1 = arith.constant 0 : i32
    return %c0_i32, %c0_i32_0 : i32, i32
  }
  func.func @transform_16(%arg0: i32) -> (i32, i32) {
    %c0_i32 = arith.constant 0 : i32
    %c0_i32_0 = arith.constant 0 : i32
    %c0_i32_1 = arith.constant 0 : i32
    return %c0_i32, %c0_i32_0 : i32, i32
  }
  func.func @transform_17(%arg0: i32) -> (i32, i32, i32) {
    %c0_i32 = arith.constant 0 : i32
    %c0_i32_0 = arith.constant 0 : i32
    %c0_i32_1 = arith.constant 0 : i32
    return %arg0, %c0_i32, %c0_i32_0 : i32, i32, i32
  }
}

</mosaic_0001>

<bundles_post_ra>
// kernel: strip_pooling_forward.1
= control target key start
LH: loop header
LB: loop body
LE: loop exit
PB: predicated region body
PF: predicated region fallthrough
CT: control target
= control target key end

     0   :  { %s9738_s0 = inlined_call_operand.vmem [shape: f32[2,16,640], index: 0, kind: input, shape index: {}]   ;;  %s9739_s1 = inlined_call_operand.vmem [shape: f32[8,16], index: 1, kind: input, shape index: {}]   ;;  %s9740_s2 = inlined_call_operand.vmem [shape: f32[4,36], index: 2, kind: input, shape index: {}]   ;;  %s9741_s3 = inlined_call_operand.vmem [shape: f32[4,36], index: 3, kind: input, shape index: {}]   ;;  %s9742_s4 = inlined_call_operand.vmem [shape: f32[4,36], index: 4, kind: input, shape index: {}]   ;;  %s9743_s5 = inlined_call_operand.vmem [shape: f32[4,12], index: 5, kind: input, shape index: {}]   ;;  %s9744_s6 = inlined_call_operand.vmem [shape: f32[4,12], index: 6, kind: input, shape index: {}]   ;;  %s9745_s7 = inlined_call_operand.vmem [shape: f32[8,72], index: 7, kind: input, shape index: {}]   ;;  %s9746_s8 = inlined_call_operand.vmem [shape: f32[16,8], index: 8, kind: input, shape index: {}]   ;;  %s9747_s9 = inlined_call_operand.hbm [shape: f32[640,400], index: 9, kind: input, shape index: {}]   ;;  %s9748_s10 = inlined_call_operand.vmem [shape: f32[400,640], index: 10, kind: input, shape index: {}]   ;;  %s9749_s11 = inlined_call_operand.hbm [shape: f32[640,144], index: 11, kind: input, shape index: {}]   ;;  %s9750_s12 = inlined_call_operand.hbm [shape: f32[144,640], index: 12, kind: input, shape index: {}]   ;;  %s9751_s13 = inlined_call_operand.hbm [shape: f32[640,24], index: 13, kind: input, shape index: {}]   ;;  %s9752_s14 = inlined_call_operand.hbm [shape: f32[24,640], index: 14, kind: input, shape index: {}]   ;;  %s9753_s15 = inlined_call_operand.hbm [shape: f32[640,24], index: 15, kind: input, shape index: {}]   ;;  %s9754_s16 = inlined_call_operand.hbm [shape: f32[24,640], index: 16, kind: input, shape index: {}]   ;;  %s9755_s17 = inlined_call_operand.vmem [shape: f32[2,16,640], index: 17, kind: output, shape index: {}]  }
   0x1   :  { %9793 = sst [smem:[#allocation34_spill]] %s9738_s0 }
   0x2   :  { %9794 = sst [smem:[#allocation35_spill]] %s9739_s1 }
   0x3   :  { %9795 = sst [smem:[#allocation36_spill]] %s9746_s8 }
   0x4   :  { %9796 = sst [smem:[#allocation37_spill]] %s9749_s11 }
   0x5   :  { %9797 = sst [smem:[#allocation38_spill]] %s9751_s13 }
   0x6   :  { %9798 = sst [smem:[#allocation39_spill]] %s9755_s17 }
   0x7   :  { %22 = vsyncpa [#allocation5], 0 }
   0x8   :  { %23 = vsyncpa [#allocation7], 0 }
   0x9   :  { %24 = vsyncpa [#allocation10], 0 }
   0xa   :  { %25 = vsyncpa [#allocation13], 0  ;;  %s7215_s24 = smov 0  }
   0xb LB: > { %9799 = sst [smem:[#allocation19_spill]] %s7086_s24  ;;  %s7224_s28 = sadd.s32 4294967295, %s7086_s24   ;;  %s7086_s24 = sphi %s7215_s24, %s31_s24  }
   0xc   : > { %s9800_s11 = sld [smem:[#allocation37_spill]]  ;;  %p6657_p0 = scmp.ge.s32.totalorder %s7086_s24, 1 }
   0xd   : > { %p424_p1 = scmp.lt.s32.totalorder %s7086_s24, 3  ;;  %p6795_p2 = scmp.eq.s32.totalorder %s7224_s28, 0 }
   0xe   : > { %s7088_s0 = smov [#allocation6]   ;;  %s9802_s13 = sld [smem:[#allocation38_spill]] }
   0xf   : > { %p7229_p3 = pnand %p6657_p0, %p424_p1  ;;  %s478_s30 = sshll.u32 %s7088_s0, 4  ;;  %s479_s30 = int_to_ptr.vmem [resolvable:$true] %s478_s30 }
  0x10   : > { %s7089_s21 = smov [#allocation9]   ;;  %s7090_s23 = smov 256  }
  0x11   : > { %p6773_p4 = pneg %p7229_p3  ;;  %s506_s22 = sshll.u32 %s7089_s21, 4  ;;  %s507_s22 = int_to_ptr.vmem [resolvable:$true] %s506_s22 }
  0x12   : > { %s476_s27 = sshll.u32 %s9800_s11, 4  ;;  %s7091_s25 = smov 16   ;;  %s477_s27 = int_to_ptr.hbm [resolvable:$true] %s476_s27 }
  0x13   : > { %p7240_p5 = pnand %p6795_p2, %p6773_p4  ;;  %s532_s18 = sshll.u32 %s9753_s15, 4  ;;  %s533_s18 = int_to_ptr.hbm [resolvable:$true] %s532_s18 }
  0x14   : > { %s504_s1 = sshll.u32 %s9802_s13, 4  ;;  %s7092_s19 = smov 128   ;;  %s505_s1 = int_to_ptr.hbm [resolvable:$true] %s504_s1 }
  0x15   : > { %6779 = dma.hbm_to_vmem [thread:$0]  (!%p7240_p5), %s477_s27, 20480, %s479_s30, [#allocation7], %s7090_s23, %s7090_s23, %s7091_s25  }
  0x16   : > { %s7093_s11 = smov 8   ;;  %s7094_s13 = smov [#allocation12]  }
  0x17   : > { %6785 = dma.hbm_to_vmem [thread:$0]  (!%p7240_p5), %s505_s1, 10240, %s507_s22, [#allocation10], %s7092_s19, %s7092_s19, %s7093_s11  }
  0x18   : > { %s534_s24 = sshll.u32 %s7094_s13, 4  ;;  %s459_s21 = sshll.u32 %s9747_s9, 4  ;;  %s535_s24 = int_to_ptr.vmem [resolvable:$true] %s534_s24  ;;  %s460_s21 = int_to_ptr.hbm [resolvable:$true] %s459_s21 }
  0x19   : > { %6791 = dma.hbm_to_vmem [thread:$0]  (!%p7240_p5), %s533_s18, 10240, %s535_s24, [#allocation13], %s7092_s19, %s7092_s19, %s7093_s11  }
  0x1a   : > { %s7095_s27 = smov [#allocation4]   ;;  %s490_s26 = sshll.u32 %s9750_s12, 4  ;;  %s491_s26 = int_to_ptr.hbm [resolvable:$true] %s490_s26 }
  0x1b   : > { %s461_s30 = sshll.u32 %s7095_s27, 4  ;;  %s7096_s1 = smov 512   ;;  %s462_s30 = int_to_ptr.vmem [resolvable:$true] %s461_s30 }
  0x1c   : > { %s7097_s22 = smov 32   ;;  %s7098_s8 = smov [#allocation8]  }
  0x1d   : > { %6776 = dma.hbm_to_vmem [thread:$0]  (!%p7240_p5), %s460_s21, 40960, %s462_s30, [#allocation5], %s7096_s1, %s7096_s1, %s7097_s22  }
  0x1e   : > { %s492_s13 = sshll.u32 %s7098_s8, 4  ;;  %s7099_s17 = smov 640   ;;  %s493_s13 = int_to_ptr.vmem [resolvable:$true] %s492_s13 }
  0x1f   : > { %s7100_s0 = smov 40   ;;  %s518_s18 = sshll.u32 %s9752_s14, 4  ;;  %s519_s18 = int_to_ptr.hbm [resolvable:$true] %s518_s18 }
  0x20   : > { %6782 = dma.hbm_to_vmem [thread:$0]  (!%p7240_p5), %s491_s26, 11520, %s493_s13, [#allocation7], %s7099_s17, %s7099_s17, %s7100_s0  }
  0x21   : > { %s7101_s19 = smov [#allocation11]   ;;  %s546_s21 = sshll.u32 %s9754_s16, 4  ;;  %s547_s21 = int_to_ptr.hbm [resolvable:$true] %s546_s21 }
  0x22   : > { %s520_s27 = sshll.u32 %s7101_s19, 4  ;;  %s7102_s30 = smov [#allocation14]   ;;  %s521_s27 = int_to_ptr.vmem [resolvable:$true] %s520_s27 }
  0x23   : > { %6788 = dma.hbm_to_vmem [thread:$0]  (!%p7240_p5), %s519_s18, 1920, %s521_s27, [#allocation10], %s7099_s17, %s7099_s17, %s7100_s0  }
  0x24   : > { %s548_s1 = sshll.u32 %s7102_s30, 4  ;;  %572 = sbr.rel (%p7229_p3) target bundleno = 3159 (0xc57), region = 88  ;;  %s549_s1 = int_to_ptr.vmem [resolvable:$true] %s548_s1 }
  0x25   : > { %6794 = dma.hbm_to_vmem [thread:$0]  (!%p7240_p5), %s547_s21, 1920, %s549_s1, [#allocation13], %s7099_s17, %s7099_s17, %s7100_s0  }
  0x29   : > { %7069 = dma.done.wait (%p6795_p2), [#allocation5], 40960  }
  0x2a   : > { %7071 = vsyncadd (%p6795_p2), [#allocation5], 4294926336 }
  0x2b   : > { %7073 = dma.done.wait (%p6795_p2), [#allocation7], 32000  }
  0x2c   : > { %7075 = vsyncadd (%p6795_p2), [#allocation7], 4294935296 }
  0x2d   : > { %7077 = dma.done.wait (%p6795_p2), [#allocation10], 12160  }
  0x2e   : > { %7079 = vsyncadd (%p6795_p2), [#allocation10], 4294955136 }
  0x2f   : > { %7081 = dma.done.wait (%p6795_p2), [#allocation13], 12160  }
  0x30   : > { %7083 = vsyncadd (%p6795_p2), [#allocation13], 4294955136  ;;  %p655_p6 = scmp.lt.s32.totalorder %s7224_s28, 1  ;;  %s9804_s22 = sld [smem:[#allocation34_spill]]  ;;  %vm9788_vm0 = vcmask 130048   ;;  %v1597_v9 = vld [vmem:[#allocation4 + $0x3e0] sm:$0xff] }
  0x31   : > { %s9805_s0 = sld [smem:[#allocation35_spill]]  ;;  %v1533_v12 = vld [vmem:[#allocation4 + $0x1e0] sm:$0xff]  ;;  %1813 = vmatpush.msra.mxu2 %v1597_v9  ;;  %v1530_v9 = vld [vmem:[#allocation4 + $0x1c8] sm:$0xff]  ;;  %vm991_vm1 = vcmask 1043456   ;;  %s7104_s11 = smov 25   ;;  %vm9781_vm14 = vcmask 203776  }
  0x32   : > { %s9981_s28 = smov (!%p655_p6, %s7224_s28), 1  ;;  %v1593_v13 = vld [vmem:[#allocation4 + $0x3c0] sm:$0xff]  ;;  %s7105_s24 = smov 24  }
  0x33   : > { %s9792_s29 = smul.u32 80, %s9981_s28  ;;  %v1725_v14 = vld [vmem:[#allocation4 + $0x7e0] sm:$0xff]  ;;  %1814 = vmatpush.msra.mxu2 %v1593_v13  ;;  %s7106_s18 = smov 23  }
  0x34   : > { %v1661_v15 = vld [vmem:[#allocation4 + $0x5e0] sm:$0xff]  ;;  %s7107_s19 = smov 1   ;;  %s7108_s27 = smov 127  }
  0x35   : > { %v1529_v16 = vld [vmem:[#allocation4 + $0x1c0] sm:$0xff]  ;;  %s7109_s23 = smov 105   ;;  %s7111_s25 = smov 104  }
  0x36   : > { %s659_s8 = scalar_lea.vmem %s9804_s22, %s9792_s29  ;;  %v1589_v17 = vld [vmem:[#allocation4 + $0x3a0] sm:$0xff]  ;;  %s7112_s21 = smov 103  }
  0x37   : > { %v674_v0 = vld [vmem:[%s659_s8 + $0x28] sm:$0xff]  ;;  %v675_v1 = vld [vmem:[%s659_s8 + $0x30] sm:$0xff]  ;;  %v677_v2 = vld [vmem:[%s659_s8 + $0x40] sm:$0xff]  ;;  %1815 = vmatpush.msra.mxu2 %v1589_v17  ;;  %s7113_s30 = smov 21   ;;  %s7114_s1 = smov 20  }
  0x38   : > { %698 = vmatpush.msra.mxu0 %v674_v0  ;;  %718 = vmatpush.msra.mxu1 %v675_v1  ;;  %v669_v3 = vld [vmem:[%s659_s8] sm:$0xff]  ;;  %v670_v4 = vld [vmem:[%s659_s8 + $0x8] sm:$0xff]  ;;  %v672_v5 = vld [vmem:[%s659_s8 + $0x18] sm:$0xff]  ;;  %s7115_s20 = smov 109   ;;  %s7116_s26 = smov 108  }
  0x39   : > { %758 = vmatpush.msra.mxu3 %v677_v2  ;;  %v679_v6 = vld [vmem:[%s9805_s0] sm:$0xff]  ;;  %v676_v7 = vld [vmem:[%s659_s8 + $0x38] sm:$0xff]  ;;  %v678_v8 = vld [vmem:[%s659_s8 + $0x48] sm:$0xff]  ;;  %s7117_s22 = smov 19   ;;  %s7119_s29 = smov 13  }
  0x3a   : > { %699 = vmatpush.msra.mxu0 %v669_v3  ;;  %719 = vmatpush.msra.mxu1 %v670_v4  ;;  %v671_v10 = vld [vmem:[%s659_s8 + $0x10] sm:$0xff]  ;;  %v673_v11 = vld [vmem:[%s659_s8 + $0x20] sm:$0xff]  ;;  %s7118_s8 = smov 107   ;;  %s7123_s13 = smov 116  }
  0x3b   : > { %759 = vmatpush.msra.mxu3 %v672_v5  ;;  %6676 = vmatmul.msk.f32.vlgmr.msra.gmra.mxu0 %vm9788_vm0, %v679_v6  ;;  %v1657_v18 = vld [vmem:[#allocation4 + $0x5c0] sm:$0xff]  ;;  %v1534_v5 = vld [vmem:[#allocation4 + $0x1e8] sm:$0xff]  ;;  %s7124_s17 = smov 115   ;;  %s9978_s0 = sld [smem:[#allocation39_spill]] }
  0x3c   : > { %6677 = vmatmul.msk.f32.vlgmr.msra.gmra.mxu1 %vm9788_vm0, %v679_v6  ;;  %6679 = vmatmul.msk.f32.vlgmr.msra.gmra.mxu3 %vm9788_vm0, %v679_v6  ;;  %v1585_v19 = vld [vmem:[#allocation4 + $0x380] sm:$0xff]  ;;  %v1662_v17 = vld [vmem:[#allocation4 + $0x5e8] sm:$0xff] }
  0x3d   : > { %738 = vmatpush.msrb.mxu1 %v676_v7  ;;  %778 = vmatpush.msrb.mxu0 %v678_v8  ;;  %v1525_v20 = vld [vmem:[#allocation4 + $0x1a0] sm:$0xff] }
  0x3e   : > { %1833 = vmatpush.msrb.mxu3 %v1661_v15  ;;  %v1721_v21 = vld [vmem:[#allocation4 + $0x7c0] sm:$0xff]  ;;  %1816 = vmatpush.msra.mxu2 %v1585_v19  ;;  %v1598_v19 = vld [vmem:[#allocation4 + $0x3e8] sm:$0xff] }
  0x3f   : > { %739 = vmatpush.msrb.mxu1 %v671_v10  ;;  %779 = vmatpush.msrb.mxu0 %v673_v11  ;;  %v1581_v22 = vld [vmem:[#allocation4 + $0x360] sm:$0xff] }
  0x40   : > { %1834 = vmatpush.msrb.mxu3 %v1657_v18  ;;  %v1653_v23 = vld [vmem:[#allocation4 + $0x5a0] sm:$0xff]  ;;  %1817 = vmatpush.msra.mxu2 %v1581_v22 }
  0x41   : > { %1793 = vmatpush.msra.mxu1 %v1533_v12  ;;  %1853 = vmatpush.msra.mxu0 %v1725_v14  ;;  %v1521_v24 = vld [vmem:[#allocation4 + $0x180] sm:$0xff]  ;;  %v1526_v12 = vld [vmem:[#allocation4 + $0x1a8] sm:$0xff] }
  0x42   : > { %v1717_v25 = vld [vmem:[#allocation4 + $0x7a0] sm:$0xff]  ;;  %1835 = vmatpush.msrb.mxu3 %v1653_v23  ;;  %v1594_v23 = vld [vmem:[#allocation4 + $0x3c8] sm:$0xff] }
  0x43   : > { %1794 = vmatpush.msra.mxu1 %v1529_v16  ;;  %6680 = vmatmul.msk.f32.vlgmr.msrb.gmra.mxu0 %vm9788_vm0, %v679_v6  ;;  %v1577_v26 = vld [vmem:[#allocation4 + $0x340] sm:$0xff]  ;;  %v1522_v16 = vld [vmem:[#allocation4 + $0x188] sm:$0xff] }
  0x44   : > { %6678 = vmatmul.msk.f32.vlgmr.msrb.gmra.mxu1 %vm9788_vm0, %v679_v6  ;;  %1854 = vmatpush.msra.mxu0 %v1721_v21  ;;  %v1649_v27 = vld [vmem:[#allocation4 + $0x580] sm:$0xff]  ;;  %v1658_v21 = vld [vmem:[#allocation4 + $0x5c8] sm:$0xff] }
  0x45   : > { %1795 = vmatpush.msra.mxu1 %v1525_v20  ;;  %v1517_v28 = vld [vmem:[#allocation4 + $0x160] sm:$0xff]  ;;  %1818 = vmatpush.msra.mxu2 %v1577_v26  ;;  %v1518_v20 = vld [vmem:[#allocation4 + $0x168] sm:$0xff] }
  0x46   : > { %v1713_v29 = vld [vmem:[#allocation4 + $0x780] sm:$0xff]  ;;  %1855 = vmatpush.msra.mxu0 %v1717_v25  ;;  %1836 = vmatpush.msrb.mxu3 %v1649_v27  ;;  %v1654_v25 = vld [vmem:[#allocation4 + $0x5a8] sm:$0xff] }
  0x47   : > { %1796 = vmatpush.msra.mxu1 %v1521_v24  ;;  %v1573_v30 = vld [vmem:[#allocation4 + $0x320] sm:$0xff]  ;;  %v1514_v24 = vld [vmem:[#allocation4 + $0x148] sm:$0xff] }
  0x48   : > { %v1645_v31 = vld [vmem:[#allocation4 + $0x560] sm:$0xff]  ;;  %1856 = vmatpush.msra.mxu0 %v1713_v29  ;;  %1819 = vmatpush.msra.mxu2 %v1573_v30  ;;  %v1590_v27 = vld [vmem:[#allocation4 + $0x3a8] sm:$0xff] }
  0x49   : > { %v1513_v32 = vld [vmem:[#allocation4 + $0x140] sm:$0xff]  ;;  %1797 = vmatpush.msra.mxu1 %v1517_v28  ;;  %1837 = vmatpush.msrb.mxu3 %v1645_v31  ;;  %v1510_v28 = vld [vmem:[#allocation4 + $0x128] sm:$0xff] }
  0x4a   : > { %v1709_v33 = vld [vmem:[#allocation4 + $0x760] sm:$0xff]  ;;  %v1650_v29 = vld [vmem:[#allocation4 + $0x588] sm:$0xff] }
  0x4b   : > { %v1569_v34 = vld [vmem:[#allocation4 + $0x300] sm:$0xff]  ;;  %1798 = vmatpush.msra.mxu1 %v1513_v32  ;;  %1857 = vmatpush.msra.mxu0 %v1709_v33  ;;  %v1586_v31 = vld [vmem:[#allocation4 + $0x388] sm:$0xff] }
  0x4c   : > { %v1641_v35 = vld [vmem:[#allocation4 + $0x540] sm:$0xff]  ;;  %1820 = vmatpush.msra.mxu2 %v1569_v34  ;;  %v1506_v32 = vld [vmem:[#allocation4 + $0x108] sm:$0xff] }
  0x4d   : > { %v1509_v36 = vld [vmem:[#allocation4 + $0x120] sm:$0xff]  ;;  %1838 = vmatpush.msrb.mxu3 %v1641_v35  ;;  %v1646_v33 = vld [vmem:[#allocation4 + $0x568] sm:$0xff] }
  0x4e   : > { %v1705_v37 = vld [vmem:[#allocation4 + $0x740] sm:$0xff]  ;;  %1799 = vmatpush.msra.mxu1 %v1509_v36  ;;  %v1582_v35 = vld [vmem:[#allocation4 + $0x368] sm:$0xff] }
  0x4f   : > { %v1565_v38 = vld [vmem:[#allocation4 + $0x2e0] sm:$0xff]  ;;  %1858 = vmatpush.msra.mxu0 %v1705_v37  ;;  %v1502_v36 = vld [vmem:[#allocation4 + $0xe8] sm:$0xff] }
  0x50   : > { %v1637_v39 = vld [vmem:[#allocation4 + $0x520] sm:$0xff]  ;;  %1821 = vmatpush.msra.mxu2 %v1565_v38  ;;  %v1642_v37 = vld [vmem:[#allocation4 + $0x548] sm:$0xff] }
  0x51   : > { %v1505_v40 = vld [vmem:[#allocation4 + $0x100] sm:$0xff]  ;;  %1839 = vmatpush.msrb.mxu3 %v1637_v39  ;;  %v1578_v39 = vld [vmem:[#allocation4 + $0x348] sm:$0xff] }
  0x52   : > { %v1701_v41 = vld [vmem:[#allocation4 + $0x720] sm:$0xff]  ;;  %1800 = vmatpush.msra.mxu1 %v1505_v40  ;;  %v1498_v40 = vld [vmem:[#allocation4 + $0xc8] sm:$0xff] }
  0x53   : > { %v1561_v42 = vld [vmem:[#allocation4 + $0x2c0] sm:$0xff]  ;;  %1859 = vmatpush.msra.mxu0 %v1701_v41  ;;  %v1638_v41 = vld [vmem:[#allocation4 + $0x528] sm:$0xff] }
  0x54   : > { %v1633_v43 = vld [vmem:[#allocation4 + $0x500] sm:$0xff]  ;;  %1822 = vmatpush.msra.mxu2 %v1561_v42 }
  0x55   : > { %v1501_v44 = vld [vmem:[#allocation4 + $0xe0] sm:$0xff]  ;;  %1840 = vmatpush.msrb.mxu3 %v1633_v43  ;;  %v1574_v43 = vld [vmem:[#allocation4 + $0x328] sm:$0xff] }
  0x56   : > { %v1697_v45 = vld [vmem:[#allocation4 + $0x700] sm:$0xff]  ;;  %1801 = vmatpush.msra.mxu1 %v1501_v44  ;;  %v1494_v44 = vld [vmem:[#allocation4 + $0xa8] sm:$0xff] }
  0x57   : > { %v1557_v46 = vld [vmem:[#allocation4 + $0x2a0] sm:$0xff]  ;;  %1860 = vmatpush.msra.mxu0 %v1697_v45  ;;  %v1634_v45 = vld [vmem:[#allocation4 + $0x508] sm:$0xff] }
  0x58   : > { %v1629_v47 = vld [vmem:[#allocation4 + $0x4e0] sm:$0xff]  ;;  %1823 = vmatpush.msra.mxu2 %v1557_v46 }
  0x59   : > { %v1497_v48 = vld [vmem:[#allocation4 + $0xc0] sm:$0xff]  ;;  %1841 = vmatpush.msrb.mxu3 %v1629_v47  ;;  %v1570_v47 = vld [vmem:[#allocation4 + $0x308] sm:$0xff] }
  0x5a   : > { %v1693_v49 = vld [vmem:[#allocation4 + $0x6e0] sm:$0xff]  ;;  %1802 = vmatpush.msra.mxu1 %v1497_v48  ;;  %v1490_v48 = vld [vmem:[#allocation4 + $0x88] sm:$0xff] }
  0x5b   : > { %v1553_v50 = vld [vmem:[#allocation4 + $0x280] sm:$0xff]  ;;  %1861 = vmatpush.msra.mxu0 %v1693_v49  ;;  %v1630_v49 = vld [vmem:[#allocation4 + $0x4e8] sm:$0xff] }
  0x5c   : > { %v1625_v51 = vld [vmem:[#allocation4 + $0x4c0] sm:$0xff]  ;;  %1824 = vmatpush.msra.mxu2 %v1553_v50 }
  0x5d   : > { %v1493_v52 = vld [vmem:[#allocation4 + $0xa0] sm:$0xff]  ;;  %1842 = vmatpush.msrb.mxu3 %v1625_v51  ;;  %v1566_v51 = vld [vmem:[#allocation4 + $0x2e8] sm:$0xff] }
  0x5e   : > { %v1689_v53 = vld [vmem:[#allocation4 + $0x6c0] sm:$0xff]  ;;  %1803 = vmatpush.msra.mxu1 %v1493_v52  ;;  %v1486_v52 = vld [vmem:[#allocation4 + $0x68] sm:$0xff] }
  0x5f   : > { %v1549_v54 = vld [vmem:[#allocation4 + $0x260] sm:$0xff]  ;;  %1862 = vmatpush.msra.mxu0 %v1689_v53  ;;  %v1626_v53 = vld [vmem:[#allocation4 + $0x4c8] sm:$0xff] }
  0x60   : > { %v1621_v55 = vld [vmem:[#allocation4 + $0x4a0] sm:$0xff]  ;;  %1825 = vmatpush.msra.mxu2 %v1549_v54 }
  0x61   : > { %v1489_v56 = vld [vmem:[#allocation4 + $0x80] sm:$0xff]  ;;  %1843 = vmatpush.msrb.mxu3 %v1621_v55  ;;  %v1562_v55 = vld [vmem:[#allocation4 + $0x2c8] sm:$0xff] }
  0x62   : > { %v1685_v57 = vld [vmem:[#allocation4 + $0x6a0] sm:$0xff]  ;;  %1804 = vmatpush.msra.mxu1 %v1489_v56  ;;  %v1482_v56 = vld [vmem:[#allocation4 + $0x48] sm:$0xff] }
  0x63   : > { %v1545_v58 = vld [vmem:[#allocation4 + $0x240] sm:$0xff]  ;;  %1863 = vmatpush.msra.mxu0 %v1685_v57  ;;  %v1622_v57 = vld [vmem:[#allocation4 + $0x4a8] sm:$0xff] }
  0x64   : > { %v1617_v59 = vld [vmem:[#allocation4 + $0x480] sm:$0xff]  ;;  %1826 = vmatpush.msra.mxu2 %v1545_v58 }
  0x65   : > { %v1485_v60 = vld [vmem:[#allocation4 + $0x60] sm:$0xff]  ;;  %1844 = vmatpush.msrb.mxu3 %v1617_v59 }
  0x66   : > { %v1681_v61 = vld [vmem:[#allocation4 + $0x680] sm:$0xff]  ;;  %1805 = vmatpush.msra.mxu1 %v1485_v60  ;;  %v9761_v60 = vmov 0.0  }
  0x67   : > { %v1541_v62 = vld [vmem:[#allocation4 + $0x220] sm:$0xff]  ;;  %1864 = vmatpush.msra.mxu0 %v1681_v61  ;;  %665 = vst [vmem:[#allocation2] sm:$0xff] %v9761_v60 }
  0x68   : > { %v1613_v63 = vld [vmem:[#allocation4 + $0x460] sm:$0xff]  ;;  %1827 = vmatpush.msra.mxu2 %v1541_v62  ;;  %v1478_v62 = vld [vmem:[#allocation4 + $0x28] sm:$0xff]  ;;  %666 = vst [vmem:[#allocation2 + $0x8] sm:$0xff] %v9761_v60 }
  0x69   : > { %v1481_v0 = vld [vmem:[#allocation4 + $0x40] sm:$0xff]  ;;  %1845 = vmatpush.msrb.mxu3 %v1613_v63  ;;  %v1558_v63 = vld [vmem:[#allocation4 + $0x2a8] sm:$0xff]  ;;  %668 = vst [vmem:[#allocation2 + $0x18] sm:$0xf] %v9761_v60 }
  0x6a   : > { %v1677_v1 = vld [vmem:[#allocation4 + $0x660] sm:$0xff]  ;;  %1806 = vmatpush.msra.mxu1 %v1481_v0  ;;  %v1618_v0 = vld [vmem:[#allocation4 + $0x488] sm:$0xff]  ;;  %667 = vst [vmem:[#allocation2 + $0x10] sm:$0xff] %v9761_v60 }
  0x6b   : > { %v1537_v2 = vld [vmem:[#allocation4 + $0x200] sm:$0xff]  ;;  %1865 = vmatpush.msra.mxu0 %v1677_v1 }
  0x6c   : > { %v1609_v3 = vld [vmem:[#allocation4 + $0x440] sm:$0xff]  ;;  %1828 = vmatpush.msra.mxu2 %v1537_v2  ;;  %v1474_v2 = vld [vmem:[#allocation4 + $0x8] sm:$0xff] }
  0x6d   : > { %v1477_v4 = vld [vmem:[#allocation4 + $0x20] sm:$0xff]  ;;  %1846 = vmatpush.msrb.mxu3 %v1609_v3  ;;  %v1554_v3 = vld [vmem:[#allocation4 + $0x288] sm:$0xff] }
  0x6e   : > { %v1673_v6 = vld [vmem:[#allocation4 + $0x640] sm:$0xff]  ;;  %1807 = vmatpush.msra.mxu1 %v1477_v4  ;;  %1893 = vmatpush.msrb.mxu2 %v1534_v5  ;;  %v1614_v4 = vld [vmem:[#allocation4 + $0x468] sm:$0xff] }
  0x6f   : > { %v1605_v7 = vld [vmem:[#allocation4 + $0x420] sm:$0xff]  ;;  %1866 = vmatpush.msra.mxu0 %v1673_v6  ;;  %v1550_v5 = vld [vmem:[#allocation4 + $0x268] sm:$0xff] }
  0x70   : > { %v1473_v8 = vld [vmem:[#allocation4] sm:$0xff]  ;;  %1847 = vmatpush.msrb.mxu3 %v1605_v7  ;;  %1894 = vmatpush.msrb.mxu2 %v1530_v9  ;;  %v1610_v6 = vld [vmem:[#allocation4 + $0x448] sm:$0xff] }
  0x71   : > { %v1789_v10 = vld [vmem:[#allocation4 + $0x9e0] sm:$0xff]  ;;  %1808 = vmatpush.msra.mxu1 %v1473_v8  ;;  %v1546_v7 = vld [vmem:[#allocation4 + $0x248] sm:$0xff] }
  0x72   : > { %v1669_v11 = vld [vmem:[#allocation4 + $0x620] sm:$0xff]  ;;  %1895 = vmatpush.msrb.mxu2 %v1526_v12  ;;  %v1606_v8 = vld [vmem:[#allocation4 + $0x428] sm:$0xff]  ;;  %v789_v12 = vlaneseq }
  0x73   : > { %v1601_v13 = vld [vmem:[#allocation4 + $0x400] sm:$0xff]  ;;  %1873 = vmatpush.msrb.mxu1 %v1789_v10  ;;  %1867 = vmatpush.msra.mxu0 %v1669_v11  ;;  %v1542_v9 = vld [vmem:[#allocation4 + $0x228] sm:$0xff] }
  0x74   : > { %v1785_v14 = vld [vmem:[#allocation4 + $0x9c0] sm:$0xff]  ;;  %1848 = vmatpush.msrb.mxu3 %v1601_v13  ;;  %1896 = vmatpush.msrb.mxu2 %v1522_v16  ;;  %v1602_v10 = vld [vmem:[#allocation4 + $0x408] sm:$0xff] }
  0x75   : > { %v1665_v15 = vld [vmem:[#allocation4 + $0x600] sm:$0xff]  ;;  %1874 = vmatpush.msrb.mxu1 %v1785_v14  ;;  %v1538_v11 = vld [vmem:[#allocation4 + $0x208] sm:$0xff]  ;;  %v7313_v14 = vand.u32 127, %v789_v12  ;;  %v1567_v12 = vld [vmem:[#allocation4 + $0x2f0] sm:$0xff] }
  0x76   : > { %v1781_v18 = vld [vmem:[#allocation4 + $0x9a0] sm:$0xff]  ;;  %1868 = vmatpush.msra.mxu0 %v1665_v15  ;;  %1913 = vmatpush.msra.mxu3 %v1598_v19  ;;  %v1790_v19 = vld [vmem:[#allocation4 + $0x9e8] sm:$0xff] }
  0x77   : > { %v1777_v22 = vld [vmem:[#allocation4 + $0x980] sm:$0xff]  ;;  %1875 = vmatpush.msrb.mxu1 %v1781_v18  ;;  %1897 = vmatpush.msrb.mxu2 %v1518_v20  ;;  %v1722_v20 = vld [vmem:[#allocation4 + $0x7c8] sm:$0xff] }
  0x78   : > { %1933 = vmatpush.msrb.mxu0 %v1662_v17  ;;  %v1773_v26 = vld [vmem:[#allocation4 + $0x960] sm:$0xff]  ;;  %1914 = vmatpush.msra.mxu3 %v1594_v23  ;;  %v1726_v17 = vld [vmem:[#allocation4 + $0x7e8] sm:$0xff]  ;;  %v7325_v23 = vadd.s32 512, %v7313_v14 }
  0x79   : > { %1876 = vmatpush.msrb.mxu1 %v1777_v22  ;;  %v1769_v30 = vld [vmem:[#allocation4 + $0x940] sm:$0xff]  ;;  %1898 = vmatpush.msrb.mxu2 %v1514_v24  ;;  %v1786_v22 = vld [vmem:[#allocation4 + $0x9c8] sm:$0xff] }
  0x7a   : > { %1934 = vmatpush.msrb.mxu0 %v1658_v21  ;;  %1915 = vmatpush.msra.mxu3 %v1590_v27  ;;  %v1765_v34 = vld [vmem:[#allocation4 + $0x920] sm:$0xff]  ;;  %9806 = vst [vmem:[#allocation20_spill] sm:$0xff] %v7325_v23  ;;  %v1718_v24 = vld [vmem:[#allocation4 + $0x7a8] sm:$0xff]  ;;  %vm9758_vm2 = vcmp.lt.s32.totalorder %v7325_v23, 576 }
  0x7b   : > { %1877 = vmatpush.msrb.mxu1 %v1773_v26  ;;  %1899 = vmatpush.msrb.mxu2 %v1510_v28  ;;  %v1761_v38 = vld [vmem:[#allocation4 + $0x900] sm:$0xff]  ;;  %v1782_v26 = vld [vmem:[#allocation4 + $0x9a8] sm:$0xff] }
  0x7c   : > { %1935 = vmatpush.msrb.mxu0 %v1654_v25  ;;  %1916 = vmatpush.msra.mxu3 %v1586_v31  ;;  %v1757_v42 = vld [vmem:[#allocation4 + $0x8e0] sm:$0xff]  ;;  %v1714_v28 = vld [vmem:[#allocation4 + $0x788] sm:$0xff] }
  0x7d   : > { %1878 = vmatpush.msrb.mxu1 %v1769_v30  ;;  %1900 = vmatpush.msrb.mxu2 %v1506_v32  ;;  %v1753_v46 = vld [vmem:[#allocation4 + $0x8c0] sm:$0xff]  ;;  %v1778_v31 = vld [vmem:[#allocation4 + $0x988] sm:$0xff]  ;;  %v1599_v32 = vld [vmem:[#allocation4 + $0x3f0] sm:$0xff] }
  0x7e   : > { %1936 = vmatpush.msrb.mxu0 %v1650_v29  ;;  %1917 = vmatpush.msra.mxu3 %v1582_v35  ;;  %v1749_v50 = vld [vmem:[#allocation4 + $0x8a0] sm:$0xff]  ;;  %v1710_v35 = vld [vmem:[#allocation4 + $0x768] sm:$0xff] }
  0x7f   : > { %1879 = vmatpush.msrb.mxu1 %v1765_v34  ;;  %1901 = vmatpush.msrb.mxu2 %v1502_v36  ;;  %v1745_v54 = vld [vmem:[#allocation4 + $0x880] sm:$0xff] }
  0x80   : > { %1937 = vmatpush.msrb.mxu0 %v1646_v33  ;;  %1918 = vmatpush.msra.mxu3 %v1578_v39  ;;  %v1741_v58 = vld [vmem:[#allocation4 + $0x860] sm:$0xff]  ;;  %v1535_v39 = vld [vmem:[#allocation4 + $0x1f0] sm:$0xff] }
  0x81   : > { %1880 = vmatpush.msrb.mxu1 %v1761_v38  ;;  %1902 = vmatpush.msrb.mxu2 %v1498_v40  ;;  %v1737_v59 = vld [vmem:[#allocation4 + $0x840] sm:$0xff]  ;;  %v1774_v38 = vld [vmem:[#allocation4 + $0x968] sm:$0xff] }
  0x82   : > { %1938 = vmatpush.msrb.mxu0 %v1642_v37  ;;  %1919 = vmatpush.msra.mxu3 %v1574_v43  ;;  %v1733_v61 = vld [vmem:[#allocation4 + $0x820] sm:$0xff]  ;;  %v1706_v43 = vld [vmem:[#allocation4 + $0x748] sm:$0xff] }
  0x83   : > { %1881 = vmatpush.msrb.mxu1 %v1757_v42  ;;  %1903 = vmatpush.msrb.mxu2 %v1494_v44  ;;  %v1729_v1 = vld [vmem:[#allocation4 + $0x800] sm:$0xff]  ;;  %v1770_v44 = vld [vmem:[#allocation4 + $0x948] sm:$0xff] }
  0x84   : > { %1939 = vmatpush.msrb.mxu0 %v1638_v41  ;;  %1920 = vmatpush.msra.mxu3 %v1570_v47  ;;  %v1595_v41 = vld [vmem:[#allocation4 + $0x3d0] sm:$0xff] }
  0x85   : > { %1882 = vmatpush.msrb.mxu1 %v1753_v46  ;;  %1904 = vmatpush.msrb.mxu2 %v1490_v48  ;;  %v1591_v46 = vld [vmem:[#allocation4 + $0x3b0] sm:$0xff]  ;;  %v1702_v48 = vld [vmem:[#allocation4 + $0x728] sm:$0xff] }
  0x86   : > { %1940 = vmatpush.msrb.mxu0 %v1634_v45  ;;  %1921 = vmatpush.msra.mxu3 %v1566_v51  ;;  %v1531_v45 = vld [vmem:[#allocation4 + $0x1d0] sm:$0xff] }
  0x87   : > { %1883 = vmatpush.msrb.mxu1 %v1749_v50  ;;  %1905 = vmatpush.msrb.mxu2 %v1486_v52  ;;  %v1527_v50 = vld [vmem:[#allocation4 + $0x1b0] sm:$0xff]  ;;  %v1698_v52 = vld [vmem:[#allocation4 + $0x708] sm:$0xff] }
  0x88   : > { %1941 = vmatpush.msrb.mxu0 %v1630_v49  ;;  %1922 = vmatpush.msra.mxu3 %v1562_v55  ;;  %v1766_v49 = vld [vmem:[#allocation4 + $0x928] sm:$0xff]  ;;  %v1587_v51 = vld [vmem:[#allocation4 + $0x390] sm:$0xff] }
  0x89   : > { %1884 = vmatpush.msrb.mxu1 %v1745_v54  ;;  %1906 = vmatpush.msrb.mxu2 %v1482_v56  ;;  %v1523_v54 = vld [vmem:[#allocation4 + $0x190] sm:$0xff]  ;;  %v1694_v56 = vld [vmem:[#allocation4 + $0x6e8] sm:$0xff] }
  0x8a   : > { %1942 = vmatpush.msrb.mxu0 %v1626_v53  ;;  %1923 = vmatpush.msra.mxu3 %v1558_v63  ;;  %v1762_v53 = vld [vmem:[#allocation4 + $0x908] sm:$0xff]  ;;  %v1583_v55 = vld [vmem:[#allocation4 + $0x370] sm:$0xff] }
  0x8b   : > { %1885 = vmatpush.msrb.mxu1 %v1741_v58  ;;  %1907 = vmatpush.msrb.mxu2 %v1478_v62  ;;  %v1519_v58 = vld [vmem:[#allocation4 + $0x170] sm:$0xff]  ;;  %v1690_v62 = vld [vmem:[#allocation4 + $0x6c8] sm:$0xff] }
  0x8c   : > { %1943 = vmatpush.msrb.mxu0 %v1622_v57  ;;  %1924 = vmatpush.msra.mxu3 %v1554_v3  ;;  %v1758_v57 = vld [vmem:[#allocation4 + $0x8e8] sm:$0xff] }
  0x8d   : > { %1886 = vmatpush.msrb.mxu1 %v1737_v59  ;;  %1908 = vmatpush.msrb.mxu2 %v1474_v2 }
  0x8e   : > { %1944 = vmatpush.msrb.mxu0 %v1618_v0  ;;  %1925 = vmatpush.msra.mxu3 %v1550_v5  ;;  %v1754_v0 = vld [vmem:[#allocation4 + $0x8c8] sm:$0xff] }
  0x8f   : > { %1887 = vmatpush.msrb.mxu1 %v1733_v61  ;;  %v1579_v61 = vld [vmem:[#allocation4 + $0x350] sm:$0xff]  ;;  %v1686_v5 = vld [vmem:[#allocation4 + $0x6a8] sm:$0xff] }
  0x90   : > { %1945 = vmatpush.msrb.mxu0 %v1614_v4  ;;  %1926 = vmatpush.msra.mxu3 %v1546_v7  ;;  %v1575_v4 = vld [vmem:[#allocation4 + $0x330] sm:$0xff] }
  0x91   : > { %1888 = vmatpush.msrb.mxu1 %v1729_v1  ;;  %v1515_v1 = vld [vmem:[#allocation4 + $0x150] sm:$0xff] }
  0x92   : > { %1946 = vmatpush.msrb.mxu0 %v1610_v6  ;;  %1927 = vmatpush.msra.mxu3 %v1542_v9  ;;  %v1750_v6 = vld [vmem:[#allocation4 + $0x8a8] sm:$0xff]  ;;  %v1511_v7 = vld [vmem:[#allocation4 + $0x130] sm:$0xff] }
  0x93   : > { %v1682_v9 = vld [vmem:[#allocation4 + $0x688] sm:$0xff] }
  0x94   : > { %1947 = vmatpush.msrb.mxu0 %v1606_v8  ;;  %1928 = vmatpush.msra.mxu3 %v1538_v11  ;;  %v1571_v8 = vld [vmem:[#allocation4 + $0x310] sm:$0xff] }
  0x95   : > { %v1507_v11 = vld [vmem:[#allocation4 + $0x110] sm:$0xff] }
  0x96   : > { %1948 = vmatpush.msrb.mxu0 %v1602_v10  ;;  %v1746_v10 = vld [vmem:[#allocation4 + $0x888] sm:$0xff] }
  0xb8   : > { %v701_v13 = vpop.f32.mrf.mxu0 }
  0xb9   : > { %v7315_v15 = vmax.f32 %v701_v13, 0.0  ;;  %v721_v16 = vpop.f32.mrf.mxu1  ;;  %v1678_v13 = vld [vmem:[#allocation4 + $0x668] sm:$0xff] }
  0xba   : > { %v7317_v18 = vmax.f32 %v721_v16, 0.0  ;;  %v1742_v16 = vld [vmem:[#allocation4 + $0x868] sm:$0xff] }
  0xbb   : > { %1809 = vmatmul.f32.vlgmr.msra.gmra.mxu1 %v7315_v15 }
  0xbc   : > { %v7321_v21 = vrot.slane %v7317_v18, 4  ;;  %1829 = vmatmul.f32.vlgmr.msra.gmra.mxu2 %v7317_v18  ;;  %1953 = vmatpush.msra.mxu1 %v1726_v17 }
  0xbd   : > { %1973 = vmatpush.msra.mxu2 %v1790_v19 }
  0xbe   : > { %v7330_v25 = vsel %vm991_vm1, %v7315_v15, %v7321_v21  ;;  %1954 = vmatpush.msra.mxu1 %v1722_v20  ;;  %v1503_v20 = vld [vmem:[#allocation4 + $0xf0] sm:$0xff] }
  0xbf   : > { %996 = vst [vmem:[#allocation2 + $0x4] sm:$0xff] %v7330_v25  ;;  %1974 = vmatpush.msra.mxu2 %v1786_v22  ;;  %v761_v27 = vpop.f32.mrf.mxu3  ;;  %v1563_v22 = vld [vmem:[#allocation4 + $0x2d0] sm:$0xff] }
  0xc0   : > { %v7333_v29 = vmax.f32 %v761_v27, 0.0  ;;  %1955 = vmatpush.msra.mxu1 %v1718_v24  ;;  %v781_v30 = vpop.f32.mrf.mxu0  ;;  %v1674_v24 = vld [vmem:[#allocation4 + $0x648] sm:$0xff] }
  0xc1   : > { %1975 = vmatpush.msra.mxu2 %v1782_v26  ;;  %v741_v33 = vpop.f32.mrf.mxu1  ;;  %v7336_v34 = vmax.f32 %v781_v30, 0.0  ;;  %v1738_v30 = vld [vmem:[#allocation4 + $0x848] sm:$0xff] }
  0xc2   : > { %v7339_v36 = vrot.slane %v7333_v29, 4  ;;  %v7341_v37 = vmax.f32 %v741_v33, 0.0  ;;  %1869 = vmatmul.f32.vlgmr.msra.gmra.mxu0 %v7333_v29  ;;  %1956 = vmatpush.msra.mxu1 %v1714_v28  ;;  %v1559_v33 = vld [vmem:[#allocation4 + $0x2b0] sm:$0xff] }
  0xc3   : > { %v984_v40 = vsel %vm9758_vm2, %v7336_v34, 0.0  ;;  %1976 = vmatpush.msra.mxu2 %v1778_v31  ;;  %2013 = vmatpush.msra.mxu0 %v1599_v32  ;;  %v1499_v32 = vld [vmem:[#allocation4 + $0xd0] sm:$0xff]  ;;  %vm1265_vm2 = vcmask 1039360  }
  0xc4   : > { %v7350_v42 = vsel %vm991_vm1, %v7341_v37, %v7339_v36  ;;  %998 = vst [vmem:[#allocation2 + $0x14] sm:$0xf] %v984_v40  ;;  %1849 = vmatmul.f32.vlgmr.msrb.gmra.mxu3 %v7341_v37  ;;  %1957 = vmatpush.msra.mxu1 %v1710_v35  ;;  %v1670_v35 = vld [vmem:[#allocation4 + $0x628] sm:$0xff]  ;;  %v1555_v40 = vld [vmem:[#allocation4 + $0x290] sm:$0xff] }
  0xc5   : > { %997 = vst [vmem:[#allocation2 + $0xc] sm:$0xff] %v7350_v42  ;;  %1977 = vmatpush.msra.mxu2 %v1774_v38  ;;  %1993 = vmatpush.msrb.mxu3 %v1535_v39  ;;  %v1734_v38 = vld [vmem:[#allocation4 + $0x828] sm:$0xff]  ;;  %v1495_v39 = vld [vmem:[#allocation4 + $0xb0] sm:$0xff] }
  0xc6   : > { %v7354_v47 = vld [vmem:[#allocation2] sm:$0xff]  ;;  %2014 = vmatpush.msra.mxu0 %v1595_v41  ;;  %1909 = vmatmul.f32.vlgmr.msrb.gmra.mxu2 %v7315_v15  ;;  %v1666_v41 = vld [vmem:[#allocation4 + $0x608] sm:$0xff] }
  0xc7   : > { %1005 = vst [vmem:[#allocation1] ss:$2 sm:$0xff] %v7354_v47  ;;  %1958 = vmatpush.msra.mxu1 %v1706_v43  ;;  %1978 = vmatpush.msra.mxu2 %v1770_v44  ;;  %v1730_v43 = vld [vmem:[#allocation4 + $0x808] sm:$0xff] }
  0xc8   : > { %1994 = vmatpush.msrb.mxu3 %v1531_v45  ;;  %2015 = vmatpush.msra.mxu0 %v1591_v46  ;;  %v1491_v46 = vld [vmem:[#allocation4 + $0x90] sm:$0xff] }
  0xc9   : > { %1959 = vmatpush.msra.mxu1 %v1702_v48  ;;  %1979 = vmatpush.msra.mxu2 %v1766_v49  ;;  %v1551_v48 = vld [vmem:[#allocation4 + $0x270] sm:$0xff] }
  0xca   : > { %1995 = vmatpush.msrb.mxu3 %v1527_v50  ;;  %2016 = vmatpush.msra.mxu0 %v1587_v51  ;;  %v1663_v49 = vld [vmem:[#allocation4 + $0x5f0] sm:$0xff] }
  0xcb   : > { %1949 = vmatmul.f32.vlgmr.msrb.gmra.mxu0 %v7341_v37  ;;  %1960 = vmatpush.msra.mxu1 %v1698_v52  ;;  %v1727_v52 = vld [vmem:[#allocation4 + $0x7f0] sm:$0xff] }
  0xcc   : > { %v7359_v59 = vld [vmem:[#allocation2 + $0x8] sm:$0xff]  ;;  %1980 = vmatpush.msra.mxu2 %v1762_v53  ;;  %1996 = vmatpush.msrb.mxu3 %v1523_v54  ;;  %v7362_v63 = vld [vmem:[#allocation2 + $0x10] sm:$0xff] }
  0xcd   : > { %1007 = vst [vmem:[#allocation1 + $0x10] ss:$2 sm:$0xff] %v7359_v59  ;;  %2017 = vmatpush.msra.mxu0 %v1583_v55  ;;  %1929 = vmatmul.f32.vlgmr.msra.gmra.mxu3 %v7317_v18  ;;  %v1487_v53 = vld [vmem:[#allocation4 + $0x70] sm:$0xff] }
  0xce   : > { %v1010_v2 = vld.sshfl [vmem:[#allocation1] sm:$0xff pattern:$0x75316420]  ;;  %v1011_v3 = vld.sshfl [vmem:[#allocation1 + $0x8] sm:$0xff pattern:$0x75316420]  ;;  %1961 = vmatpush.msra.mxu1 %v1694_v56  ;;  %1981 = vmatpush.msra.mxu2 %v1758_v57 }
  0xcf   : > { %1056 = vst [vmem:[#allocation1 + $0x1] ss:$2 sm:$0xff] %v7354_v47  ;;  %1997 = vmatpush.msrb.mxu3 %v1519_v58  ;;  %2018 = vmatpush.msra.mxu0 %v1579_v61  ;;  %v1547_v54 = vld [vmem:[#allocation4 + $0x250] sm:$0xff] }
  0xd0   : > { %1009 = vst [vmem:[#allocation1 + $0x20] ss:$2 sm:$0xff] %v7362_v63  ;;  %1889 = vmatmul.f32.vlgmr.msrb.gmra.mxu1 %v7336_v34  ;;  %1982 = vmatpush.msra.mxu2 %v1754_v0  ;;  %v1659_v57 = vld [vmem:[#allocation4 + $0x5d0] sm:$0xff] }
  0xd1   : > { %1962 = vmatpush.msra.mxu1 %v1690_v62  ;;  %1998 = vmatpush.msrb.mxu3 %v1515_v1  ;;  %v1723_v58 = vld [vmem:[#allocation4 + $0x7d0] sm:$0xff] }
  0xd2   : > { %2019 = vmatpush.msra.mxu0 %v1575_v4  ;;  %1018 = vrot.lane.b32.xlu1 %v1011_v3, %s7104_s11  ;;  %v1543_v61 = vld [vmem:[#allocation4 + $0x230] sm:$0xff] }
  0xd3   : > { %1016 = vrot.lane.b32.xlu0 %v1010_v2, %s7104_s11  ;;  %1963 = vmatpush.msra.mxu1 %v1686_v5  ;;  %v1655_v62 = vld [vmem:[#allocation4 + $0x5b0] sm:$0xff] }
  0xd4   : > { %v1012_v17 = vld.sshfl [vmem:[#allocation1 + $0x10] sm:$0xff pattern:$0x75316420]  ;;  %v1013_v19 = vld.sshfl [vmem:[#allocation1 + $0x18] sm:$0xff pattern:$0x75316420]  ;;  %1983 = vmatpush.msra.mxu2 %v1750_v6  ;;  %1999 = vmatpush.msrb.mxu3 %v1511_v7 }
  0xd5   : > { %1058 = vst [vmem:[#allocation1 + $0x11] ss:$2 sm:$0xff] %v7359_v59  ;;  %2020 = vmatpush.msra.mxu0 %v1571_v8  ;;  %1964 = vmatpush.msra.mxu1 %v1682_v9  ;;  %v1719_v0 = vld [vmem:[#allocation4 + $0x7b0] sm:$0xff]  ;;  %v1536_v8 = vld [vmem:[#allocation4 + $0x1f8] sm:$0xff] }
  0xd6   : > { %v7371_v26 = vld.sshfl [vmem:[#allocation1] sm:$0xff pattern:$0x75316420]  ;;  %v7373_v27 = vld.sshfl [vmem:[#allocation1 + $0x8] sm:$0xff pattern:$0x75316420]  ;;  %1984 = vmatpush.msra.mxu2 %v1746_v10  ;;  %2000 = vmatpush.msrb.mxu3 %v1507_v11 }
  0xd7   : > { %1101 = vst [vmem:[#allocation1] ss:$2 sm:$0xff] %v7354_v47  ;;  %v1014_v28 = vld.sshfl [vmem:[#allocation1 + $0x20] sm:$0xff pattern:$0x75316420]  ;;  %2021 = vmatpush.msra.mxu0 %v1567_v12  ;;  %1965 = vmatpush.msra.mxu1 %v1678_v13 }
  0xd8   : > { %v7376_v31 = vld.sshfl [vmem:[#allocation1 + $0x28] sm:$0xff pattern:$0x75316420]  ;;  %1985 = vmatpush.msra.mxu2 %v1742_v16  ;;  %2001 = vmatpush.msrb.mxu3 %v1503_v20  ;;  %v1479_v3 = vld [vmem:[#allocation4 + $0x30] sm:$0xff] }
  0xd9   : > { %9807 = vst [vmem:[#allocation21_spill] sm:$0xff] %v7376_v31  ;;  %2022 = vmatpush.msra.mxu0 %v1563_v22  ;;  %1022 = vrot.lane.b32.xlu2 %v1013_v19, %s7104_s11  ;;  %v1539_v4 = vld [vmem:[#allocation4 + $0x210] sm:$0xff] }
  0xda   : > { %1060 = vst [vmem:[#allocation1 + $0x21] ss:$2 sm:$0xff] %v7362_v63  ;;  %1966 = vmatpush.msra.mxu1 %v1674_v24  ;;  %1986 = vmatpush.msra.mxu2 %v1738_v30  ;;  %v1651_v5 = vld [vmem:[#allocation4 + $0x590] sm:$0xff]  ;;  %v1528_v24 = vld [vmem:[#allocation4 + $0x1b8] sm:$0xff] }
  0xdb   : > { %2002 = vmatpush.msrb.mxu3 %v1499_v32  ;;  %2023 = vmatpush.msra.mxu0 %v1559_v33  ;;  %v1475_v9 = vld [vmem:[#allocation4 + $0x10] sm:$0xff] }
  0xdc   : > { %v7380_v44 = vld.sshfl [vmem:[#allocation1 + $0x10] sm:$0xff pattern:$0x75316420]  ;;  %v7382_v45 = vld.sshfl [vmem:[#allocation1 + $0x18] sm:$0xff pattern:$0x75316420]  ;;  %1020 = vrot.lane.b32.xlu1 %v1012_v17, %s7104_s11  ;;  %1024 = vrot.lane.b32.xlu0 %v1014_v28, %s7104_s11 }
  0xdd   : > { %1103 = vst [vmem:[#allocation1 + $0x10] ss:$2 sm:$0xff] %v7359_v59  ;;  %1967 = vmatpush.msra.mxu1 %v1670_v35  ;;  %1987 = vmatpush.msra.mxu2 %v1734_v38  ;;  %v1647_v12 = vld [vmem:[#allocation4 + $0x570] sm:$0xff]  ;;  %v1532_v17 = vld [vmem:[#allocation4 + $0x1d8] sm:$0xff] }
  0xde   : > { %v7387_v50 = vld.sshfl [vmem:[#allocation1] sm:$0xff pattern:$0x75316420]  ;;  %v7389_v51 = vld.sshfl [vmem:[#allocation1 + $0x8] sm:$0xff pattern:$0x75316420]  ;;  %2003 = vmatpush.msrb.mxu3 %v1495_v39  ;;  %2024 = vmatpush.msra.mxu0 %v1555_v40 }
  0xdf   : > { %1151 = vst [vmem:[#allocation1] ss:$2 sm:$0xff] %v7354_v47  ;;  %1968 = vmatpush.msra.mxu1 %v1666_v41  ;;  %1988 = vmatpush.msra.mxu2 %v1730_v43  ;;  %v1483_v47 = vld [vmem:[#allocation4 + $0x50] sm:$0xff]  ;;  %v1524_v38 = vld [vmem:[#allocation4 + $0x198] sm:$0xff] }
  0xe0   : > { %2004 = vmatpush.msrb.mxu3 %v1491_v46  ;;  %2025 = vmatpush.msra.mxu0 %v1551_v48  ;;  %v1711_v13 = vld [vmem:[#allocation4 + $0x770] sm:$0xff]  ;;  %v1520_v48 = vld [vmem:[#allocation4 + $0x178] sm:$0xff] }
  0xe1   : > { %v1065_v55 = vld.sshfl [vmem:[#allocation1 + $0x20] sm:$0xff pattern:$0x75316420]  ;;  %v7392_v56 = vld.sshfl [vmem:[#allocation1 + $0x28] sm:$0xff pattern:$0x75316420]  ;;  %1969 = vmatmul.f32.vlgmr.msra.gmra.mxu1 %v7333_v29  ;;  %1989 = vmatmul.f32.vlgmr.msra.gmra.mxu2 %v7336_v34 }
  0xe2   : > { %9808 = vst [vmem:[#allocation22_spill] sm:$0xff] %v7392_v56  ;;  %2033 = vmatpush.msrb.mxu1 %v1663_v49  ;;  %2053 = vmatpush.msrb.mxu2 %v1727_v52  ;;  %v1791_v16 = vld [vmem:[#allocation4 + $0x9f0] sm:$0xff] }
  0xe3   : > { %1105 = vst [vmem:[#allocation1 + $0x20] ss:$2 sm:$0xff] %v7362_v63  ;;  %2005 = vmatpush.msrb.mxu3 %v1487_v53  ;;  %2026 = vmatpush.msra.mxu0 %v1547_v54  ;;  %v1643_v19 = vld [vmem:[#allocation4 + $0x550] sm:$0xff]  ;;  %v1516_v53 = vld [vmem:[#allocation4 + $0x158] sm:$0xff] }
  0xe4   : > { %v7397_v1 = vld.sshfl [vmem:[#allocation1 + $0x10] sm:$0xff pattern:$0x75316420]  ;;  %v7399_v2 = vld.sshfl [vmem:[#allocation1 + $0x18] sm:$0xff pattern:$0x75316420]  ;;  %2034 = vmatpush.msrb.mxu1 %v1659_v57  ;;  %2054 = vmatpush.msrb.mxu2 %v1723_v58 }
  0xe5   : > { %1153 = vst [vmem:[#allocation1 + $0x10] ss:$2 sm:$0xff] %v7359_v59  ;;  %1075 = vrot.lane.b32.xlu2 %v1065_v55, %s7105_s24  ;;  %2006 = vmatpush.msrb.mxu3 %v1483_v47  ;;  %v1715_v59 = vld [vmem:[#allocation4 + $0x790] sm:$0xff] }
  0xe6   : > { %v7403_v6 = vld.sshfl [vmem:[#allocation1] sm:$0xff pattern:$0x75316420]  ;;  %v7405_v7 = vld.sshfl [vmem:[#allocation1 + $0x8] sm:$0xff pattern:$0x75316420]  ;;  %2027 = vmatpush.msra.mxu0 %v1543_v61  ;;  %2035 = vmatpush.msrb.mxu1 %v1655_v62 }
  0xe7   : > { %1216 = vst [vmem:[#allocation1] ss:$2 sm:$0xff] %v7330_v25  ;;  %2055 = vmatpush.msrb.mxu2 %v1719_v0  ;;  %1069 = vrot.lane.b32.xlu1 %v7373_v27, %s7105_s24  ;;  %v1707_v20 = vld [vmem:[#allocation4 + $0x750] sm:$0xff]  ;;  %v1512_v61 = vld [vmem:[#allocation4 + $0x138] sm:$0xff] }
  0xe8   : > { %1067 = vrot.lane.b32.xlu0 %v7371_v26, %s7105_s24  ;;  %2007 = vmatpush.msrb.mxu3 %v1479_v3  ;;  %v1787_v22 = vld [vmem:[#allocation4 + $0x9d0] sm:$0xff] }
  0xe9   : > { %2028 = vmatpush.msra.mxu0 %v1539_v4  ;;  %2036 = vmatpush.msrb.mxu1 %v1651_v5  ;;  %v1639_v28 = vld [vmem:[#allocation4 + $0x530] sm:$0xff] }
  0xea   : > { %v7410_v10 = vld.sshfl [vmem:[#allocation1 + $0x20] sm:$0xff pattern:$0x75316420]  ;;  %v7412_v11 = vld.sshfl [vmem:[#allocation1 + $0x28] sm:$0xff pattern:$0x75316420]  ;;  %2029 = vmatmul.f32.vlgmr.msra.gmra.mxu0 %v7317_v18  ;;  %2056 = vmatpush.msrb.mxu2 %v1715_v59 }
  0xeb   : > { %1155 = vst [vmem:[#allocation1 + $0x20] ss:$2 sm:$0xff] %v7362_v63  ;;  %2093 = vmatpush.msrb.mxu0 %v1536_v8  ;;  %2008 = vmatpush.msrb.mxu3 %v1475_v9  ;;  %v1212_v63 = vld [vmem:[#allocation2 + $0x14] sm:$0xf]  ;;  %v1508_v59 = vld [vmem:[#allocation4 + $0x118] sm:$0xff] }
  0xec   : > { %v7418_v27 = vld.sshfl [vmem:[#allocation1 + $0x10] sm:$0xff pattern:$0x75316420]  ;;  %v7420_v26 = vld.sshfl [vmem:[#allocation1 + $0x18] sm:$0xff pattern:$0x75316420]  ;;  %2009 = vmatmul.f32.vlgmr.msrb.gmra.mxu3 %v7315_v15  ;;  %2037 = vmatpush.msrb.mxu1 %v1647_v12 }
  0xed   : > { %1218 = vst [vmem:[#allocation1 + $0x10] ss:$2 sm:$0xff] %v7350_v42  ;;  %2057 = vmatpush.msrb.mxu2 %v1711_v13  ;;  %2073 = vmatpush.msra.mxu3 %v1791_v16  ;;  %v1703_v30 = vld [vmem:[#allocation4 + $0x730] sm:$0xff]  ;;  %v1504_v13 = vld [vmem:[#allocation4 + $0xf8] sm:$0xff] }
  0xee   : > { %v1221_v32 = vld.sshfl [vmem:[#allocation1] sm:$0xff pattern:$0x75316420]  ;;  %v1222_v33 = vld.sshfl [vmem:[#allocation1 + $0x8] sm:$0xff pattern:$0x75316420]  ;;  %2094 = vmatpush.msrb.mxu0 %v1532_v17  ;;  %2038 = vmatpush.msrb.mxu1 %v1643_v19 }
  0xef   : > { %1242 = vst [vmem:[#allocation1] ss:$2 sm:$0xff] %v7330_v25  ;;  %2058 = vmatpush.msrb.mxu2 %v1707_v20  ;;  %2074 = vmatpush.msra.mxu3 %v1787_v22  ;;  %v1783_v35 = vld [vmem:[#allocation4 + $0x9b0] sm:$0xff]  ;;  %v1500_v22 = vld [vmem:[#allocation4 + $0xd8] sm:$0xff] }
  0xf0   : > { %v1635_v39 = vld [vmem:[#allocation4 + $0x510] sm:$0xff]  ;;  %1231 = vst [vmem:[#allocation3 + $0x50] sm:$0xf] %v1221_v32  ;;  %2095 = vmatpush.msrb.mxu0 %v1528_v24  ;;  %1114 = vrot.lane.b32.xlu2 %v7389_v51, %s7106_s18  ;;  %v1496_v32 = vld [vmem:[#allocation4 + $0xb8] sm:$0xff] }
  0xf1   : > { %v1699_v41 = vld [vmem:[#allocation4 + $0x710] sm:$0xff]  ;;  %1232 = vst [vmem:[#allocation3 + $0x58] sm:$0xf] %v1222_v33  ;;  %2039 = vmatpush.msrb.mxu1 %v1639_v28  ;;  %2059 = vmatpush.msrb.mxu2 %v1703_v30 }
  0xf2   : > { %v7425_v40 = vld.sshfl [vmem:[#allocation1 + $0x20] sm:$0xff pattern:$0x75316420]  ;;  %v7429_v43 = vld.sshfl [vmem:[#allocation1 + $0x28] sm:$0xff pattern:$0x75316420]  ;;  %2075 = vmatpush.msra.mxu3 %v1783_v35  ;;  %2096 = vmatpush.msrb.mxu0 %v1524_v38 }
  0xf3   : > { %9809 = vst [vmem:[#allocation23_spill] sm:$0xff] %v7429_v43  ;;  %v1779_v46 = vld [vmem:[#allocation4 + $0x990] sm:$0xff]  ;;  %1073 = vrot.lane.b32.xlu1 %v7382_v45, %s7105_s24  ;;  %1071 = vrot.lane.b32.xlu0 %v7380_v44, %s7105_s24 }
  0xf4   : > { %1220 = vst [vmem:[#allocation1 + $0x20] ss:$2 sm:$0xff] %v1212_v63  ;;  %v1631_v49 = vld [vmem:[#allocation4 + $0x4f0] sm:$0xff]  ;;  %v1223_v55 = vld.sshfl [vmem:[#allocation1 + $0x10] sm:$0xff pattern:$0x75316420]  ;;  %2040 = vmatpush.msrb.mxu1 %v1635_v39  ;;  %2060 = vmatpush.msrb.mxu2 %v1699_v41 }
  0xf5   : > { %v1695_v52 = vld [vmem:[#allocation4 + $0x6f0] sm:$0xff]  ;;  %2076 = vmatpush.msra.mxu3 %v1779_v46  ;;  %2097 = vmatpush.msrb.mxu0 %v1520_v48  ;;  %1233 = vst [vmem:[#allocation3 + $0x60] sm:$0xf] %v1223_v55  ;;  %v1492_v41 = vld [vmem:[#allocation4 + $0x98] sm:$0xff] }
  0xf6   : > { %v1775_v51 = vld [vmem:[#allocation4 + $0x970] sm:$0xff]  ;;  %v7438_v45 = vld.sshfl [vmem:[#allocation1 + $0x8] sm:$0xff pattern:$0x75316420]  ;;  %2041 = vmatpush.msrb.mxu1 %v1631_v49  ;;  %2061 = vmatpush.msrb.mxu2 %v1695_v52 }
  0xf7   : > { %v1627_v54 = vld [vmem:[#allocation4 + $0x4d0] sm:$0xff]  ;;  %2077 = vmatpush.msra.mxu3 %v1775_v51  ;;  %2098 = vmatpush.msrb.mxu0 %v1516_v53  ;;  %v1488_v53 = vld [vmem:[#allocation4 + $0x78] sm:$0xff] }
  0xf8   : > { %v1224_v57 = vld.sshfl [vmem:[#allocation1 + $0x18] sm:$0xff pattern:$0x75316420]  ;;  %v7436_v62 = vld.sshfl [vmem:[#allocation1] sm:$0xff pattern:$0x75316420]  ;;  %2042 = vmatpush.msrb.mxu1 %v1627_v54  ;;  %1118 = vrot.lane.b32.xlu2 %v7399_v2, %s7106_s18 }
  0xf9   : > { %1244 = vst [vmem:[#allocation1 + $0x10] ss:$2 sm:$0xff] %v7350_v42  ;;  %v1691_v58 = vld [vmem:[#allocation4 + $0x6d0] sm:$0xff]  ;;  %2099 = vmatpush.msrb.mxu0 %v1512_v61  ;;  %v1596_v61 = vld [vmem:[#allocation4 + $0x3d8] sm:$0xff] }
  0xfa   : > { %v1771_v47 = vld [vmem:[#allocation4 + $0x950] sm:$0xff]  ;;  %1307 = vst [vmem:[#allocation1] ss:$2 sm:$0xff] %v7330_v25  ;;  %2062 = vmatpush.msrb.mxu2 %v1691_v58 }
  0xfb   : > { %v1623_v44 = vld [vmem:[#allocation4 + $0x4b0] sm:$0xff]  ;;  %1234 = vst [vmem:[#allocation3 + $0x68] sm:$0xf] %v1224_v57  ;;  %2078 = vmatpush.msra.mxu3 %v1771_v47  ;;  %2100 = vmatpush.msrb.mxu0 %v1508_v59  ;;  %v1664_v57 = vld [vmem:[#allocation4 + $0x5f8] sm:$0xff] }
  0xfc   : > { %v7441_v0 = vld [vmem:[#allocation2 + $0x14] sm:$0xff]  ;;  %2043 = vmatpush.msrb.mxu1 %v1623_v44  ;;  %1112 = vrot.lane.b32.xlu1 %v7387_v50, %s7106_s18  ;;  %v1484_v47 = vld [vmem:[#allocation4 + $0x58] sm:$0xff] }
  0xfd   : > { %v1687_v3 = vld [vmem:[#allocation4 + $0x6b0] sm:$0xff]  ;;  %1164 = vrot.lane.b32.xlu0 %v7405_v7, %s7107_s19  ;;  %2101 = vmatpush.msrb.mxu0 %v1504_v13  ;;  %v1660_v44 = vld [vmem:[#allocation4 + $0x5d8] sm:$0xff] }
  0xfe   : > { %v1767_v4 = vld [vmem:[#allocation4 + $0x930] sm:$0xff]  ;;  %2063 = vmatpush.msrb.mxu2 %v1687_v3  ;;  %v1588_v13 = vld [vmem:[#allocation4 + $0x398] sm:$0xff] }
  0xff   : > { %v1225_v5 = vld.sshfl [vmem:[#allocation1 + $0x20] sm:$0xff pattern:$0x75316420]  ;;  %2079 = vmatpush.msra.mxu3 %v1767_v4  ;;  %2102 = vmatpush.msrb.mxu0 %v1500_v22 }
 0x100   : > { %1246 = vst [vmem:[#allocation1 + $0x20] ss:$2 sm:$0xff] %v7441_v0  ;;  %v1619_v8 = vld [vmem:[#allocation4 + $0x490] sm:$0xff]  ;;  %v7446_v19 = vld.sshfl [vmem:[#allocation1 + $0x10] sm:$0xff pattern:$0x75316420]  ;;  %1162 = vrot.lane.b32.xlu2 %v7403_v6, %s7107_s19 }
 0x101   : > { %v1683_v9 = vld [vmem:[#allocation4 + $0x690] sm:$0xff]  ;;  %1235 = vst [vmem:[#allocation3 + $0x70] sm:$0xf] %v1225_v5  ;;  %2044 = vmatpush.msrb.mxu1 %v1619_v8  ;;  %v7457_v28 = vld.sshfl [vmem:[#allocation1 + $0x8] sm:$0xff pattern:$0x75316420]  ;;  %2103 = vmatpush.msrb.mxu0 %v1496_v32 }
 0x102   : > { %v1763_v12 = vld [vmem:[#allocation4 + $0x910] sm:$0xff]  ;;  %2064 = vmatpush.msrb.mxu2 %v1683_v9  ;;  %v1600_v6 = vld [vmem:[#allocation4 + $0x3f8] sm:$0xff] }
 0x103   : > { %v1615_v16 = vld [vmem:[#allocation4 + $0x470] sm:$0xff]  ;;  %2080 = vmatpush.msra.mxu3 %v1763_v12  ;;  %2104 = vmatpush.msrb.mxu0 %v1492_v41  ;;  %v1656_v5 = vld [vmem:[#allocation4 + $0x5b8] sm:$0xff] }
 0x104   : > { %v1679_v17 = vld [vmem:[#allocation4 + $0x670] sm:$0xff]  ;;  %2045 = vmatpush.msrb.mxu1 %v1615_v16  ;;  %1116 = vrot.lane.b32.xlu1 %v7397_v1, %s7106_s18  ;;  %v1480_v1 = vld [vmem:[#allocation4 + $0x38] sm:$0xff] }
 0x105   : > { %v7448_v20 = vld.sshfl [vmem:[#allocation1 + $0x18] sm:$0xff pattern:$0x75316420]  ;;  %v7455_v63 = vld.sshfl [vmem:[#allocation1] sm:$0xff pattern:$0x75316420]  ;;  %2065 = vmatpush.msrb.mxu2 %v1679_v17  ;;  %1168 = vrot.lane.b32.xlu0 %v7420_v26, %s7107_s19 }
 0x106   : > { %1309 = vst [vmem:[#allocation1 + $0x10] ss:$2 sm:$0xff] %v7350_v42  ;;  %v1759_v2 = vld [vmem:[#allocation4 + $0x8f0] sm:$0xff]  ;;  %2105 = vmatpush.msrb.mxu0 %v1488_v53  ;;  %v1592_v26 = vld [vmem:[#allocation4 + $0x3b8] sm:$0xff] }
 0x107   : > { %v1611_v24 = vld [vmem:[#allocation4 + $0x450] sm:$0xff]  ;;  %1358 = vst [vmem:[#allocation1 + $0x1] ss:$2 sm:$0xff] %v7330_v25  ;;  %2081 = vmatpush.msra.mxu3 %v1759_v2  ;;  %v7462_v38 = vld.sshfl [vmem:[#allocation1 + $0x28] sm:$0xff pattern:$0x75316420] }
 0x108   : > { %v1675_v50 = vld [vmem:[#allocation4 + $0x650] sm:$0xff]  ;;  %2046 = vmatpush.msrb.mxu1 %v1611_v24  ;;  %2106 = vmatpush.msrb.mxu0 %v1484_v47  ;;  %v1476_v12 = vld [vmem:[#allocation4 + $0x18] sm:$0xff] }
 0x109   : > { %v1755_v30 = vld [vmem:[#allocation4 + $0x8d0] sm:$0xff]  ;;  %2066 = vmatpush.msrb.mxu2 %v1675_v50  ;;  %1166 = vrot.lane.b32.xlu2 %v7418_v27, %s7107_s19  ;;  %v1652_v16 = vld [vmem:[#allocation4 + $0x598] sm:$0xff] }
 0x10a   : > { %v1607_v7 = vld [vmem:[#allocation4 + $0x430] sm:$0xff]  ;;  %2082 = vmatpush.msra.mxu3 %v1755_v30  ;;  %2107 = vmatpush.msrb.mxu0 %v1480_v1  ;;  %v1792_v17 = vld [vmem:[#allocation4 + $0x9f8] sm:$0xff] }
 0x10b   : > { %v1671_v33 = vld [vmem:[#allocation4 + $0x630] sm:$0xff]  ;;  %2047 = vmatpush.msrb.mxu1 %v1607_v7  ;;  %v1648_v27 = vld [vmem:[#allocation4 + $0x578] sm:$0xff] }
 0x10c   : > { %v7460_v35 = vld.sshfl [vmem:[#allocation1 + $0x20] sm:$0xff pattern:$0x75316420]  ;;  %2067 = vmatpush.msrb.mxu2 %v1671_v33  ;;  %2108 = vmatpush.msrb.mxu0 %v1476_v12 }
 0x10d   : > { %1311 = vst [vmem:[#allocation1 + $0x20] ss:$2 sm:$0xff] %v7441_v0  ;;  %v1751_v39 = vld [vmem:[#allocation4 + $0x8b0] sm:$0xff]  ;;  %v7467_v49 = vld.sshfl [vmem:[#allocation1 + $0x10] sm:$0xff pattern:$0x75316420]  ;;  %1120 = vrot.lane.b32.xlu1 %v7410_v10, %s7106_s18  ;;  %1170 = vrot.lane.b32.xlu0 %v7425_v40, %s7107_s19 }
 0x10e   : > { %v1603_v46 = vld [vmem:[#allocation4 + $0x410] sm:$0xff]  ;;  %2083 = vmatpush.msra.mxu3 %v1751_v39  ;;  %v7474_v55 = vld.sshfl [vmem:[#allocation1 + $0x8] sm:$0xff pattern:$0x75316420]  ;;  %2109 = vmatmul.f32.vlgmr.msrb.gmra.mxu0 %v7315_v15 }
 0x10f   : > { %v1667_v48 = vld [vmem:[#allocation4 + $0x610] sm:$0xff]  ;;  %2048 = vmatpush.msrb.mxu1 %v1603_v46  ;;  %v1728_v24 = vld [vmem:[#allocation4 + $0x7f8] sm:$0xff]  ;;  %2173 = vmatpush.msra.mxu0 %v1792_v17 }
 0x110   : > { %v7469_v52 = vld.sshfl [vmem:[#allocation1 + $0x18] sm:$0xff pattern:$0x75316420]  ;;  %v7472_v54 = vld.sshfl [vmem:[#allocation1] sm:$0xff pattern:$0x75316420]  ;;  %2068 = vmatpush.msrb.mxu2 %v1667_v48  ;;  %2049 = vmatmul.f32.vlgmr.msrb.gmra.mxu1 %v7341_v37 }
 0x111   : > { %1360 = vst [vmem:[#allocation1 + $0x11] ss:$2 sm:$0xff] %v7350_v42  ;;  %v1747_v51 = vld [vmem:[#allocation4 + $0x890] sm:$0xff]  ;;  %2069 = vmatmul.f32.vlgmr.msrb.gmra.mxu2 %v7333_v29  ;;  %2113 = vmatpush.msra.mxu1 %v1600_v6  ;;  %v1788_v30 = vld [vmem:[#allocation4 + $0x9d8] sm:$0xff] }
 0x112   : > { %1403 = vst [vmem:[#allocation1] ss:$2 sm:$0xff] %v7330_v25  ;;  %v1743_v58 = vld [vmem:[#allocation4 + $0x870] sm:$0xff]  ;;  %2084 = vmatpush.msra.mxu3 %v1747_v51  ;;  %2133 = vmatpush.msra.mxu2 %v1664_v57  ;;  %v1580_v10 = vld [vmem:[#allocation4 + $0x358] sm:$0xff] }
 0x113   : > { %v1739_v25 = vld [vmem:[#allocation4 + $0x850] sm:$0xff]  ;;  %2114 = vmatpush.msra.mxu1 %v1596_v61  ;;  %v1644_v32 = vld [vmem:[#allocation4 + $0x558] sm:$0xff]  ;;  %2174 = vmatpush.msra.mxu0 %v1788_v30 }
 0x114   : > { %v7481_v3 = vld.sshfl [vmem:[#allocation1 + $0x20] sm:$0xff pattern:$0x75316420]  ;;  %v7483_v4 = vld.sshfl [vmem:[#allocation1 + $0x28] sm:$0xff pattern:$0x75316420]  ;;  %2085 = vmatpush.msra.mxu3 %v1743_v58  ;;  %2134 = vmatpush.msra.mxu2 %v1660_v44 }
 0x115   : > { %1362 = vst [vmem:[#allocation1 + $0x21] ss:$2 sm:$0xff] %v7441_v0  ;;  %v1735_v59 = vld [vmem:[#allocation4 + $0x830] sm:$0xff]  ;;  %2115 = vmatpush.msra.mxu1 %v1592_v26  ;;  %v1724_v40 = vld [vmem:[#allocation4 + $0x7d8] sm:$0xff]  ;;  %1255 = vrot.lane.b32.xlu2 %v7438_v45, %s7108_s27 }
 0x116   : > { %2086 = vmatpush.msra.mxu3 %v1739_v25  ;;  %2135 = vmatpush.msra.mxu2 %v1656_v5  ;;  %v1731_v2 = vld [vmem:[#allocation4 + $0x810] sm:$0xff]  ;;  %v1784_v7 = vld [vmem:[#allocation4 + $0x9b8] sm:$0xff] }
 0x117   : > { %2116 = vmatpush.msra.mxu1 %v1588_v13  ;;  %v1576_v33 = vld [vmem:[#allocation4 + $0x338] sm:$0xff]  ;;  %2175 = vmatpush.msra.mxu0 %v1784_v7 }
 0x118   : > { %v7488_v8 = vld.sshfl [vmem:[#allocation1 + $0x10] sm:$0xff pattern:$0x75316420]  ;;  %v7490_v9 = vld.sshfl [vmem:[#allocation1 + $0x18] sm:$0xff pattern:$0x75316420]  ;;  %2087 = vmatpush.msra.mxu3 %v1735_v59  ;;  %2136 = vmatpush.msra.mxu2 %v1652_v16 }
 0x119   : > { %1405 = vst [vmem:[#allocation1 + $0x10] ss:$2 sm:$0xff] %v7350_v42  ;;  %v1584_v42 = vld [vmem:[#allocation4 + $0x378] sm:$0xff]  ;;  %1261 = vrot.lane.b32.xlu0 %v7460_v35, %s7108_s27  ;;  %1253 = vrot.lane.b32.xlu1 %v7436_v62, %s7108_s27  ;;  %v7515_v59 = vand.u32 65535, %v7313_v14 }
 0x11a   : > { %2088 = vmatpush.msra.mxu3 %v1731_v2  ;;  %2117 = vmatpush.msra.mxu1 %v1584_v42  ;;  %v1640_v39 = vld [vmem:[#allocation4 + $0x538] sm:$0xff]  ;;  %v7520_v2 = vshrl.u32 %v7313_v14, 16 }
 0x11b   : > { %2089 = vmatmul.f32.vlgmr.msra.gmra.mxu3 %v7336_v34  ;;  %2137 = vmatpush.msra.mxu2 %v1648_v27  ;;  %v1720_v41 = vld [vmem:[#allocation4 + $0x7b8] sm:$0xff] }
 0x11c   : > { %v7497_v22 = vld.sshfl [vmem:[#allocation1 + $0x28] sm:$0xff pattern:$0x75316420]  ;;  %v7502_v50 = vld.sshfl [vmem:[#allocation1 + $0x20] sm:$0xff pattern:$0x75316420]  ;;  %2153 = vmatpush.msrb.mxu3 %v1728_v24  ;;  %2118 = vmatpush.msra.mxu1 %v1580_v10 }
 0x11d   : > { %9810 = vst [vmem:[#allocation24_spill] sm:$0xff] %v7497_v22  ;;  %2138 = vmatpush.msra.mxu2 %v1644_v32  ;;  %v1780_v46 = vld [vmem:[#allocation4 + $0x998] sm:$0xff]  ;;  %1322 = vrot.lane.b32.xlu2 %v7467_v49, %s7109_s23  ;;  %v802_v49 = vmul.u32 43690, %v7515_v59  ;;  %v801_v10 = vmul.u32 43691, %v7515_v59 }
 0x11e   : > { %1407 = vst [vmem:[#allocation1 + $0x20] ss:$2 sm:$0xff] %v7441_v0  ;;  %2154 = vmatpush.msrb.mxu3 %v1724_v40  ;;  %2119 = vmatpush.msra.mxu1 %v1576_v33  ;;  %v1572_v0 = vld [vmem:[#allocation4 + $0x318] sm:$0xff] }
 0x11f   : > { %2139 = vmatpush.msra.mxu2 %v1640_v39  ;;  %v1636_v48 = vld [vmem:[#allocation4 + $0x518] sm:$0xff]  ;;  %2176 = vmatpush.msra.mxu0 %v1780_v46  ;;  %v805_v32 = vshll.u32 %v802_v49, 16 }
 0x120   : > { %2155 = vmatpush.msrb.mxu3 %v1720_v41  ;;  %v1716_v51 = vld [vmem:[#allocation4 + $0x798] sm:$0xff]  ;;  %2120 = vmatpush.msra.mxu1 %v1572_v0  ;;  %v9759_v0 = vmov 0  }
 0x121   : > { %v1776_v53 = vld [vmem:[#allocation4 + $0x978] sm:$0xff]  ;;  %2140 = vmatpush.msra.mxu2 %v1636_v48  ;;  %1257 = vrot.lane.b32.xlu1 %v7446_v19, %s7108_s27  ;;  %v803_v19 = vmul.u32 43691, %v7520_v2  ;;  %vm809_vm3 = vc.u32 %v801_v10, %v805_v32 }
 0x122   : > { %v1568_v6 = vld [vmem:[#allocation4 + $0x2f8] sm:$0xff]  ;;  %2156 = vmatpush.msrb.mxu3 %v1716_v51  ;;  %2177 = vmatpush.msra.mxu0 %v1776_v53  ;;  %v810_v48 = vsel %vm809_vm3, 1, %v9759_v0  ;;  %v811_v51 = vadd.s32 %v805_v32, %v801_v10  ;;  %v7530_v53 = vadd.s32 128, %v7313_v14 }
 0x123   : > { %v1632_v57 = vld [vmem:[#allocation4 + $0x4f8] sm:$0xff]  ;;  %2121 = vmatpush.msra.mxu1 %v1568_v6  ;;  %1318 = vrot.lane.b32.xlu0 %v7455_v63, %s7109_s23  ;;  %v804_v63 = vmul.u32 43690, %v7520_v2  ;;  %v807_v39 = vshll.u32 %v803_v19, 16  ;;  %v7533_v6 = vadd.s32 256, %v7313_v14 }
 0x124   : > { %v1712_v58 = vld [vmem:[#allocation4 + $0x778] sm:$0xff]  ;;  %2141 = vmatpush.msra.mxu2 %v1632_v57 }
 0x125   : > { %v1772_v45 = vld [vmem:[#allocation4 + $0x958] sm:$0xff]  ;;  %2157 = vmatpush.msrb.mxu3 %v1712_v58  ;;  %1324 = vrot.lane.b32.xlu2 %v7469_v52, %s7109_s23  ;;  %vm813_vm4 = vc.u32 %v811_v51, %v807_v39  ;;  %v7551_v52 = vshrl.u32 %v7533_v6, 16 }
 0x126   : > { %v1564_v47 = vld [vmem:[#allocation4 + $0x2d8] sm:$0xff]  ;;  %2178 = vmatpush.msra.mxu0 %v1772_v45  ;;  %v812_v45 = vadd.s32 %v810_v48, %v804_v63 }
 0x127   : > { %v1628_v61 = vld [vmem:[#allocation4 + $0x4d8] sm:$0xff]  ;;  %2122 = vmatpush.msra.mxu1 %v1564_v47  ;;  %v7538_v47 = vand.u32 65535, %v7530_v53 }
 0x128   : > { %v1708_v44 = vld [vmem:[#allocation4 + $0x758] sm:$0xff]  ;;  %2142 = vmatpush.msra.mxu2 %v1628_v61  ;;  %v7541_v61 = vand.u32 65535, %v7533_v6 }
 0x129   : > { %v1768_v25 = vld [vmem:[#allocation4 + $0x938] sm:$0xff]  ;;  %2158 = vmatpush.msrb.mxu3 %v1708_v44  ;;  %v7544_v44 = vadd.s32 384, %v7313_v14  ;;  %1259 = vrot.lane.b32.xlu1 %v7448_v20, %s7108_s27 }
 0x12a   : > { %v1560_v35 = vld [vmem:[#allocation4 + $0x2b8] sm:$0xff]  ;;  %2179 = vmatpush.msra.mxu0 %v1768_v25 }
 0x12b   : > { %v1624_v62 = vld [vmem:[#allocation4 + $0x4b8] sm:$0xff]  ;;  %2123 = vmatpush.msra.mxu1 %v1560_v35  ;;  %1369 = vrot.lane.b32.xlu0 %v7472_v54, %s7111_s25  ;;  %v7566_v63 = vand.u32 65535, %v7544_v44 }
 0x12c   : > { %v1704_v1 = vld [vmem:[#allocation4 + $0x738] sm:$0xff]  ;;  %2143 = vmatpush.msra.mxu2 %v1624_v62  ;;  %v806_v62 = vshrl.u32 %v802_v49, 16  ;;  %v808_v49 = vshrl.u32 %v803_v19, 16 }
 0x12d   : > { %v1764_v26 = vld [vmem:[#allocation4 + $0x918] sm:$0xff]  ;;  %2159 = vmatpush.msrb.mxu3 %v1704_v1  ;;  %v814_v1 = vsel %vm813_vm4, 1, %v9759_v0  ;;  %1377 = vrot.lane.b32.xlu2 %v7502_v50, %s7111_s25  ;;  %v889_v50 = vmul.u32 43690, %v7566_v63 }
 0x12e   : > { %v1556_v5 = vld [vmem:[#allocation4 + $0x298] sm:$0xff]  ;;  %2180 = vmatpush.msra.mxu0 %v1764_v26  ;;  %v7548_v26 = vshrl.u32 %v7530_v53, 16 }
 0x12f   : > { %v1620_v12 = vld [vmem:[#allocation4 + $0x498] sm:$0xff]  ;;  %2124 = vmatpush.msra.mxu1 %v1556_v5 }
 0x130   : > { %v1700_v13 = vld [vmem:[#allocation4 + $0x718] sm:$0xff]  ;;  %2144 = vmatpush.msra.mxu2 %v1620_v12  ;;  %v833_v54 = vmul.u32 43690, %v7548_v26 }
 0x131   : > { %v1760_v16 = vld [vmem:[#allocation4 + $0x8f8] sm:$0xff]  ;;  %2160 = vmatpush.msrb.mxu3 %v1700_v13  ;;  %v816_v13 = vadd.s32 %v814_v1, %v812_v45  ;;  %v7574_v45 = vshrl.u32 %v7544_v44, 16  ;;  %1320 = vrot.lane.b32.xlu1 %v7457_v28, %s7109_s23 }
 0x132   : > { %v1552_v17 = vld [vmem:[#allocation4 + $0x278] sm:$0xff]  ;;  %2181 = vmatpush.msra.mxu0 %v1760_v16  ;;  %v831_v16 = vmul.u32 43690, %v7538_v47 }
 0x133   : > { %v1616_v42 = vld [vmem:[#allocation4 + $0x478] sm:$0xff]  ;;  %2125 = vmatpush.msra.mxu1 %v1552_v17  ;;  %v860_v17 = vmul.u32 43690, %v7541_v61  ;;  %v817_v32 = vadd.s32 %v816_v13, %v806_v62  ;;  %1373 = vrot.lane.b32.xlu0 %v7488_v8, %s7111_s25 }
 0x134   : > { %v1696_v27 = vld [vmem:[#allocation4 + $0x6f8] sm:$0xff]  ;;  %2145 = vmatpush.msra.mxu2 %v1616_v42  ;;  %v830_v42 = vmul.u32 43691, %v7538_v47 }
 0x135   : > { %v1756_v24 = vld [vmem:[#allocation4 + $0x8d8] sm:$0xff]  ;;  %2161 = vmatpush.msrb.mxu3 %v1696_v27  ;;  %v832_v27 = vmul.u32 43691, %v7548_v26  ;;  %v863_v20 = vshll.u32 %v860_v17, 16 }
 0x136   : > { %v1548_v30 = vld [vmem:[#allocation4 + $0x258] sm:$0xff]  ;;  %2182 = vmatpush.msra.mxu0 %v1756_v24  ;;  %v859_v24 = vmul.u32 43691, %v7541_v61 }
 0x137   : > { %v1612_v40 = vld [vmem:[#allocation4 + $0x458] sm:$0xff]  ;;  %2126 = vmatpush.msra.mxu1 %v1548_v30  ;;  %v836_v19 = vshll.u32 %v832_v27, 16 }
 0x138   : > { %v1692_v7 = vld [vmem:[#allocation4 + $0x6d8] sm:$0xff]  ;;  %2146 = vmatpush.msra.mxu2 %v1612_v40  ;;  %v834_v40 = vshll.u32 %v831_v16, 16  ;;  %vm867_vm6 = vc.u32 %v859_v24, %v863_v20 }
 0x139   : > { %v1752_v33 = vld [vmem:[#allocation4 + $0x8b8] sm:$0xff]  ;;  %2162 = vmatpush.msrb.mxu3 %v1692_v7  ;;  %v861_v7 = vmul.u32 43691, %v7551_v52  ;;  %1326 = vrot.lane.b32.xlu1 %v7481_v3, %s7109_s23 }
 0x13a   : > { %v1544_v41 = vld [vmem:[#allocation4 + $0x238] sm:$0xff]  ;;  %2183 = vmatpush.msra.mxu0 %v1752_v33  ;;  %v862_v33 = vmul.u32 43690, %v7551_v52  ;;  %vm838_vm5 = vc.u32 %v830_v42, %v834_v40  ;;  %v840_v48 = vadd.s32 %v834_v40, %v830_v42  ;;  %v888_v42 = vmul.u32 43691, %v7566_v63 }
 0x13b   : > { %v1608_v46 = vld [vmem:[#allocation4 + $0x438] sm:$0xff]  ;;  %2127 = vmatpush.msra.mxu1 %v1544_v41  ;;  %v865_v51 = vshll.u32 %v861_v7, 16  ;;  %v837_v40 = vshrl.u32 %v832_v27, 16  ;;  %v892_v27 = vshll.u32 %v889_v50, 16 }
 0x13c   : > { %v1688_v57 = vld [vmem:[#allocation4 + $0x6b8] sm:$0xff]  ;;  %2147 = vmatpush.msra.mxu2 %v1608_v46  ;;  %v7570_v46 = vadd.s32 %v817_v32, %v808_v49  ;;  %vm842_vm7 = vc.u32 %v840_v48, %v836_v19  ;;  %v7583_v32 = vpop.permute.xlu2 %1022 }
 0x13d   : > { %v1748_v58 = vld [vmem:[#allocation4 + $0x898] sm:$0xff]  ;;  %2163 = vmatpush.msrb.mxu3 %v1688_v57  ;;  %v839_v57 = vsel %vm838_vm5, 1, %v9759_v0  ;;  %v843_v13 = vsel %vm842_vm7, 1, %v9759_v0  ;;  %vm896_vm9 = vc.u32 %v888_v42, %v892_v27  ;;  %v898_v28 = vadd.s32 %v892_v27, %v888_v42 }
 0x13e   : > { %v1540_v25 = vld [vmem:[#allocation4 + $0x218] sm:$0xff]  ;;  %2184 = vmatpush.msra.mxu0 %v1748_v58  ;;  %v869_v58 = vadd.s32 %v863_v20, %v859_v24  ;;  %v819_v62 = vshrl.u32 %v7570_v46, 4  ;;  %v841_v1 = vadd.s32 %v839_v57, %v833_v54  ;;  %v864_v20 = vshrl.u32 %v860_v17, 16 }
 0x13f   : > { %v1604_v35 = vld [vmem:[#allocation4 + $0x418] sm:$0xff]  ;;  %2128 = vmatpush.msra.mxu1 %v1540_v25  ;;  %v891_v17 = vmul.u32 43690, %v7574_v45 }
 0x140   : > { %v1684_v5 = vld [vmem:[#allocation4 + $0x698] sm:$0xff]  ;;  %2148 = vmatpush.msra.mxu2 %v1604_v35  ;;  %2129 = vmatmul.f32.vlgmr.msra.gmra.mxu1 %v7317_v18  ;;  %vm871_vm8 = vc.u32 %v869_v58, %v865_v51 }
 0x141   : > { %v1744_v12 = vld [vmem:[#allocation4 + $0x878] sm:$0xff]  ;;  %2164 = vmatpush.msrb.mxu3 %v1684_v5  ;;  %2149 = vmatmul.f32.vlgmr.msra.gmra.mxu2 %v7341_v37  ;;  %v868_v5 = vsel %vm867_vm6, 1, %v9759_v0  ;;  %v872_v54 = vsel %vm871_vm8, 1, %v9759_v0 }
 0x142   : > { %v1680_v30 = vld [vmem:[#allocation4 + $0x678] sm:$0xff]  ;;  %2185 = vmatpush.msra.mxu0 %v1744_v12  ;;  %v835_v12 = vshrl.u32 %v831_v16, 16  ;;  %v870_v49 = vadd.s32 %v868_v5, %v862_v33  ;;  %v890_v16 = vmul.u32 43691, %v7574_v45  ;;  %1371 = vrot.lane.b32.xlu1 %v7474_v55, %s7111_s25 }
 0x143   : > { %v1740_v10 = vld [vmem:[#allocation4 + $0x858] sm:$0xff]  ;;  %2165 = vmatpush.msrb.mxu3 %v1680_v30  ;;  %v820_v30 = vmul.u32 24, %v819_v62 }
 0x144   : > { %v1676_v39 = vld [vmem:[#allocation4 + $0x658] sm:$0xff]  ;;  %2186 = vmatpush.msra.mxu0 %v1740_v10  ;;  %v845_v10 = vadd.s32 %v843_v13, %v841_v1  ;;  %v894_v48 = vshll.u32 %v890_v16, 16 }
 0x145   : > { %v1736_v41 = vld [vmem:[#allocation4 + $0x838] sm:$0xff]  ;;  %2166 = vmatpush.msrb.mxu3 %v1676_v39  ;;  %v821_v19 = vsub.s32 %v7313_v14, %v820_v30  ;;  %v874_v39 = vadd.s32 %v872_v54, %v870_v49  ;;  %v895_v49 = vshrl.u32 %v890_v16, 16  ;;  %v1019_v16 = vpop.permute.xlu1 %1018  ;;  %v1017_v3 = vpop.permute.xlu0 %1016 }
 0x146   : > { %v1672_v25 = vld [vmem:[#allocation4 + $0x638] sm:$0xff]  ;;  %2187 = vmatpush.msra.mxu0 %v1736_v41  ;;  %v846_v33 = vadd.s32 %v845_v10, %v835_v12  ;;  %v866_v41 = vshrl.u32 %v861_v7, 16  ;;  %v897_v7 = vsel %vm896_vm9, 1, %v9759_v0  ;;  %vm900_vm12 = vc.u32 %v898_v28, %v894_v48  ;;  %v7605_v10 = vpop.permute.xlu2 %1075 }
 0x147   : > { %v1732_v35 = vld [vmem:[#allocation4 + $0x818] sm:$0xff]  ;;  %2167 = vmatpush.msrb.mxu3 %v1672_v25  ;;  %v875_v58 = vadd.s32 %v874_v39, %v864_v20  ;;  %vm940_vm10 = vcmp.ne.s32.totalorder %v821_v19, 0  ;;  %vm945_vm11 = vcmp.lt.s32.totalorder %v821_v19, 0  ;;  %v899_v62 = vadd.s32 %v897_v7, %v891_v17  ;;  %9811 = vst [vmem:[#allocation25_spill] sm:$0xff] %v7605_v10 }
 0x148   : > { %v1668_v24 = vld [vmem:[#allocation4 + $0x618] sm:$0xff]  ;;  %2188 = vmatpush.msra.mxu0 %v1732_v35  ;;  %v7595_v51 = vadd.s32 %v846_v33, %v837_v40  ;;  %v893_v35 = vshrl.u32 %v889_v50, 16  ;;  %v955_v1 = vadd.s32 24, %v821_v19  ;;  %v901_v12 = vsel %vm900_vm12, 1, %v9759_v0  ;;  %vm950_vm13 = vmand %vm945_vm11, %vm940_vm10 }
 0x149   : > { %2189 = vmatmul.f32.vlgmr.msra.gmra.mxu0 %v7336_v34  ;;  %2168 = vmatpush.msrb.mxu3 %v1668_v24  ;;  %v1408_v57 = vld.sshfl [vmem:[#allocation1] sm:$0xff pattern:$0x75316420]  ;;  %v876_v25 = vadd.s32 %v875_v58, %v866_v41  ;;  %v903_v42 = vadd.s32 %v901_v12, %v899_v62  ;;  %v1409_v24 = vld.sshfl [vmem:[#allocation1 + $0x8] sm:$0xff pattern:$0x75316420]  ;;  %v1029_v41 = vsel %vm9781_vm14, %v1017_v3, %v1019_v16 }
 0x14a   : > { %2169 = vmatmul.f32.vlgmr.msrb.gmra.mxu3 %v7333_v29  ;;  %1414 = vrot.lane.b32.xlu2 %v1408_v57, %s7112_s21  ;;  %v848_v8 = vshrl.u32 %v7595_v51, 4  ;;  %v7607_v20 = vsel %vm950_vm13, %v955_v1, %v821_v19  ;;  %v1410_v19 = vld.sshfl [vmem:[#allocation1 + $0x10] sm:$0xff pattern:$0x75316420] }
 0x14b   : > { %v877_v13 = vshrl.u32 %v876_v25, 4  ;;  %1416 = vrot.lane.b32.xlu0 %v1409_v24, %s7112_s21  ;;  %v904_v40 = vadd.s32 %v903_v42, %v893_v35  ;;  %9812 = vst [vmem:[#allocation26_spill] sm:$0xff] %v7607_v20  ;;  %vm9777_vm4 = vcmp.ge.s32.totalorder %v7607_v20, 1  ;;  %v1411_v1 = vld.sshfl [vmem:[#allocation1 + $0x18] sm:$0xff pattern:$0x75316420]  ;;  %1375 = vrot.lane.b32.xlu1 %v7490_v9, %s7111_s25  ;;  %v1850_v42 = vpop.f32.mrf.mxu3 }
 0x14c   : > { %v849_v5 = vmul.u32 24, %v848_v8  ;;  %v1039_v48 = vsel %vm9777_vm4, %v1029_v41, 0.0 }
 0x14d   : > { %v878_v50 = vmul.u32 24, %v877_v13  ;;  %v905_v33 = vadd.s32 %v904_v40, %v895_v49  ;;  %1044 = vst [vmem:[#allocation3] sm:$0xf] %v1039_v48  ;;  %v1810_v49 = vpop.f32.mrf.mxu1 }
 0x14e   : > { %v850_v30 = vsub.s32 %v7530_v53, %v849_v5  ;;  %v7618_v28 = vpop.permute.xlu2 %1114  ;;  %v1021_v35 = vpop.permute.xlu1 %1020 }
 0x14f   : > { %v879_v54 = vsub.s32 %v7533_v6, %v878_v50  ;;  %v906_v39 = vshrl.u32 %v905_v33, 4  ;;  %v7629_v62 = vpop.permute.xlu0 %1024  ;;  %v1030_v5 = vsel %vm9781_vm14, %v1019_v16, %v1021_v35  ;;  %v1031_v12 = vsel %vm9781_vm14, %v1021_v35, %v7583_v32  ;;  %v1830_v50 = vpop.f32.mrf.mxu2 }
 0x150   : > { %vm941_vm15 = vcmp.ne.s32.totalorder %v850_v30, 0  ;;  %vm946_vm3 = vcmp.lt.s32.totalorder %v850_v30, 0  ;;  %v956_v17 = vadd.s32 24, %v850_v30  ;;  %9813 = vst [vmem:[#allocation27_spill] sm:$0xff] %v7629_v62  ;;  %v1032_v13 = vsel %vm9781_vm14, %v7583_v32, %v7629_v62  ;;  %v1870_v32 = vpop.f32.mrf.mxu0 }
 0x151   : > { %vm942_vm5 = vcmp.ne.s32.totalorder %v879_v54, 0  ;;  %vm947_vm6 = vcmp.lt.s32.totalorder %v879_v54, 0  ;;  %vm951_vm7 = vmand %vm946_vm3, %vm941_vm15  ;;  %v957_v27 = vadd.s32 24, %v879_v54  ;;  %v907_v57 = vmul.u32 24, %v906_v39 }
 0x152   : > { %vm952_vm8 = vmand %vm947_vm6, %vm942_vm5  ;;  %v7620_v8 = vsel %vm951_vm7, %v956_v17, %v850_v30  ;;  %vm9786_vm3 = vcmask 195584   ;;  %vm9784_vm5 = vcmask 187392   ;;  %vm9776_vm6 = vcmp.lt.s32.totalorder %v7607_v20, 23 }
 0x153   : > { %1418 = vrot.lane.b32.xlu0 %v1410_v19, %s7112_s21  ;;  %v908_v58 = vsub.s32 %v7544_v44, %v907_v57  ;;  %v7622_v7 = vsel %vm952_vm8, %v957_v27, %v879_v54  ;;  %vm9769_vm12 = vcmp.ge.s32.totalorder %v7620_v8, 1  ;;  %v1412_v54 = vld.sshfl [vmem:[#allocation1 + $0x20] sm:$0xff pattern:$0x75316420]  ;;  %v1930_v3 = vpop.f32.mrf.mxu3  ;;  %v1831_v27 = vadd.f32 %v1830_v50, %v1810_v49 }
 0x154   : > { %vm9763_vm13 = vcmp.ge.s32.totalorder %v7622_v7, 1  ;;  %v1040_v24 = vsel %vm9769_vm12, %v1030_v5, 0.0  ;;  %vm1174_vm7 = vcmask 7168   ;;  %vm9779_vm8 = vcmp.lt.s32.totalorder %v7620_v8, 23 }
 0x155   : > { %vm943_vm9 = vcmp.ne.s32.totalorder %v908_v58, 0  ;;  %vm948_vm10 = vcmp.lt.s32.totalorder %v908_v58, 0  ;;  %v958_v25 = vadd.s32 24, %v908_v58  ;;  %v1041_v30 = vsel %vm9763_vm13, %v1031_v12, 0.0  ;;  %1045 = vst [vmem:[#allocation3 + $0x8] sm:$0xf] %v1040_v24  ;;  %v1890_v33 = vpop.f32.mrf.mxu1 }
 0x156   : > { %vm953_vm11 = vmand %vm948_vm10, %vm943_vm9  ;;  %1046 = vst [vmem:[#allocation3 + $0x10] sm:$0xf] %v1041_v30  ;;  %v7646_v40 = vpop.permute.xlu2 %1118  ;;  %v1851_v57 = vadd.f32 %v1850_v42, %v1831_v27  ;;  %vm9780_vm9 = vcmp.lt.s32.totalorder %v7622_v7, 23 }
 0x157   : > { %v7626_v55 = vsel %vm953_vm11, %v958_v25, %v908_v58  ;;  %v1910_v17 = vpop.f32.mrf.mxu2  ;;  %vm9785_vm11 = vcmask 859136  }
 0x158   : > { %vm9775_vm15 = vcmp.ge.s32.totalorder %v7626_v55, 1  ;;  %v1931_v19 = vadd.f32 %v1930_v3, %v1910_v17  ;;  %v1950_v58 = vpop.f32.mrf.mxu0  ;;  %vm9778_vm10 = vcmp.lt.s32.totalorder %v7626_v55, 23 }
 0x159   : > { %v1042_v9 = vsel %vm9775_vm15, %v1032_v13, 0.0  ;;  %v1070_v16 = vpop.permute.xlu1 %1069 }
 0x15a   : > { %1047 = vst [vmem:[#allocation3 + $0x18] sm:$0xf] %v1042_v9  ;;  %v1068_v39 = vpop.permute.xlu0 %1067  ;;  %v1951_v35 = vadd.f32 %v1950_v58, %v1931_v19 }
 0x15b   : > { %1420 = vrot.lane.b32.xlu0 %v1411_v1, %s7112_s21  ;;  %v1080_v41 = vsel %vm9786_vm3, %v1068_v39, %v1070_v16  ;;  %v1871_v1 = vadd.f32 %v1870_v32, %v1851_v57 }
 0x15c   : > { %1090 = vst [vmem:[#allocation3] sm:$0xf0] %v1080_v41 }
 0x15d   : > { %v1891_v49 = vadd.f32 %v1890_v33, %v1871_v1 }
 0x15e   : > { %v1163_v48 = vpop.permute.xlu2 %1162  ;;  %v1970_v25 = vpop.f32.mrf.mxu1 }
 0x15f   : > { %v1971_v5 = vadd.f32 %v1970_v25, %v1951_v35 }
 0x163   : > { %1422 = vrot.lane.b32.xlu0 %v1412_v54, %s7112_s21 }
 0x164   : > { %v1990_v12 = vpop.f32.mrf.mxu2 }
 0x165   : > { %v1074_v13 = vpop.permute.xlu1 %1073  ;;  %v1072_v24 = vpop.permute.xlu0 %1071  ;;  %v1991_v30 = vadd.f32 %v1990_v12, %v1971_v5 }
 0x166   : > { %v1083_v9 = vsel %vm9786_vm3, %v1074_v13, %v7605_v10  ;;  %v1081_v54 = vsel %vm9786_vm3, %v1070_v16, %v1072_v24  ;;  %v1082_v39 = vsel %vm9786_vm3, %v1072_v24, %v1074_v13  ;;  %v1167_v42 = vpop.permute.xlu2 %1166 }
 0x167   : > { %1093 = vst [vmem:[#allocation3 + $0x18] sm:$0xf0] %v1083_v9  ;;  %v2197_v50 = vrot.slane %v1991_v30, 4 }
 0x168   : > { %1091 = vst [vmem:[#allocation3 + $0x8] sm:$0xf0] %v1081_v54 }
 0x169   : > { %1092 = vst [vmem:[#allocation3 + $0x10] sm:$0xf0] %v1082_v39  ;;  %v7655_v32 = vsel %vm991_vm1, %v1891_v49, %v2197_v50 }
 0x16a   : > { %2203 = vst [vmem:[#allocation2 + $0x4] sm:$0xff] %v7655_v32 }
 0x16e   : > { %v1113_v3 = vpop.permute.xlu1 %1112 }
 0x16f   : > { %v1125_v16 = vsel %vm9784_vm5, %v1113_v3, %v7618_v28  ;;  %v1165_v41 = vpop.permute.xlu0 %1164  ;;  %v1256_v25 = vpop.permute.xlu2 %1255 }
 0x170   : > { %v1135_v33 = vsel %vm9776_vm6, %v1125_v16, 0.0  ;;  %v1175_v17 = vsel %vm1174_vm7, %v1163_v48, %v1165_v41  ;;  %v1176_v27 = vsel %vm1174_vm7, %v1165_v41, %v1167_v42 }
 0x171   : > { %v2353_v19 = vld [vmem:[#allocation2] sm:$0xff]  ;;  %1140 = vst [vmem:[#allocation3 + $0x28] sm:$0xf] %v1135_v33  ;;  %v1185_v57 = vsel %vm9777_vm4, %v1175_v17, 0.0  ;;  %v1186_v58 = vsel %vm9769_vm12, %v1176_v27, 0.0 }
 0x172   : > { %2357 = vst [vmem:[#allocation1] ss:$2 sm:$0xff] %v2353_v19  ;;  %v1195_v35 = vrot.slane %v1185_v57, 4  ;;  %v1196_v1 = vrot.slane %v1186_v58, 4 }
 0x174   : > { %1205 = vst [vmem:[#allocation3 + $0x28] sm:$0xf0] %v1195_v35 }
 0x175   : > { %1206 = vst [vmem:[#allocation3 + $0x30] sm:$0xf0] %v1196_v1 }
 0x176   : > { %v1117_v48 = vpop.permute.xlu1 %1116 }
 0x177   : > { %v1169_v5 = vpop.permute.xlu0 %1168  ;;  %v1126_v24 = vsel %vm9784_vm5, %v7618_v28, %v1117_v48  ;;  %v1127_v30 = vsel %vm9784_vm5, %v1117_v48, %v7646_v40  ;;  %v7686_v3 = vpop.permute.xlu2 %1322 }
 0x178   : > { %v1177_v9 = vsel %vm1174_vm7, %v1167_v42, %v1169_v5  ;;  %v1136_v54 = vsel %vm9779_vm8, %v1126_v24, 0.0  ;;  %v1137_v39 = vsel %vm9780_vm9, %v1127_v30, 0.0 }
 0x179   : > { %v7671_v12 = vld.sshfl [vmem:[#allocation1] sm:$0xff pattern:$0x75316420]  ;;  %v7673_v13 = vld.sshfl [vmem:[#allocation1 + $0x8] sm:$0xff pattern:$0x75316420] }
 0x17a   : > { %2394 = vst [vmem:[#allocation1 + $0x1] ss:$2 sm:$0xff] %v2353_v19  ;;  %v1187_v49 = vsel %vm9763_vm13, %v1177_v9, 0.0 }
 0x17b   : > { %1141 = vst [vmem:[#allocation3 + $0x30] sm:$0xf] %v1136_v54  ;;  %v1197_v50 = vrot.slane %v1187_v49, 4 }
 0x17c   : > { %1142 = vst [vmem:[#allocation3 + $0x38] sm:$0xf] %v1137_v39 }
 0x17d   : > { %1207 = vst [vmem:[#allocation3 + $0x38] sm:$0xf0] %v1197_v50 }
 0x17f   : > { %v7693_v16 = vpop.permute.xlu1 %1120  ;;  %v7698_v33 = vpop.permute.xlu0 %1170 }
 0x180   : > { %9814 = vst [vmem:[#allocation28_spill] sm:$0xff] %v7693_v16  ;;  %v1128_v41 = vsel %vm9784_vm5, %v7646_v40, %v7693_v16  ;;  %v1178_v27 = vsel %vm1174_vm7, %v1169_v5, %v7698_v33  ;;  %v7704_v57 = vpop.permute.xlu2 %1324 }
 0x181   : > { %v7689_v28 = vld.sshfl [vmem:[#allocation1] sm:$0xff pattern:$0x75316420]  ;;  %v7691_v42 = vld.sshfl [vmem:[#allocation1 + $0x8] sm:$0xff pattern:$0x75316420]  ;;  %v1333_v35 = vsel %vm9785_vm11, %v7686_v3, %v7704_v57 }
 0x182   : > { %2425 = vst [vmem:[#allocation1] ss:$2 sm:$0xff] %v2353_v19  ;;  %v1138_v17 = vsel %vm9778_vm10, %v1128_v41, 0.0  ;;  %v1188_v58 = vsel %vm9775_vm15, %v1178_v27, 0.0  ;;  %v1343_v40 = vsel %vm9763_vm13, %v1333_v35, 0.0  ;;  %vm9783_vm13 = vcmask 842752  }
 0x183   : > { %9815 = vst [vmem:[#allocation29_spill] sm:$0xff] %v7698_v33  ;;  %v1198_v1 = vrot.slane %v1188_v58, 4 }
 0x184   : > { %1143 = vst [vmem:[#allocation3 + $0x40] sm:$0xf] %v1138_v17 }
 0x185   : > { %1348 = vst [vmem:[#allocation3 + $0x88] sm:$0xf] %v1343_v40 }
 0x186   : > { %1208 = vst [vmem:[#allocation3 + $0x40] sm:$0xf0] %v1198_v1 }
 0x189   : > { %v7713_v48 = vld.sshfl [vmem:[#allocation1] sm:$0xff pattern:$0x75316420]  ;;  %v7715_v24 = vld.sshfl [vmem:[#allocation1 + $0x8] sm:$0xff pattern:$0x75316420] }
 0x18a   : > { %2462 = vst [vmem:[#allocation1] ss:$2 sm:$0xff] %v2353_v19 }
 0x18b   : > { %v7717_v5 = vpop.permute.xlu0 %1261  ;;  %v1254_v30 = vpop.permute.xlu1 %1253 }
 0x18c   : > { %9816 = vst [vmem:[#allocation30_spill] sm:$0xff] %v7717_v5  ;;  %v1266_v9 = vsel %vm1265_vm2, %v1254_v30, %v1256_v25 }
 0x18d   : > { %v1276_v54 = vsel %vm9776_vm6, %v1266_v9, 0.0 }
 0x18e   : > { %v1286_v50 = vrot.slane %v1276_v54, 4 }
 0x190   : > { %1296 = vst [vmem:[#allocation3 + $0x50] sm:$0xf0] %v1286_v50 }
 0x191   : > { %v7722_v39 = vld.sshfl [vmem:[#allocation1] sm:$0xff pattern:$0x75316420]  ;;  %v7724_v49 = vld.sshfl [vmem:[#allocation1 + $0x8] sm:$0xff pattern:$0x75316420] }
 0x192   : > { %2514 = vst [vmem:[#allocation1] ss:$2 sm:$0xff] %v7655_v32 }
 0x193   : > { %v1258_v41 = vpop.permute.xlu1 %1257 }
 0x194   : > { %v1267_v19 = vsel %vm1265_vm2, %v1256_v25, %v1258_v41 }
 0x195   : > { %v1319_v17 = vpop.permute.xlu0 %1318  ;;  %v1277_v27 = vsel %vm9779_vm8, %v1267_v19, 0.0 }
 0x196   : > { %v1287_v40 = vrot.slane %v1277_v27, 4 }
 0x197   : > { %v7731_v1 = vld [vmem:[#allocation3 + $0x50] sm:$0xff] }
 0x198   : > { %1297 = vst [vmem:[#allocation3 + $0x58] sm:$0xf0] %v1287_v40 }
 0x199   : > { %v2517_v58 = vld.sshfl [vmem:[#allocation1] sm:$0xff pattern:$0x75316420]  ;;  %v2518_v35 = vld.sshfl [vmem:[#allocation1 + $0x8] sm:$0xff pattern:$0x75316420] }
 0x19a   : > { %2533 = vst [vmem:[#allocation1] ss:$2 sm:$0xff] %v7655_v32 }
 0x19b   : > { %9817 = vst [vmem:[#allocation31_spill] sm:$0xff] %v7731_v1  ;;  %v1260_v30 = vpop.permute.xlu1 %1259 }
 0x19c   : > { %2525 = vst [vmem:[#allocation3 + $0x50] sm:$0xf] %v2517_v58  ;;  %v1268_v0 = vsel %vm1265_vm2, %v1258_v41, %v1260_v30  ;;  %v1269_v25 = vsel %vm1265_vm2, %v1260_v30, %v7717_v5  ;;  %v7745_v41 = vpop.permute.xlu2 %1377 }
 0x19d   : > { %v1370_v9 = vpop.permute.xlu0 %1369  ;;  %v1278_v19 = vsel %vm9780_vm9, %v1268_v0, 0.0  ;;  %v1279_v27 = vsel %vm9778_vm10, %v1269_v25, 0.0 }
 0x19e   : > { %v1288_v58 = vrot.slane %v1278_v19, 4  ;;  %v1289_v40 = vrot.slane %v1279_v27, 4  ;;  %v2010_v27 = vpop.f32.mrf.mxu3 }
 0x19f   : > { %v7743_v60 = vld [vmem:[#allocation3 + $0x58] sm:$0xff] }
 0x1a0   : > { %9818 = vst [vmem:[#allocation32_spill] sm:$0xff] %v7743_v60  ;;  %v2070_v60 = vpop.f32.mrf.mxu2 }
 0x1a1   : > { %v2536_v54 = vld.sshfl [vmem:[#allocation1] sm:$0xff pattern:$0x75316420]  ;;  %v2537_v50 = vld.sshfl [vmem:[#allocation1 + $0x8] sm:$0xff pattern:$0x75316420] }
 0x1a2   : > { %2579 = vst [vmem:[#allocation1] ss:$2 sm:$0xff] %v7655_v32  ;;  %2542 = vrot.lane.b32.xlu0 %v2537_v50, %s7108_s27  ;;  %2540 = vrot.lane.b32.xlu2 %v2536_v54, %s7108_s27 }
 0x1a3   : > { %2526 = vst [vmem:[#allocation3 + $0x58] sm:$0xf] %v2518_v35  ;;  %v1321_v0 = vpop.permute.xlu1 %1320 }
 0x1a4   : > { %1298 = vst [vmem:[#allocation3 + $0x60] sm:$0xf0] %v1288_v58  ;;  %v1331_v50 = vsel %vm9785_vm11, %v1319_v17, %v1321_v0  ;;  %v1332_v54 = vsel %vm9785_vm11, %v1321_v0, %v7686_v3  ;;  %v2030_v58 = vpop.f32.mrf.mxu0  ;;  %v1415_v3 = vpop.permute.xlu2 %1414 }
 0x1a5   : > { %1299 = vst [vmem:[#allocation3 + $0x68] sm:$0xf0] %v1289_v40  ;;  %v1374_v25 = vpop.permute.xlu0 %1373  ;;  %v1341_v35 = vsel %vm9777_vm4, %v1331_v50, 0.0  ;;  %v1342_v19 = vsel %vm9769_vm12, %v1332_v54, 0.0  ;;  %v2050_v40 = vpop.f32.mrf.mxu1  ;;  %vm9782_vm12 = vcmask 850944   ;;  %vm9787_vm4 = vcmask 388224  }
 0x1a6   : > { %1346 = vst [vmem:[#allocation3 + $0x78] sm:$0xf] %v1341_v35 }
 0x1a7   : > { %1347 = vst [vmem:[#allocation3 + $0x80] sm:$0xf] %v1342_v19  ;;  %v2090_v19 = vpop.f32.mrf.mxu3 }
 0x1a9   : > { %v7747_v30 = vld.sshfl [vmem:[#allocation1] sm:$0xff pattern:$0x75316420]  ;;  %v7749_v1 = vld.sshfl [vmem:[#allocation1 + $0x8] sm:$0xff pattern:$0x75316420] }
 0x1aa   : > { %2615 = vst [vmem:[#allocation1 + $0x1] ss:$2 sm:$0xff] %v7655_v32 }
 0x1ab   : > { %v7759_v62 = vpop.permute.xlu1 %1326 }
 0x1ac   : > { %9819 = vst [vmem:[#allocation33_spill] sm:$0xff] %v7759_v62  ;;  %v1334_v0 = vsel %vm9785_vm11, %v7704_v57, %v7759_v62  ;;  %v2110_v5 = vpop.f32.mrf.mxu0 }
 0x1ad   : > { %v1344_v54 = vsel %vm9775_vm15, %v1334_v0, 0.0  ;;  %v2031_v0 = vadd.f32 %v2030_v58, %v2010_v27  ;;  %vm2204_vm15 = vcmask 130052  }
 0x1ae   : > { %1349 = vst [vmem:[#allocation3 + $0x90] sm:$0xf] %v1344_v54 }
 0x1b1   : > { %v7761_v17 = vld.sshfl [vmem:[#allocation1] sm:$0xff pattern:$0x75316420]  ;;  %v7763_v10 = vld.sshfl [vmem:[#allocation1 + $0x8] sm:$0xff pattern:$0x75316420] }
 0x1b2   : > { %2646 = vst [vmem:[#allocation1] ss:$2 sm:$0xff] %v7655_v32 }
 0x1b4   : > { %v1372_v57 = vpop.permute.xlu1 %1371 }
 0x1b5   : > { %v1382_v62 = vsel %vm9782_vm12, %v1370_v9, %v1372_v57  ;;  %v1383_v32 = vsel %vm9782_vm12, %v1372_v57, %v1374_v25 }
 0x1b6   : > { %1392 = vst [vmem:[#allocation3 + $0x78] sm:$0xf0] %v1382_v62 }
 0x1b7   : > { %1393 = vst [vmem:[#allocation3 + $0x80] sm:$0xf0] %v1383_v32 }
 0x1bd   : > { %v1417_v50 = vpop.permute.xlu0 %1416  ;;  %v2130_v16 = vpop.f32.mrf.mxu1 }
 0x1be   : > { %v1427_v35 = vsel %vm9783_vm13, %v1415_v3, %v1417_v50  ;;  %v2131_v31 = vadd.f32 %v2130_v16, %v2110_v5 }
 0x1bf   : > { %v1437_v33 = vsel %vm9776_vm6, %v1427_v35, 0.0  ;;  %v2051_v35 = vadd.f32 %v2050_v40, %v2031_v0  ;;  %vm7781_vm6 = vmor %vm2204_vm15, %vm991_vm1  ;;  %v9822_v40 = vmov 0.0  }
 0x1c0   : > { %1442 = vst [vmem:[#allocation3 + $0xa0] sm:$0xf] %v1437_v33 }
 0x1c1   : > { %v2071_v5 = vadd.f32 %v2070_v60, %v2051_v35 }
 0x1c3   : > { %v2091_v43 = vadd.f32 %v2090_v19, %v2071_v5 }
 0x1c4   : > { %v2150_v23 = vpop.f32.mrf.mxu2 }
 0x1c5   : > { %v1419_v22 = vpop.permute.xlu0 %1418  ;;  %v2151_v56 = vadd.f32 %v2150_v23, %v2131_v31  ;;  %v1376_v31 = vpop.permute.xlu1 %1375 }
 0x1c6   : > { %v1428_v3 = vsel %vm9783_vm13, %v1417_v50, %v1419_v22  ;;  %v2190_v16 = vpop.f32.mrf.mxu0  ;;  %v1384_v62 = vsel %vm9782_vm12, %v1374_v25, %v1376_v31 }
 0x1c7   : > { %v1438_v33 = vsel %vm9779_vm8, %v1428_v3, 0.0  ;;  %1394 = vst [vmem:[#allocation3 + $0x88] sm:$0xf0] %v1384_v62 }
 0x1c8   : > { %1443 = vst [vmem:[#allocation3 + $0xa8] sm:$0xf] %v1438_v33 }
 0x1cd   : > { %v2170_v54 = vpop.f32.mrf.mxu3  ;;  %v1421_v27 = vpop.permute.xlu0 %1420 }
 0x1ce   : > { %v2171_v20 = vadd.f32 %v2170_v54, %v2151_v56  ;;  %v1385_v56 = vsel %vm9782_vm12, %v1376_v31, %v7745_v41  ;;  %v1429_v60 = vsel %vm9783_vm13, %v1419_v22, %v1421_v27 }
 0x1cf   : > { %1395 = vst [vmem:[#allocation3 + $0x90] sm:$0xf0] %v1385_v56  ;;  %v2217_v56 = vmul.u32 52429, %v7520_v2 }
 0x1d0   : > { %v2191_v9 = vadd.f32 %v2190_v16, %v2171_v20  ;;  %v1439_v20 = vsel %vm9780_vm9, %v1429_v60, 0.0  ;;  %v7827_v60 = vld [vmem:[#allocation3 + $0x68] sm:$0xff] }
 0x1d1   : > { %1444 = vst [vmem:[#allocation3 + $0xb0] sm:$0xf] %v1439_v20 }
 0x1d2   : > { %v2198_v57 = vrot.slane %v2191_v9, 4 }
 0x1d4   : > { %v2200_v58 = vsel %vm991_vm1, %v2091_v43, %v2198_v57  ;;  %v7798_v43 = vld.sshfl [vmem:[#allocation1 + $0x28] sm:$0xff pattern:$0x75316420] }
 0x1d5   : > { %2206 = vst.msk [vmem:[#allocation2 + $0xc] sm:$0xff] %vm7781_vm6, %v2200_v58  ;;  %v7796_v25 = vpop.permute.xlu0 %1422  ;;  %v2650_v57 = vld.sshfl [vmem:[#allocation1 + $0x8] sm:$0xff pattern:$0x75316420]  ;;  %v2215_v58 = vmul.u32 52429, %v7515_v59 }
 0x1d6   : > { %2208 = vst.msk [vmem:[#allocation2 + $0x10] sm:$0xf] %vm9787_vm4, %v9822_v40  ;;  %v1430_v19 = vsel %vm9783_vm13, %v1421_v27, %v7796_v25  ;;  %v2216_v27 = vmul.u32 52428, %v7515_v59  ;;  %vm9789_vm4 = vcmask 171008  }
 0x1d7   : > { %v1440_v32 = vsel %vm9778_vm10, %v1430_v19, 0.0  ;;  %vm2387_vm10 = vcmask 125952   ;;  %v2221_v19 = vshll.u32 %v2217_v56, 16 }
 0x1d8   : > { %1445 = vst [vmem:[#allocation3 + $0xb8] sm:$0xf] %v1440_v32  ;;  %v2219_v20 = vshll.u32 %v2216_v27, 16  ;;  %v9823_v32 = vmov 0   ;;  %v2220_v59 = vshrl.u32 %v2216_v27, 16 }
 0x1da   : > { %vm2223_vm8 = vc.u32 %v2215_v58, %v2219_v20 }
 0x1dc   : > { %v2354_v50 = vld [vmem:[#allocation2 + $0x8] sm:$0xff] }
 0x1dd   : > { %2359 = vst [vmem:[#allocation1 + $0x10] ss:$2 sm:$0xff] %v2354_v50  ;;  %v2458_v22 = vld [vmem:[#allocation2 + $0x10] sm:$0xf] }
 0x1de   : > { %2466 = vst [vmem:[#allocation1 + $0x20] ss:$2 sm:$0xff] %v2458_v22  ;;  %v2511_v9 = vld [vmem:[#allocation2 + $0xc] sm:$0xff]  ;;  %v2225_v22 = vadd.s32 %v2219_v20, %v2215_v58 }
 0x1e0   : > { %vm2227_vm9 = vc.u32 %v2225_v22, %v2221_v19 }
 0x1e4   : > { %v2362_v0 = vld.sshfl [vmem:[#allocation1 + $0x10] sm:$0xff pattern:$0x75316420]  ;;  %v2363_v3 = vld.sshfl [vmem:[#allocation1 + $0x18] sm:$0xff pattern:$0x75316420] }
 0x1e5   : > { %2396 = vst [vmem:[#allocation1 + $0x11] ss:$2 sm:$0xff] %v2354_v50  ;;  %2370 = vrot.lane.b32.xlu0 %v2363_v3, %s7113_s30  ;;  %2368 = vrot.lane.b32.xlu2 %v2362_v0, %s7113_s30  ;;  %v2471_v33 = vld.sshfl [vmem:[#allocation1 + $0x20] sm:$0xff pattern:$0x75316420]  ;;  %v2224_v0 = vsel %vm2223_vm8, 1, %v9823_v32 }
 0x1e6   : > { %2480 = vrot.lane.b32.xlu1 %v2471_v33, %s7107_s19 }
 0x1ec   : > { %v2400_v54 = vld.sshfl [vmem:[#allocation1 + $0x18] sm:$0xff pattern:$0x75316420]  ;;  %v2399_v35 = vld.sshfl [vmem:[#allocation1 + $0x10] sm:$0xff pattern:$0x75316420] }
 0x1ed   : > { %2407 = vrot.lane.b32.xlu0 %v2400_v54, %s7114_s1  ;;  %2588 = vrot.lane.b32.xlu2 %v7749_v1, %s7115_s20  ;;  %2427 = vst [vmem:[#allocation1 + $0x10] ss:$2 sm:$0xff] %v2354_v50 }
 0x1ee   : > { %2586 = vrot.lane.b32.xlu1 %v7747_v30, %s7115_s20  ;;  %v7820_v30 = vld [vmem:[#allocation3 + $0x60] sm:$0xff] }
 0x1f4   : > { %v2430_v16 = vld.sshfl [vmem:[#allocation1 + $0x10] sm:$0xff pattern:$0x75316420]  ;;  %v2431_v5 = vld.sshfl [vmem:[#allocation1 + $0x18] sm:$0xff pattern:$0x75316420] }
 0x1f5   : > { %2405 = vrot.lane.b32.xlu2 %v2399_v35, %s7114_s1  ;;  %2622 = vrot.lane.b32.xlu0 %v7761_v17, %s7116_s26  ;;  %2464 = vst [vmem:[#allocation1 + $0x10] ss:$2 sm:$0xff] %v2354_v50  ;;  %v2218_v50 = vmul.u32 52428, %v7520_v2  ;;  %v2228_v35 = vsel %vm2227_vm9, 1, %v9823_v32  ;;  %v2222_v2 = vshrl.u32 %v2217_v56, 16 }
 0x1f6   : > { %2624 = vrot.lane.b32.xlu1 %v7763_v10, %s7116_s26  ;;  %v2649_v10 = vld.sshfl [vmem:[#allocation1] sm:$0xff pattern:$0x75316420] }
 0x1f7   : > { %v2226_v3 = vadd.s32 %v2224_v0, %v2218_v50  ;;  %v2303_v50 = vmul.u32 52428, %v7566_v63 }
 0x1fc   : > { %v2469_v31 = vld.sshfl [vmem:[#allocation1 + $0x10] sm:$0xff pattern:$0x75316420]  ;;  %v2470_v1 = vld.sshfl [vmem:[#allocation1 + $0x18] sm:$0xff pattern:$0x75316420]  ;;  %v2541_v0 = vpop.permute.xlu2 %2540 }
 0x1fd   : > { %2436 = vrot.lane.b32.xlu0 %v2430_v16, %s7117_s22  ;;  %2655 = vrot.lane.b32.xlu2 %v2650_v57, %s7118_s8  ;;  %2516 = vst [vmem:[#allocation1 + $0x10] ss:$2 sm:$0xff] %v2511_v9  ;;  %v2230_v16 = vadd.s32 %v2228_v35, %v2226_v3  ;;  %v2306_v35 = vshll.u32 %v2303_v50, 16 }
 0x1fe   : > { %2438 = vrot.lane.b32.xlu1 %v2431_v5, %s7117_s22 }
 0x1ff   : > { %v2231_v5 = vadd.s32 %v2230_v16, %v2220_v59  ;;  %v2304_v59 = vmul.u32 52429, %v7574_v45  ;;  %v2275_v16 = vmul.u32 52429, %v7551_v52 }
 0x201   : > { %v2232_v57 = vadd.s32 %v2231_v5, %v2222_v2 }
 0x204   : > { %v2519_v17 = vld.sshfl [vmem:[#allocation1 + $0x10] sm:$0xff pattern:$0x75316420]  ;;  %v2520_v62 = vld.sshfl [vmem:[#allocation1 + $0x18] sm:$0xff pattern:$0x75316420] }
 0x205   : > { %2478 = vrot.lane.b32.xlu2 %v2470_v1, %s7107_s19  ;;  %2535 = vst [vmem:[#allocation1 + $0x10] ss:$2 sm:$0xff] %v2511_v9 }
 0x206   : > { %2653 = vrot.lane.b32.xlu1 %v2649_v10, %s7118_s8  ;;  %2527 = vst [vmem:[#allocation3 + $0x60] sm:$0xf] %v2519_v17 }
 0x207   : > { %2528 = vst.msk [vmem:[#allocation3 + $0x68] sm:$0xf] %vm2387_vm10, %v2520_v62  ;;  %v2233_v62 = vshrl.u32 %v2232_v57, 4 }
 0x209   : > { %v2234_v10 = vmul.u32 20, %v2233_v62  ;;  %v2279_v62 = vshll.u32 %v2275_v16, 16 }
 0x20b   : > { %v2235_v58 = vsub.s32 %v7313_v14, %v2234_v10 }
 0x20c   : > { %v2539_v33 = vld.sshfl [vmem:[#allocation1 + $0x18] sm:$0xff pattern:$0x75316420]  ;;  %v2538_v54 = vld.sshfl [vmem:[#allocation1 + $0x10] sm:$0xff pattern:$0x75316420] }
 0x20d   : > { %2546 = vrot.lane.b32.xlu0 %v2539_v33, %s7108_s27  ;;  %2544 = vrot.lane.b32.xlu2 %v2538_v54, %s7108_s27  ;;  %2581 = vst [vmem:[#allocation1 + $0x10] ss:$2 sm:$0xff] %v2511_v9  ;;  %vm2325_vm8 = vcmp.ne.s32.totalorder %v2235_v58, 0  ;;  %vm2329_vm14 = vcmp.lt.s32.totalorder %v2235_v58, 0  ;;  %v2337_v27 = vadd.s32 20, %v2235_v58  ;;  %v2274_v33 = vmul.u32 52428, %v7541_v61 }
 0x20e   : > { %2476 = vrot.lane.b32.xlu1 %v2469_v31, %s7107_s19  ;;  %vm2333_vm9 = vmand %vm2329_vm14, %vm2325_vm8  ;;  %v2302_v54 = vmul.u32 52429, %v7566_v63  ;;  %v2305_v63 = vmul.u32 52428, %v7574_v45 }
 0x20f   : > { %v7841_v56 = vsel %vm2333_vm9, %v2337_v27, %v2235_v58  ;;  %v2277_v5 = vshll.u32 %v2274_v33, 16 }
 0x210   : > { %vm2349_vm12 = vcmp.lt.s32.totalorder %v7841_v56, 19  ;;  %vm2310_vm14 = vc.u32 %v2302_v54, %v2306_v35 }
 0x211   : > { %v2311_v58 = vsel %vm2310_vm14, 1, %v9823_v32 }
 0x214   : > { %v2585_v1 = vld.sshfl [vmem:[#allocation1 + $0x18] sm:$0xff pattern:$0x75316420]  ;;  %v2584_v17 = vld.sshfl [vmem:[#allocation1 + $0x10] sm:$0xff pattern:$0x75316420]  ;;  %v7848_v3 = vpop.permute.xlu0 %2542 }
 0x215   : > { %2592 = vrot.lane.b32.xlu2 %v2585_v1, %s7115_s20  ;;  %2617 = vst [vmem:[#allocation1 + $0x11] ss:$2 sm:$0xff] %v2511_v9  ;;  %v2308_v1 = vshll.u32 %v2304_v59, 16 }
 0x216   : > { %2590 = vrot.lane.b32.xlu1 %v2584_v17, %s7115_s20  ;;  %v2312_v17 = vadd.s32 %v2306_v35, %v2302_v54 }
 0x218   : > { %vm2314_vm9 = vc.u32 %v2312_v17, %v2308_v1 }
 0x219   : > { %v2315_v45 = vsel %vm2314_vm9, 1, %v9823_v32 }
 0x21c   : > { %v2621_v20 = vld.sshfl [vmem:[#allocation1 + $0x18] sm:$0xff pattern:$0x75316420]  ;;  %v2620_v31 = vld.sshfl [vmem:[#allocation1 + $0x10] sm:$0xff pattern:$0x75316420] }
 0x21d   : > { %2628 = vrot.lane.b32.xlu0 %v2621_v20, %s7116_s26  ;;  %2626 = vrot.lane.b32.xlu2 %v2620_v31, %s7116_s26  ;;  %2648 = vst [vmem:[#allocation1 + $0x10] ss:$2 sm:$0xff] %v2511_v9  ;;  %v2548_v9 = vsel %vm1265_vm2, %v2541_v0, %v7848_v3  ;;  %v2313_v20 = vadd.s32 %v2311_v58, %v2305_v63  ;;  %v2244_v0 = vmul.u32 52429, %v7538_v47  ;;  %s7120_s26 = smov 11  }
 0x21e   : > { %v2555_v2 = vsel %vm2349_vm12, %v2548_v9, 0.0  ;;  %v2246_v9 = vmul.u32 52429, %v7548_v26 }
 0x21f   : > { %v2563_v57 = vrot.slane %v2555_v2, 4  ;;  %v2280_v2 = vshrl.u32 %v2275_v16, 16 }
 0x221   : > { %2571 = vst [vmem:[#allocation3 + $0x50] sm:$0xf0] %v2563_v57 }
 0x224   : > { %v2652_v19 = vld.sshfl [vmem:[#allocation1 + $0x18] sm:$0xff pattern:$0x75316420]  ;;  %v2651_v22 = vld.sshfl [vmem:[#allocation1 + $0x10] sm:$0xff pattern:$0x75316420] }
 0x225   : > { %2474 = vrot.lane.b32.xlu0 %v7724_v49, %s7107_s19  ;;  %2659 = vrot.lane.b32.xlu2 %v2652_v19, %s7118_s8  ;;  %v2273_v49 = vmul.u32 52429, %v7541_v61  ;;  %v2276_v61 = vmul.u32 52428, %v7551_v52  ;;  %v2307_v19 = vshrl.u32 %v2303_v50, 16  ;;  %v2278_v52 = vshrl.u32 %v2274_v33, 16 }
 0x226   : > { %2657 = vrot.lane.b32.xlu1 %v2651_v22, %s7118_s8  ;;  %v2317_v22 = vadd.s32 %v2315_v45, %v2313_v20  ;;  %v2309_v50 = vshrl.u32 %v2304_v59, 16  ;;  %v2247_v33 = vmul.u32 52428, %v7548_v26  ;;  %s7122_s8 = smov 12  }
 0x227   : > { %vm2281_vm8 = vc.u32 %v2273_v49, %v2277_v5  ;;  %v2283_v10 = vadd.s32 %v2277_v5, %v2273_v49  ;;  %v2250_v5 = vshll.u32 %v2246_v9, 16 }
 0x228   : > { %v2282_v27 = vsel %vm2281_vm8, 1, %v9823_v32  ;;  %v2318_v35 = vadd.s32 %v2317_v22, %v2307_v19 }
 0x229   : > { %vm2285_vm13 = vc.u32 %v2283_v10, %v2279_v62  ;;  %v2284_v31 = vadd.s32 %v2282_v27, %v2276_v61  ;;  %v2251_v27 = vshrl.u32 %v2246_v9, 16 }
 0x22a   : > { %v2319_v57 = vadd.s32 %v2318_v35, %v2309_v50  ;;  %v7908_v35 = vld [vmem:[#allocation3 + $0x10] sm:$0xff] }
 0x22c   : > { %v2320_v1 = vshrl.u32 %v2319_v57, 4 }
 0x22d   : > { %2364 = vrot.lane.b32.xlu0 %v7671_v12, %s7113_s30  ;;  %2472 = vrot.lane.b32.xlu2 %v7722_v39, %s7107_s19  ;;  %v2286_v12 = vsel %vm2285_vm13, 1, %v9823_v32  ;;  %v2245_v39 = vmul.u32 52428, %v7538_v47 }
 0x22e   : > { %2432 = vrot.lane.b32.xlu1 %v7713_v48, %s7117_s22  ;;  %v2288_v48 = vadd.s32 %v2286_v12, %v2284_v31  ;;  %v2321_v62 = vmul.u32 20, %v2320_v1 }
 0x22f   : > { %v2248_v54 = vshll.u32 %v2245_v39, 16  ;;  %v2249_v63 = vshrl.u32 %v2245_v39, 16 }
 0x230   : > { %v2289_v49 = vadd.s32 %v2288_v48, %v2278_v52 }
 0x231   : > { %vm2252_vm13 = vc.u32 %v2244_v0, %v2248_v54 }
 0x235   : > { %2403 = vrot.lane.b32.xlu0 %v7691_v42, %s7114_s1  ;;  %2434 = vrot.lane.b32.xlu2 %v7715_v24, %s7117_s22  ;;  %v2254_v42 = vadd.s32 %v2248_v54, %v2244_v0  ;;  %v2290_v24 = vadd.s32 %v2289_v49, %v2280_v2  ;;  %v7902_v0 = vld [vmem:[#allocation3 + $0x18] sm:$0xff]  ;;  %s7121_s22 = smov 117  }
 0x236   : > { %2366 = vrot.lane.b32.xlu1 %v7673_v13, %s7113_s30  ;;  %v2253_v13 = vsel %vm2252_vm13, 1, %v9823_v32 }
 0x237   : > { %vm2256_vm14 = vc.u32 %v2254_v42, %v2250_v5  ;;  %v2291_v59 = vshrl.u32 %v2290_v24, 4  ;;  %v2255_v17 = vadd.s32 %v2253_v13, %v2247_v33 }
 0x238   : > { %v2257_v16 = vsel %vm2256_vm14, 1, %v9823_v32 }
 0x239   : > { %v2292_v10 = vmul.u32 20, %v2291_v59  ;;  %v2259_v61 = vadd.s32 %v2257_v16, %v2255_v17  ;;  %v7926_v16 = vld [vmem:[#allocation3 + $0x78] sm:$0xff] }
 0x23b   : > { %v2293_v26 = vsub.s32 %v7533_v6, %v2292_v10  ;;  %v2260_v20 = vadd.s32 %v2259_v61, %v2249_v63  ;;  %v7932_v63 = vld [vmem:[#allocation3 + $0x40] sm:$0xff] }
 0x23d   : > { %2401 = vrot.lane.b32.xlu2 %v7689_v28, %s7114_s1  ;;  %v2322_v28 = vsub.s32 %v7544_v44, %v2321_v62  ;;  %vm2327_vm13 = vcmp.ne.s32.totalorder %v2293_v26, 0  ;;  %vm2331_vm5 = vcmp.lt.s32.totalorder %v2293_v26, 0  ;;  %v2261_v31 = vadd.s32 %v2260_v20, %v2251_v27 }
 0x23e   : > { %v2339_v19 = vadd.s32 20, %v2293_v26  ;;  %vm2335_vm11 = vmand %vm2331_vm5, %vm2327_vm13  ;;  %vm9790_vm5 = vcmask 162816   ;;  %vm9791_vm13 = vcmp.ge.s32.totalorder %v7841_v56, 1 }
 0x23f   : > { %v7885_v47 = vpop.permute.xlu2 %2368  ;;  %vm2328_vm8 = vcmp.ne.s32.totalorder %v2322_v28, 0  ;;  %vm2332_vm9 = vcmp.lt.s32.totalorder %v2322_v28, 0  ;;  %v2340_v45 = vadd.s32 20, %v2322_v28  ;;  %v2262_v22 = vshrl.u32 %v2261_v31, 4 }
 0x240   : > { %vm2336_vm14 = vmand %vm2332_vm9, %vm2328_vm8  ;;  %v7896_v52 = vsel %vm2335_vm11, %v2339_v19, %v2293_v26  ;;  %vm2594_vm9 = vcmask 891904  }
 0x241   : > { %v7894_v39 = vsel %vm2336_vm14, %v2340_v45, %v2322_v28  ;;  %v2263_v6 = vmul.u32 20, %v2262_v22  ;;  %vm2347_vm0 = vcmp.ge.s32.totalorder %v7896_v52, 1 }
 0x242   : > { %vm2348_vm3 = vcmp.ge.s32.totalorder %v7894_v39, 1 }
 0x243   : > { %v2264_v49 = vsub.s32 %v7530_v53, %v2263_v6  ;;  %v7945_v6 = vld [vmem:[#allocation3 + $0x90] sm:$0xff] }
 0x245   : > { %vm2326_vm11 = vcmp.ne.s32.totalorder %v2264_v49, 0  ;;  %vm2330_vm8 = vcmp.lt.s32.totalorder %v2264_v49, 0  ;;  %v2338_v57 = vadd.s32 20, %v2264_v49 }
 0x246   : > { %vm2334_vm14 = vmand %vm2330_vm8, %vm2326_vm11  ;;  %vm2630_vm8 = vcmask 883712  }
 0x247   : > { %v7888_v58 = vpop.permute.xlu2 %2588  ;;  %v7930_v10 = vsel %vm2334_vm14, %v2338_v57, %v2264_v49  ;;  %vm2352_vm14 = vcmp.lt.s32.totalorder %v7894_v39, 19 }
 0x248   : > { %vm2350_vm11 = vcmp.lt.s32.totalorder %v7930_v10, 19 }
 0x24f   : > { %v7892_v12 = vpop.permute.xlu2 %2405 }
 0x257   : > { %v2371_v44 = vpop.permute.xlu0 %2370  ;;  %v7900_v48 = vpop.permute.xlu2 %2655 }
 0x258   : > { %v2375_v9 = vsel %vm9789_vm4, %v7885_v47, %v2371_v44  ;;  %v2383_v54 = vsel %vm2348_vm3, %v2371_v44, 0.0  ;;  %v2481_v50 = vpop.permute.xlu1 %2480  ;;  %vm2440_vm4 = vcmask 154624  }
 0x259   : > { %v2382_v2 = vsel %vm2347_vm0, %v2375_v9, 0.0  ;;  %2388 = vst.msk [vmem:[#allocation3 + $0x18] sm:$0xf] %vm2387_vm10, %v2383_v54 }
 0x25a   : > { %2386 = vst [vmem:[#allocation3 + $0x10] sm:$0xf] %v2382_v2 }
 0x25f   : > { %v2408_v5 = vpop.permute.xlu0 %2407  ;;  %v7914_v42 = vpop.permute.xlu2 %2478 }
 0x260   : > { %v2412_v24 = vsel %vm9790_vm5, %v7892_v12, %v2408_v5  ;;  %2420 = vst.msk [vmem:[#allocation3 + $0x18] sm:$0xf0] %vm2204_vm15, %v2408_v5  ;;  %v2485_v33 = vsel %vm1174_vm7, %v7914_v42, %v2481_v50  ;;  %v2587_v13 = vpop.permute.xlu1 %2586  ;;  %vm2351_vm5 = vcmp.lt.s32.totalorder %v7896_v52, 19  ;;  %v7954_v50 = vld [vmem:[#allocation3 + $0x38] sm:$0xff]  ;;  %v7959_v5 = vld [vmem:[#allocation3 + $0x80] sm:$0xff] }
 0x261   : > { %2419 = vst [vmem:[#allocation3 + $0x10] sm:$0xf0] %v2412_v24  ;;  %v2493_v1 = vsel %vm2348_vm3, %v2485_v33, 0.0  ;;  %v2595_v59 = vsel %vm2594_vm9, %v2587_v13, %v7888_v58  ;;  %v7964_v13 = vld [vmem:[#allocation3 + $0xa0] sm:$0xf] }
 0x262   : > { %v2501_v17 = vrot.slane %v2493_v1, 4  ;;  %v2602_v62 = vsel %vm9791_vm13, %v2595_v59, 0.0  ;;  %vm2661_vm13 = vcmask 875520  }
 0x263   : > { %2606 = vst [vmem:[#allocation3 + $0x78] sm:$0xf] %v2602_v62 }
 0x264   : > { %2509 = vst.msk [vmem:[#allocation3 + $0x40] sm:$0xf0] %vm2204_vm15, %v2501_v17 }
 0x267   : > { %v2623_v61 = vpop.permute.xlu0 %2622  ;;  %v2545_v28 = vpop.permute.xlu2 %2544 }
 0x268   : > { %v2549_v26 = vsel %vm1265_vm2, %v7848_v3, %v2545_v28  ;;  %v2625_v27 = vpop.permute.xlu1 %2624 }
 0x269   : > { %v2556_v20 = vsel %vm2350_vm11, %v2549_v26, 0.0  ;;  %v2631_v31 = vsel %vm2630_vm8, %v2623_v61, %v2625_v27  ;;  %v7971_v26 = vld [vmem:[#allocation3 + $0xb8] sm:$0xf] }
 0x26a   : > { %v2564_v45 = vrot.slane %v2556_v20, 4  ;;  %2638 = vst [vmem:[#allocation3 + $0x78] sm:$0xf0] %v2631_v31 }
 0x26c   : > { %2572 = vst [vmem:[#allocation3 + $0x58] sm:$0xf0] %v2564_v45 }
 0x26f   : > { %v7942_v19 = vpop.permute.xlu0 %2436  ;;  %v2593_v22 = vpop.permute.xlu2 %2592 }
 0x270   : > { %v2605_v3 = vsel %vm2348_vm3, %v2593_v22, 0.0  ;;  %v2439_v44 = vpop.permute.xlu1 %2438  ;;  %vm2346_vm3 = vcmp.ge.s32.totalorder %v7930_v10, 1  ;;  %v2835_v10 = vld [vmem:[%s9748_s10 + $0x148] sm:$0xff] }
 0x271   : > { %2609 = vst.msk [vmem:[#allocation3 + $0x90] sm:$0xf] %vm2387_vm10, %v2605_v3  ;;  %v2443_v9 = vsel %vm2440_vm4, %v7942_v19, %v2439_v44  ;;  %v2451_v54 = vsel %vm2352_vm14, %v2439_v44, 0.0  ;;  %v2690_v39 = vld [vmem:[#allocation3 + $0x78] sm:$0xff] }
 0x272   : > { %v2450_v2 = vsel %vm2351_vm5, %v2443_v9, 0.0  ;;  %2455 = vst.msk [vmem:[#allocation3 + $0x40] sm:$0xf] %vm2387_vm10, %v2451_v54 }
 0x273   : > { %2454 = vst [vmem:[#allocation3 + $0x38] sm:$0xf] %v2450_v2  ;;  %v2686_v2 = vld [vmem:[#allocation3 + $0x50] sm:$0xff] }
 0x277   : > { %v2627_v49 = vpop.permute.xlu2 %2626 }
 0x278   : > { %v2632_v57 = vsel %vm2630_vm8, %v2625_v27, %v2627_v49  ;;  %v2654_v24 = vpop.permute.xlu1 %2653 }
 0x279   : > { %2639 = vst [vmem:[#allocation3 + $0x80] sm:$0xf0] %v2632_v57  ;;  %v2662_v33 = vsel %vm2661_vm13, %v2654_v24, %v7900_v48 }
 0x27a   : > { %v2669_v1 = vsel %vm2349_vm12, %v2662_v33, 0.0 }
 0x27b   : > { %2673 = vst [vmem:[#allocation3 + $0xa0] sm:$0xf] %v2669_v1 }
 0x27f   : > { %v2547_v59 = vpop.permute.xlu0 %2546  ;;  %v2660_v17 = vpop.permute.xlu2 %2659 }
 0x280   : > { %v2550_v62 = vsel %vm1265_vm2, %v2545_v28, %v2547_v59  ;;  %v2558_v61 = vsel %vm2352_vm14, %v2547_v59, 0.0  ;;  %v2672_v27 = vsel %vm2352_vm14, %v2660_v17, 0.0  ;;  %v2477_v20 = vpop.permute.xlu1 %2476 }
 0x281   : > { %v2557_v31 = vsel %vm2351_vm5, %v2550_v62, 0.0  ;;  %v2566_v45 = vrot.slane %v2558_v61, 4  ;;  %2676 = vst.msk [vmem:[#allocation3 + $0xb8] sm:$0xf] %vm2387_vm10, %v2672_v27  ;;  %v2484_v3 = vsel %vm1174_vm7, %v2477_v20, %v7914_v42  ;;  %v7993_v61 = vld [vmem:[#allocation3 + $0x88] sm:$0xff] }
 0x282   : > { %v2565_v44 = vrot.slane %v2557_v31, 4  ;;  %v2492_v28 = vsel %vm2347_vm0, %v2484_v3, 0.0  ;;  %v2694_v9 = vld [vmem:[#allocation3 + $0xa0] sm:$0xf] }
 0x283   : > { %2574 = vst.msk [vmem:[#allocation3 + $0x68] sm:$0xf0] %vm2204_vm15, %v2566_v45  ;;  %v2500_v54 = vrot.slane %v2492_v28, 4  ;;  %6681 = vmatpush.msk.msrb.mxu1 %vm991_vm1, %v2694_v9 }
 0x284   : > { %2573 = vst [vmem:[#allocation3 + $0x60] sm:$0xf0] %v2565_v44 }
 0x285   : > { %2508 = vst [vmem:[#allocation3 + $0x38] sm:$0xf0] %v2500_v54  ;;  %2726 = vmatpush.msrb.mxu1 %v2690_v39 }
 0x287   : > { %v2473_v57 = vpop.permute.xlu2 %2472  ;;  %2727 = vmatpush.msrb.mxu1 %v2686_v2 }
 0x288   : > { %v2591_v42 = vpop.permute.xlu1 %2590  ;;  %v2697_v24 = vld [vmem:[#allocation3 + $0xb8] sm:$0xf] }
 0x289   : > { %v2596_v33 = vsel %vm2594_vm9, %v7888_v58, %v2591_v42  ;;  %v2597_v1 = vsel %vm2594_vm9, %v2591_v42, %v2593_v22  ;;  %6687 = vmatpush.msk.msrb.mxu0 %vm991_vm1, %v2697_v24  ;;  %v7999_v22 = vld [vmem:[#allocation3 + $0x30] sm:$0xff]  ;;  %vm2698_vm9 = vcmask 293888  }
 0x28a   : > { %v2603_v59 = vsel %vm2346_vm3, %v2596_v33, 0.0  ;;  %v2604_v62 = vsel %vm2347_vm0, %v2597_v1, 0.0  ;;  %vm9824_vm0 = vcmp.ge.s32.totalorder %v7841_v56, 1  ;;  %v2689_v24 = vld [vmem:[#allocation3 + $0x68] sm:$0xff]  ;;  %v2680_v56 = vld [vmem:[#allocation3 + $0x10] sm:$0xff] }
 0x28b   : > { %2607 = vst [vmem:[#allocation3 + $0x80] sm:$0xf] %v2603_v59  ;;  %v8012_v59 = vld [vmem:[#allocation3 + $0xa8] sm:$0xf] }
 0x28c   : > { %2608 = vst [vmem:[#allocation3 + $0x88] sm:$0xf] %v2604_v62 }
 0x28f   : > { %v2629_v27 = vpop.permute.xlu0 %2628  ;;  %v2435_v31 = vpop.permute.xlu2 %2434 }
 0x290   : > { %v2633_v45 = vsel %vm2630_vm8, %v2627_v49, %v2629_v27  ;;  %2641 = vst.msk [vmem:[#allocation3 + $0x90] sm:$0xf0] %vm2204_vm15, %v2629_v27  ;;  %v2442_v58 = vsel %vm2440_vm4, %v2435_v31, %v7942_v19  ;;  %v2685_v27 = vld [vmem:[#allocation3 + $0x40] sm:$0xff]  ;;  %vm9830_vm8 = vcmask 130048  }
 0x291   : > { %2640 = vst [vmem:[#allocation3 + $0x88] sm:$0xf0] %v2633_v45  ;;  %v2449_v3 = vsel %vm2350_vm11, %v2442_v58, 0.0  ;;  %v2681_v45 = vld [vmem:[#allocation3 + $0x18] sm:$0xff]  ;;  %v3039_v58 = vld [vmem:[%s9748_s10 + $0x7a8] sm:$0xff]  ;;  %vm9831_vm14 = vmmov %vm9830_vm8 }
 0x292   : > { %2453 = vst [vmem:[#allocation3 + $0x30] sm:$0xf] %v2449_v3  ;;  %v3034_v3 = vld [vmem:[%s9748_s10 + $0x780] sm:$0xff] }
 0x297   : > { %v2475_v44 = vpop.permute.xlu0 %2474  ;;  %v2693_v28 = vld [vmem:[#allocation3 + $0x90] sm:$0xff] }
 0x298   : > { %v2482_v9 = vsel %vm1174_vm7, %v2473_v57, %v2475_v44  ;;  %v2483_v54 = vsel %vm1174_vm7, %v2475_v44, %v2477_v20  ;;  %v2658_v39 = vpop.permute.xlu1 %2657  ;;  %2786 = vmatpush.msrb.mxu0 %v2693_v28  ;;  %v8016_v57 = vld [vmem:[#allocation3 + $0x28] sm:$0xff]  ;;  %v2870_v28 = vld [vmem:[%s9748_s10 + $0x260] sm:$0xff] }
 0x299   : > { %v2490_v49 = vsel %vm9824_vm0, %v2482_v9, 0.0  ;;  %v2491_v19 = vsel %vm2346_vm3, %v2483_v54, 0.0  ;;  %v2663_v2 = vsel %vm2661_vm13, %v7900_v48, %v2658_v39  ;;  %v2664_v42 = vsel %vm2661_vm13, %v2658_v39, %v2660_v17  ;;  %v8023_v48 = vld [vmem:[%s9741_s3] sm:$0xf]  ;;  %v8025_v17 = vld [vmem:[#allocation3 + $0xb0] sm:$0xf] }
 0x29a   : > { %v2498_v33 = vrot.slane %v2490_v49, 4  ;;  %v2499_v1 = vrot.slane %v2491_v19, 4  ;;  %v2670_v20 = vsel %vm2350_vm11, %v2663_v2, 0.0  ;;  %2787 = vmatpush.msrb.mxu0 %v2689_v24  ;;  %v2671_v62 = vsel %vm2351_vm5, %v2664_v42, 0.0  ;;  %v2865_v49 = vld [vmem:[%s9748_s10 + $0x238] sm:$0xff]  ;;  %v2691_v19 = vld [vmem:[#allocation3 + $0x80] sm:$0xff]  ;;  %vm9829_vm11 = vmmov %vm9824_vm0 }
 0x29b   : > { %2674 = vst [vmem:[#allocation3 + $0xa8] sm:$0xf] %v2670_v20  ;;  %v2860_v2 = vld [vmem:[%s9748_s10 + $0x210] sm:$0xff]  ;;  %v2855_v24 = vld [vmem:[%s9748_s10 + $0x1e8] sm:$0xff]  ;;  %vm9827_vm5 = vcmask 171008  }
 0x29c   : > { %2506 = vst [vmem:[#allocation3 + $0x28] sm:$0xf0] %v2498_v33  ;;  %2788 = vmatpush.msrb.mxu0 %v2685_v27  ;;  %v2402_v33 = vpop.permute.xlu2 %2401  ;;  %vm9828_vm13 = vmmov %vm9827_vm5 }
 0x29d   : > { %2507 = vst [vmem:[#allocation3 + $0x30] sm:$0xf0] %v2499_v1  ;;  %v2692_v1 = vld [vmem:[#allocation3 + $0x88] sm:$0xff] }
 0x29e   : > { %2675 = vst [vmem:[#allocation3 + $0xb0] sm:$0xf] %v2671_v62  ;;  %2789 = vmatpush.msrb.mxu0 %v2681_v45  ;;  %v8052_v62 = vld [vmem:[#allocation3] sm:$0xff] }
 0x29f   : > { %v2365_v52 = vpop.permute.xlu0 %2364  ;;  %6688 = vmatmul.msk.f32.vlgmr.msrb.gmra.mxu0 %vm2698_vm9, %v8023_v48 }
 0x2a0   : > { %v2433_v44 = vpop.permute.xlu1 %2432  ;;  %3121 = vmatpush.msra.mxu0 %v3039_v58 }
 0x2a1   : > { %v2441_v9 = vsel %vm2440_vm4, %v2433_v44, %v2435_v31  ;;  %v2687_v31 = vld [vmem:[#allocation3 + $0x58] sm:$0xff]  ;;  %vm9825_vm4 = vcmask 162816  }
 0x2a2   : > { %v2448_v54 = vsel %vm2349_vm12, %v2441_v9, 0.0  ;;  %v2695_v39 = vld [vmem:[#allocation3 + $0xa8] sm:$0xf]  ;;  %3122 = vmatpush.msra.mxu0 %v3034_v3  ;;  %vm9826_vm12 = vmmov %vm9825_vm4  ;;  %v2850_v44 = vld [vmem:[%s9748_s10 + $0x1c0] sm:$0xff] }
 0x2a3   : > { %2452 = vst [vmem:[#allocation3 + $0x28] sm:$0xf] %v2448_v54  ;;  %6683 = vmatpush.msk.msrb.mxu2 %vm991_vm1, %v2695_v39  ;;  %v8060_v9 = vld [vmem:[#allocation3 + $0x8] sm:$0xff] }
 0x2a4   : > { %3127 = vmatpush.msrb.mxu0 %v2870_v28  ;;  %v2683_v3 = vld [vmem:[#allocation3 + $0x30] sm:$0xff]  ;;  %v2688_v28 = vld [vmem:[#allocation3 + $0x60] sm:$0xff] }
 0x2a5   : > { %v2696_v42 = vld [vmem:[#allocation3 + $0xb0] sm:$0xf]  ;;  %2746 = vmatpush.msrb.mxu2 %v2691_v19 }
 0x2a6   : > { %3128 = vmatpush.msrb.mxu0 %v2865_v49  ;;  %6685 = vmatpush.msk.msra.mxu3 %vm991_vm1, %v2696_v42  ;;  %v3029_v42 = vld [vmem:[%s9748_s10 + $0x758] sm:$0xff] }
 0x2a7   : > { %2747 = vmatpush.msrb.mxu2 %v2687_v31  ;;  %v2404_v20 = vpop.permute.xlu0 %2403  ;;  %v2830_v31 = vld [vmem:[%s9748_s10 + $0x120] sm:$0xff] }
 0x2a8   : > { %3129 = vmatpush.msrb.mxu0 %v2860_v2  ;;  %2766 = vmatpush.msra.mxu3 %v2692_v1  ;;  %v2410_v27 = vsel %vm9825_vm4, %v2402_v33, %v2404_v20  ;;  %v2411_v45 = vsel %vm9826_vm12, %v2404_v20, %v7892_v12  ;;  %v2367_v58 = vpop.permute.xlu1 %2366  ;;  %v2845_v2 = vld [vmem:[%s9748_s10 + $0x198] sm:$0xff]  ;;  %vm9835_vm12 = vcmask 388224  }
 0x2a9   : > { %2417 = vst [vmem:[#allocation3] sm:$0xf0] %v2410_v27  ;;  %v2373_v54 = vsel %vm9827_vm5, %v2365_v52, %v2367_v58  ;;  %v2374_v39 = vsel %vm9828_vm13, %v2367_v58, %v7885_v47  ;;  %2748 = vmatpush.msrb.mxu2 %v2683_v3  ;;  %v2684_v52 = vld [vmem:[#allocation3 + $0x38] sm:$0xff]  ;;  %v2840_v47 = vld [vmem:[%s9748_s10 + $0x170] sm:$0xff]  ;;  %v3019_v3 = vld [vmem:[%s9748_s10 + $0x708] sm:$0xff] }
 0x2aa   : > { %3130 = vmatpush.msrb.mxu0 %v2855_v24  ;;  %2767 = vmatpush.msra.mxu3 %v2688_v28  ;;  %2418 = vst [vmem:[#allocation3 + $0x8] sm:$0xf0] %v2411_v45  ;;  %v2380_v12 = vsel %vm9829_vm11, %v2373_v54, 0.0  ;;  %v2381_v49 = vsel %vm2346_vm3, %v2374_v39, 0.0  ;;  %v2682_v19 = vld [vmem:[#allocation3 + $0x28] sm:$0xff]  ;;  %v2869_v1 = vld [vmem:[%s9748_s10 + $0x258] sm:$0xff]  ;;  %vm9832_vm3 = vmmov %vm9830_vm8 }
 0x2ab   : > { %2384 = vst [vmem:[#allocation3] sm:$0xf] %v2380_v12  ;;  %2728 = vmatpush.msrb.mxu1 %v2682_v19  ;;  %v3024_v24 = vld [vmem:[%s9748_s10 + $0x730] sm:$0xff]  ;;  %v2949_v27 = vld [vmem:[%s9748_s10 + $0x4d8] sm:$0xff]  ;;  %v2859_v54 = vld [vmem:[%s9748_s10 + $0x208] sm:$0xff]  ;;  %vm3902_vm11 = vcmask 105472  }
 0x2ac   : > { %3131 = vmatpush.msrb.mxu0 %v2850_v44  ;;  %2385 = vst [vmem:[#allocation3 + $0x8] sm:$0xf] %v2381_v49  ;;  %2768 = vmatpush.msra.mxu3 %v2684_v52  ;;  %v2825_v45 = vld [vmem:[%s9748_s10 + $0xf8] sm:$0xff]  ;;  %v2864_v58 = vld [vmem:[%s9748_s10 + $0x230] sm:$0xff]  ;;  %v3014_v39 = vld [vmem:[%s9748_s10 + $0x6e0] sm:$0xff] }
 0x2ad   : > { %v2944_v44 = vld [vmem:[%s9748_s10 + $0x4b0] sm:$0xff]  ;;  %v2815_v12 = vld [vmem:[%s9748_s10 + $0xa8] sm:$0xff]  ;;  %v2854_v49 = vld [vmem:[%s9748_s10 + $0x1e0] sm:$0xff] }
 0x2ae   : > { %3132 = vmatpush.msrb.mxu0 %v2845_v2  ;;  %2769 = vmatpush.msra.mxu3 %v2680_v56  ;;  %v2820_v28 = vld [vmem:[%s9748_s10 + $0xd0] sm:$0xff]  ;;  %v3009_v19 = vld [vmem:[%s9748_s10 + $0x6b8] sm:$0xff]  ;;  %v2934_v2 = vld [vmem:[%s9748_s10 + $0x460] sm:$0xff] }
 0x2af   : > { %6686 = vmatmul.msk.f32.vlgmr.msra.gmra.mxu3 %vm2698_vm9, %v8023_v48  ;;  %v2810_v52 = vld [vmem:[%s9748_s10 + $0x80] sm:$0xff]  ;;  %v3004_v56 = vld [vmem:[%s9748_s10 + $0x690] sm:$0xff]  ;;  %vm9833_vm0 = vmmov %vm9832_vm3 }
 0x2b0   : > { %3133 = vmatpush.msrb.mxu0 %v2840_v47  ;;  %3087 = vmatpush.msrb.mxu3 %v3029_v42  ;;  %v2849_v47 = vld [vmem:[%s9748_s10 + $0x1b8] sm:$0xff]  ;;  %vm9834_vm4 = vmmov %vm9833_vm0 }
 0x2b1   : > { %v2805_v42 = vld [vmem:[%s9748_s10 + $0x58] sm:$0xff] }
 0x2b2   : > { %3134 = vmatpush.msrb.mxu0 %v2835_v10  ;;  %v2678_v33 = vld [vmem:[#allocation3] sm:$0xff]  ;;  %3088 = vmatpush.msrb.mxu3 %v3024_v24  ;;  %v2929_v10 = vld [vmem:[%s9748_s10 + $0x438] sm:$0xff] }
 0x2b3   : > { %2729 = vmatpush.msrb.mxu1 %v2678_v33  ;;  %v2679_v20 = vld [vmem:[#allocation3 + $0x8] sm:$0xff] }
 0x2b4   : > { %3135 = vmatpush.msrb.mxu0 %v2830_v31  ;;  %2749 = vmatpush.msrb.mxu2 %v2679_v20  ;;  %v2844_v31 = vld [vmem:[%s9748_s10 + $0x190] sm:$0xff]  ;;  %v2999_v24 = vld [vmem:[%s9748_s10 + $0x668] sm:$0xff] }
 0x2b5   : > { %6682 = vmatmul.msk.f32.vlgmr.msrb.gmra.mxu1 %vm2698_vm9, %v8023_v48  ;;  %6684 = vmatmul.msk.f32.vlgmr.msrb.gmra.mxu2 %vm2698_vm9, %v8023_v48  ;;  %v2939_v48 = vld [vmem:[%s9748_s10 + $0x488] sm:$0xff]  ;;  %v2924_v33 = vld [vmem:[%s9748_s10 + $0x410] sm:$0xff] }
 0x2b6   : > { %3047 = vmatpush.msra.mxu1 %v2869_v1  ;;  %3067 = vmatpush.msra.mxu2 %v2949_v27  ;;  %v2800_v1 = vld [vmem:[%s9748_s10 + $0x30] sm:$0xff]  ;;  %v2839_v20 = vld [vmem:[%s9748_s10 + $0x168] sm:$0xff]  ;;  %v2994_v27 = vld [vmem:[%s9748_s10 + $0x640] sm:$0xff] }
 0x2b7   : > { %3136 = vmatpush.msrb.mxu0 %v2825_v45  ;;  %3089 = vmatpush.msrb.mxu3 %v3019_v3  ;;  %v2919_v45 = vld [vmem:[%s9748_s10 + $0x3e8] sm:$0xff]  ;;  %v2914_v3 = vld [vmem:[%s9748_s10 + $0x3c0] sm:$0xff] }
 0x2b8   : > { %3048 = vmatpush.msra.mxu1 %v2864_v58  ;;  %3068 = vmatpush.msra.mxu2 %v2944_v44  ;;  %v2834_v58 = vld [vmem:[%s9748_s10 + $0x140] sm:$0xff]  ;;  %v2829_v44 = vld [vmem:[%s9748_s10 + $0x118] sm:$0xff] }
 0x2b9   : > { %3137 = vmatpush.msrb.mxu0 %v2820_v28  ;;  %3090 = vmatpush.msrb.mxu3 %v3014_v39  ;;  %v2909_v28 = vld [vmem:[%s9748_s10 + $0x398] sm:$0xff]  ;;  %v2904_v39 = vld [vmem:[%s9748_s10 + $0x370] sm:$0xff] }
 0x2ba   : > { %3049 = vmatpush.msra.mxu1 %v2859_v54  ;;  %3069 = vmatpush.msra.mxu2 %v2939_v48  ;;  %v2824_v54 = vld [vmem:[%s9748_s10 + $0xf0] sm:$0xff]  ;;  %v2819_v48 = vld [vmem:[%s9748_s10 + $0xc8] sm:$0xff] }
 0x2bb   : > { %3138 = vmatpush.msrb.mxu0 %v2815_v12  ;;  %3091 = vmatpush.msrb.mxu3 %v3009_v19  ;;  %v2899_v12 = vld [vmem:[%s9748_s10 + $0x348] sm:$0xff]  ;;  %v2894_v19 = vld [vmem:[%s9748_s10 + $0x320] sm:$0xff] }
 0x2bc   : > { %3050 = vmatpush.msra.mxu1 %v2854_v49  ;;  %3070 = vmatpush.msra.mxu2 %v2934_v2  ;;  %v2814_v49 = vld [vmem:[%s9748_s10 + $0xa0] sm:$0xff]  ;;  %v2809_v2 = vld [vmem:[%s9748_s10 + $0x78] sm:$0xff] }
 0x2bd   : > { %3139 = vmatpush.msrb.mxu0 %v2810_v52  ;;  %3092 = vmatpush.msrb.mxu3 %v3004_v56  ;;  %v2889_v52 = vld [vmem:[%s9748_s10 + $0x2f8] sm:$0xff]  ;;  %v2884_v56 = vld [vmem:[%s9748_s10 + $0x2d0] sm:$0xff] }
 0x2be   : > { %3051 = vmatpush.msra.mxu1 %v2849_v47  ;;  %3071 = vmatpush.msra.mxu2 %v2929_v10  ;;  %v2804_v47 = vld [vmem:[%s9748_s10 + $0x50] sm:$0xff]  ;;  %v2799_v10 = vld [vmem:[%s9748_s10 + $0x28] sm:$0xff] }
 0x2bf   : > { %3140 = vmatpush.msrb.mxu0 %v2805_v42  ;;  %3093 = vmatpush.msrb.mxu3 %v2999_v24  ;;  %v2879_v42 = vld [vmem:[%s9748_s10 + $0x2a8] sm:$0xff]  ;;  %v2950_v24 = vld [vmem:[%s9748_s10 + $0x4e0] sm:$0xff] }
 0x2c0   : > { %3052 = vmatpush.msra.mxu1 %v2844_v31  ;;  %3072 = vmatpush.msra.mxu2 %v2924_v33  ;;  %v2794_v31 = vld [vmem:[%s9748_s10] sm:$0xff]  ;;  %v2945_v33 = vld [vmem:[%s9748_s10 + $0x4b8] sm:$0xff] }
 0x2c1   : > { %3141 = vmatpush.msrb.mxu0 %v2800_v1  ;;  %3094 = vmatpush.msrb.mxu3 %v2994_v27  ;;  %v2940_v1 = vld [vmem:[%s9748_s10 + $0x490] sm:$0xff]  ;;  %v2930_v27 = vld [vmem:[%s9748_s10 + $0x440] sm:$0xff] }
 0x2c2   : > { %3053 = vmatpush.msra.mxu1 %v2839_v20  ;;  %3073 = vmatpush.msra.mxu2 %v2919_v45  ;;  %v2935_v20 = vld [vmem:[%s9748_s10 + $0x468] sm:$0xff]  ;;  %v2874_v45 = vld [vmem:[%s9748_s10 + $0x280] sm:$0xff] }
 0x2c4   : > { %3054 = vmatpush.msra.mxu1 %v2834_v58  ;;  %3074 = vmatpush.msra.mxu2 %v2914_v3  ;;  %v2795_v58 = vld [vmem:[%s9748_s10 + $0x8] sm:$0xff]  ;;  %v2925_v3 = vld [vmem:[%s9748_s10 + $0x418] sm:$0xff] }
 0x2c5   : > { %3142 = vmatpush.msrb.mxu0 %v2795_v58  ;;  %v2954_v58 = vld [vmem:[%s9748_s10 + $0x500] sm:$0xff] }
 0x2c6   : > { %3055 = vmatpush.msra.mxu1 %v2829_v44  ;;  %3075 = vmatpush.msra.mxu2 %v2909_v28  ;;  %v2989_v44 = vld [vmem:[%s9748_s10 + $0x618] sm:$0xff]  ;;  %v3030_v28 = vld [vmem:[%s9748_s10 + $0x760] sm:$0xff] }
 0x2c7   : > { %3095 = vmatpush.msrb.mxu3 %v2989_v44  ;;  %v2885_v44 = vld [vmem:[%s9748_s10 + $0x2d8] sm:$0xff] }
 0x2c8   : > { %3056 = vmatpush.msra.mxu1 %v2824_v54  ;;  %3076 = vmatpush.msra.mxu2 %v2904_v39  ;;  %v2920_v54 = vld [vmem:[%s9748_s10 + $0x3f0] sm:$0xff] }
 0x2c9   : > { %v2984_v39 = vld [vmem:[%s9748_s10 + $0x5f0] sm:$0xff] }
 0x2ca   : > { %3057 = vmatpush.msra.mxu1 %v2819_v48  ;;  %3077 = vmatpush.msra.mxu2 %v2899_v12  ;;  %v3025_v48 = vld [vmem:[%s9748_s10 + $0x738] sm:$0xff]  ;;  %v2915_v12 = vld [vmem:[%s9748_s10 + $0x3c8] sm:$0xff] }
 0x2cb   : > { %3096 = vmatpush.msrb.mxu3 %v2984_v39  ;;  %v2880_v39 = vld [vmem:[%s9748_s10 + $0x2b0] sm:$0xff] }
 0x2cc   : > { %3058 = vmatpush.msra.mxu1 %v2814_v49  ;;  %3078 = vmatpush.msra.mxu2 %v2894_v19  ;;  %v2979_v49 = vld [vmem:[%s9748_s10 + $0x5c8] sm:$0xff]  ;;  %v3020_v19 = vld [vmem:[%s9748_s10 + $0x710] sm:$0xff] }
 0x2cd   : > { %3097 = vmatpush.msrb.mxu3 %v2979_v49  ;;  %v2875_v49 = vld [vmem:[%s9748_s10 + $0x288] sm:$0xff] }
 0x2ce   : > { %3059 = vmatpush.msra.mxu1 %v2809_v2  ;;  %3079 = vmatpush.msra.mxu2 %v2889_v52  ;;  %v2910_v2 = vld [vmem:[%s9748_s10 + $0x3a0] sm:$0xff] }
 0x2cf   : > { %v2974_v52 = vld [vmem:[%s9748_s10 + $0x5a0] sm:$0xff] }
 0x2d0   : > { %3060 = vmatpush.msra.mxu1 %v2804_v47  ;;  %3080 = vmatpush.msra.mxu2 %v2884_v56  ;;  %v3015_v47 = vld [vmem:[%s9748_s10 + $0x6e8] sm:$0xff]  ;;  %v2905_v56 = vld [vmem:[%s9748_s10 + $0x378] sm:$0xff] }
 0x2d1   : > { %3098 = vmatpush.msrb.mxu3 %v2974_v52  ;;  %v2970_v52 = vld [vmem:[%s9748_s10 + $0x580] sm:$0xff] }
 0x2d2   : > { %3061 = vmatpush.msra.mxu1 %v2799_v10  ;;  %3081 = vmatpush.msra.mxu2 %v2879_v42  ;;  %v2969_v10 = vld [vmem:[%s9748_s10 + $0x578] sm:$0xff]  ;;  %v3010_v42 = vld [vmem:[%s9748_s10 + $0x6c0] sm:$0xff] }
 0x2d3   : > { %3099 = vmatpush.msrb.mxu3 %v2969_v10 }
 0x2d4   : > { %3062 = vmatpush.msra.mxu1 %v2794_v31  ;;  %3082 = vmatpush.msra.mxu2 %v2874_v45  ;;  %v2900_v31 = vld [vmem:[%s9748_s10 + $0x350] sm:$0xff]  ;;  %v2890_v45 = vld [vmem:[%s9748_s10 + $0x300] sm:$0xff] }
 0x2d6   : > { %3147 = vmatpush.msrb.mxu1 %v2950_v24  ;;  %3167 = vmatpush.msrb.mxu2 %v3030_v28  ;;  %v2964_v24 = vld [vmem:[%s9748_s10 + $0x550] sm:$0xff] }
 0x2d7   : > { %3100 = vmatpush.msrb.mxu3 %v2964_v24  ;;  %v3040_v28 = vld [vmem:[%s9748_s10 + $0x7b0] sm:$0xff]  ;;  %v2955_v24 = vld [vmem:[%s9748_s10 + $0x508] sm:$0xff] }
 0x2d8   : > { %3148 = vmatpush.msrb.mxu1 %v2945_v33  ;;  %3168 = vmatpush.msrb.mxu2 %v3025_v48  ;;  %v3005_v33 = vld [vmem:[%s9748_s10 + $0x698] sm:$0xff]  ;;  %v3035_v48 = vld [vmem:[%s9748_s10 + $0x788] sm:$0xff] }
 0x2da   : > { %3149 = vmatpush.msrb.mxu1 %v2940_v1  ;;  %3169 = vmatpush.msrb.mxu2 %v3020_v19  ;;  %v2895_v1 = vld [vmem:[%s9748_s10 + $0x328] sm:$0xff]  ;;  %v2980_v19 = vld [vmem:[%s9748_s10 + $0x5d0] sm:$0xff] }
 0x2dc   : > { %3150 = vmatpush.msrb.mxu1 %v2935_v20  ;;  %3170 = vmatpush.msrb.mxu2 %v3015_v47  ;;  %v2959_v20 = vld [vmem:[%s9748_s10 + $0x528] sm:$0xff]  ;;  %v2965_v47 = vld [vmem:[%s9748_s10 + $0x558] sm:$0xff] }
 0x2dd   : > { %3101 = vmatpush.msrb.mxu3 %v2959_v20  ;;  %v2931_v20 = vld [vmem:[%s9748_s10 + $0x448] sm:$0xff] }
 0x2de   : > { %3151 = vmatpush.msrb.mxu1 %v2930_v27  ;;  %3171 = vmatpush.msrb.mxu2 %v3010_v42  ;;  %v3000_v27 = vld [vmem:[%s9748_s10 + $0x670] sm:$0xff] }
 0x2df   : > { %3102 = vmatpush.msrb.mxu3 %v2954_v58  ;;  %v2960_v42 = vld [vmem:[%s9748_s10 + $0x530] sm:$0xff] }
 0x2e0   : > { %3152 = vmatpush.msrb.mxu1 %v2925_v3  ;;  %3172 = vmatpush.msrb.mxu2 %v3005_v33  ;;  %v2995_v3 = vld [vmem:[%s9748_s10 + $0x648] sm:$0xff]  ;;  %v2941_v33 = vld [vmem:[%s9748_s10 + $0x498] sm:$0xff]  ;;  %v2916_v58 = vld [vmem:[%s9748_s10 + $0x3d0] sm:$0xff] }
 0x2e1   : > { %3201 = vmatpush.msra.mxu3 %v3040_v28  ;;  %v2901_v28 = vld [vmem:[%s9748_s10 + $0x358] sm:$0xff] }
 0x2e2   : > { %3153 = vmatpush.msrb.mxu1 %v2920_v54  ;;  %3173 = vmatpush.msrb.mxu2 %v3000_v27  ;;  %v2990_v54 = vld [vmem:[%s9748_s10 + $0x620] sm:$0xff] }
 0x2e3   : > { %3202 = vmatpush.msra.mxu3 %v3035_v48  ;;  %v2926_v27 = vld [vmem:[%s9748_s10 + $0x420] sm:$0xff] }
 0x2e4   : > { %3154 = vmatpush.msrb.mxu1 %v2915_v12  ;;  %3174 = vmatpush.msrb.mxu2 %v2995_v3  ;;  %v2985_v12 = vld [vmem:[%s9748_s10 + $0x5f8] sm:$0xff]  ;;  %v2911_v3 = vld [vmem:[%s9748_s10 + $0x3a8] sm:$0xff] }
 0x2e6   : > { %3155 = vmatpush.msrb.mxu1 %v2910_v2  ;;  %3175 = vmatpush.msrb.mxu2 %v2990_v54  ;;  %v2975_v2 = vld [vmem:[%s9748_s10 + $0x5a8] sm:$0xff] }
 0x2e7   : > { %v3031_v54 = vld [vmem:[%s9748_s10 + $0x768] sm:$0xff] }
 0x2e8   : > { %3156 = vmatpush.msrb.mxu1 %v2905_v56  ;;  %3176 = vmatpush.msrb.mxu2 %v2985_v12  ;;  %v2951_v56 = vld [vmem:[%s9748_s10 + $0x4e8] sm:$0xff]  ;;  %v2896_v12 = vld [vmem:[%s9748_s10 + $0x330] sm:$0xff] }
 0x2ea   : > { %3157 = vmatpush.msrb.mxu1 %v2900_v31  ;;  %3177 = vmatpush.msrb.mxu2 %v2980_v19  ;;  %v2946_v31 = vld [vmem:[%s9748_s10 + $0x4c0] sm:$0xff] }
 0x2eb   : > { %v3026_v19 = vld [vmem:[%s9748_s10 + $0x740] sm:$0xff] }
 0x2ec   : > { %3158 = vmatpush.msrb.mxu1 %v2895_v1  ;;  %3178 = vmatpush.msrb.mxu2 %v2975_v2  ;;  %v2936_v1 = vld [vmem:[%s9748_s10 + $0x470] sm:$0xff]  ;;  %v2866_v2 = vld [vmem:[%s9748_s10 + $0x240] sm:$0xff] }
 0x2ee   : > { %3159 = vmatpush.msrb.mxu1 %v2890_v45  ;;  %3179 = vmatpush.msrb.mxu2 %v2970_v52  ;;  %v2921_v45 = vld [vmem:[%s9748_s10 + $0x3f8] sm:$0xff]  ;;  %v2891_v52 = vld [vmem:[%s9748_s10 + $0x308] sm:$0xff] }
 0x2f0   : > { %3160 = vmatpush.msrb.mxu1 %v2885_v44  ;;  %3180 = vmatpush.msrb.mxu2 %v2965_v47  ;;  %v2906_v44 = vld [vmem:[%s9748_s10 + $0x380] sm:$0xff]  ;;  %v3021_v47 = vld [vmem:[%s9748_s10 + $0x718] sm:$0xff] }
 0x2f2   : > { %3161 = vmatpush.msrb.mxu1 %v2880_v39  ;;  %3181 = vmatpush.msrb.mxu2 %v2960_v42  ;;  %v2871_v39 = vld [vmem:[%s9748_s10 + $0x268] sm:$0xff]  ;;  %v2886_v42 = vld [vmem:[%s9748_s10 + $0x2e0] sm:$0xff] }
 0x2f4   : > { %3162 = vmatpush.msrb.mxu1 %v2875_v49  ;;  %3182 = vmatpush.msrb.mxu2 %v2955_v24  ;;  %v2856_v24 = vld [vmem:[%s9748_s10 + $0x1f0] sm:$0xff] }
 0x31c   : > { %v8351_v10 = vpop.f32.mrf.mxu0 }
 0x31d   : > { %6689 = vmatmul.msk.f32.vlgmr.msra.gmra.mxu0 %vm9830_vm8, %v8351_v10 }
 0x31e   : > { %3227 = vmatpush.msra.mxu0 %v2951_v56  ;;  %v2861_v56 = vld [vmem:[%s9748_s10 + $0x218] sm:$0xff] }
 0x320   : > { %3228 = vmatpush.msra.mxu0 %v2946_v31  ;;  %v3016_v31 = vld [vmem:[%s9748_s10 + $0x6f0] sm:$0xff] }
 0x322   : > { %3229 = vmatpush.msra.mxu0 %v2941_v33 }
 0x324   : > { %3230 = vmatpush.msra.mxu0 %v2936_v1  ;;  %v2881_v1 = vld [vmem:[%s9748_s10 + $0x2b8] sm:$0xff] }
 0x326   : > { %3231 = vmatpush.msra.mxu0 %v2931_v20  ;;  %v2851_v20 = vld [vmem:[%s9748_s10 + $0x1c8] sm:$0xff] }
 0x328   : > { %3232 = vmatpush.msra.mxu0 %v2926_v27  ;;  %v3011_v27 = vld [vmem:[%s9748_s10 + $0x6c8] sm:$0xff] }
 0x32a   : > { %3233 = vmatpush.msra.mxu0 %v2921_v45  ;;  %v2876_v45 = vld [vmem:[%s9748_s10 + $0x290] sm:$0xff] }
 0x32c   : > { %3234 = vmatpush.msra.mxu0 %v2916_v58  ;;  %v3041_v58 = vld [vmem:[%s9748_s10 + $0x7b8] sm:$0xff] }
 0x32e   : > { %3235 = vmatpush.msra.mxu0 %v2911_v3  ;;  %v2846_v3 = vld [vmem:[%s9748_s10 + $0x1a0] sm:$0xff] }
 0x330   : > { %3236 = vmatpush.msra.mxu0 %v2906_v44  ;;  %v3006_v44 = vld [vmem:[%s9748_s10 + $0x6a0] sm:$0xff] }
 0x332   : > { %v8397_v48 = vpop.f32.mrf.mxu1  ;;  %v8402_v49 = vpop.f32.mrf.mxu3  ;;  %3237 = vmatpush.msra.mxu0 %v2901_v28  ;;  %v3032_v28 = vld [vmem:[%s9748_s10 + $0x770] sm:$0xff] }
 0x333   : > { %3063 = vmatmul.f32.vlgmr.msra.gmra.mxu1 %v8397_v48  ;;  %3103 = vmatmul.f32.vlgmr.msrb.gmra.mxu3 %v8402_v49 }
 0x334   : > { %3247 = vmatpush.msra.mxu1 %v3031_v54  ;;  %3207 = vmatpush.msrb.mxu3 %v2871_v39  ;;  %v3036_v54 = vld [vmem:[%s9748_s10 + $0x790] sm:$0xff]  ;;  %v2841_v39 = vld [vmem:[%s9748_s10 + $0x178] sm:$0xff] }
 0x335   : > { %3238 = vmatpush.msra.mxu0 %v2896_v12  ;;  %v3001_v12 = vld [vmem:[%s9748_s10 + $0x678] sm:$0xff] }
 0x336   : > { %3248 = vmatpush.msra.mxu1 %v3026_v19  ;;  %3143 = vmatmul.f32.vlgmr.msrb.gmra.mxu0 %v8397_v48  ;;  %v3027_v19 = vld [vmem:[%s9748_s10 + $0x748] sm:$0xff] }
 0x337   : > { %3208 = vmatpush.msrb.mxu3 %v2866_v2  ;;  %3239 = vmatpush.msra.mxu0 %v2891_v52  ;;  %v2836_v2 = vld [vmem:[%s9748_s10 + $0x150] sm:$0xff] }
 0x338   : > { %3249 = vmatpush.msra.mxu1 %v3021_v47  ;;  %v8431_v33 = vpop.f32.mrf.mxu2  ;;  %v2996_v52 = vld [vmem:[%s9748_s10 + $0x650] sm:$0xff] }
 0x339   : > { %3209 = vmatpush.msrb.mxu3 %v2861_v56  ;;  %3240 = vmatpush.msra.mxu0 %v2886_v42  ;;  %v2872_v47 = vld [vmem:[%s9748_s10 + $0x270] sm:$0xff]  ;;  %v3022_v56 = vld [vmem:[%s9748_s10 + $0x720] sm:$0xff]  ;;  %v2831_v42 = vld [vmem:[%s9748_s10 + $0x128] sm:$0xff] }
 0x33a   : > { %3083 = vmatmul.f32.vlgmr.msra.gmra.mxu2 %v8431_v33  ;;  %3250 = vmatpush.msra.mxu1 %v3016_v31  ;;  %v2991_v31 = vld [vmem:[%s9748_s10 + $0x628] sm:$0xff] }
 0x33b   : > { %3210 = vmatpush.msrb.mxu3 %v2856_v24  ;;  %3163 = vmatmul.f32.vlgmr.msrb.gmra.mxu1 %v8431_v33  ;;  %v2867_v24 = vld [vmem:[%s9748_s10 + $0x248] sm:$0xff] }
 0x33c   : > { %6690 = vmatmul.msk.f32.vlgmr.msra.gmra.mxu3 %vm9831_vm14, %v8351_v10  ;;  %3241 = vmatpush.msra.mxu0 %v2881_v1  ;;  %v3017_v1 = vld [vmem:[%s9748_s10 + $0x6f8] sm:$0xff]  ;;  %vm3951_vm14 = vcmask 89088  }
 0x33d   : > { %3211 = vmatpush.msrb.mxu3 %v2851_v20  ;;  %3251 = vmatpush.msra.mxu1 %v3011_v27  ;;  %v2826_v20 = vld [vmem:[%s9748_s10 + $0x100] sm:$0xff] }
 0x33e   : > { %3242 = vmatpush.msra.mxu0 %v2876_v45  ;;  %3281 = vmatpush.msra.mxu2 %v3041_v58  ;;  %v2986_v27 = vld [vmem:[%s9748_s10 + $0x600] sm:$0xff]  ;;  %v2821_v58 = vld [vmem:[%s9748_s10 + $0xd8] sm:$0xff] }
 0x33f   : > { %3212 = vmatpush.msrb.mxu3 %v2846_v3  ;;  %3252 = vmatpush.msra.mxu1 %v3006_v44  ;;  %v2862_v45 = vld [vmem:[%s9748_s10 + $0x220] sm:$0xff]  ;;  %v3012_v3 = vld [vmem:[%s9748_s10 + $0x6d0] sm:$0xff]  ;;  %v2981_v44 = vld [vmem:[%s9748_s10 + $0x5d8] sm:$0xff] }
 0x340   : > { %3327 = vmatpush.msrb.mxu0 %v3032_v28  ;;  %3282 = vmatpush.msra.mxu2 %v3036_v54  ;;  %v2857_v28 = vld [vmem:[%s9748_s10 + $0x1f8] sm:$0xff]  ;;  %v2816_v54 = vld [vmem:[%s9748_s10 + $0xb0] sm:$0xff] }
 0x341   : > { %3213 = vmatpush.msrb.mxu3 %v2841_v39  ;;  %3253 = vmatpush.msra.mxu1 %v3001_v12  ;;  %v3007_v39 = vld [vmem:[%s9748_s10 + $0x6a8] sm:$0xff]  ;;  %v2976_v12 = vld [vmem:[%s9748_s10 + $0x5b0] sm:$0xff] }
 0x342   : > { %3328 = vmatpush.msrb.mxu0 %v3027_v19  ;;  %3183 = vmatmul.f32.vlgmr.msrb.gmra.mxu2 %v8402_v49  ;;  %v2811_v19 = vld [vmem:[%s9748_s10 + $0x88] sm:$0xff] }
 0x343   : > { %3214 = vmatpush.msrb.mxu3 %v2836_v2  ;;  %3254 = vmatpush.msra.mxu1 %v2996_v52  ;;  %v2852_v2 = vld [vmem:[%s9748_s10 + $0x1d0] sm:$0xff]  ;;  %v3002_v52 = vld [vmem:[%s9748_s10 + $0x680] sm:$0xff] }
 0x344   : > { %3287 = vmatpush.msrb.mxu2 %v2872_v47  ;;  %3329 = vmatpush.msrb.mxu0 %v3022_v56  ;;  %v2971_v47 = vld [vmem:[%s9748_s10 + $0x588] sm:$0xff]  ;;  %v2806_v56 = vld [vmem:[%s9748_s10 + $0x60] sm:$0xff] }
 0x345   : > { %3215 = vmatpush.msrb.mxu3 %v2831_v42  ;;  %3255 = vmatpush.msra.mxu1 %v2991_v31  ;;  %v2847_v42 = vld [vmem:[%s9748_s10 + $0x1a8] sm:$0xff]  ;;  %v2997_v31 = vld [vmem:[%s9748_s10 + $0x658] sm:$0xff] }
 0x346   : > { %3288 = vmatpush.msrb.mxu2 %v2867_v24  ;;  %3330 = vmatpush.msrb.mxu0 %v3017_v1  ;;  %v2966_v24 = vld [vmem:[%s9748_s10 + $0x560] sm:$0xff]  ;;  %v2801_v1 = vld [vmem:[%s9748_s10 + $0x38] sm:$0xff] }
 0x347   : > { %3216 = vmatpush.msrb.mxu3 %v2826_v20  ;;  %3256 = vmatpush.msra.mxu1 %v2986_v27  ;;  %v2842_v20 = vld [vmem:[%s9748_s10 + $0x180] sm:$0xff]  ;;  %v2992_v27 = vld [vmem:[%s9748_s10 + $0x630] sm:$0xff] }
 0x348   : > { %3289 = vmatpush.msrb.mxu2 %v2862_v45  ;;  %3243 = vmatmul.f32.vlgmr.msra.gmra.mxu0 %v8431_v33  ;;  %v2961_v45 = vld [vmem:[%s9748_s10 + $0x538] sm:$0xff] }
 0x349   : > { %3217 = vmatpush.msrb.mxu3 %v2821_v58  ;;  %3331 = vmatpush.msrb.mxu0 %v3012_v3  ;;  %v2796_v58 = vld [vmem:[%s9748_s10 + $0x10] sm:$0xff]  ;;  %v2837_v3 = vld [vmem:[%s9748_s10 + $0x158] sm:$0xff] }
 0x34a   : > { %3257 = vmatpush.msra.mxu1 %v2981_v44  ;;  %3290 = vmatpush.msrb.mxu2 %v2857_v28  ;;  %v2987_v44 = vld [vmem:[%s9748_s10 + $0x608] sm:$0xff]  ;;  %v2952_v28 = vld [vmem:[%s9748_s10 + $0x4f0] sm:$0xff] }
 0x34b   : > { %3218 = vmatpush.msrb.mxu3 %v2816_v54  ;;  %3332 = vmatpush.msrb.mxu0 %v3007_v39  ;;  %v2956_v54 = vld [vmem:[%s9748_s10 + $0x510] sm:$0xff] }
 0x34c   : > { %3258 = vmatpush.msra.mxu1 %v2976_v12  ;;  %6691 = vmatmul.msk.f32.vlgmr.msra.gmra.mxu2 %vm9832_vm3, %v8351_v10  ;;  %v2832_v39 = vld [vmem:[%s9748_s10 + $0x130] sm:$0xff]  ;;  %v2947_v12 = vld [vmem:[%s9748_s10 + $0x4c8] sm:$0xff] }
 0x34d   : > { %3219 = vmatpush.msrb.mxu3 %v2811_v19  ;;  %3291 = vmatpush.msrb.mxu2 %v2852_v2  ;;  %v2982_v19 = vld [vmem:[%s9748_s10 + $0x5e0] sm:$0xff] }
 0x34e   : > { %3333 = vmatpush.msrb.mxu0 %v3002_v52  ;;  %3259 = vmatpush.msra.mxu1 %v2971_v47  ;;  %v3042_v2 = vld [vmem:[%s9748_s10 + $0x7c0] sm:$0xff]  ;;  %v2827_v52 = vld [vmem:[%s9748_s10 + $0x108] sm:$0xff] }
 0x34f   : > { %3220 = vmatpush.msrb.mxu3 %v2806_v56  ;;  %3292 = vmatpush.msrb.mxu2 %v2847_v42  ;;  %v2942_v47 = vld [vmem:[%s9748_s10 + $0x4a0] sm:$0xff]  ;;  %v2977_v56 = vld [vmem:[%s9748_s10 + $0x5b8] sm:$0xff] }
 0x350   : > { %3334 = vmatpush.msrb.mxu0 %v2997_v31  ;;  %3260 = vmatpush.msra.mxu1 %v2966_v24  ;;  %v3037_v42 = vld [vmem:[%s9748_s10 + $0x798] sm:$0xff]  ;;  %v2822_v31 = vld [vmem:[%s9748_s10 + $0xe0] sm:$0xff] }
 0x351   : > { %3221 = vmatpush.msrb.mxu3 %v2801_v1  ;;  %3293 = vmatpush.msrb.mxu2 %v2842_v20  ;;  %v2873_v24 = vld [vmem:[%s9748_s10 + $0x278] sm:$0xff]  ;;  %v2972_v20 = vld [vmem:[%s9748_s10 + $0x590] sm:$0xff] }
 0x352   : > { %3335 = vmatpush.msrb.mxu0 %v2992_v27  ;;  %3261 = vmatpush.msra.mxu1 %v2961_v45  ;;  %v2937_v1 = vld [vmem:[%s9748_s10 + $0x478] sm:$0xff]  ;;  %v2868_v45 = vld [vmem:[%s9748_s10 + $0x250] sm:$0xff] }
 0x353   : > { %3222 = vmatpush.msrb.mxu3 %v2796_v58  ;;  %3294 = vmatpush.msrb.mxu2 %v2837_v3  ;;  %v2817_v27 = vld [vmem:[%s9748_s10 + $0xb8] sm:$0xff]  ;;  %v2932_v58 = vld [vmem:[%s9748_s10 + $0x450] sm:$0xff]  ;;  %v2967_v3 = vld [vmem:[%s9748_s10 + $0x568] sm:$0xff] }
 0x354   : > { %3223 = vmatmul.f32.vlgmr.msrb.gmra.mxu3 %v8397_v48  ;;  %3336 = vmatpush.msrb.mxu0 %v2987_v44  ;;  %v2812_v44 = vld [vmem:[%s9748_s10 + $0x90] sm:$0xff] }
 0x355   : > { %3307 = vmatpush.msra.mxu3 %v2952_v28  ;;  %3262 = vmatpush.msra.mxu1 %v2956_v54  ;;  %v2863_v28 = vld [vmem:[%s9748_s10 + $0x228] sm:$0xff] }
 0x356   : > { %3295 = vmatpush.msrb.mxu2 %v2832_v39  ;;  %3263 = vmatmul.f32.vlgmr.msra.gmra.mxu1 %v8402_v49  ;;  %v2927_v54 = vld [vmem:[%s9748_s10 + $0x428] sm:$0xff]  ;;  %v2962_v39 = vld [vmem:[%s9748_s10 + $0x540] sm:$0xff] }
 0x357   : > { %3308 = vmatpush.msra.mxu3 %v2947_v12  ;;  %3337 = vmatpush.msrb.mxu0 %v2982_v19  ;;  %v2807_v12 = vld [vmem:[%s9748_s10 + $0x68] sm:$0xff]  ;;  %v2858_v19 = vld [vmem:[%s9748_s10 + $0x200] sm:$0xff] }
 0x358   : > { %3361 = vmatpush.msrb.mxu1 %v3042_v2  ;;  %3296 = vmatpush.msrb.mxu2 %v2827_v52  ;;  %v2922_v2 = vld [vmem:[%s9748_s10 + $0x400] sm:$0xff]  ;;  %v2957_v52 = vld [vmem:[%s9748_s10 + $0x518] sm:$0xff] }
 0x359   : > { %3309 = vmatpush.msra.mxu3 %v2942_v47  ;;  %3338 = vmatpush.msrb.mxu0 %v2977_v56  ;;  %v2802_v47 = vld [vmem:[%s9748_s10 + $0x40] sm:$0xff]  ;;  %v2853_v56 = vld [vmem:[%s9748_s10 + $0x1d8] sm:$0xff] }
 0x35a   : > { %3362 = vmatpush.msrb.mxu1 %v3037_v42  ;;  %3297 = vmatpush.msrb.mxu2 %v2822_v31  ;;  %v3043_v42 = vld [vmem:[%s9748_s10 + $0x7c8] sm:$0xff]  ;;  %v2917_v31 = vld [vmem:[%s9748_s10 + $0x3d8] sm:$0xff] }
 0x35b   : > { %3310 = vmatpush.msra.mxu3 %v2937_v1  ;;  %3339 = vmatpush.msrb.mxu0 %v2972_v20  ;;  %v2848_v1 = vld [vmem:[%s9748_s10 + $0x1b0] sm:$0xff]  ;;  %v3038_v20 = vld [vmem:[%s9748_s10 + $0x7a0] sm:$0xff] }
 0x35c   : > { %3367 = vmatpush.msra.mxu1 %v2873_v24  ;;  %3298 = vmatpush.msrb.mxu2 %v2817_v27  ;;  %v2797_v24 = vld [vmem:[%s9748_s10 + $0x18] sm:$0xff]  ;;  %v2912_v27 = vld [vmem:[%s9748_s10 + $0x3b0] sm:$0xff] }
 0x35d   : > { %3311 = vmatpush.msra.mxu3 %v2932_v58  ;;  %3340 = vmatpush.msrb.mxu0 %v2967_v3  ;;  %v3477_v58 = vld [vmem:[#allocation6 + $0xf0] sm:$0xff]  ;;  %v2843_v3 = vld [vmem:[%s9748_s10 + $0x188] sm:$0xff] }
 0x35e   : > { %3368 = vmatpush.msra.mxu1 %v2868_v45  ;;  %3299 = vmatpush.msrb.mxu2 %v2812_v44  ;;  %v2953_v45 = vld [vmem:[%s9748_s10 + $0x4f8] sm:$0xff]  ;;  %v2907_v44 = vld [vmem:[%s9748_s10 + $0x388] sm:$0xff] }
 0x35f   : > { %3312 = vmatpush.msra.mxu3 %v2927_v54  ;;  %3341 = vmatpush.msrb.mxu0 %v2962_v39  ;;  %v3475_v54 = vld [vmem:[#allocation6 + $0xe0] sm:$0xff]  ;;  %v2838_v39 = vld [vmem:[%s9748_s10 + $0x160] sm:$0xff] }
 0x360   : > { %3369 = vmatpush.msra.mxu1 %v2863_v28  ;;  %3300 = vmatpush.msrb.mxu2 %v2807_v12  ;;  %v2948_v28 = vld [vmem:[%s9748_s10 + $0x4d0] sm:$0xff]  ;;  %v2902_v12 = vld [vmem:[%s9748_s10 + $0x360] sm:$0xff] }
 0x361   : > { %6692 = vmatmul.msk.f32.vlgmr.msrb.gmra.mxu1 %vm9833_vm0, %v8351_v10  ;;  %3313 = vmatpush.msra.mxu3 %v2922_v2  ;;  %v3473_v2 = vld [vmem:[#allocation6 + $0xd0] sm:$0xff] }
 0x362   : > { %3370 = vmatpush.msra.mxu1 %v2858_v19  ;;  %3342 = vmatpush.msrb.mxu0 %v2957_v52  ;;  %v2943_v19 = vld [vmem:[%s9748_s10 + $0x4a8] sm:$0xff]  ;;  %v2833_v52 = vld [vmem:[%s9748_s10 + $0x138] sm:$0xff] }
 0x363   : > { %3301 = vmatpush.msrb.mxu2 %v2802_v47  ;;  %3343 = vmatmul.f32.vlgmr.msrb.gmra.mxu0 %v8402_v49  ;;  %v2897_v47 = vld [vmem:[%s9748_s10 + $0x338] sm:$0xff] }
 0x364   : > { %3371 = vmatpush.msra.mxu1 %v2853_v56  ;;  %3441 = vmatpush.msra.mxu0 %v3043_v42  ;;  %v2938_v56 = vld [vmem:[%s9748_s10 + $0x480] sm:$0xff]  ;;  %v3471_v42 = vld [vmem:[#allocation6 + $0xc0] sm:$0xff] }
 0x365   : > { %3314 = vmatpush.msra.mxu3 %v2917_v31  ;;  %3302 = vmatpush.msrb.mxu2 %v2797_v24  ;;  %v2828_v31 = vld [vmem:[%s9748_s10 + $0x110] sm:$0xff] }
 0x366   : > { %3372 = vmatpush.msra.mxu1 %v2848_v1  ;;  %3442 = vmatpush.msra.mxu0 %v3038_v20  ;;  %v2892_v24 = vld [vmem:[%s9748_s10 + $0x310] sm:$0xff]  ;;  %v2933_v1 = vld [vmem:[%s9748_s10 + $0x458] sm:$0xff] }
 0x367   : > { %3303 = vmatmul.f32.vlgmr.msrb.gmra.mxu2 %v8397_v48  ;;  %3315 = vmatpush.msra.mxu3 %v2912_v27  ;;  %v3469_v20 = vld [vmem:[#allocation6 + $0xb0] sm:$0xff]  ;;  %v2823_v27 = vld [vmem:[%s9748_s10 + $0xe8] sm:$0xff] }
 0x368   : > { %3387 = vmatpush.msra.mxu2 %v2953_v45  ;;  %3607 = vmatpush.msrb.mxu0 %v3477_v58  ;;  %v2928_v45 = vld [vmem:[%s9748_s10 + $0x430] sm:$0xff] }
 0x369   : > { %3373 = vmatpush.msra.mxu1 %v2843_v3  ;;  %3316 = vmatpush.msra.mxu3 %v2907_v44  ;;  %v3467_v58 = vld [vmem:[#allocation6 + $0xa0] sm:$0xff]  ;;  %v2818_v3 = vld [vmem:[%s9748_s10 + $0xc0] sm:$0xff] }
 0x36a   : > { %3388 = vmatpush.msra.mxu2 %v2948_v28  ;;  %3608 = vmatpush.msrb.mxu0 %v3475_v54  ;;  %v2882_v44 = vld [vmem:[%s9748_s10 + $0x2c0] sm:$0xff]  ;;  %v2923_v28 = vld [vmem:[%s9748_s10 + $0x408] sm:$0xff] }
 0x36b   : > { %3374 = vmatpush.msra.mxu1 %v2838_v39  ;;  %3317 = vmatpush.msra.mxu3 %v2902_v12  ;;  %v3465_v54 = vld [vmem:[#allocation6 + $0x90] sm:$0xff] }
 0x36c   : > { %3389 = vmatpush.msra.mxu2 %v2943_v19  ;;  %3609 = vmatpush.msrb.mxu0 %v3473_v2  ;;  %v2813_v39 = vld [vmem:[%s9748_s10 + $0x98] sm:$0xff]  ;;  %v2918_v19 = vld [vmem:[%s9748_s10 + $0x3e0] sm:$0xff]  ;;  %v3463_v2 = vld [vmem:[#allocation6 + $0x80] sm:$0xff] }
 0x36d   : > { %3375 = vmatpush.msra.mxu1 %v2833_v52  ;;  %6693 = vmatmul.msk.f32.vlgmr.msra.gmra.mxu0 %vm9834_vm4, %v8351_v10  ;;  %v2887_v10 = vld [vmem:[%s9748_s10 + $0x2e8] sm:$0xff]  ;;  %v2877_v12 = vld [vmem:[%s9748_s10 + $0x298] sm:$0xff]  ;;  %v2808_v52 = vld [vmem:[%s9748_s10 + $0x70] sm:$0xff] }
 0x36e   : > { %3318 = vmatpush.msra.mxu3 %v2897_v47  ;;  %3390 = vmatpush.msra.mxu2 %v2938_v56  ;;  %v3033_v47 = vld [vmem:[%s9748_s10 + $0x778] sm:$0xff] }
 0x36f   : > { %3610 = vmatpush.msrb.mxu0 %v3471_v42  ;;  %3376 = vmatpush.msra.mxu1 %v2828_v31  ;;  %v2913_v56 = vld [vmem:[%s9748_s10 + $0x3b8] sm:$0xff]  ;;  %v2803_v31 = vld [vmem:[%s9748_s10 + $0x48] sm:$0xff] }
 0x370   : > { %3319 = vmatpush.msra.mxu3 %v2892_v24  ;;  %3391 = vmatpush.msra.mxu2 %v2933_v1  ;;  %v3461_v42 = vld [vmem:[#allocation6 + $0x70] sm:$0xff]  ;;  %v3028_v24 = vld [vmem:[%s9748_s10 + $0x750] sm:$0xff] }
 0x371   : > { %3611 = vmatpush.msrb.mxu0 %v3469_v20  ;;  %3377 = vmatpush.msra.mxu1 %v2823_v27  ;;  %v2908_v1 = vld [vmem:[%s9748_s10 + $0x390] sm:$0xff]  ;;  %v2798_v27 = vld [vmem:[%s9748_s10 + $0x20] sm:$0xff] }
 0x372   : > { %3320 = vmatpush.msra.mxu3 %v2887_v10  ;;  %3392 = vmatpush.msra.mxu2 %v2928_v45  ;;  %v3459_v20 = vld [vmem:[#allocation6 + $0x60] sm:$0xff] }
 0x373   : > { %3612 = vmatpush.msrb.mxu0 %v3467_v58  ;;  %3378 = vmatpush.msra.mxu1 %v2818_v3  ;;  %v3023_v10 = vld [vmem:[%s9748_s10 + $0x728] sm:$0xff]  ;;  %v3457_v58 = vld [vmem:[#allocation6 + $0x50] sm:$0xff] }
 0x374   : > { %3321 = vmatpush.msra.mxu3 %v2882_v44  ;;  %3393 = vmatpush.msra.mxu2 %v2923_v28  ;;  %v2903_v45 = vld [vmem:[%s9748_s10 + $0x368] sm:$0xff]  ;;  %v3509_v3 = vld [vmem:[#allocation6 + $0x1f0] sm:$0xff] }
 0x375   : > { %3613 = vmatpush.msrb.mxu0 %v3465_v54  ;;  %3379 = vmatpush.msra.mxu1 %v2813_v39  ;;  %v3018_v44 = vld [vmem:[%s9748_s10 + $0x700] sm:$0xff]  ;;  %v3455_v54 = vld [vmem:[#allocation6 + $0x40] sm:$0xff] }
 0x376   : > { %3322 = vmatpush.msra.mxu3 %v2877_v12  ;;  %3394 = vmatpush.msra.mxu2 %v2918_v19  ;;  %v2898_v28 = vld [vmem:[%s9748_s10 + $0x340] sm:$0xff]  ;;  %v3507_v39 = vld [vmem:[#allocation6 + $0x1e0] sm:$0xff]  ;;  %v3013_v12 = vld [vmem:[%s9748_s10 + $0x6d8] sm:$0xff] }
 0x377   : > { %3614 = vmatpush.msrb.mxu0 %v3463_v2  ;;  %3323 = vmatmul.f32.vlgmr.msra.gmra.mxu3 %v8431_v33  ;;  %v2893_v19 = vld [vmem:[%s9748_s10 + $0x318] sm:$0xff] }
 0x378   : > { %3380 = vmatpush.msra.mxu1 %v2808_v52  ;;  %3407 = vmatpush.msrb.mxu3 %v3033_v47  ;;  %v3453_v2 = vld [vmem:[#allocation6 + $0x30] sm:$0xff]  ;;  %v2888_v47 = vld [vmem:[%s9748_s10 + $0x2f0] sm:$0xff] }
 0x379   : > { %3395 = vmatpush.msra.mxu2 %v2913_v56  ;;  %3615 = vmatpush.msrb.mxu0 %v3461_v42  ;;  %v3505_v52 = vld [vmem:[#allocation6 + $0x1d0] sm:$0xff]  ;;  %v3451_v56 = vld [vmem:[#allocation6 + $0x20] sm:$0xff] }
 0x37a   : > { %3381 = vmatpush.msra.mxu1 %v2803_v31  ;;  %3408 = vmatpush.msrb.mxu3 %v3028_v24  ;;  %v3503_v42 = vld [vmem:[#allocation6 + $0x1c0] sm:$0xff] }
 0x37b   : > { %3396 = vmatpush.msra.mxu2 %v2908_v1  ;;  %3616 = vmatpush.msrb.mxu0 %v3459_v20  ;;  %v3003_v31 = vld [vmem:[%s9748_s10 + $0x688] sm:$0xff]  ;;  %v3449_v1 = vld [vmem:[#allocation6 + $0x10] sm:$0xff] }
 0x37c   : > { %3382 = vmatpush.msra.mxu1 %v2798_v27  ;;  %3409 = vmatpush.msrb.mxu3 %v3023_v10  ;;  %v2883_v24 = vld [vmem:[%s9748_s10 + $0x2c8] sm:$0xff]  ;;  %v3501_v20 = vld [vmem:[#allocation6 + $0x1b0] sm:$0xff] }
 0x37d   : > { %3383 = vmatmul.f32.vlgmr.msra.gmra.mxu1 %v8397_v48  ;;  %3397 = vmatpush.msra.mxu2 %v2903_v45  ;;  %v3008_v48 = vld [vmem:[%s9748_s10 + $0x6b0] sm:$0xff]  ;;  %v2998_v27 = vld [vmem:[%s9748_s10 + $0x660] sm:$0xff] }
 0x37e   : > { %3617 = vmatpush.msrb.mxu0 %v3457_v58  ;;  %3627 = vmatpush.msrb.mxu1 %v3509_v3  ;;  %v2878_v10 = vld [vmem:[%s9748_s10 + $0x2a0] sm:$0xff]  ;;  %v3447_v45 = vld [vmem:[#allocation6] sm:$0xff]  ;;  %v2993_v3 = vld [vmem:[%s9748_s10 + $0x638] sm:$0xff] }
 0x37f   : > { %3410 = vmatpush.msrb.mxu3 %v3018_v44  ;;  %3398 = vmatpush.msra.mxu2 %v2898_v28  ;;  %v3499_v58 = vld [vmem:[#allocation6 + $0x1a0] sm:$0xff]  ;;  %v3541_v44 = vld [vmem:[#allocation6 + $0x2f0] sm:$0xff] }
 0x380   : > { %3618 = vmatpush.msrb.mxu0 %v3455_v54  ;;  %3628 = vmatpush.msrb.mxu1 %v3507_v39  ;;  %v3605_v28 = vld [vmem:[#allocation6 + $0x4f0] sm:$0xff]  ;;  %v2988_v39 = vld [vmem:[%s9748_s10 + $0x610] sm:$0xff] }
 0x381   : > { %3411 = vmatpush.msrb.mxu3 %v3013_v12  ;;  %3399 = vmatpush.msra.mxu2 %v2893_v19  ;;  %v3497_v54 = vld [vmem:[#allocation6 + $0x190] sm:$0xff]  ;;  %v3539_v12 = vld [vmem:[#allocation6 + $0x2e0] sm:$0xff] }
 0x382   : > { %3619 = vmatpush.msrb.mxu0 %v3453_v2  ;;  %3629 = vmatpush.msrb.mxu1 %v3505_v52  ;;  %v3603_v19 = vld [vmem:[#allocation6 + $0x4e0] sm:$0xff] }
 0x383   : > { %3412 = vmatpush.msrb.mxu3 %v3008_v48  ;;  %3400 = vmatpush.msra.mxu2 %v2888_v47  ;;  %v3495_v2 = vld [vmem:[#allocation6 + $0x180] sm:$0xff]  ;;  %v3537_v48 = vld [vmem:[#allocation6 + $0x2d0] sm:$0xff] }
 0x384   : > { %3620 = vmatpush.msrb.mxu0 %v3451_v56  ;;  %3630 = vmatpush.msrb.mxu1 %v3503_v42  ;;  %v2983_v52 = vld [vmem:[%s9748_s10 + $0x5e8] sm:$0xff]  ;;  %v3493_v47 = vld [vmem:[#allocation6 + $0x170] sm:$0xff] }
 0x385   : > { %3413 = vmatpush.msrb.mxu3 %v3003_v31  ;;  %3401 = vmatpush.msra.mxu2 %v2883_v24  ;;  %v2978_v56 = vld [vmem:[%s9748_s10 + $0x5c0] sm:$0xff]  ;;  %v3535_v42 = vld [vmem:[#allocation6 + $0x2c0] sm:$0xff] }
 0x386   : > { %3621 = vmatpush.msrb.mxu0 %v3449_v1  ;;  %3631 = vmatpush.msrb.mxu1 %v3501_v20  ;;  %v3599_v31 = vld [vmem:[#allocation6 + $0x4c0] sm:$0xff]  ;;  %v2973_v1 = vld [vmem:[%s9748_s10 + $0x598] sm:$0xff] }
 0x387   : > { %3414 = vmatpush.msrb.mxu3 %v2998_v27  ;;  %3402 = vmatpush.msra.mxu2 %v2878_v10  ;;  %v3491_v24 = vld [vmem:[#allocation6 + $0x160] sm:$0xff]  ;;  %v3533_v20 = vld [vmem:[#allocation6 + $0x2b0] sm:$0xff] }
 0x388   : > { %3622 = vmatpush.msrb.mxu0 %v3447_v45  ;;  %3632 = vmatpush.msrb.mxu1 %v3499_v58  ;;  %v3597_v27 = vld [vmem:[#allocation6 + $0x4b0] sm:$0xff]  ;;  %v2968_v45 = vld [vmem:[%s9748_s10 + $0x570] sm:$0xff] }
 0x389   : > { %3403 = vmatmul.f32.vlgmr.msra.gmra.mxu2 %v8431_v33  ;;  %3415 = vmatpush.msrb.mxu3 %v2993_v3  ;;  %v3601_v33 = vld [vmem:[#allocation6 + $0x4d0] sm:$0xff]  ;;  %v3531_v58 = vld [vmem:[#allocation6 + $0x2a0] sm:$0xff] }
 0x38a   : > { %3623 = vmatmul.f32.vlgmr.msrb.gmra.mxu0 %v7315_v15  ;;  %3647 = vmatpush.msrb.mxu2 %v3541_v44  ;;  %v3489_v10 = vld [vmem:[#allocation6 + $0x150] sm:$0xff]  ;;  %v3595_v3 = vld [vmem:[#allocation6 + $0x4a0] sm:$0xff] }
 0x38b   : > { %3687 = vmatpush.msra.mxu0 %v3605_v28  ;;  %3633 = vmatpush.msrb.mxu1 %v3497_v54  ;;  %v3487_v44 = vld [vmem:[#allocation6 + $0x140] sm:$0xff]  ;;  %v3529_v54 = vld [vmem:[#allocation6 + $0x290] sm:$0xff] }
 0x38c   : > { %3416 = vmatpush.msrb.mxu3 %v2988_v39  ;;  %3648 = vmatpush.msrb.mxu2 %v3539_v12  ;;  %v2963_v28 = vld [vmem:[%s9748_s10 + $0x548] sm:$0xff]  ;;  %v3593_v39 = vld [vmem:[#allocation6 + $0x490] sm:$0xff] }
 0x38d   : > { %3688 = vmatpush.msra.mxu0 %v3603_v19  ;;  %3634 = vmatpush.msrb.mxu1 %v3495_v2  ;;  %v3485_v12 = vld [vmem:[#allocation6 + $0x130] sm:$0xff]  ;;  %v3527_v2 = vld [vmem:[#allocation6 + $0x280] sm:$0xff] }
 0x38e   : > { %3417 = vmatpush.msrb.mxu3 %v2983_v52  ;;  %3649 = vmatpush.msrb.mxu2 %v3537_v48  ;;  %v2958_v19 = vld [vmem:[%s9748_s10 + $0x520] sm:$0xff]  ;;  %v3591_v52 = vld [vmem:[#allocation6 + $0x480] sm:$0xff] }
 0x38f   : > { %3689 = vmatpush.msra.mxu0 %v3601_v33  ;;  %3635 = vmatpush.msrb.mxu1 %v3493_v47  ;;  %v3483_v48 = vld [vmem:[#allocation6 + $0x120] sm:$0xff]  ;;  %v3573_v33 = vld [vmem:[#allocation6 + $0x3f0] sm:$0xff] }
 0x390   : > { %3418 = vmatpush.msrb.mxu3 %v2978_v56  ;;  %3650 = vmatpush.msrb.mxu2 %v3535_v42  ;;  %v3525_v47 = vld [vmem:[#allocation6 + $0x270] sm:$0xff] }
 0x391   : > { %3690 = vmatpush.msra.mxu0 %v3599_v31  ;;  %3636 = vmatpush.msrb.mxu1 %v3491_v24  ;;  %v3589_v56 = vld [vmem:[#allocation6 + $0x470] sm:$0xff]  ;;  %v3571_v31 = vld [vmem:[#allocation6 + $0x3e0] sm:$0xff] }
 0x392   : > { %3419 = vmatpush.msrb.mxu3 %v2973_v1  ;;  %3651 = vmatpush.msrb.mxu2 %v3533_v20  ;;  %v3481_v42 = vld [vmem:[#allocation6 + $0x110] sm:$0xff]  ;;  %v3523_v24 = vld [vmem:[#allocation6 + $0x260] sm:$0xff] }
 0x393   : > { %3691 = vmatpush.msra.mxu0 %v3597_v27  ;;  %3637 = vmatpush.msrb.mxu1 %v3489_v10  ;;  %v3587_v1 = vld [vmem:[#allocation6 + $0x460] sm:$0xff]  ;;  %v3569_v27 = vld [vmem:[#allocation6 + $0x3d0] sm:$0xff] }
 0x394   : > { %3420 = vmatpush.msrb.mxu3 %v2968_v45  ;;  %3652 = vmatpush.msrb.mxu2 %v3531_v58  ;;  %v3479_v20 = vld [vmem:[#allocation6 + $0x100] sm:$0xff]  ;;  %v3521_v10 = vld [vmem:[#allocation6 + $0x250] sm:$0xff]  ;;  %v3478_v58 = vld [vmem:[#allocation6 + $0xf8] sm:$0xff] }
 0x395   : > { %3692 = vmatpush.msra.mxu0 %v3595_v3  ;;  %3638 = vmatpush.msrb.mxu1 %v3487_v44  ;;  %v3585_v45 = vld [vmem:[#allocation6 + $0x450] sm:$0xff]  ;;  %v3519_v3 = vld [vmem:[#allocation6 + $0x240] sm:$0xff] }
 0x396   : > { %3421 = vmatpush.msrb.mxu3 %v2963_v28  ;;  %3653 = vmatpush.msrb.mxu2 %v3529_v54  ;;  %v3583_v44 = vld [vmem:[#allocation6 + $0x440] sm:$0xff]  ;;  %v3476_v28 = vld [vmem:[#allocation6 + $0xe8] sm:$0xff]  ;;  %v3565_v54 = vld [vmem:[#allocation6 + $0x3b0] sm:$0xff] }
 0x397   : > { %3693 = vmatpush.msra.mxu0 %v3593_v39  ;;  %3639 = vmatpush.msrb.mxu1 %v3485_v12  ;;  %v3517_v39 = vld [vmem:[#allocation6 + $0x230] sm:$0xff] }
 0x398   : > { %3422 = vmatpush.msrb.mxu3 %v2958_v19  ;;  %3654 = vmatpush.msrb.mxu2 %v3527_v2  ;;  %v3581_v12 = vld [vmem:[#allocation6 + $0x430] sm:$0xff]  ;;  %v3474_v19 = vld [vmem:[#allocation6 + $0xd8] sm:$0xff]  ;;  %v3563_v2 = vld [vmem:[#allocation6 + $0x3a0] sm:$0xff] }
 0x399   : > { %3694 = vmatpush.msra.mxu0 %v3591_v52  ;;  %3423 = vmatmul.f32.vlgmr.msrb.gmra.mxu3 %v8402_v49  ;;  %v3567_v49 = vld [vmem:[#allocation6 + $0x3c0] sm:$0xff] }
 0x39a   : > { %3640 = vmatpush.msrb.mxu1 %v3483_v48  ;;  %3667 = vmatpush.msra.mxu3 %v3573_v33  ;;  %v3515_v52 = vld [vmem:[#allocation6 + $0x220] sm:$0xff]  ;;  %v3472_v33 = vld [vmem:[#allocation6 + $0xc8] sm:$0xff] }
 0x39b   : > { %3655 = vmatpush.msrb.mxu2 %v3525_v47  ;;  %3695 = vmatpush.msra.mxu0 %v3589_v56  ;;  %v3579_v48 = vld [vmem:[#allocation6 + $0x420] sm:$0xff]  ;;  %v3561_v47 = vld [vmem:[#allocation6 + $0x390] sm:$0xff] }
 0x39c   : > { %3641 = vmatpush.msrb.mxu1 %v3481_v42  ;;  %3668 = vmatpush.msra.mxu3 %v3571_v31  ;;  %v3513_v56 = vld [vmem:[#allocation6 + $0x210] sm:$0xff]  ;;  %v3470_v31 = vld [vmem:[#allocation6 + $0xb8] sm:$0xff] }
 0x39d   : > { %3656 = vmatpush.msrb.mxu2 %v3523_v24  ;;  %3696 = vmatpush.msra.mxu0 %v3587_v1  ;;  %v3577_v42 = vld [vmem:[#allocation6 + $0x410] sm:$0xff]  ;;  %v3559_v24 = vld [vmem:[#allocation6 + $0x380] sm:$0xff] }
 0x39e   : > { %3642 = vmatpush.msrb.mxu1 %v3479_v20  ;;  %3669 = vmatpush.msra.mxu3 %v3569_v27  ;;  %v3511_v1 = vld [vmem:[#allocation6 + $0x200] sm:$0xff]  ;;  %v3468_v27 = vld [vmem:[#allocation6 + $0xa8] sm:$0xff] }
 0x39f   : > { %3643 = vmatmul.f32.vlgmr.msrb.gmra.mxu1 %v7317_v18  ;;  %3657 = vmatpush.msrb.mxu2 %v3521_v10  ;;  %v3575_v20 = vld [vmem:[#allocation6 + $0x400] sm:$0xff]  ;;  %v3557_v10 = vld [vmem:[#allocation6 + $0x370] sm:$0xff] }
 0x3a0   : > { %3697 = vmatpush.msra.mxu0 %v3585_v45  ;;  %3707 = vmatpush.msra.mxu1 %v3478_v58  ;;  %v3510_v45 = vld [vmem:[#allocation6 + $0x1f8] sm:$0xff] }
 0x3a1   : > { %3670 = vmatpush.msra.mxu3 %v3567_v49  ;;  %3658 = vmatpush.msrb.mxu2 %v3519_v3  ;;  %v3574_v58 = vld [vmem:[#allocation6 + $0x3f8] sm:$0xff]  ;;  %v3555_v3 = vld [vmem:[#allocation6 + $0x360] sm:$0xff] }
 0x3a2   : > { %3698 = vmatpush.msra.mxu0 %v3583_v44  ;;  %3708 = vmatpush.msra.mxu1 %v3476_v28  ;;  %v3466_v49 = vld [vmem:[#allocation6 + $0x98] sm:$0xff]  ;;  %v3508_v44 = vld [vmem:[#allocation6 + $0x1e8] sm:$0xff] }
 0x3a3   : > { %3671 = vmatpush.msra.mxu3 %v3565_v54  ;;  %3659 = vmatpush.msrb.mxu2 %v3517_v39  ;;  %v3572_v28 = vld [vmem:[#allocation6 + $0x3e8] sm:$0xff]  ;;  %v3553_v39 = vld [vmem:[#allocation6 + $0x350] sm:$0xff] }
 0x3a4   : > { %3699 = vmatpush.msra.mxu0 %v3581_v12  ;;  %3709 = vmatpush.msra.mxu1 %v3474_v19  ;;  %v3464_v54 = vld [vmem:[#allocation6 + $0x88] sm:$0xff]  ;;  %v3506_v12 = vld [vmem:[#allocation6 + $0x1d8] sm:$0xff] }
 0x3a5   : > { %3672 = vmatpush.msra.mxu3 %v3563_v2  ;;  %3660 = vmatpush.msrb.mxu2 %v3515_v52  ;;  %v3570_v19 = vld [vmem:[#allocation6 + $0x3d8] sm:$0xff]  ;;  %v8841_v52 = vpop.f32.mrf.mxu0 }
 0x3a6   : > { %3700 = vmatpush.msra.mxu0 %v3579_v48  ;;  %3710 = vmatpush.msra.mxu1 %v3472_v33  ;;  %v3462_v2 = vld [vmem:[#allocation6 + $0x78] sm:$0xff]  ;;  %v3551_v48 = vld [vmem:[#allocation6 + $0x340] sm:$0xff]  ;;  %v3504_v33 = vld [vmem:[#allocation6 + $0x1c8] sm:$0xff] }
 0x3a7   : > { %3673 = vmatpush.msra.mxu3 %v3561_v47  ;;  %3661 = vmatpush.msrb.mxu2 %v3513_v56  ;;  %v3568_v47 = vld [vmem:[#allocation6 + $0x3c8] sm:$0xff] }
 0x3a8   : > { %3701 = vmatpush.msra.mxu0 %v3577_v42  ;;  %3711 = vmatpush.msra.mxu1 %v3470_v31  ;;  %v3460_v56 = vld [vmem:[#allocation6 + $0x68] sm:$0xff]  ;;  %v3549_v31 = vld [vmem:[#allocation6 + $0x330] sm:$0xff] }
 0x3a9   : > { %3674 = vmatpush.msra.mxu3 %v3559_v24  ;;  %3662 = vmatpush.msrb.mxu2 %v3511_v1  ;;  %v3502_v24 = vld [vmem:[#allocation6 + $0x1b8] sm:$0xff] }
 0x3aa   : > { %3702 = vmatpush.msra.mxu0 %v3575_v20  ;;  %3712 = vmatpush.msra.mxu1 %v3468_v27  ;;  %v3566_v1 = vld [vmem:[#allocation6 + $0x3b8] sm:$0xff]  ;;  %v3547_v27 = vld [vmem:[#allocation6 + $0x320] sm:$0xff] }
 0x3ab   : > { %3663 = vmatmul.f32.vlgmr.msrb.gmra.mxu2 %v7341_v37  ;;  %3675 = vmatpush.msra.mxu3 %v3557_v10  ;;  %v3458_v20 = vld [vmem:[#allocation6 + $0x58] sm:$0xff]  ;;  %v3500_v10 = vld [vmem:[#allocation6 + $0x1a8] sm:$0xff] }
 0x3ac   : > { %3703 = vmatmul.f32.vlgmr.msra.gmra.mxu0 %v7336_v34  ;;  %3727 = vmatpush.msra.mxu2 %v3510_v45  ;;  %v3564_v45 = vld [vmem:[#allocation6 + $0x3a8] sm:$0xff] }
 0x3ad   : > { %3767 = vmatpush.msrb.mxu0 %v3574_v58  ;;  %3713 = vmatpush.msra.mxu1 %v3466_v49  ;;  %v3456_v58 = vld [vmem:[#allocation6 + $0x48] sm:$0xff]  ;;  %v3545_v49 = vld [vmem:[#allocation6 + $0x310] sm:$0xff] }
 0x3ae   : > { %3676 = vmatpush.msra.mxu3 %v3555_v3  ;;  %3728 = vmatpush.msra.mxu2 %v3508_v44  ;;  %v3498_v3 = vld [vmem:[#allocation6 + $0x198] sm:$0xff] }
 0x3af   : > { %3768 = vmatpush.msrb.mxu0 %v3572_v28  ;;  %3714 = vmatpush.msra.mxu1 %v3464_v54  ;;  %v3562_v44 = vld [vmem:[#allocation6 + $0x398] sm:$0xff]  ;;  %v3543_v54 = vld [vmem:[#allocation6 + $0x300] sm:$0xff] }
 0x3b0   : > { %3677 = vmatpush.msra.mxu3 %v3553_v39  ;;  %3729 = vmatpush.msra.mxu2 %v3506_v12  ;;  %v3064_v42 = vpop.f32.mrf.mxu1  ;;  %v3454_v28 = vld [vmem:[#allocation6 + $0x38] sm:$0xff]  ;;  %v3496_v39 = vld [vmem:[#allocation6 + $0x188] sm:$0xff] }
 0x3b1   : > { %3769 = vmatpush.msrb.mxu0 %v3570_v19  ;;  %3715 = vmatpush.msra.mxu1 %v3462_v2  ;;  %v3560_v12 = vld [vmem:[#allocation6 + $0x388] sm:$0xff] }
 0x3b2   : > { %3678 = vmatpush.msra.mxu3 %v3551_v48  ;;  %3730 = vmatpush.msra.mxu2 %v3504_v33  ;;  %v3452_v48 = vld [vmem:[#allocation6 + $0x28] sm:$0xff]  ;;  %v3542_v33 = vld [vmem:[#allocation6 + $0x2f8] sm:$0xff] }
 0x3b3   : > { %3770 = vmatpush.msrb.mxu0 %v3568_v47  ;;  %3716 = vmatpush.msra.mxu1 %v3460_v56  ;;  %v3144_v19 = vpop.f32.mrf.mxu0  ;;  %v3494_v56 = vld [vmem:[#allocation6 + $0x178] sm:$0xff] }
 0x3b4   : > { %3679 = vmatpush.msra.mxu3 %v3549_v31  ;;  %3731 = vmatpush.msra.mxu2 %v3502_v24  ;;  %v3558_v31 = vld [vmem:[#allocation6 + $0x378] sm:$0xff] }
 0x3b5   : > { %3771 = vmatpush.msrb.mxu0 %v3566_v1  ;;  %3717 = vmatpush.msra.mxu1 %v3458_v20  ;;  %v3450_v24 = vld [vmem:[#allocation6 + $0x18] sm:$0xff]  ;;  %v3540_v1 = vld [vmem:[#allocation6 + $0x2e8] sm:$0xff] }
 0x3b6   : > { %3680 = vmatpush.msra.mxu3 %v3547_v27  ;;  %3732 = vmatpush.msra.mxu2 %v3500_v10  ;;  %v3492_v20 = vld [vmem:[#allocation6 + $0x168] sm:$0xff] }
 0x3b7   : > { %3772 = vmatpush.msrb.mxu0 %v3564_v45  ;;  %3718 = vmatpush.msra.mxu1 %v3456_v58  ;;  %v3556_v27 = vld [vmem:[#allocation6 + $0x368] sm:$0xff]  ;;  %v3538_v45 = vld [vmem:[#allocation6 + $0x2d8] sm:$0xff]  ;;  %v3104_v58 = vpop.f32.mrf.mxu3 }
 0x3b8   : > { %3681 = vmatpush.msra.mxu3 %v3545_v49  ;;  %3733 = vmatpush.msra.mxu2 %v3498_v3  ;;  %v3164_v2 = vpop.f32.mrf.mxu1  ;;  %v3448_v10 = vld [vmem:[#allocation6 + $0x8] sm:$0xff]  ;;  %v3490_v3 = vld [vmem:[#allocation6 + $0x158] sm:$0xff] }
 0x3b9   : > { %3773 = vmatpush.msrb.mxu0 %v3562_v44  ;;  %3719 = vmatpush.msra.mxu1 %v3454_v28  ;;  %v3165_v47 = vadd.f32 %v3164_v2, %v3144_v19  ;;  %v3554_v28 = vld [vmem:[#allocation6 + $0x358] sm:$0xff]  ;;  %v3552_v2 = vld [vmem:[#allocation6 + $0x348] sm:$0xff] }
 0x3ba   : > { %3682 = vmatpush.msra.mxu3 %v3543_v54  ;;  %3734 = vmatpush.msra.mxu2 %v3496_v39  ;;  %v3606_v54 = vld [vmem:[#allocation6 + $0x4f8] sm:$0xff]  ;;  %v3536_v39 = vld [vmem:[#allocation6 + $0x2c8] sm:$0xff] }
 0x3bb   : > { %3774 = vmatpush.msrb.mxu0 %v3560_v12  ;;  %3683 = vmatmul.f32.vlgmr.msra.gmra.mxu3 %v7333_v29  ;;  %v3488_v12 = vld [vmem:[#allocation6 + $0x148] sm:$0xff] }
 0x3bc   : > { %3720 = vmatpush.msra.mxu1 %v3452_v48  ;;  %3747 = vmatpush.msrb.mxu3 %v3542_v33  ;;  %v3604_v48 = vld [vmem:[#allocation6 + $0x4e8] sm:$0xff]  ;;  %v3534_v33 = vld [vmem:[#allocation6 + $0x2b8] sm:$0xff] }
 0x3bd   : > { %3735 = vmatpush.msra.mxu2 %v3494_v56  ;;  %3775 = vmatpush.msrb.mxu0 %v3558_v31  ;;  %v3084_v49 = vpop.f32.mrf.mxu2  ;;  %v3486_v56 = vld [vmem:[#allocation6 + $0x138] sm:$0xff] }
 0x3be   : > { %3721 = vmatpush.msra.mxu1 %v3450_v24  ;;  %3748 = vmatpush.msrb.mxu3 %v3540_v1  ;;  %v3085_v44 = vadd.f32 %v3084_v49, %v3064_v42  ;;  %v3550_v31 = vld [vmem:[#allocation6 + $0x338] sm:$0xff]  ;;  %v3532_v1 = vld [vmem:[#allocation6 + $0x2a8] sm:$0xff] }
 0x3bf   : > { %3736 = vmatpush.msra.mxu2 %v3492_v20  ;;  %3776 = vmatpush.msrb.mxu0 %v3556_v27  ;;  %v3602_v24 = vld [vmem:[#allocation6 + $0x4d8] sm:$0xff]  ;;  %v3484_v20 = vld [vmem:[#allocation6 + $0x128] sm:$0xff] }
 0x3c0   : > { %3722 = vmatpush.msra.mxu1 %v3448_v10  ;;  %3749 = vmatpush.msrb.mxu3 %v3538_v45  ;;  %v3105_v19 = vadd.f32 %v3104_v58, %v3085_v44  ;;  %v3548_v27 = vld [vmem:[#allocation6 + $0x328] sm:$0xff]  ;;  %v3530_v58 = vld [vmem:[#allocation6 + $0x298] sm:$0xff] }
 0x3c1   : > { %3723 = vmatmul.f32.vlgmr.msra.gmra.mxu1 %v7315_v15  ;;  %3737 = vmatpush.msra.mxu2 %v3490_v3  ;;  %v3600_v10 = vld [vmem:[#allocation6 + $0x4c8] sm:$0xff]  ;;  %v3482_v49 = vld [vmem:[#allocation6 + $0x118] sm:$0xff] }
 0x3c2   : > { %3777 = vmatpush.msrb.mxu0 %v3554_v28  ;;  %3787 = vmatpush.msrb.mxu1 %v3606_v54  ;;  %v8846_v42 = vadd.f32 %v8841_v52, %v3105_v19  ;;  %v3546_v52 = vld [vmem:[#allocation6 + $0x318] sm:$0xff]  ;;  %v3204_v28 = vpop.f32.mrf.mxu3  ;;  %v3528_v54 = vld [vmem:[#allocation6 + $0x288] sm:$0xff] }
 0x3c3   : > { %3750 = vmatpush.msrb.mxu3 %v3536_v39  ;;  %3738 = vmatpush.msra.mxu2 %v3488_v12  ;;  %v3598_v44 = vld [vmem:[#allocation6 + $0x4b8] sm:$0xff]  ;;  %v3480_v39 = vld [vmem:[#allocation6 + $0x108] sm:$0xff] }
 0x3c4   : > { %3778 = vmatpush.msrb.mxu0 %v3552_v2  ;;  %3788 = vmatpush.msrb.mxu1 %v3604_v48  ;;  %v3544_v19 = vld [vmem:[#allocation6 + $0x308] sm:$0xff]  ;;  %v3526_v48 = vld [vmem:[#allocation6 + $0x278] sm:$0xff] }
 0x3c5   : > { %3751 = vmatpush.msrb.mxu3 %v3534_v33  ;;  %3739 = vmatpush.msra.mxu2 %v3486_v56  ;;  %v3184_v45 = vpop.f32.mrf.mxu2  ;;  %v3596_v2 = vld [vmem:[#allocation6 + $0x4a8] sm:$0xff] }
 0x3c6   : > { %3779 = vmatpush.msrb.mxu0 %v3550_v31  ;;  %3789 = vmatpush.msrb.mxu1 %v3602_v24  ;;  %v3185_v3 = vadd.f32 %v3184_v45, %v3165_v47  ;;  %v3594_v47 = vld [vmem:[#allocation6 + $0x498] sm:$0xff]  ;;  %v3524_v33 = vld [vmem:[#allocation6 + $0x268] sm:$0xff] }
 0x3c7   : > { %3752 = vmatpush.msrb.mxu3 %v3532_v1  ;;  %3740 = vmatpush.msra.mxu2 %v3484_v20  ;;  %v3592_v56 = vld [vmem:[#allocation6 + $0x488] sm:$0xff]  ;;  %v3522_v31 = vld [vmem:[#allocation6 + $0x258] sm:$0xff] }
 0x3c8   : > { %3780 = vmatpush.msrb.mxu0 %v3548_v27  ;;  %3790 = vmatpush.msrb.mxu1 %v3600_v10  ;;  %v8848_v12 = vadd.f32 %v3204_v28, %v3185_v3  ;;  %v3590_v24 = vld [vmem:[#allocation6 + $0x478] sm:$0xff]  ;;  %v3520_v1 = vld [vmem:[#allocation6 + $0x248] sm:$0xff] }
 0x3c9   : > { %3753 = vmatpush.msrb.mxu3 %v3530_v58  ;;  %3741 = vmatpush.msra.mxu2 %v3482_v49  ;;  %v3588_v20 = vld [vmem:[#allocation6 + $0x468] sm:$0xff]  ;;  %v3518_v27 = vld [vmem:[#allocation6 + $0x238] sm:$0xff]  ;;  %v3244_v49 = vpop.f32.mrf.mxu0 }
 0x3ca   : > { %3781 = vmatpush.msrb.mxu0 %v3546_v52  ;;  %3791 = vmatpush.msrb.mxu1 %v3598_v44  ;;  %v3586_v10 = vld [vmem:[#allocation6 + $0x458] sm:$0xff]  ;;  %v3516_v45 = vld [vmem:[#allocation6 + $0x228] sm:$0xff] }
 0x3cb   : > { %3754 = vmatpush.msrb.mxu3 %v3528_v54  ;;  %3742 = vmatpush.msra.mxu2 %v3480_v39  ;;  %v3514_v58 = vld [vmem:[#allocation6 + $0x218] sm:$0xff]  ;;  %v3512_v52 = vld [vmem:[#allocation6 + $0x208] sm:$0xff] }
 0x3cc   : > { %3782 = vmatpush.msrb.mxu0 %v3544_v19  ;;  %3792 = vmatpush.msrb.mxu1 %v3596_v2  ;;  %v3580_v28 = vld [vmem:[#allocation6 + $0x428] sm:$0xff]  ;;  %v3578_v2 = vld [vmem:[#allocation6 + $0x418] sm:$0xff] }
 0x3cd   : > { %3743 = vmatmul.f32.vlgmr.msra.gmra.mxu2 %v7317_v18  ;;  %3755 = vmatpush.msrb.mxu3 %v3526_v48  ;;  %v3584_v18 = vld [vmem:[#allocation6 + $0x448] sm:$0xff] }
 0x3ce   : > { %3783 = vmatmul.f32.vlgmr.msrb.gmra.mxu0 %v7333_v29  ;;  %3793 = vmatpush.msrb.mxu1 %v3594_v47  ;;  %v3582_v29 = vld [vmem:[#allocation6 + $0x438] sm:$0xff]  ;;  %v3576_v47 = vld [vmem:[#allocation6 + $0x408] sm:$0xff] }
 0x3cf   : > { %3756 = vmatpush.msrb.mxu3 %v3524_v33  ;;  %v3284_v19 = vpop.f32.mrf.mxu2 }
 0x3d0   : > { %3794 = vmatpush.msrb.mxu1 %v3592_v56 }
 0x3d1   : > { %3757 = vmatpush.msrb.mxu3 %v3522_v31 }
 0x3d2   : > { %3795 = vmatpush.msrb.mxu1 %v3590_v24 }
 0x3d3   : > { %3758 = vmatpush.msrb.mxu3 %v3520_v1  ;;  %v3264_v54 = vpop.f32.mrf.mxu1 }
 0x3d4   : > { %3796 = vmatpush.msrb.mxu1 %v3588_v20 }
 0x3d5   : > { %3759 = vmatpush.msrb.mxu3 %v3518_v27 }
 0x3d6   : > { %3797 = vmatpush.msrb.mxu1 %v3586_v10 }
 0x3d7   : > { %3760 = vmatpush.msrb.mxu3 %v3516_v45  ;;  %v3224_v3 = vpop.f32.mrf.mxu3 }
 0x3d8   : > { %3798 = vmatpush.msrb.mxu1 %v3584_v18  ;;  %v3245_v44 = vadd.f32 %v3244_v49, %v3224_v3 }
 0x3d9   : > { %3761 = vmatpush.msrb.mxu3 %v3514_v58 }
 0x3da   : > { %3799 = vmatpush.msrb.mxu1 %v3582_v29  ;;  %v3265_v39 = vadd.f32 %v3264_v54, %v3245_v44 }
 0x3db   : > { %3762 = vmatpush.msrb.mxu3 %v3512_v52 }
 0x3dc   : > { %3763 = vmatmul.f32.vlgmr.msrb.gmra.mxu3 %v7341_v37  ;;  %3800 = vmatpush.msrb.mxu1 %v3580_v28  ;;  %v8853_v48 = vadd.f32 %v3284_v19, %v3265_v39 }
 0x3de   : > { %3801 = vmatpush.msrb.mxu1 %v3578_v2  ;;  %v3364_v20 = vpop.f32.mrf.mxu1 }
 0x3e0   : > { %3802 = vmatpush.msrb.mxu1 %v3576_v47  ;;  %v3344_v24 = vpop.f32.mrf.mxu0 }
 0x3e1   : > { %3803 = vmatmul.f32.vlgmr.msrb.gmra.mxu1 %v7336_v34 }
 0x3ea   : > { %v3304_v33 = vpop.f32.mrf.mxu2  ;;  %v3444_v29 = vpop.f32.mrf.mxu0 }
 0x3fa   : > { %v3324_v56 = vpop.f32.mrf.mxu3  ;;  %v3384_v10 = vpop.f32.mrf.mxu1 }
 0x3fb   : > { %v3325_v31 = vadd.f32 %v3324_v56, %v3304_v33 }
 0x3fd   : > { %v3345_v1 = vadd.f32 %v3344_v24, %v3325_v31 }
 0x3ff   : > { %v8856_v27 = vadd.f32 %v3364_v20, %v3345_v1 }
 0x407   : > { %v3624_v52 = vpop.f32.mrf.mxu0 }
 0x40c   : > { %v3404_v45 = vpop.f32.mrf.mxu2 }
 0x40d   : > { %v3405_v18 = vadd.f32 %v3404_v45, %v3384_v10 }
 0x41c   : > { %v3424_v58 = vpop.f32.mrf.mxu3  ;;  %v3644_v44 = vpop.f32.mrf.mxu1 }
 0x41d   : > { %v3425_v49 = vadd.f32 %v3424_v58, %v3405_v18  ;;  %v3645_v47 = vadd.f32 %v3644_v44, %v3624_v52 }
 0x41f   : > { %v8858_v3 = vadd.f32 %v3444_v29, %v3425_v49 }
 0x429   : > { %v3704_v39 = vpop.f32.mrf.mxu0 }
 0x42e   : > { %v3664_v28 = vpop.f32.mrf.mxu2 }
 0x42f   : > { %v3665_v31 = vadd.f32 %v3664_v28, %v3645_v47 }
 0x43e   : > { %v3684_v54 = vpop.f32.mrf.mxu3  ;;  %v3724_v19 = vpop.f32.mrf.mxu1 }
 0x43f   : > { %v3685_v20 = vadd.f32 %v3684_v54, %v3665_v31 }
 0x441   : > { %v3705_v58 = vadd.f32 %v3704_v39, %v3685_v20 }
 0x44b   : > { %v3784_v1 = vpop.f32.mrf.mxu0 }
 0x450   : > { %v3744_v2 = vpop.f32.mrf.mxu2 }
 0x451   : > { %v3745_v33 = vadd.f32 %v3744_v2, %v3724_v19 }
 0x45e   : > { %v3804_v45 = vpop.f32.mrf.mxu1 }
 0x45f   : > { %v3764_v56 = vpop.f32.mrf.mxu3 }
 0x460   : > { %v3765_v24 = vadd.f32 %v3764_v56, %v3745_v33 }
 0x462   : > { %v3785_v10 = vadd.f32 %v3784_v1, %v3765_v24 }
 0x464   : > { %v3805_v18 = vadd.f32 %v3804_v45, %v3785_v10 }
 0x466   : > { %v3809_v49 = vrot.slane %v3805_v18, 4 }
 0x468   : > { %v3810_v29 = vsel %vm991_vm1, %v3705_v58, %v3809_v49 }
 0x469   : > { %3812 = vst.msk [vmem:[#allocation2 + $0x4] sm:$0xff] %vm7781_vm6, %v3810_v29 }
 0x46a   : > { %3813 = vst.msk [vmem:[#allocation2 + $0x8] sm:$0xf] %vm9835_vm12, %v9822_v40 }
 0x470   : > { %v3886_v52 = vld [vmem:[#allocation2] sm:$0xff] }
 0x471   : > { %v3887_v44 = vld [vmem:[#allocation2 + $0x8] sm:$0xf]  ;;  %3890 = vst [vmem:[#allocation1] ss:$2 sm:$0xff] %v3886_v52 }
 0x472   : > { %3892 = vst [vmem:[#allocation1 + $0x10] ss:$2 sm:$0xff] %v3887_v44  ;;  %v3912_v28 = vld [vmem:[#allocation2 + $0x8] sm:$0xf] }
 0x473   : > { %v3936_v23 = vld [vmem:[#allocation2 + $0x8] sm:$0xf] }
 0x474   : > { %v3961_v56 = vld [vmem:[#allocation2 + $0x8] sm:$0xf] }
 0x475   : > { %v3990_v20 = vld [vmem:[#allocation2 + $0x4] sm:$0xff] }
 0x478   : > { %v3894_v19 = vld.sshfl [vmem:[#allocation1 + $0x8] sm:$0xff pattern:$0x75316420]  ;;  %v3893_v54 = vld.sshfl [vmem:[#allocation1] sm:$0xff pattern:$0x75316420] }
 0x479   : > { %3898 = vrot.lane.b32.xlu0 %v3894_v19, %s7119_s29  ;;  %3896 = vrot.lane.b32.xlu2 %v3893_v54, %s7119_s29  ;;  %3916 = vst [vmem:[#allocation1 + $0x1] ss:$2 sm:$0xff] %v3886_v52  ;;  %v3895_v39 = vld.sshfl [vmem:[#allocation1 + $0x10] sm:$0xff pattern:$0x75316420] }
 0x47a   : > { %3918 = vst [vmem:[#allocation1 + $0x11] ss:$2 sm:$0xff] %v3912_v28 }
 0x480   : > { %v3919_v2 = vld.sshfl [vmem:[#allocation1] sm:$0xff pattern:$0x75316420]  ;;  %v3920_v47 = vld.sshfl [vmem:[#allocation1 + $0x8] sm:$0xff pattern:$0x75316420] }
 0x481   : > { %3939 = vst [vmem:[#allocation1] ss:$2 sm:$0xff] %v3886_v52  ;;  %v3921_v33 = vld.sshfl [vmem:[#allocation1 + $0x10] sm:$0xff pattern:$0x75316420] }
 0x482   : > { %3941 = vst [vmem:[#allocation1 + $0x10] ss:$2 sm:$0xff] %v3936_v23 }
 0x488   : > { %v3943_v31 = vld.sshfl [vmem:[#allocation1 + $0x8] sm:$0xff pattern:$0x75316420]  ;;  %v3942_v24 = vld.sshfl [vmem:[#allocation1] sm:$0xff pattern:$0x75316420] }
 0x489   : > { %3947 = vrot.lane.b32.xlu0 %v3943_v31, %s7120_s26  ;;  %3945 = vrot.lane.b32.xlu2 %v3942_v24, %s7120_s26  ;;  %3964 = vst [vmem:[#allocation1] ss:$2 sm:$0xff] %v3886_v52  ;;  %v3944_v1 = vld.sshfl [vmem:[#allocation1 + $0x10] sm:$0xff pattern:$0x75316420]  ;;  %v3838_v31 = vshrl.u32 %v7570_v46, 3 }
 0x48a   : > { %3966 = vst [vmem:[#allocation1 + $0x10] ss:$2 sm:$0xff] %v3961_v56 }
 0x48b   : > { %v3839_v24 = vmul.u32 12, %v3838_v31 }
 0x490   : > { %v3968_v10 = vld.sshfl [vmem:[#allocation1 + $0x8] sm:$0xff pattern:$0x75316420]  ;;  %v3967_v45 = vld.sshfl [vmem:[#allocation1] sm:$0xff pattern:$0x75316420] }
 0x491   : > { %3972 = vrot.lane.b32.xlu1 %v3968_v10, %s7107_s19  ;;  %3992 = vst [vmem:[#allocation1] ss:$2 sm:$0xff] %v3990_v20  ;;  %3970 = vrot.lane.b32.xlu0 %v3967_v45, %s7107_s19  ;;  %v3969_v18 = vld.sshfl [vmem:[#allocation1 + $0x10] sm:$0xff pattern:$0x75316420] }
 0x498   : > { %v3993_v58 = vld.sshfl [vmem:[#allocation1] sm:$0xff pattern:$0x75316420]  ;;  %v3994_v49 = vld.sshfl [vmem:[#allocation1 + $0x8] sm:$0xff pattern:$0x75316420] }
 0x499   : > { %3974 = vrot.lane.b32.xlu1 %v3969_v18, %s7107_s19  ;;  %4001 = vst [vmem:[#allocation1] ss:$2 sm:$0xff] %v3990_v20 }
 0x49a   : > { %3997 = vst [vmem:[#allocation3 + $0x50] sm:$0xf] %v3993_v58 }
 0x49b   : > { %3998 = vst.msk [vmem:[#allocation3 + $0x58] sm:$0xf] %vm2387_vm10, %v3994_v49 }
 0x4a0   : > { %v4002_v29 = vld.sshfl [vmem:[#allocation1] sm:$0xff pattern:$0x75316420]  ;;  %v4003_v52 = vld.sshfl [vmem:[#allocation1 + $0x8] sm:$0xff pattern:$0x75316420] }
 0x4a1   : > { %4004 = vrot.lane.b32.xlu0 %v4002_v29, %s7108_s27  ;;  %4006 = vrot.lane.b32.xlu1 %v4003_v52, %s7108_s27  ;;  %4023 = vst [vmem:[#allocation1] ss:$2 sm:$0xff] %v3990_v20 }
 0x4a8   : > { %v4025_v44 = vld.sshfl [vmem:[#allocation1 + $0x8] sm:$0xff pattern:$0x75316420]  ;;  %v4024_v28 = vld.sshfl [vmem:[#allocation1] sm:$0xff pattern:$0x75316420] }
 0x4a9   : > { %4028 = vrot.lane.b32.xlu0 %v4025_v44, %s7121_s22  ;;  %4026 = vrot.lane.b32.xlu2 %v4024_v28, %s7121_s22  ;;  %4041 = vst [vmem:[#allocation1 + $0x1] ss:$2 sm:$0xff] %v3990_v20 }
 0x4b0   : > { %v4043_v19 = vld.sshfl [vmem:[#allocation1 + $0x8] sm:$0xff pattern:$0x75316420]  ;;  %v4042_v54 = vld.sshfl [vmem:[#allocation1] sm:$0xff pattern:$0x75316420] }
 0x4b1   : > { %3924 = vrot.lane.b32.xlu0 %v3920_v47, %s7122_s8  ;;  %4046 = vrot.lane.b32.xlu2 %v4043_v19, %s7123_s13  ;;  %4056 = vst [vmem:[#allocation1] ss:$2 sm:$0xff] %v3990_v20  ;;  %v3840_v47 = vsub.s32 %v7313_v14, %v3839_v24  ;;  %v3867_v14 = vshrl.u32 %v7595_v51, 3 }
 0x4b2   : > { %4044 = vrot.lane.b32.xlu1 %v4042_v54, %s7123_s13 }
 0x4b3   : > { %vm3872_vm6 = vcmp.ne.s32.totalorder %v3840_v47, 0  ;;  %vm3874_vm5 = vcmp.lt.s32.totalorder %v3840_v47, 0  ;;  %v3878_v20 = vadd.s32 12, %v3840_v47 }
 0x4b4   : > { %vm3876_vm13 = vmand %vm3874_vm5, %vm3872_vm6 }
 0x4b5   : > { %v8879_v10 = vsel %vm3876_vm13, %v3878_v20, %v3840_v47  ;;  %vm4030_vm13 = vcmask 957440  }
 0x4b6   : > { %vm3882_vm8 = vcmp.ge.s32.totalorder %v8879_v10, 1  ;;  %vm3884_vm3 = vcmp.lt.s32.totalorder %v8879_v10, 11 }
 0x4b8   : > { %v4058_v23 = vld.sshfl [vmem:[#allocation1 + $0x8] sm:$0xff pattern:$0x75316420]  ;;  %v4057_v56 = vld.sshfl [vmem:[#allocation1] sm:$0xff pattern:$0x75316420] }
 0x4b9   : > { %4061 = vrot.lane.b32.xlu2 %v4058_v23, %s7124_s17 }
 0x4ba   : > { %4059 = vrot.lane.b32.xlu1 %v4057_v56, %s7124_s17 }
 0x4c1   : > { %3922 = vrot.lane.b32.xlu2 %v3919_v2, %s7122_s8 }
 0x4c2   : > { %3949 = vrot.lane.b32.xlu1 %v3944_v1, %s7120_s26 }
 0x4c9   : > { %3926 = vrot.lane.b32.xlu2 %v3921_v33, %s7122_s8  ;;  %v3868_v33 = vmul.u32 12, %v3867_v14 }
 0x4ca   : > { %3900 = vrot.lane.b32.xlu1 %v3895_v39, %s7119_s29 }
 0x4cb   : > { %v3869_v29 = vsub.s32 %v7530_v53, %v3868_v33 }
 0x4cd   : > { %vm3873_vm0 = vcmp.ne.s32.totalorder %v3869_v29, 0  ;;  %vm3875_vm4 = vcmp.lt.s32.totalorder %v3869_v29, 0  ;;  %v3879_v44 = vadd.s32 12, %v3869_v29 }
 0x4ce   : > { %vm3877_vm12 = vmand %vm3875_vm4, %vm3873_vm0  ;;  %vm3928_vm0 = vcmask 97280   ;;  %vm4048_vm4 = vcmask 949248  }
 0x4cf   : > { %v8900_v56 = vsel %vm3877_vm12, %v3879_v44, %v3869_v29  ;;  %vm4619_vm12 = vcmask 191488  }
 0x4d0   : > { %vm3883_vm6 = vcmp.ge.s32.totalorder %v8900_v56, 1  ;;  %vm3885_vm5 = vcmp.lt.s32.totalorder %v8900_v56, 11  ;;  %v4196_v56 = vld [vmem:[#allocation8 + $0x208] sm:$0xff] }
 0x4d3   : > { %v3897_v2 = vpop.permute.xlu2 %3896 }
 0x4e3   : > { %v3946_v1 = vpop.permute.xlu2 %3945 }
 0x4eb   : > { %v8882_v45 = vpop.permute.xlu0 %3898 }
 0x4ec   : > { %v3903_v39 = vsel %vm3902_vm11, %v3897_v2, %v8882_v45 }
 0x4ed   : > { %v3907_v46 = vsel %vm3882_vm8, %v3903_v39, 0.0 }
 0x4ee   : > { %3909 = vst [vmem:[#allocation3] sm:$0xf] %v3907_v46 }
 0x4fb   : > { %v8890_v18 = vpop.permute.xlu0 %3947 }
 0x4fc   : > { %v3952_v58 = vsel %vm3951_vm14, %v3946_v1, %v8890_v18 }
 0x4fd   : > { %v3956_v49 = vsel %vm3884_vm3, %v3952_v58, 0.0 }
 0x4fe   : > { %3958 = vst [vmem:[#allocation3 + $0x28] sm:$0xf] %v3956_v49 }
 0x503   : > { %v3973_v52 = vpop.permute.xlu1 %3972  ;;  %v3971_v51 = vpop.permute.xlu0 %3970 }
 0x504   : > { %v3976_v28 = vsel %vm1174_vm7, %v3971_v51, %v3973_v52  ;;  %v4027_v19 = vpop.permute.xlu2 %4026 }
 0x505   : > { %v3980_v54 = vsel %vm3882_vm8, %v3976_v28, 0.0 }
 0x506   : > { %v3984_v23 = vrot.slane %v3980_v54, 4 }
 0x508   : > { %3988 = vst [vmem:[#allocation3 + $0x28] sm:$0xf0] %v3984_v23 }
 0x50b   : > { %v3975_v53 = vpop.permute.xlu1 %3974 }
 0x50c   : > { %v4047_v31 = vpop.permute.xlu2 %4046  ;;  %v3977_v24 = vsel %vm1174_vm7, %v3973_v52, %v3975_v53 }
 0x50d   : > { %4053 = vst.msk [vmem:[#allocation3 + $0x80] sm:$0xf0] %vm2204_vm15, %v4047_v31  ;;  %v3981_v47 = vsel %vm3883_vm6, %v3977_v24, 0.0 }
 0x50e   : > { %v3985_v20 = vrot.slane %v3981_v47, 4 }
 0x510   : > { %3989 = vst.msk [vmem:[#allocation3 + $0x30] sm:$0xf0] %vm2204_vm15, %v3985_v20 }
 0x513   : > { %v4005_v2 = vpop.permute.xlu0 %4004  ;;  %v4007_v39 = vpop.permute.xlu1 %4006 }
 0x514   : > { %v4062_v46 = vpop.permute.xlu2 %4061  ;;  %v4008_v14 = vsel %vm1265_vm2, %v4005_v2, %v4007_v39  ;;  %v4012_v33 = vsel %vm3885_vm5, %v4007_v39, 0.0 }
 0x515   : > { %v4068_v1 = vsel %vm3885_vm5, %v4062_v46, 0.0  ;;  %v4011_v58 = vsel %vm3884_vm3, %v4008_v14, 0.0  ;;  %v4016_v49 = vrot.slane %v4012_v33, 4  ;;  %v4207_v33 = vld [vmem:[#allocation8 + $0x260] sm:$0xff] }
 0x516   : > { %4070 = vst.msk [vmem:[#allocation3 + $0xa8] sm:$0xf] %vm2387_vm10, %v4068_v1  ;;  %v4015_v29 = vrot.slane %v4011_v58, 4  ;;  %v4202_v1 = vld [vmem:[#allocation8 + $0x238] sm:$0xff]  ;;  %4264 = vmatpush.msra.mxu0 %v4207_v33  ;;  %v4197_v58 = vld [vmem:[#allocation8 + $0x210] sm:$0xff] }
 0x517   : > { %4020 = vst.msk [vmem:[#allocation3 + $0x58] sm:$0xf0] %vm2204_vm15, %v4016_v49 }
 0x518   : > { %4019 = vst [vmem:[#allocation3 + $0x50] sm:$0xf0] %v4015_v29  ;;  %4265 = vmatpush.msra.mxu0 %v4202_v1  ;;  %v4192_v29 = vld [vmem:[#allocation8 + $0x1e8] sm:$0xff]  ;;  %v4162_v1 = vld [vmem:[#allocation8 + $0xf8] sm:$0xff] }
 0x51a   : > { %4266 = vmatpush.msra.mxu0 %v4197_v58 }
 0x51b   : > { %v4029_v52 = vpop.permute.xlu0 %4028 }
 0x51c   : > { %v4031_v51 = vsel %vm4030_vm13, %v4027_v19, %v4029_v52  ;;  %v4035_v44 = vsel %vm3883_vm6, %v4029_v52, 0.0  ;;  %v3923_v28 = vpop.permute.xlu2 %3922  ;;  %4267 = vmatpush.msra.mxu0 %v4192_v29  ;;  %v4184_v29 = vld [vmem:[#allocation8 + $0x1a8] sm:$0xff]  ;;  %vm9841_vm13 = vcmask 195584  }
 0x51d   : > { %v4034_v54 = vsel %vm3882_vm8, %v4031_v51, 0.0  ;;  %4037 = vst.msk [vmem:[#allocation3 + $0x80] sm:$0xf] %vm2387_vm10, %v4035_v44  ;;  %v4081_v23 = vld [vmem:[#allocation3 + $0xa8] sm:$0xf]  ;;  %vm4063_vm8 = vcmask 941056  }
 0x51e   : > { %4036 = vst [vmem:[#allocation3 + $0x78] sm:$0xf] %v4034_v54  ;;  %6696 = vmatpush.msk.msra.mxu3 %vm991_vm1, %v4081_v23  ;;  %v4077_v14 = vld [vmem:[#allocation3 + $0x58] sm:$0xff]  ;;  %v4182_v44 = vld [vmem:[#allocation8 + $0x198] sm:$0xff] }
 0x51f   : > { %v4213_v54 = vld [vmem:[#allocation8 + $0x290] sm:$0xff]  ;;  %v4076_v58 = vld [vmem:[#allocation3 + $0x50] sm:$0xff] }
 0x520   : > { %v4209_v23 = vld [vmem:[#allocation8 + $0x270] sm:$0xff] }
 0x523   : > { %v3925_v53 = vpop.permute.xlu0 %3924 }
 0x524   : > { %v3929_v24 = vsel %vm3928_vm0, %v3923_v28, %v3925_v53  ;;  %v3927_v47 = vpop.permute.xlu2 %3926  ;;  %v4045_v19 = vpop.permute.xlu1 %4044  ;;  %v4079_v20 = vld [vmem:[#allocation3 + $0x80] sm:$0xff] }
 0x525   : > { %3933 = vst [vmem:[#allocation3] sm:$0xf0] %v3929_v24  ;;  %v3930_v2 = vsel %vm3928_vm0, %v3925_v53, %v3927_v47  ;;  %v4049_v39 = vsel %vm4048_vm4, %v4045_v19, %v4047_v31  ;;  %4123 = vmatpush.msra.mxu3 %v4079_v20  ;;  %v4187_v31 = vld [vmem:[#allocation8 + $0x1c0] sm:$0xff]  ;;  %v4218_v28 = vld [vmem:[#allocation8 + $0x2b8] sm:$0xff]  ;;  %v4177_v53 = vld [vmem:[#allocation8 + $0x170] sm:$0xff] }
 0x526   : > { %3934 = vst.msk [vmem:[#allocation3 + $0x8] sm:$0xf0] %vm2204_vm15, %v3930_v2  ;;  %4268 = vmatpush.msra.mxu0 %v4187_v31  ;;  %4338 = vmatpush.msra.mxu1 %v4218_v28  ;;  %v4204_v24 = vld [vmem:[#allocation8 + $0x248] sm:$0xff]  ;;  %v4071_v28 = vld [vmem:[%s9742_s4] sm:$0xf]  ;;  %vm9836_vm15 = vcmask 130048  }
 0x527   : > { %4052 = vst [vmem:[#allocation3 + $0x78] sm:$0xf0] %v4049_v39  ;;  %4124 = vmatpush.msra.mxu3 %v4077_v14  ;;  %v4172_v19 = vld [vmem:[#allocation8 + $0x148] sm:$0xff]  ;;  %v4167_v39 = vld [vmem:[#allocation8 + $0x120] sm:$0xff]  ;;  %v4194_v14 = vld [vmem:[#allocation8 + $0x1f8] sm:$0xff] }
 0x528   : > { %4269 = vmatpush.msra.mxu0 %v4182_v44  ;;  %4339 = vmatpush.msra.mxu1 %v4213_v54  ;;  %v4152_v54 = vld [vmem:[#allocation8 + $0xa8] sm:$0xff] }
 0x52a   : > { %4344 = vmatpush.msrb.mxu1 %v4209_v23  ;;  %4270 = vmatpush.msra.mxu0 %v4177_v53 }
 0x52c   : > { %v4060_v49 = vpop.permute.xlu1 %4059  ;;  %4345 = vmatpush.msrb.mxu1 %v4204_v24  ;;  %4271 = vmatpush.msra.mxu0 %v4172_v19  ;;  %v4072_v44 = vld [vmem:[#allocation3] sm:$0xff]  ;;  %v4201_v19 = vld [vmem:[#allocation8 + $0x230] sm:$0xff] }
 0x52d   : > { %v4064_v52 = vsel %vm4063_vm8, %v4060_v49, %v4062_v46  ;;  %v4199_v46 = vld [vmem:[#allocation8 + $0x220] sm:$0xff]  ;;  %v4157_v49 = vld [vmem:[#allocation8 + $0xd0] sm:$0xff]  ;;  %v4206_v24 = vld [vmem:[#allocation8 + $0x258] sm:$0xff] }
 0x52e   : > { %v4067_v51 = vsel %vm3884_vm3, %v4064_v52, 0.0  ;;  %v4078_v33 = vld [vmem:[#allocation3 + $0x78] sm:$0xff]  ;;  %4346 = vmatpush.msrb.mxu1 %v4199_v46  ;;  %4272 = vmatpush.msra.mxu0 %v4167_v39  ;;  %v4142_v46 = vld [vmem:[#allocation8 + $0x58] sm:$0xff]  ;;  %v4191_v39 = vld [vmem:[#allocation8 + $0x1e0] sm:$0xff] }
 0x52f   : > { %4069 = vst [vmem:[#allocation3 + $0xa0] sm:$0xf] %v4067_v51  ;;  %v4074_v51 = vld [vmem:[#allocation3 + $0x28] sm:$0xff] }
 0x530   : > { %4347 = vmatpush.msrb.mxu1 %v4194_v14  ;;  %4273 = vmatpush.msra.mxu0 %v4162_v1  ;;  %v4132_v14 = vld [vmem:[#allocation8 + $0x8] sm:$0xff]  ;;  %v4210_v1 = vld [vmem:[#allocation8 + $0x278] sm:$0xff] }
 0x532   : > { %4274 = vmatpush.msra.mxu0 %v4157_v49  ;;  %v4205_v49 = vld [vmem:[#allocation8 + $0x250] sm:$0xff] }
 0x534   : > { %v3950_v47 = vpop.permute.xlu1 %3949  ;;  %4275 = vmatpush.msra.mxu0 %v4152_v54  ;;  %v4171_v54 = vld [vmem:[#allocation8 + $0x140] sm:$0xff] }
 0x535   : > { %v3953_v10 = vsel %vm3951_vm14, %v8890_v18, %v3950_v47  ;;  %v4189_v18 = vld [vmem:[#allocation8 + $0x1d0] sm:$0xff]  ;;  %v4179_v47 = vld [vmem:[#allocation8 + $0x180] sm:$0xff] }
 0x536   : > { %v3957_v20 = vsel %vm3885_vm5, %v3953_v10, 0.0  ;;  %v4080_v2 = vld [vmem:[#allocation3 + $0xa0] sm:$0xf]  ;;  %4348 = vmatpush.msrb.mxu1 %v4189_v18  ;;  %vm4641_vm5 = vcmask 195588  }
 0x537   : > { %3959 = vst.msk [vmem:[#allocation3 + $0x30] sm:$0xf] %vm2387_vm10, %v3957_v20  ;;  %6694 = vmatpush.msk.msrb.mxu2 %vm991_vm1, %v4080_v2  ;;  %v4174_v10 = vld [vmem:[#allocation8 + $0x158] sm:$0xff]  ;;  %v4169_v20 = vld [vmem:[#allocation8 + $0x130] sm:$0xff] }
 0x538   : > { %4349 = vmatpush.msrb.mxu1 %v4184_v29  ;;  %v4137_v2 = vld [vmem:[#allocation8 + $0x30] sm:$0xff]  ;;  %v4186_v18 = vld [vmem:[#allocation8 + $0x1b8] sm:$0xff] }
 0x539   : > { %4103 = vmatpush.msrb.mxu2 %v4078_v33  ;;  %v4181_v29 = vld [vmem:[#allocation8 + $0x190] sm:$0xff] }
 0x53a   : > { %4350 = vmatpush.msrb.mxu1 %v4179_v47  ;;  %v4180_v47 = vld [vmem:[#allocation8 + $0x188] sm:$0xff] }
 0x53b   : > { %4104 = vmatpush.msrb.mxu2 %v4076_v58  ;;  %v4164_v58 = vld [vmem:[#allocation8 + $0x108] sm:$0xff] }
 0x53c   : > { %v3901_v52 = vpop.permute.xlu1 %3900  ;;  %4351 = vmatpush.msrb.mxu1 %v4174_v10  ;;  %v4151_v10 = vld [vmem:[#allocation8 + $0xa0] sm:$0xff] }
 0x53d   : > { %v3904_v31 = vsel %vm3902_vm11, %v8882_v45, %v3901_v52  ;;  %4105 = vmatpush.msrb.mxu2 %v4074_v51  ;;  %v4147_v45 = vld [vmem:[#allocation8 + $0x80] sm:$0xff]  ;;  %v4200_v51 = vld [vmem:[#allocation8 + $0x228] sm:$0xff] }
 0x53e   : > { %v3908_v23 = vsel %vm3883_vm6, %v3904_v31, 0.0  ;;  %v4075_v53 = vld [vmem:[#allocation3 + $0x30] sm:$0xff]  ;;  %4276 = vmatpush.msra.mxu0 %v4147_v45  ;;  %4352 = vmatpush.msrb.mxu1 %v4169_v20  ;;  %v4159_v52 = vld [vmem:[#allocation8 + $0xe0] sm:$0xff]  ;;  %v4165_v20 = vld [vmem:[#allocation8 + $0x110] sm:$0xff]  ;;  %vm4621_vm6 = vcmask 453824  }
 0x53f   : > { %3910 = vst.msk [vmem:[#allocation3 + $0x8] sm:$0xf] %vm2387_vm10, %v3908_v23  ;;  %4106 = vmatpush.msrb.mxu2 %v4072_v44  ;;  %4125 = vmatpush.msra.mxu3 %v4075_v53  ;;  %v4176_v31 = vld [vmem:[#allocation8 + $0x168] sm:$0xff]  ;;  %v4195_v44 = vld [vmem:[#allocation8 + $0x200] sm:$0xff]  ;;  %v4190_v23 = vld [vmem:[#allocation8 + $0x1d8] sm:$0xff] }
 0x540   : > { %6695 = vmatmul.msk.f32.vlgmr.msrb.gmra.mxu2 %vm2698_vm9, %v4071_v28  ;;  %4277 = vmatpush.msra.mxu0 %v4142_v46  ;;  %v4166_v53 = vld [vmem:[#allocation8 + $0x118] sm:$0xff]  ;;  %v4156_v45 = vld [vmem:[#allocation8 + $0xc8] sm:$0xff]  ;;  %vm9837_vm10 = vmmov %vm9836_vm15 }
 0x541   : > { %4224 = vmatpush.msra.mxu2 %v4206_v24  ;;  %4353 = vmatpush.msrb.mxu1 %v4164_v58  ;;  %v4161_v24 = vld [vmem:[#allocation8 + $0xf0] sm:$0xff]  ;;  %v4170_v46 = vld [vmem:[#allocation8 + $0x138] sm:$0xff]  ;;  %v4140_v58 = vld [vmem:[#allocation8 + $0x48] sm:$0xff] }
 0x542   : > { %4278 = vmatpush.msra.mxu0 %v4137_v2  ;;  %v4141_v2 = vld [vmem:[#allocation8 + $0x50] sm:$0xff]  ;;  %vm9838_vm11 = vmmov %vm9837_vm10 }
 0x543   : > { %4225 = vmatpush.msra.mxu2 %v4201_v19  ;;  %4354 = vmatpush.msrb.mxu1 %v4159_v52  ;;  %v4175_v19 = vld [vmem:[#allocation8 + $0x160] sm:$0xff]  ;;  %vm9839_vm14 = vmmov %vm9837_vm10 }
 0x544   : > { %4279 = vmatpush.msra.mxu0 %v4132_v14  ;;  %v4136_v14 = vld [vmem:[#allocation8 + $0x28] sm:$0xff]  ;;  %v4135_v52 = vld [vmem:[#allocation8 + $0x20] sm:$0xff]  ;;  %vm9840_vm3 = vmmov %vm9837_vm10 }
 0x545   : > { %4226 = vmatpush.msra.mxu2 %v4196_v56  ;;  %v4146_v56 = vld [vmem:[#allocation8 + $0x78] sm:$0xff] }
 0x546   : > { %v4073_v33 = vld [vmem:[#allocation3 + $0x8] sm:$0xff]  ;;  %4384 = vmatpush.msrb.mxu0 %v4210_v1  ;;  %v4150_v1 = vld [vmem:[#allocation8 + $0x98] sm:$0xff] }
 0x547   : > { %4126 = vmatpush.msra.mxu3 %v4073_v33  ;;  %4227 = vmatpush.msra.mxu2 %v4191_v39  ;;  %v4160_v39 = vld [vmem:[#allocation8 + $0xe8] sm:$0xff]  ;;  %v4155_v33 = vld [vmem:[#allocation8 + $0xc0] sm:$0xff] }
 0x548   : > { %6697 = vmatmul.msk.f32.vlgmr.msra.gmra.mxu3 %vm2698_vm9, %v4071_v28  ;;  %4385 = vmatpush.msrb.mxu0 %v4205_v49  ;;  %v4185_v28 = vld [vmem:[#allocation8 + $0x1b0] sm:$0xff]  ;;  %v4131_v49 = vld [vmem:[#allocation8] sm:$0xff] }
 0x549   : > { %4228 = vmatpush.msra.mxu2 %v4186_v18  ;;  %v4145_v18 = vld [vmem:[#allocation8 + $0x70] sm:$0xff] }
 0x54a   : > { %4386 = vmatpush.msrb.mxu0 %v4200_v51  ;;  %v4149_v51 = vld [vmem:[#allocation8 + $0x90] sm:$0xff] }
 0x54b   : > { %4229 = vmatpush.msra.mxu2 %v4181_v29  ;;  %v4154_v29 = vld [vmem:[#allocation8 + $0xb8] sm:$0xff] }
 0x54c   : > { %4387 = vmatpush.msrb.mxu0 %v4195_v44  ;;  %4355 = vmatpush.msrb.mxu1 %v4154_v29  ;;  %v4219_v44 = vld [vmem:[#allocation8 + $0x2c0] sm:$0xff] }
 0x54d   : > { %4230 = vmatpush.msra.mxu2 %v4176_v31  ;;  %v4216_v31 = vld [vmem:[#allocation8 + $0x2a8] sm:$0xff]  ;;  %v4438_v29 = vld [vmem:[#allocation9 + $0x70] sm:$0xff] }
 0x54e   : > { %4388 = vmatpush.msrb.mxu0 %v4190_v23  ;;  %4356 = vmatpush.msrb.mxu1 %v4149_v51  ;;  %v4211_v23 = vld [vmem:[#allocation8 + $0x280] sm:$0xff] }
 0x54f   : > { %4231 = vmatpush.msra.mxu2 %v4171_v54  ;;  %4258 = vmatpush.msrb.mxu3 %v4216_v31  ;;  %v4144_v54 = vld [vmem:[#allocation8 + $0x68] sm:$0xff]  ;;  %v4482_v51 = vld [vmem:[#allocation9 + $0x1d0] sm:$0xff]  ;;  %v4198_v31 = vld [vmem:[#allocation8 + $0x218] sm:$0xff] }
 0x550   : > { %4389 = vmatpush.msrb.mxu0 %v4185_v28  ;;  %4357 = vmatpush.msrb.mxu1 %v4144_v54  ;;  %v4217_v28 = vld [vmem:[#allocation8 + $0x2b0] sm:$0xff]  ;;  %v4469_v54 = vld [vmem:[#allocation9 + $0x168] sm:$0xff] }
 0x551   : > { %4232 = vmatpush.msra.mxu2 %v4166_v53  ;;  %v4214_v53 = vld [vmem:[#allocation8 + $0x298] sm:$0xff]  ;;  %4259 = vmatpush.msrb.mxu3 %v4211_v23 }
 0x552   : > { %4390 = vmatpush.msrb.mxu0 %v4180_v47  ;;  %v4212_v47 = vld [vmem:[#allocation8 + $0x288] sm:$0xff]  ;;  %v4481_v23 = vld [vmem:[#allocation9 + $0x1c8] sm:$0xff] }
 0x553   : > { %4233 = vmatpush.msra.mxu2 %v4161_v24  ;;  %v4139_v24 = vld [vmem:[#allocation8 + $0x40] sm:$0xff]  ;;  %4298 = vmatpush.msra.mxu3 %v4217_v28  ;;  %v4436_v28 = vld [vmem:[#allocation9 + $0x60] sm:$0xff] }
 0x554   : > { %4391 = vmatpush.msrb.mxu0 %v4175_v19  ;;  %4358 = vmatpush.msrb.mxu1 %v4139_v24  ;;  %v4487_v19 = vld [vmem:[#allocation9 + $0x1f8] sm:$0xff]  ;;  %v4468_v24 = vld [vmem:[#allocation9 + $0x160] sm:$0xff] }
 0x555   : > { %4234 = vmatpush.msra.mxu2 %v4156_v45  ;;  %v4134_v45 = vld [vmem:[#allocation8 + $0x18] sm:$0xff]  ;;  %4299 = vmatpush.msra.mxu3 %v4212_v47  ;;  %v4480_v47 = vld [vmem:[#allocation9 + $0x1c0] sm:$0xff] }
 0x556   : > { %4392 = vmatpush.msrb.mxu0 %v4170_v46  ;;  %4359 = vmatpush.msrb.mxu1 %v4134_v45  ;;  %v4188_v45 = vld [vmem:[#allocation8 + $0x1c8] sm:$0xff] }
 0x557   : > { %4235 = vmatpush.msra.mxu2 %v4151_v10  ;;  %v4220_v10 = vld [vmem:[#allocation8 + $0x2c8] sm:$0xff] }
 0x558   : > { %4393 = vmatpush.msrb.mxu0 %v4165_v20  ;;  %v4215_v20 = vld [vmem:[#allocation8 + $0x2a0] sm:$0xff] }
 0x559   : > { %4236 = vmatpush.msra.mxu2 %v4146_v56  ;;  %v4486_v56 = vld [vmem:[#allocation9 + $0x1f0] sm:$0xff] }
 0x55a   : > { %4394 = vmatpush.msrb.mxu0 %v4160_v39  ;;  %v4484_v39 = vld [vmem:[#allocation9 + $0x1e0] sm:$0xff] }
 0x55b   : > { %4237 = vmatpush.msra.mxu2 %v4141_v2  ;;  %v4485_v2 = vld [vmem:[#allocation9 + $0x1e8] sm:$0xff] }
 0x55c   : > { %4395 = vmatpush.msrb.mxu0 %v4155_v33 }
 0x55d   : > { %4238 = vmatpush.msra.mxu2 %v4136_v14  ;;  %v4208_v14 = vld [vmem:[#allocation8 + $0x268] sm:$0xff] }
 0x55e   : > { %4396 = vmatpush.msrb.mxu0 %v4150_v1  ;;  %v4439_v1 = vld [vmem:[#allocation9 + $0x78] sm:$0xff] }
 0x55f   : > { %4239 = vmatpush.msra.mxu2 %v4131_v49  ;;  %v4203_v49 = vld [vmem:[#allocation8 + $0x240] sm:$0xff] }
 0x560   : > { %4397 = vmatpush.msrb.mxu0 %v4145_v18  ;;  %v4471_v18 = vld [vmem:[#allocation9 + $0x178] sm:$0xff] }
 0x561   : > { %4378 = vmatpush.msrb.mxu2 %v4219_v44  ;;  %v4437_v44 = vld [vmem:[#allocation9 + $0x68] sm:$0xff] }
 0x562   : > { %4398 = vmatpush.msrb.mxu0 %v4140_v58  ;;  %v4483_v58 = vld [vmem:[#allocation9 + $0x1d8] sm:$0xff] }
 0x563   : > { %4379 = vmatpush.msrb.mxu2 %v4214_v53  ;;  %v4193_v53 = vld [vmem:[#allocation8 + $0x1f0] sm:$0xff] }
 0x564   : > { %4399 = vmatpush.msrb.mxu0 %v4135_v52  ;;  %v4470_v52 = vld [vmem:[#allocation9 + $0x170] sm:$0xff] }
 0x5c3   : > { %v8945_v46 = vpop.f32.mrf.mxu2 }
 0x5c4   : > { %4240 = vmatmul.f32.vlgmr.msra.gmra.mxu2 %v8945_v46  ;;  %4280 = vmatmul.f32.vlgmr.msra.gmra.mxu0 %v8945_v46 }
 0x5c5   : > { %4579 = vmatpush.msra.mxu0 %v4487_v19  ;;  %4418 = vmatpush.msra.mxu2 %v4220_v10  ;;  %v4435_v19 = vld [vmem:[#allocation9 + $0x58] sm:$0xff] }
 0x5c6   : > { %v4467_v10 = vld [vmem:[#allocation9 + $0x158] sm:$0xff] }
 0x5c7   : > { %4580 = vmatpush.msra.mxu0 %v4486_v56  ;;  %4419 = vmatpush.msra.mxu2 %v4215_v20  ;;  %v4479_v56 = vld [vmem:[#allocation9 + $0x1b8] sm:$0xff]  ;;  %v4183_v20 = vld [vmem:[#allocation8 + $0x1a0] sm:$0xff] }
 0x5c9   : > { %4581 = vmatpush.msra.mxu0 %v4485_v2  ;;  %v4434_v2 = vld [vmem:[#allocation9 + $0x50] sm:$0xff] }
 0x5cb   : > { %4582 = vmatpush.msra.mxu0 %v4484_v39  ;;  %v4128_v33 = vpop.f32.mrf.mxu3  ;;  %v4466_v39 = vld [vmem:[#allocation9 + $0x150] sm:$0xff] }
 0x5cc   : > { %6698 = vmatmul.msk.f32.vlgmr.msrb.gmra.mxu3 %vm9836_vm15, %v4128_v33  ;;  %6700 = vmatmul.msk.f32.vlgmr.msra.gmra.mxu1 %vm9837_vm10, %v4128_v33 }
 0x5cd   : > { %4304 = vmatpush.msrb.mxu3 %v4208_v14  ;;  %6701 = vmatmul.msk.f32.vlgmr.msrb.gmra.mxu2 %vm9838_vm11, %v4128_v33  ;;  %v4478_v14 = vld [vmem:[#allocation9 + $0x1b0] sm:$0xff] }
 0x5ce   : > { %4400 = vmatmul.f32.vlgmr.msrb.gmra.mxu0 %v8945_v46  ;;  %4519 = vmatpush.msrb.mxu2 %v4439_v1  ;;  %v4178_v1 = vld [vmem:[#allocation8 + $0x178] sm:$0xff] }
 0x5cf   : > { %4559 = vmatpush.msra.mxu1 %v4471_v18  ;;  %4583 = vmatpush.msra.mxu0 %v4483_v58  ;;  %v4433_v18 = vld [vmem:[#allocation9 + $0x48] sm:$0xff] }
 0x5d0   : > { %4305 = vmatpush.msrb.mxu3 %v4203_v49  ;;  %4520 = vmatpush.msrb.mxu2 %v4438_v29  ;;  %v4465_v58 = vld [vmem:[#allocation9 + $0x148] sm:$0xff]  ;;  %v4173_v29 = vld [vmem:[#allocation8 + $0x150] sm:$0xff] }
 0x5d1   : > { %4560 = vmatpush.msra.mxu1 %v4470_v52  ;;  %4584 = vmatpush.msra.mxu0 %v4482_v51  ;;  %v4477_v49 = vld [vmem:[#allocation9 + $0x1a8] sm:$0xff]  ;;  %v4432_v52 = vld [vmem:[#allocation9 + $0x40] sm:$0xff] }
 0x5d2   : > { %4306 = vmatpush.msrb.mxu3 %v4198_v31  ;;  %4521 = vmatpush.msrb.mxu2 %v4437_v44  ;;  %v4464_v51 = vld [vmem:[#allocation9 + $0x140] sm:$0xff]  ;;  %v4168_v31 = vld [vmem:[#allocation8 + $0x128] sm:$0xff] }
 0x5d3   : > { %4561 = vmatpush.msra.mxu1 %v4469_v54  ;;  %4585 = vmatpush.msra.mxu0 %v4481_v23  ;;  %v4431_v44 = vld [vmem:[#allocation9 + $0x38] sm:$0xff] }
 0x5d4   : > { %4307 = vmatpush.msrb.mxu3 %v4193_v53  ;;  %4522 = vmatpush.msrb.mxu2 %v4436_v28  ;;  %v4463_v54 = vld [vmem:[#allocation9 + $0x138] sm:$0xff]  ;;  %v4163_v53 = vld [vmem:[#allocation8 + $0x100] sm:$0xff] }
 0x5d5   : > { %4562 = vmatpush.msra.mxu1 %v4468_v24  ;;  %4586 = vmatpush.msra.mxu0 %v4480_v47  ;;  %v4475_v23 = vld [vmem:[#allocation9 + $0x198] sm:$0xff]  ;;  %v4430_v28 = vld [vmem:[#allocation9 + $0x30] sm:$0xff] }
 0x5d6   : > { %6699 = vmatmul.msk.f32.vlgmr.msra.gmra.mxu3 %vm9839_vm14, %v4128_v33  ;;  %4360 = vmatmul.f32.vlgmr.msrb.gmra.mxu1 %v8945_v46  ;;  %v4462_v24 = vld [vmem:[#allocation9 + $0x130] sm:$0xff] }
 0x5d7   : > { %4308 = vmatpush.msrb.mxu3 %v4188_v45  ;;  %6702 = vmatmul.msk.f32.vlgmr.msra.gmra.mxu2 %vm9840_vm3, %v4128_v33  ;;  %v4476_v33 = vld [vmem:[#allocation9 + $0x1a0] sm:$0xff]  ;;  %v4474_v47 = vld [vmem:[#allocation9 + $0x190] sm:$0xff]  ;;  %v4158_v45 = vld [vmem:[#allocation8 + $0xd8] sm:$0xff]  ;;  %vm9848_vm3 = vcmask 859136  }
 0x5d8   : > { %4523 = vmatpush.msrb.mxu2 %v4435_v19  ;;  %4563 = vmatpush.msra.mxu1 %v4467_v10  ;;  %v4429_v19 = vld [vmem:[#allocation9 + $0x28] sm:$0xff] }
 0x5d9   : > { %4587 = vmatpush.msra.mxu0 %v4479_v56  ;;  %4309 = vmatpush.msrb.mxu3 %v4183_v20  ;;  %v4461_v10 = vld [vmem:[#allocation9 + $0x128] sm:$0xff]  ;;  %v4153_v20 = vld [vmem:[#allocation8 + $0xb0] sm:$0xff] }
 0x5da   : > { %4524 = vmatpush.msrb.mxu2 %v4434_v2  ;;  %4564 = vmatpush.msra.mxu1 %v4466_v39  ;;  %v4473_v56 = vld [vmem:[#allocation9 + $0x188] sm:$0xff]  ;;  %v4428_v2 = vld [vmem:[#allocation9 + $0x20] sm:$0xff] }
 0x5db   : > { %4588 = vmatpush.msra.mxu0 %v4478_v14  ;;  %4310 = vmatpush.msrb.mxu3 %v4178_v1  ;;  %v4460_v39 = vld [vmem:[#allocation9 + $0x120] sm:$0xff]  ;;  %v4148_v1 = vld [vmem:[#allocation8 + $0x88] sm:$0xff] }
 0x5dc   : > { %4525 = vmatpush.msrb.mxu2 %v4433_v18  ;;  %4565 = vmatpush.msra.mxu1 %v4465_v58  ;;  %v4472_v14 = vld [vmem:[#allocation9 + $0x180] sm:$0xff]  ;;  %v4427_v18 = vld [vmem:[#allocation9 + $0x18] sm:$0xff]  ;;  %v4742_v58 = vld [vmem:[#allocation12 + $0x178] sm:$0xff] }
 0x5dd   : > { %4589 = vmatpush.msra.mxu0 %v4477_v49  ;;  %4311 = vmatpush.msrb.mxu3 %v4173_v29  ;;  %v4459_v49 = vld [vmem:[#allocation9 + $0x118] sm:$0xff]  ;;  %v4143_v29 = vld [vmem:[#allocation8 + $0x60] sm:$0xff] }
 0x5de   : > { %4526 = vmatpush.msrb.mxu2 %v4432_v52  ;;  %4566 = vmatpush.msra.mxu1 %v4464_v51  ;;  %v4426_v52 = vld [vmem:[#allocation9 + $0x10] sm:$0xff]  ;;  %v4741_v51 = vld [vmem:[#allocation12 + $0x170] sm:$0xff] }
 0x5df   : > { %4590 = vmatpush.msra.mxu0 %v4476_v33  ;;  %4312 = vmatpush.msrb.mxu3 %v4168_v31  ;;  %v4458_v33 = vld [vmem:[#allocation9 + $0x110] sm:$0xff]  ;;  %v4138_v31 = vld [vmem:[#allocation8 + $0x38] sm:$0xff] }
 0x5e0   : > { %4527 = vmatpush.msrb.mxu2 %v4431_v44  ;;  %4567 = vmatpush.msra.mxu1 %v4463_v54  ;;  %v4425_v44 = vld [vmem:[#allocation9 + $0x8] sm:$0xff]  ;;  %v4740_v54 = vld [vmem:[#allocation12 + $0x168] sm:$0xff] }
 0x5e1   : > { %4591 = vmatpush.msra.mxu0 %v4475_v23  ;;  %4313 = vmatpush.msrb.mxu3 %v4163_v53  ;;  %v4457_v23 = vld [vmem:[#allocation9 + $0x108] sm:$0xff]  ;;  %v4133_v53 = vld [vmem:[#allocation8 + $0x10] sm:$0xff] }
 0x5e2   : > { %4528 = vmatpush.msrb.mxu2 %v4430_v28  ;;  %4568 = vmatpush.msra.mxu1 %v4462_v24  ;;  %v4424_v28 = vld [vmem:[#allocation9] sm:$0xff]  ;;  %v4739_v24 = vld [vmem:[#allocation12 + $0x160] sm:$0xff] }
 0x5e3   : > { %4592 = vmatpush.msra.mxu0 %v4474_v47  ;;  %4314 = vmatpush.msrb.mxu3 %v4158_v45  ;;  %v4456_v47 = vld [vmem:[#allocation9 + $0x100] sm:$0xff]  ;;  %v4509_v45 = vrot.slane %v7315_v15, 4 }
 0x5e4   : > { %4529 = vmatpush.msrb.mxu2 %v4429_v19  ;;  %4569 = vmatpush.msra.mxu1 %v4461_v10  ;;  %v4455_v19 = vld [vmem:[#allocation9 + $0xf8] sm:$0xff]  ;;  %v4511_v10 = vrot.slane %v7341_v37, 4  ;;  %v4758_v37 = vld [vmem:[#allocation12 + $0x1f8] sm:$0xff]  ;;  %v4764_v15 = vld [vmem:[#allocation12 + $0x228] sm:$0xff] }
 0x5e5   : > { %4593 = vmatpush.msra.mxu0 %v4473_v56  ;;  %4315 = vmatpush.msrb.mxu3 %v4153_v20  ;;  %v4503_v56 = vld [vmem:[#allocation9 + $0x278] sm:$0xff]  ;;  %v4726_v20 = vld [vmem:[#allocation12 + $0xf8] sm:$0xff] }
 0x5e6   : > { %4530 = vmatpush.msrb.mxu2 %v4428_v2  ;;  %4570 = vmatpush.msra.mxu1 %v4460_v39  ;;  %v4738_v2 = vld [vmem:[#allocation12 + $0x158] sm:$0xff] }
 0x5e7   : > { %4594 = vmatpush.msra.mxu0 %v4472_v14  ;;  %4316 = vmatpush.msrb.mxu3 %v4148_v1  ;;  %v4454_v39 = vld [vmem:[#allocation9 + $0xf0] sm:$0xff]  ;;  %v4725_v1 = vld [vmem:[#allocation12 + $0xf0] sm:$0xff] }
 0x5e8   : > { %4595 = vmatmul.f32.vlgmr.msra.gmra.mxu0 %v7339_v36  ;;  %4531 = vmatpush.msrb.mxu2 %v4427_v18  ;;  %v4502_v14 = vld [vmem:[#allocation9 + $0x270] sm:$0xff]  ;;  %v4737_v18 = vld [vmem:[#allocation12 + $0x150] sm:$0xff] }
 0x5e9   : > { %4815 = vmatpush.msrb.mxu0 %v4742_v58  ;;  %4571 = vmatpush.msra.mxu1 %v4459_v49  ;;  %v4453_v58 = vld [vmem:[#allocation9 + $0xe8] sm:$0xff] }
 0x5ea   : > { %4317 = vmatpush.msrb.mxu3 %v4143_v29  ;;  %4532 = vmatpush.msrb.mxu2 %v4426_v52  ;;  %v4501_v49 = vld [vmem:[#allocation9 + $0x268] sm:$0xff]  ;;  %v4724_v29 = vld [vmem:[#allocation12 + $0xe8] sm:$0xff] }
 0x5eb   : > { %4816 = vmatpush.msrb.mxu0 %v4741_v51  ;;  %4572 = vmatpush.msra.mxu1 %v4458_v33  ;;  %v4452_v52 = vld [vmem:[#allocation9 + $0xe0] sm:$0xff]  ;;  %v4723_v33 = vld [vmem:[#allocation12 + $0xe0] sm:$0xff] }
 0x5ec   : > { %4318 = vmatpush.msrb.mxu3 %v4138_v31  ;;  %4533 = vmatpush.msrb.mxu2 %v4425_v44  ;;  %v4500_v51 = vld [vmem:[#allocation9 + $0x260] sm:$0xff]  ;;  %v4735_v31 = vld [vmem:[#allocation12 + $0x140] sm:$0xff] }
 0x5ed   : > { %4817 = vmatpush.msrb.mxu0 %v4740_v54  ;;  %4573 = vmatpush.msra.mxu1 %v4457_v23  ;;  %v4451_v44 = vld [vmem:[#allocation9 + $0xd8] sm:$0xff]  ;;  %v4722_v23 = vld [vmem:[#allocation12 + $0xd8] sm:$0xff] }
 0x5ee   : > { %4319 = vmatpush.msrb.mxu3 %v4133_v53  ;;  %4534 = vmatpush.msrb.mxu2 %v4424_v28  ;;  %v4499_v54 = vld [vmem:[#allocation9 + $0x258] sm:$0xff]  ;;  %v4734_v53 = vld [vmem:[#allocation12 + $0x138] sm:$0xff] }
 0x5ef   : > { %4818 = vmatpush.msrb.mxu0 %v4739_v24  ;;  %4574 = vmatpush.msra.mxu1 %v4456_v47  ;;  %v4450_v28 = vld [vmem:[#allocation9 + $0xd0] sm:$0xff]  ;;  %v4721_v47 = vld [vmem:[#allocation12 + $0xd0] sm:$0xff] }
 0x5f0   : > { %4320 = vmatmul.f32.vlgmr.msrb.gmra.mxu3 %v8945_v46  ;;  %4535 = vmatmul.f32.vlgmr.msrb.gmra.mxu2 %v4509_v45  ;;  %v4736_v46 = vld [vmem:[#allocation12 + $0x148] sm:$0xff]  ;;  %v4498_v24 = vld [vmem:[#allocation9 + $0x250] sm:$0xff] }
 0x5f1   : > { %4539 = vmatpush.msra.mxu3 %v4455_v19  ;;  %4575 = vmatmul.f32.vlgmr.msra.gmra.mxu1 %v4511_v10  ;;  %v4733_v19 = vld [vmem:[#allocation12 + $0x130] sm:$0xff] }
 0x5f2   : > { %4599 = vmatpush.msra.mxu2 %v4503_v56  ;;  %4795 = vmatpush.msrb.mxu1 %v4726_v20  ;;  %v4449_v56 = vld [vmem:[#allocation9 + $0xc8] sm:$0xff] }
 0x5f3   : > { %4819 = vmatpush.msrb.mxu0 %v4738_v2  ;;  %4540 = vmatpush.msra.mxu3 %v4454_v39  ;;  %v4497_v20 = vld [vmem:[#allocation9 + $0x248] sm:$0xff]  ;;  %v4720_v2 = vld [vmem:[#allocation12 + $0xc8] sm:$0xff] }
 0x5f4   : > { %4600 = vmatpush.msra.mxu2 %v4502_v14  ;;  %4796 = vmatpush.msrb.mxu1 %v4725_v1  ;;  %v4732_v39 = vld [vmem:[#allocation12 + $0x128] sm:$0xff] }
 0x5f5   : > { %4820 = vmatpush.msrb.mxu0 %v4737_v18  ;;  %4541 = vmatpush.msra.mxu3 %v4453_v58  ;;  %v4448_v14 = vld [vmem:[#allocation9 + $0xc0] sm:$0xff]  ;;  %v4719_v18 = vld [vmem:[#allocation12 + $0xc0] sm:$0xff] }
 0x5f6   : > { %4601 = vmatpush.msra.mxu2 %v4501_v49  ;;  %4797 = vmatpush.msrb.mxu1 %v4724_v29  ;;  %v4496_v1 = vld [vmem:[#allocation9 + $0x240] sm:$0xff]  ;;  %v4731_v58 = vld [vmem:[#allocation12 + $0x120] sm:$0xff] }
 0x5f7   : > { %4821 = vmatpush.msrb.mxu0 %v4736_v46  ;;  %4542 = vmatpush.msra.mxu3 %v4452_v52  ;;  %v4447_v49 = vld [vmem:[#allocation9 + $0xb8] sm:$0xff]  ;;  %v4718_v46 = vld [vmem:[#allocation12 + $0xb8] sm:$0xff] }
 0x5f8   : > { %4602 = vmatpush.msra.mxu2 %v4500_v51  ;;  %4798 = vmatpush.msrb.mxu1 %v4723_v33  ;;  %v4495_v29 = vld [vmem:[#allocation9 + $0x238] sm:$0xff]  ;;  %v4730_v52 = vld [vmem:[#allocation12 + $0x118] sm:$0xff] }
 0x5f9   : > { %4822 = vmatpush.msrb.mxu0 %v4735_v31  ;;  %4543 = vmatpush.msra.mxu3 %v4451_v44  ;;  %v4446_v51 = vld [vmem:[#allocation9 + $0xb0] sm:$0xff]  ;;  %v4717_v31 = vld [vmem:[#allocation12 + $0xb0] sm:$0xff] }
 0x5fa   : > { %4603 = vmatpush.msra.mxu2 %v4499_v54  ;;  %4799 = vmatpush.msrb.mxu1 %v4722_v23  ;;  %v4494_v33 = vld [vmem:[#allocation9 + $0x230] sm:$0xff]  ;;  %v4729_v44 = vld [vmem:[#allocation12 + $0x110] sm:$0xff] }
 0x5fb   : > { %4823 = vmatpush.msrb.mxu0 %v4734_v53  ;;  %4544 = vmatpush.msra.mxu3 %v4450_v28  ;;  %v4445_v54 = vld [vmem:[#allocation9 + $0xa8] sm:$0xff]  ;;  %v4716_v53 = vld [vmem:[#allocation12 + $0xa8] sm:$0xff] }
 0x5fc   : > { %4604 = vmatpush.msra.mxu2 %v4498_v24  ;;  %4800 = vmatpush.msrb.mxu1 %v4721_v47  ;;  %v4493_v23 = vld [vmem:[#allocation9 + $0x228] sm:$0xff]  ;;  %v4728_v28 = vld [vmem:[#allocation12 + $0x108] sm:$0xff] }
 0x5fd   : > { %4824 = vmatpush.msrb.mxu0 %v4733_v19  ;;  %4545 = vmatpush.msra.mxu3 %v4449_v56  ;;  %v4444_v24 = vld [vmem:[#allocation9 + $0xa0] sm:$0xff]  ;;  %v4715_v19 = vld [vmem:[#allocation12 + $0xa0] sm:$0xff] }
 0x5fe   : > { %4605 = vmatpush.msra.mxu2 %v4497_v20  ;;  %4801 = vmatpush.msrb.mxu1 %v4720_v2  ;;  %v4492_v47 = vld [vmem:[#allocation9 + $0x220] sm:$0xff]  ;;  %v4727_v56 = vld [vmem:[#allocation12 + $0x100] sm:$0xff] }
 0x5ff   : > { %4825 = vmatpush.msrb.mxu0 %v4732_v39  ;;  %4546 = vmatpush.msra.mxu3 %v4448_v14  ;;  %v4443_v20 = vld [vmem:[#allocation9 + $0x98] sm:$0xff]  ;;  %v4714_v39 = vld [vmem:[#allocation12 + $0x98] sm:$0xff] }
 0x600   : > { %4606 = vmatpush.msra.mxu2 %v4496_v1  ;;  %4802 = vmatpush.msrb.mxu1 %v4719_v18  ;;  %v4491_v2 = vld [vmem:[#allocation9 + $0x218] sm:$0xff]  ;;  %v4442_v14 = vld [vmem:[#allocation9 + $0x90] sm:$0xff]  ;;  %v4713_v18 = vld [vmem:[#allocation12 + $0x90] sm:$0xff] }
 0x601   : > { %4826 = vmatpush.msrb.mxu0 %v4731_v58  ;;  %4547 = vmatpush.msra.mxu3 %v4447_v49  ;;  %v4490_v1 = vld [vmem:[#allocation9 + $0x210] sm:$0xff]  ;;  %v4441_v58 = vld [vmem:[#allocation9 + $0x88] sm:$0xff] }
 0x602   : > { %4607 = vmatpush.msra.mxu2 %v4495_v29  ;;  %4803 = vmatpush.msrb.mxu1 %v4718_v46  ;;  %v4489_v49 = vld [vmem:[#allocation9 + $0x208] sm:$0xff]  ;;  %v4712_v29 = vld [vmem:[#allocation12 + $0x88] sm:$0xff] }
 0x603   : > { %4827 = vmatpush.msrb.mxu0 %v4730_v52  ;;  %4548 = vmatpush.msra.mxu3 %v4446_v51  ;;  %v4440_v46 = vld [vmem:[#allocation9 + $0x80] sm:$0xff]  ;;  %v4711_v51 = vld [vmem:[#allocation12 + $0x80] sm:$0xff] }
 0x604   : > { %4608 = vmatpush.msra.mxu2 %v4494_v33  ;;  %4804 = vmatpush.msrb.mxu1 %v4717_v31  ;;  %v4488_v52 = vld [vmem:[#allocation9 + $0x200] sm:$0xff]  ;;  %v4513_v33 = vrot.slane %v7336_v34, 4 }
 0x605   : > { %4828 = vmatpush.msrb.mxu0 %v4729_v44  ;;  %4549 = vmatpush.msra.mxu3 %v4445_v54  ;;  %v4756_v31 = vld [vmem:[#allocation12 + $0x1e8] sm:$0xff]  ;;  %v4755_v44 = vld [vmem:[#allocation12 + $0x1e0] sm:$0xff]  ;;  %v4754_v54 = vld [vmem:[#allocation12 + $0x1d8] sm:$0xff] }
 0x606   : > { %4609 = vmatpush.msra.mxu2 %v4493_v23  ;;  %4805 = vmatpush.msrb.mxu1 %v4716_v53  ;;  %v4753_v23 = vld [vmem:[#allocation12 + $0x1d0] sm:$0xff]  ;;  %v4752_v53 = vld [vmem:[#allocation12 + $0x1c8] sm:$0xff] }
 0x607   : > { %4829 = vmatpush.msrb.mxu0 %v4728_v28  ;;  %4550 = vmatpush.msra.mxu3 %v4444_v24  ;;  %v4751_v28 = vld [vmem:[#allocation12 + $0x1c0] sm:$0xff]  ;;  %v4750_v24 = vld [vmem:[#allocation12 + $0x1b8] sm:$0xff]  ;;  %v4692_v34 = vld [vmem:[#allocation11 + $0x60] sm:$0xff] }
 0x608   : > { %4610 = vmatpush.msra.mxu2 %v4492_v47  ;;  %4806 = vmatpush.msrb.mxu1 %v4715_v19  ;;  %v4749_v47 = vld [vmem:[#allocation12 + $0x1b0] sm:$0xff]  ;;  %v4748_v19 = vld [vmem:[#allocation12 + $0x1a8] sm:$0xff] }
 0x609   : > { %4830 = vmatpush.msrb.mxu0 %v4727_v56  ;;  %4551 = vmatpush.msra.mxu3 %v4443_v20  ;;  %v4746_v56 = vld [vmem:[#allocation12 + $0x198] sm:$0xff]  ;;  %v4745_v20 = vld [vmem:[#allocation12 + $0x190] sm:$0xff] }
 0x60a   : > { %4831 = vmatmul.f32.vlgmr.msrb.gmra.mxu0 %v4511_v10  ;;  %4611 = vmatpush.msra.mxu2 %v4491_v2  ;;  %v4757_v10 = vld [vmem:[#allocation12 + $0x1f0] sm:$0xff]  ;;  %v4744_v2 = vld [vmem:[#allocation12 + $0x188] sm:$0xff] }
 0x60b   : > { %4807 = vmatpush.msrb.mxu1 %v4714_v39  ;;  %4552 = vmatpush.msra.mxu3 %v4442_v14  ;;  %v4743_v39 = vld [vmem:[#allocation12 + $0x180] sm:$0xff]  ;;  %v4947_v14 = vld [vmem:[#allocation14 + $0x70] sm:$0xff] }
 0x60c   : > { %4612 = vmatpush.msra.mxu2 %v4490_v1  ;;  %v4942_v1 = vld [vmem:[#allocation14 + $0x48] sm:$0xff] }
 0x60d   : > { %4808 = vmatpush.msrb.mxu1 %v4713_v18  ;;  %4553 = vmatpush.msra.mxu3 %v4441_v58  ;;  %v4937_v18 = vld [vmem:[#allocation14 + $0x20] sm:$0xff] }
 0x60e   : > { %4613 = vmatpush.msra.mxu2 %v4489_v49 }
 0x60f   : > { %4809 = vmatpush.msrb.mxu1 %v4712_v29  ;;  %4554 = vmatpush.msra.mxu3 %v4440_v46 }
 0x610   : > { %4614 = vmatpush.msra.mxu2 %v4488_v52  ;;  %4555 = vmatmul.f32.vlgmr.msra.gmra.mxu3 %v7321_v21 }
 0x611   : > { %4810 = vmatpush.msrb.mxu1 %v4711_v51  ;;  %4615 = vmatmul.f32.vlgmr.msra.gmra.mxu2 %v4513_v33 }
 0x612   : > { %4811 = vmatmul.f32.vlgmr.msrb.gmra.mxu1 %v7321_v21  ;;  %4835 = vmatpush.msrb.mxu2 %v4758_v37  ;;  %v4747_v21 = vld [vmem:[#allocation12 + $0x1a0] sm:$0xff] }
 0x614   : > { %4836 = vmatpush.msrb.mxu2 %v4757_v10 }
 0x616   : > { %4837 = vmatpush.msrb.mxu2 %v4756_v31 }
 0x618   : > { %4838 = vmatpush.msrb.mxu2 %v4755_v44 }
 0x61a   : > { %4839 = vmatpush.msrb.mxu2 %v4754_v54 }
 0x61c   : > { %4840 = vmatpush.msrb.mxu2 %v4753_v23 }
 0x61e   : > { %4841 = vmatpush.msrb.mxu2 %v4752_v53 }
 0x620   : > { %4842 = vmatpush.msrb.mxu2 %v4751_v28 }
 0x622   : > { %4843 = vmatpush.msrb.mxu2 %v4750_v24 }
 0x624   : > { %4844 = vmatpush.msrb.mxu2 %v4749_v47 }
 0x626   : > { %4845 = vmatpush.msrb.mxu2 %v4748_v19 }
 0x628   : > { %4846 = vmatpush.msrb.mxu2 %v4747_v21 }
 0x62a   : > { %4847 = vmatpush.msrb.mxu2 %v4746_v56 }
 0x62c   : > { %4848 = vmatpush.msrb.mxu2 %v4745_v20 }
 0x62e   : > { %4849 = vmatpush.msrb.mxu2 %v4744_v2 }
 0x630   : > { %4850 = vmatpush.msrb.mxu2 %v4743_v39 }
 0x631   : > { %4851 = vmatmul.f32.vlgmr.msrb.gmra.mxu2 %v7339_v36 }
 0x632   : > { %5044 = vmatpush.msra.mxu2 %v4947_v14 }
 0x634   : > { %5045 = vmatpush.msra.mxu2 %v4942_v1 }
 0x636   : > { %5046 = vmatpush.msra.mxu2 %v4937_v18 }
 0x638   : > { %6716 = vmatpush.msk.msrb.mxu2 %vm991_vm1, %v8025_v17 }
 0x63a   : > { %5121 = vmatpush.msrb.mxu2 %v7993_v61 }
 0x63c   : > { %5122 = vmatpush.msrb.mxu2 %v7820_v30 }
 0x63e   : > { %5123 = vmatpush.msrb.mxu2 %v7954_v50 }
 0x640   : > { %5124 = vmatpush.msrb.mxu2 %v7908_v35 }
 0x641   : > { %v4281_v36 = vpop.f32.mrf.mxu0 }
 0x647   : > { %v4241_v58 = vpop.f32.mrf.mxu2 }
 0x649   : > { %v4341_v49 = vpop.f32.mrf.mxu1 }
 0x64b   : > { %v4401_v17 = vpop.f32.mrf.mxu0 }
 0x64f   : > { %v4261_v29 = vpop.f32.mrf.mxu3 }
 0x650   : > { %v8978_v46 = vadd.f32 %v4261_v29, %v4241_v58  ;;  %v4381_v52 = vpop.f32.mrf.mxu2 }
 0x653   : > { %v4361_v51 = vpop.f32.mrf.mxu1 }
 0x654   : > { %v8980_v37 = vadd.f32 %v4381_v52, %v4361_v51  ;;  %v4710_v51 = vld [vmem:[#allocation12 + $0x78] sm:$0xff] }
 0x659   : > { %v4301_v10 = vpop.f32.mrf.mxu3 }
 0x65a   : > { %v8982_v31 = vadd.f32 %v4301_v10, %v4281_v36  ;;  %v4421_v61 = vpop.f32.mrf.mxu2 }
 0x65b   : > { %v8984_v30 = vadd.f32 %v4421_v61, %v4401_v17  ;;  %v4651_v17 = vld [vmem:[%s9743_s5] sm:$0xf]  ;;  %v4709_v61 = vld [vmem:[#allocation12 + $0x70] sm:$0xff] }
 0x665   : > { %v4596_v24 = vpop.f32.mrf.mxu0 }
 0x66e   : > { %v4576_v53 = vpop.f32.mrf.mxu1 }
 0x673   : > { %v4321_v50 = vpop.f32.mrf.mxu3  ;;  %v4536_v35 = vpop.f32.mrf.mxu2 }
 0x674   : > { %v8986_v44 = vadd.f32 %v4341_v49, %v4321_v50  ;;  %v4708_v50 = vld [vmem:[#allocation12 + $0x68] sm:$0xff] }
 0x693   : > { %v4556_v54 = vpop.f32.mrf.mxu3 }
 0x694   : > { %v4557_v23 = vadd.f32 %v4556_v54, %v4536_v35  ;;  %v4616_v19 = vpop.f32.mrf.mxu2  ;;  %v4707_v35 = vld [vmem:[#allocation12 + $0x60] sm:$0xff]  ;;  %v4706_v54 = vld [vmem:[#allocation12 + $0x58] sm:$0xff] }
 0x696   : > { %v4577_v28 = vadd.f32 %v4576_v53, %v4557_v23  ;;  %v4705_v23 = vld [vmem:[#allocation12 + $0x50] sm:$0xff]  ;;  %v4704_v53 = vld [vmem:[#allocation12 + $0x48] sm:$0xff] }
 0x698   : > { %v4597_v47 = vadd.f32 %v4596_v24, %v4577_v28  ;;  %v4703_v28 = vld [vmem:[#allocation12 + $0x40] sm:$0xff]  ;;  %v4702_v24 = vld [vmem:[#allocation12 + $0x38] sm:$0xff] }
 0x69a   : > { %v4617_v21 = vadd.f32 %v4616_v19, %v4597_v47  ;;  %v4701_v47 = vld [vmem:[#allocation12 + $0x30] sm:$0xff]  ;;  %v4700_v19 = vld [vmem:[#allocation12 + $0x28] sm:$0xff] }
 0x69c   : > { %4620 = vst.msk [vmem:[#allocation2 + $0x4] sm:$0xf] %vm4619_vm12, %v4617_v21  ;;  %v4699_v21 = vld [vmem:[#allocation12 + $0x20] sm:$0xff] }
 0x69d   : > { %4622 = vst.msk [vmem:[#allocation2 + $0x4] sm:$0xf] %vm4621_vm6, %v9822_v40 }
 0x6a4   : > { %v4623_v56 = vld [vmem:[#allocation2] sm:$0xff] }
 0x6a5   : > { %4625 = vst [vmem:[#allocation1] ss:$2 sm:$0xff] %v4623_v56  ;;  %v4635_v20 = vld [vmem:[#allocation2 + $0x4] sm:$0xf] }
 0x6a6   : > { %v4643_v14 = vld [vmem:[#allocation2 + $0x4] sm:$0xf] }
 0x6a7   : > { %v4698_v56 = vld [vmem:[#allocation12 + $0x18] sm:$0xff] }
 0x6ac   : > { %v4627_v2 = vld.sshfl [vmem:[#allocation1 + $0x8] sm:$0xff pattern:$0x75316420]  ;;  %v4626_v39 = vld.sshfl [vmem:[#allocation1] sm:$0xff pattern:$0x75316420] }
 0x6ad   : > { %4630 = vrot.lane.b32.xlu2 %v4627_v2, %s7107_s19  ;;  %4628 = vrot.lane.b32.xlu1 %v4626_v39, %s7107_s19  ;;  %4638 = vst [vmem:[#allocation1 + $0x1] ss:$2 sm:$0xff] %v4635_v20  ;;  %v4697_v20 = vld [vmem:[#allocation12 + $0x10] sm:$0xff]  ;;  %v4696_v2 = vld [vmem:[#allocation12 + $0x8] sm:$0xff]  ;;  %v4695_v39 = vld [vmem:[#allocation12] sm:$0xff] }
 0x6b4   : > { %v4639_v1 = vld.sshfl [vmem:[#allocation1] sm:$0xff pattern:$0x75316420] }
 0x6b5   : > { %4645 = vst [vmem:[#allocation1] ss:$2 sm:$0xff] %v4643_v14  ;;  %v4774_v14 = vld [vmem:[#allocation12 + $0x278] sm:$0xff] }
 0x6b6   : > { %4642 = vst.msk [vmem:[#allocation3] sm:$0xf0] %vm4641_vm5, %v4639_v1  ;;  %v4773_v1 = vld [vmem:[#allocation12 + $0x270] sm:$0xff] }
 0x6bc   : > { %v4646_v18 = vld.sshfl [vmem:[#allocation1] sm:$0xff pattern:$0x75316420] }
 0x6bd   : > { %4647 = vrot.lane.b32.xlu0 %v4646_v18, %s7108_s27  ;;  %v4772_v18 = vld [vmem:[#allocation12 + $0x268] sm:$0xff] }
 0x707   : > { %v4631_v58 = vpop.permute.xlu2 %4630 }
 0x71f   : > { %v4629_v49 = vpop.permute.xlu1 %4628 }
 0x720   : > { %v4632_v29 = vsel %vm1174_vm7, %v4629_v49, %v4631_v58  ;;  %v4771_v58 = vld [vmem:[#allocation12 + $0x260] sm:$0xff]  ;;  %v4770_v49 = vld [vmem:[#allocation12 + $0x258] sm:$0xff] }
 0x721   : > { %4634 = vst.msk [vmem:[#allocation3] sm:$0xf] %vm4619_vm12, %v4632_v29  ;;  %v4769_v29 = vld [vmem:[#allocation12 + $0x250] sm:$0xff] }
 0x728   : > { %v4652_v10 = vld [vmem:[#allocation3] sm:$0xff] }
 0x72f   : > { %v4648_v36 = vpop.permute.xlu0 %4647 }
 0x730   : > { %4650 = vst.msk [vmem:[#allocation3 + $0x28] sm:$0xf] %vm4619_vm12, %v4648_v36  ;;  %v4768_v36 = vld [vmem:[#allocation12 + $0x248] sm:$0xff] }
 0x737   : > { %v4653_v52 = vld [vmem:[#allocation3 + $0x28] sm:$0xf] }
 0x738   : > { %6703 = vmatpush.msk.msrb.mxu3 %vm991_vm1, %v4653_v52  ;;  %v4767_v52 = vld [vmem:[#allocation12 + $0x240] sm:$0xff] }
 0x73a   : > { %4675 = vmatpush.msrb.mxu3 %v4652_v10  ;;  %v4765_v10 = vld [vmem:[#allocation12 + $0x230] sm:$0xff] }
 0x73b   : > { %6704 = vmatmul.msk.f32.vlgmr.msrb.gmra.mxu3 %vm3928_vm0, %v4651_v17  ;;  %v4762_v17 = vld [vmem:[#allocation12 + $0x218] sm:$0xff] }
 0x73c   : > { %4775 = vmatpush.msra.mxu3 %v4710_v51  ;;  %v4766_v51 = vld [vmem:[#allocation12 + $0x238] sm:$0xff] }
 0x73e   : > { %4776 = vmatpush.msra.mxu3 %v4709_v61  ;;  %v4761_v61 = vld [vmem:[#allocation12 + $0x210] sm:$0xff] }
 0x740   : > { %4777 = vmatpush.msra.mxu3 %v4708_v50  ;;  %v4760_v50 = vld [vmem:[#allocation12 + $0x208] sm:$0xff] }
 0x742   : > { %4778 = vmatpush.msra.mxu3 %v4707_v35  ;;  %v4759_v35 = vld [vmem:[#allocation12 + $0x200] sm:$0xff] }
 0x744   : > { %4779 = vmatpush.msra.mxu3 %v4706_v54  ;;  %v9015_v54 = vld [vmem:[%s9740_s2] sm:$0xf] }
 0x746   : > { %4780 = vmatpush.msra.mxu3 %v4705_v23 }
 0x748   : > { %4781 = vmatpush.msra.mxu3 %v4704_v53  ;;  %v4832_v53 = vpop.f32.mrf.mxu0 }
 0x74a   : > { %4782 = vmatpush.msra.mxu3 %v4703_v28 }
 0x74c   : > { %4783 = vmatpush.msra.mxu3 %v4702_v24 }
 0x74e   : > { %4784 = vmatpush.msra.mxu3 %v4701_v47 }
 0x750   : > { %4785 = vmatpush.msra.mxu3 %v4700_v19 }
 0x752   : > { %4786 = vmatpush.msra.mxu3 %v4699_v21 }
 0x754   : > { %4787 = vmatpush.msra.mxu3 %v4698_v56 }
 0x756   : > { %4788 = vmatpush.msra.mxu3 %v4697_v20 }
 0x758   : > { %4789 = vmatpush.msra.mxu3 %v4696_v2 }
 0x75a   : > { %4790 = vmatpush.msra.mxu3 %v4695_v39 }
 0x75b   : > { %4791 = vmatmul.f32.vlgmr.msra.gmra.mxu3 %v4509_v45  ;;  %v4763_v45 = vld [vmem:[#allocation12 + $0x220] sm:$0xff] }
 0x75c   : > { %4855 = vmatpush.msrb.mxu3 %v4774_v14 }
 0x75e   : > { %4856 = vmatpush.msrb.mxu3 %v4773_v1 }
 0x760   : > { %4857 = vmatpush.msrb.mxu3 %v4772_v18 }
 0x762   : > { %4858 = vmatpush.msrb.mxu3 %v4771_v58 }
 0x764   : > { %4859 = vmatpush.msrb.mxu3 %v4770_v49  ;;  %v9846_v49 = vld [vmem:[#allocation20_spill] sm:$0xff] }
 0x766   : > { %4860 = vmatpush.msrb.mxu3 %v4769_v29  ;;  %v915_v29 = vshrl.u32 %v9846_v49, 16 }
 0x768   : > { %4861 = vmatpush.msrb.mxu3 %v4768_v36 }
 0x76a   : > { %4862 = vmatpush.msrb.mxu3 %v4767_v52 }
 0x76c   : > { %4863 = vmatpush.msrb.mxu3 %v4766_v51  ;;  %v919_v51 = vmul.u32 43691, %v915_v29 }
 0x76e   : > { %4864 = vmatpush.msrb.mxu3 %v4765_v10 }
 0x770   : > { %4865 = vmatpush.msrb.mxu3 %v4764_v15  ;;  %v923_v15 = vshll.u32 %v919_v51, 16 }
 0x772   : > { %4866 = vmatpush.msrb.mxu3 %v4763_v45 }
 0x774   : > { %4867 = vmatpush.msrb.mxu3 %v4762_v17  ;;  %v920_v17 = vmul.u32 43690, %v915_v29  ;;  %v4933_v29 = vld [vmem:[#allocation14] sm:$0xff] }
 0x776   : > { %4868 = vmatpush.msrb.mxu3 %v4761_v61 }
 0x778   : > { %4869 = vmatpush.msrb.mxu3 %v4760_v50 }
 0x77a   : > { %4870 = vmatpush.msrb.mxu3 %v4759_v35 }
 0x77b   : > { %4871 = vmatmul.f32.vlgmr.msrb.gmra.mxu3 %v4513_v33  ;;  %v4687_v33 = vld [vmem:[#allocation11 + $0x38] sm:$0xff] }
 0x77c   : > { %6718 = vmatpush.msk.msra.mxu3 %vm991_vm1, %v7971_v26  ;;  %v4682_v26 = vld [vmem:[#allocation11 + $0x10] sm:$0xff] }
 0x77e   : > { %5141 = vmatpush.msra.mxu3 %v7945_v6 }
 0x780   : > { %5142 = vmatpush.msra.mxu3 %v7827_v60 }
 0x782   : > { %5143 = vmatpush.msra.mxu3 %v7932_v63  ;;  %v4812_v63 = vpop.f32.mrf.mxu1 }
 0x784   : > { %5144 = vmatpush.msra.mxu3 %v7902_v0  ;;  %v4852_v0 = vpop.f32.mrf.mxu2 }
 0x785   : > { %6719 = vmatmul.msk.f32.vlgmr.msra.gmra.mxu3 %vm2698_vm9, %v9015_v54 }
 0x786   : > { %5235 = vmatpush.msrb.mxu3 %v4692_v34 }
 0x788   : > { %5236 = vmatpush.msrb.mxu3 %v4687_v33  ;;  %v924_v33 = vshrl.u32 %v919_v51, 16  ;;  %v9852_v51 = vld [vmem:[#allocation29_spill] sm:$0xff] }
 0x78a   : > { %5237 = vmatpush.msrb.mxu3 %v4682_v26 }
 0x7be   : > { %v9020_v6 = vpop.f32.mrf.mxu3 }
 0x7bf   : > { %6724 = vmatmul.msk.f32.vlgmr.msrb.gmra.mxu3 %vm9841_vm13, %v9020_v6 }
 0x7de   : > { %v4792_v60 = vpop.f32.mrf.mxu3 }
 0x7df   : > { %v4813_v23 = vadd.f32 %v4812_v63, %v4792_v60 }
 0x7e1   : > { %v4833_v28 = vadd.f32 %v4832_v53, %v4813_v23 }
 0x7e3   : > { %v4853_v24 = vadd.f32 %v4852_v0, %v4833_v28 }
 0x7fe   : > { %v4872_v47 = vpop.f32.mrf.mxu3 }
 0x7ff   : > { %v4873_v19 = vadd.f32 %v4872_v47, %v4853_v24 }
 0x801   : > { %4875 = vst.msk [vmem:[#allocation2 + $0x4] sm:$0xf] %vm4619_vm12, %v4873_v19 }
 0x802   : > { %4876 = vst.msk [vmem:[#allocation2 + $0x4] sm:$0xf] %vm4621_vm6, %v9822_v40  ;;  %v9842_v40 = vld [vmem:[#allocation23_spill] sm:$0xff] }
 0x808   : > { %v5146_v21 = vpop.f32.mrf.mxu3 }
 0x809   : > { %v4877_v56 = vld [vmem:[#allocation2] sm:$0xff]  ;;  %v5147_v20 = vadd.f32 %v5146_v21, %v8856_v27 }
 0x80a   : > { %4879 = vst [vmem:[#allocation1] ss:$2 sm:$0xff] %v4877_v56  ;;  %v4889_v39 = vld [vmem:[#allocation2 + $0x4] sm:$0xf] }
 0x80b   : > { %v9029_v2 = vadd.f32 %v5147_v20, %v8980_v37  ;;  %v4896_v18 = vld [vmem:[#allocation2 + $0x4] sm:$0xf]  ;;  %v9843_v37 = vld [vmem:[#allocation22_spill] sm:$0xff] }
 0x80c   : > { %v9849_v20 = vld [vmem:[#allocation28_spill] sm:$0xff] }
 0x811   : > { %v4881_v14 = vld.sshfl [vmem:[#allocation1 + $0x8] sm:$0xff pattern:$0x75316420]  ;;  %v4880_v1 = vld.sshfl [vmem:[#allocation1] sm:$0xff pattern:$0x75316420] }
 0x812   : > { %4884 = vrot.lane.b32.xlu2 %v4881_v14, %s7107_s19  ;;  %4882 = vrot.lane.b32.xlu1 %v4880_v1, %s7107_s19  ;;  %4892 = vst [vmem:[#allocation1 + $0x1] ss:$2 sm:$0xff] %v4889_v39 }
 0x819   : > { %v4893_v58 = vld.sshfl [vmem:[#allocation1] sm:$0xff pattern:$0x75316420] }
 0x81a   : > { %4895 = vst.msk [vmem:[#allocation3] sm:$0xf0] %vm4641_vm5, %v4893_v58  ;;  %1328 = vrot.lane.b32.xlu2 %v7483_v4, %s7109_s23  ;;  %1263 = vrot.lane.b32.xlu1 %v7462_v38, %s7108_s27  ;;  %v9844_v4 = vld [vmem:[#allocation24_spill] sm:$0xff]  ;;  %v9845_v38 = vld [vmem:[#allocation21_spill] sm:$0xff]  ;;  %vm9850_vm5 = vcmask 187392  }
 0x81b   : > { %4898 = vst [vmem:[#allocation1] ss:$2 sm:$0xff] %v4896_v18 }
 0x822   : > { %1122 = vrot.lane.b32.xlu2 %v7412_v11, %s7106_s18  ;;  %1172 = vrot.lane.b32.xlu1 %v9842_v40, %s7107_s19  ;;  %v4899_v27 = vld.sshfl [vmem:[#allocation1] sm:$0xff pattern:$0x75316420]  ;;  %v914_v11 = vand.u32 65535, %v9846_v49 }
 0x823   : > { %4900 = vrot.lane.b32.xlu0 %v4899_v27, %s7108_s27  ;;  %v9851_v40 = vld [vmem:[#allocation30_spill] sm:$0xff] }
 0x824   : > { %v918_v36 = vmul.u32 43690, %v914_v11  ;;  %v917_v52 = vmul.u32 43691, %v914_v11  ;;  %v4938_v11 = vld [vmem:[#allocation14 + $0x28] sm:$0xff] }
 0x826   : > { %v921_v10 = vshll.u32 %v918_v36, 16  ;;  %v922_v35 = vshrl.u32 %v918_v36, 16  ;;  %v4945_v36 = vld [vmem:[#allocation14 + $0x60] sm:$0xff] }
 0x828   : > { %vm925_vm4 = vc.u32 %v917_v52, %v921_v10  ;;  %v927_v45 = vadd.s32 %v921_v10, %v917_v52 }
 0x82a   : > { %1077 = vrot.lane.b32.xlu1 %v9843_v37, %s7105_s24  ;;  %vm929_vm8 = vc.u32 %v927_v45, %v923_v15  ;;  %v4940_v45 = vld [vmem:[#allocation14 + $0x38] sm:$0xff] }
 0x82b   : > { %1424 = vrot.lane.b32.xlu0 %v7798_v43, %s7112_s21  ;;  %v926_v43 = vsel %vm925_vm4, 1, %v9823_v32  ;;  %v930_v50 = vsel %vm929_vm8, 1, %v9823_v32  ;;  %v9847_v32 = vld [vmem:[#allocation33_spill] sm:$0xff]  ;;  %vm9854_vm4 = vcmask 842752   ;;  %vm9857_vm8 = vcmask 203776  }
 0x82c   : > { %v928_v61 = vadd.s32 %v926_v43, %v920_v17 }
 0x82e   : > { %v932_v34 = vadd.s32 %v930_v50, %v928_v61  ;;  %v9853_v50 = vld [vmem:[#allocation25_spill] sm:$0xff] }
 0x830   : > { %v933_v26 = vadd.s32 %v932_v34, %v922_v35 }
 0x832   : > { %v934_v60 = vadd.s32 %v933_v26, %v924_v33 }
 0x833   : > { %1379 = vrot.lane.b32.xlu0 %v9844_v4, %s7111_s25 }
 0x834   : > { %v935_v63 = vshrl.u32 %v934_v60, 4 }
 0x836   : > { %v936_v23 = vmul.u32 24, %v935_v63  ;;  %v4904_v63 = vld [vmem:[%s9744_s6] sm:$0xf] }
 0x838   : > { %v937_v53 = vsub.s32 %v9846_v49, %v936_v23 }
 0x83a   : > { %vm944_vm15 = vcmp.ne.s32.totalorder %v937_v53, 0  ;;  %vm949_vm10 = vcmp.lt.s32.totalorder %v937_v53, 0  ;;  %v959_v0 = vadd.s32 24, %v937_v53 }
 0x83b   : > { %1026 = vrot.lane.b32.xlu0 %v9845_v38, %s7104_s11  ;;  %vm954_vm11 = vmand %vm949_vm10, %vm944_vm15  ;;  %v4943_v38 = vld [vmem:[#allocation14 + $0x50] sm:$0xff] }
 0x83c   : > { %v9056_v24 = vsel %vm954_vm11, %v959_v0, %v937_v53  ;;  %4964 = vmatpush.msra.mxu0 %v4943_v38  ;;  %v4944_v53 = vld [vmem:[#allocation14 + $0x58] sm:$0xff]  ;;  %v4934_v0 = vld [vmem:[#allocation14 + $0x8] sm:$0xff] }
 0x83d   : > { %vm969_vm14 = vcmp.ge.s32.totalorder %v9056_v24, 1  ;;  %vm974_vm6 = vcmp.lt.s32.totalorder %v9056_v24, 23 }
 0x83e   : > { %4965 = vmatpush.msra.mxu0 %v4938_v11 }
 0x840   : > { %4966 = vmatpush.msra.mxu0 %v4933_v29  ;;  %v4689_v29 = vld [vmem:[#allocation11 + $0x48] sm:$0xff] }
 0x842   : > { %5004 = vmatpush.msrb.mxu0 %v4945_v36  ;;  %v4683_v36 = vld [vmem:[#allocation11 + $0x18] sm:$0xff] }
 0x844   : > { %5005 = vmatpush.msrb.mxu0 %v4940_v45 }
 0x86c   : > { %v4885_v28 = vpop.permute.xlu2 %4884 }
 0x874   : > { %v1329_v47 = vpop.permute.xlu2 %1328 }
 0x875   : > { %v1335_v19 = vsel %vm9848_vm3, %v9847_v32, %v1329_v47  ;;  %v4946_v47 = vld [vmem:[#allocation14 + $0x68] sm:$0xff] }
 0x876   : > { %v1345_v21 = vsel %vm969_vm14, %v1335_v19, 0.0  ;;  %v4941_v19 = vld [vmem:[#allocation14 + $0x40] sm:$0xff] }
 0x877   : > { %1350 = vst [vmem:[#allocation3 + $0x98] sm:$0xf] %v1345_v21 }
 0x87c   : > { %v1123_v56 = vpop.permute.xlu2 %1122 }
 0x87d   : > { %v1129_v39 = vsel %vm9850_vm5, %v9849_v20, %v1123_v56  ;;  %v9856_v56 = vld [vmem:[#allocation27_spill] sm:$0xff] }
 0x87e   : > { %v1139_v14 = vsel %vm974_vm6, %v1129_v39, 0.0 }
 0x87f   : > { %1144 = vst [vmem:[#allocation3 + $0x48] sm:$0xf] %v1139_v14  ;;  %v4935_v14 = vld [vmem:[#allocation14 + $0x10] sm:$0xff] }
 0x880   : > { %5006 = vmatpush.msrb.mxu0 %v4935_v14  ;;  %v5239_v14 = vpop.f32.mrf.mxu3 }
 0x884   : > { %v4883_v1 = vpop.permute.xlu1 %4882 }
 0x885   : > { %v4886_v18 = vsel %vm1174_vm7, %v4883_v1, %v4885_v28  ;;  %v4939_v28 = vld [vmem:[#allocation14 + $0x30] sm:$0xff]  ;;  %v4936_v1 = vld [vmem:[#allocation14 + $0x18] sm:$0xff] }
 0x886   : > { %4888 = vst.msk [vmem:[#allocation3] sm:$0xf] %vm4619_vm12, %v4886_v18 }
 0x88c   : > { %v1264_v58 = vpop.permute.xlu1 %1263 }
 0x88d   : > { %v1270_v27 = vsel %vm1265_vm2, %v9851_v40, %v1264_v58  ;;  %v4905_v26 = vld [vmem:[#allocation3] sm:$0xff]  ;;  %v4691_v58 = vld [vmem:[#allocation11 + $0x58] sm:$0xff] }
 0x88e   : > { %v1280_v37 = vsel %vm974_vm6, %v1270_v27, 0.0  ;;  %v4681_v40 = vld [vmem:[#allocation11 + $0x8] sm:$0xff] }
 0x88f   : > { %v1290_v4 = vrot.slane %v1280_v37, 4  ;;  %v9861_v27 = vld [vmem:[#allocation31_spill] sm:$0xff]  ;;  %v9862_v37 = vld [vmem:[#allocation32_spill] sm:$0xff] }
 0x891   : > { %1300 = vst [vmem:[#allocation3 + $0x70] sm:$0xf0] %v1290_v4  ;;  %v4693_v4 = vld [vmem:[#allocation11 + $0x68] sm:$0xff] }
 0x894   : > { %v1173_v52 = vpop.permute.xlu1 %1172 }
 0x895   : > { %v1179_v10 = vsel %vm1174_vm7, %v9852_v51, %v1173_v52  ;;  %v4901_v15 = vpop.permute.xlu0 %4900  ;;  %v4684_v52 = vld [vmem:[#allocation11 + $0x20] sm:$0xff] }
 0x896   : > { %v1189_v17 = vsel %vm969_vm14, %v1179_v10, 0.0  ;;  %4903 = vst.msk [vmem:[#allocation3 + $0x28] sm:$0xf] %vm4619_vm12, %v4901_v15  ;;  %vm9855_vm12 = vcmask 850944  }
 0x897   : > { %v1199_v43 = vrot.slane %v1189_v17, 4 }
 0x899   : > { %1209 = vst [vmem:[#allocation3 + $0x48] sm:$0xf0] %v1199_v43 }
 0x89c   : > { %v1078_v61 = vpop.permute.xlu1 %1077 }
 0x89d   : > { %v1084_v35 = vsel %vm9841_vm13, %v9853_v50, %v1078_v61  ;;  %v1425_v34 = vpop.permute.xlu0 %1424  ;;  %v4906_v33 = vld [vmem:[#allocation3 + $0x28] sm:$0xf]  ;;  %v5177_v50 = vmax.f32 %v9029_v2, 0.0 }
 0x89e   : > { %1094 = vst [vmem:[#allocation3 + $0x20] sm:$0xf0] %v1084_v35  ;;  %v1431_v60 = vsel %vm9854_vm4, %v7796_v25, %v1425_v34  ;;  %6705 = vmatpush.msk.msra.mxu1 %vm991_vm1, %v4906_v33 }
 0x89f   : > { %v1441_v23 = vsel %vm974_vm6, %v1431_v60, 0.0 }
 0x8a0   : > { %1446 = vst [vmem:[#allocation3 + $0xc0] sm:$0xf] %v1441_v23  ;;  %4928 = vmatpush.msra.mxu1 %v4905_v26  ;;  %v1457_v38 = vld [vmem:[#allocation3 + $0x48] sm:$0xff] }
 0x8a1   : > { %6706 = vmatmul.msk.f32.vlgmr.msra.gmra.mxu1 %vm3928_vm0, %v4904_v63  ;;  %vm9858_vm0 = vmmov %vm9841_vm13  ;;  %v5297_v63 = vrot.slane %v5177_v50, 4 }
 0x8a2   : > { %4984 = vmatpush.msrb.mxu1 %v4944_v53  ;;  %vm9859_vm15 = vmmov %vm9858_vm0 }
 0x8a3   : > { %vm9860_vm10 = vmmov %vm9858_vm0 }
 0x8a4   : > { %4985 = vmatpush.msrb.mxu1 %v4939_v28  ;;  %vm9863_vm11 = vmmov %vm9858_vm0 }
 0x8a5   : > { %v1380_v25 = vpop.permute.xlu0 %1379  ;;  %vm9864_vm3 = vmmov %vm9858_vm0 }
 0x8a6   : > { %v1386_v32 = vsel %vm9855_vm12, %v7745_v41, %v1380_v25  ;;  %4986 = vmatpush.msrb.mxu1 %v4934_v0  ;;  %v4686_v41 = vld [vmem:[#allocation11 + $0x30] sm:$0xff]  ;;  %vm9865_vm5 = vmmov %vm9858_vm0 }
 0x8a7   : > { %1396 = vst [vmem:[#allocation3 + $0x98] sm:$0xf0] %v1386_v32  ;;  %vm9866_vm13 = vmmov %vm9858_vm0 }
 0x8a8   : > { %5024 = vmatpush.msra.mxu1 %v4946_v47  ;;  %vm9867_vm4 = vmmov %vm9858_vm0 }
 0x8a9   : > { %vm9868_vm12 = vmmov %vm9858_vm0 }
 0x8aa   : > { %5025 = vmatpush.msra.mxu1 %v4941_v19 }
 0x8ac   : > { %5026 = vmatpush.msra.mxu1 %v4936_v1 }
 0x8ad   : > { %v1027_v21 = vpop.permute.xlu0 %1026 }
 0x8ae   : > { %v1033_v20 = vsel %vm9857_vm8, %v9856_v56, %v1027_v21 }
 0x8af   : > { %v1043_v39 = vsel %vm969_vm14, %v1033_v20, 0.0 }
 0x8b0   : > { %1048 = vst [vmem:[#allocation3 + $0x20] sm:$0xf] %v1043_v39 }
 0x8b7   : > { %v1452_v11 = vld [vmem:[#allocation3 + $0x20] sm:$0xff] }
 0x91e   : > { %v4930_v18 = vpop.f32.mrf.mxu1 }
 0x91f   : > { %6707 = vmatmul.msk.f32.vlgmr.msra.gmra.mxu0 %vm9858_vm0, %v4930_v18  ;;  %6708 = vmatmul.msk.f32.vlgmr.msrb.gmra.mxu1 %vm9859_vm15, %v4930_v18 }
 0x920   : > { %6711 = vmatmul.msk.f32.vlgmr.msra.gmra.mxu2 %vm9860_vm10, %v4930_v18  ;;  %6712 = vmatpush.msk.msra.mxu0 %vm991_vm1, %v7964_v13  ;;  %v4690_v13 = vld [vmem:[#allocation11 + $0x50] sm:$0xff]  ;;  %vm9875_vm10 = vmmov %vm9864_vm3 }
 0x921   : > { %6714 = vmatpush.msk.msrb.mxu1 %vm991_vm1, %v8012_v59  ;;  %5215 = vmatpush.msra.mxu2 %v4691_v58  ;;  %v1467_v59 = vld [vmem:[#allocation3 + $0x98] sm:$0xff] }
 0x922   : > { %5081 = vmatpush.msra.mxu0 %v7926_v16  ;;  %v1472_v16 = vld [vmem:[#allocation3 + $0xc0] sm:$0xf] }
 0x923   : > { %5101 = vmatpush.msrb.mxu1 %v7959_v5  ;;  %5216 = vmatpush.msra.mxu2 %v4686_v41  ;;  %v4685_v5 = vld [vmem:[#allocation11 + $0x28] sm:$0xff] }
 0x924   : > { %5082 = vmatpush.msra.mxu0 %v9861_v27 }
 0x925   : > { %5102 = vmatpush.msrb.mxu1 %v9862_v37  ;;  %5217 = vmatpush.msra.mxu2 %v4681_v40 }
 0x926   : > { %5083 = vmatpush.msra.mxu0 %v8016_v57  ;;  %v4680_v57 = vld [vmem:[#allocation11] sm:$0xff] }
 0x927   : > { %5103 = vmatpush.msrb.mxu1 %v7999_v22  ;;  %6709 = vmatmul.msk.f32.vlgmr.msrb.gmra.mxu0 %vm9863_vm11, %v4930_v18  ;;  %v1462_v22 = vld [vmem:[#allocation3 + $0x70] sm:$0xff]  ;;  %vm9876_vm11 = vcmask 187392  }
 0x928   : > { %6710 = vmatmul.msk.f32.vlgmr.msra.gmra.mxu1 %vm9864_vm3, %v4930_v18  ;;  %5084 = vmatpush.msra.mxu0 %v8052_v62  ;;  %v4694_v62 = vld [vmem:[#allocation11 + $0x70] sm:$0xff] }
 0x929   : > { %5104 = vmatpush.msrb.mxu1 %v8060_v9  ;;  %6717 = vmatmul.msk.f32.vlgmr.msrb.gmra.mxu2 %vm2698_vm9, %v9015_v54  ;;  %v4688_v9 = vld [vmem:[#allocation11 + $0x40] sm:$0xff] }
 0x92a   : > { %6720 = vmatpush.msk.msrb.mxu0 %vm991_vm1, %v1472_v16 }
 0x92b   : > { %5195 = vmatpush.msra.mxu1 %v4690_v13 }
 0x92c   : > { %5161 = vmatpush.msrb.mxu0 %v1467_v59 }
 0x92d   : > { %5196 = vmatpush.msra.mxu1 %v4685_v5 }
 0x92e   : > { %5162 = vmatpush.msrb.mxu0 %v1462_v22 }
 0x92f   : > { %5197 = vmatpush.msra.mxu1 %v4680_v57  ;;  %6713 = vmatmul.msk.f32.vlgmr.msra.gmra.mxu0 %vm2698_vm9, %v9015_v54 }
 0x930   : > { %5163 = vmatpush.msrb.mxu0 %v1457_v38  ;;  %6715 = vmatmul.msk.f32.vlgmr.msrb.gmra.mxu1 %vm2698_vm9, %v9015_v54 }
 0x931   : > { %6723 = vmatmul.msk.f32.vlgmr.msra.gmra.mxu2 %vm9865_vm5, %v9020_v6  ;;  %5255 = vmatpush.msrb.mxu1 %v4693_v4  ;;  %vm9878_vm5 = vmmov %vm9876_vm11 }
 0x932   : > { %5164 = vmatpush.msrb.mxu0 %v1452_v11 }
 0x933   : > { %5256 = vmatpush.msrb.mxu1 %v4688_v9 }
 0x934   : > { %5275 = vmatpush.msra.mxu0 %v4694_v62 }
 0x935   : > { %5257 = vmatpush.msrb.mxu1 %v4683_v36 }
 0x936   : > { %5276 = vmatpush.msra.mxu0 %v4689_v29 }
 0x937   : > { %6721 = vmatmul.msk.f32.vlgmr.msrb.gmra.mxu0 %vm2698_vm9, %v9015_v54  ;;  %vm9869_vm9 = vcmp.lt.s32.totalorder %v9846_v49, 576 }
 0x938   : > { %6722 = vmatmul.msk.f32.vlgmr.msra.gmra.mxu1 %vm9866_vm13, %v9020_v6  ;;  %5277 = vmatpush.msra.mxu0 %v4684_v52  ;;  %vm9870_vm8 = vmmov %vm9869_vm9 }
 0x93f   : > { %6726 = vmatmul.msk.f32.vlgmr.msra.gmra.mxu0 %vm9867_vm4, %v9020_v6 }
 0x940   : > { %6725 = vmatmul.msk.f32.vlgmr.msrb.gmra.mxu1 %vm9868_vm12, %v9020_v6  ;;  %vm9881_vm12 = vcmp.lt.s32.totalorder %v7622_v7, 23 }
 0x99c   : > { %v4968_v51 = vpop.f32.mrf.mxu0  ;;  %v4988_v10 = vpop.f32.mrf.mxu1 }
 0x9a3   : > { %v5048_v15 = vpop.f32.mrf.mxu2 }
 0x9a4   : > { %v5008_v45 = vpop.f32.mrf.mxu0 }
 0x9a5   : > { %v5028_v17 = vpop.f32.mrf.mxu1  ;;  %v5240_v18 = vadd.f32 %v5239_v14, %v5008_v45 }
 0x9a7   : > { %v5284_v13 = vmax.f32 %v5240_v18, 0.0 }
 0x9ac   : > { %v5126_v43 = vpop.f32.mrf.mxu2  ;;  %v5086_v61 = vpop.f32.mrf.mxu0 }
 0x9ad   : > { %v5127_v54 = vadd.f32 %v5126_v43, %v8853_v48  ;;  %v5087_v35 = vadd.f32 %v5086_v61, %v8846_v42  ;;  %v5106_v34 = vpop.f32.mrf.mxu1 }
 0x9ae   : > { %v5107_v33 = vadd.f32 %v5106_v34, %v8848_v12 }
 0x9af   : > { %v5171_v26 = vadd.f32 %v5127_v54, %v8986_v44  ;;  %v5169_v6 = vadd.f32 %v5087_v35, %v8978_v46 }
 0x9b0   : > { %v5170_v60 = vadd.f32 %v5107_v33, %v8982_v31 }
 0x9b1   : > { %v5176_v23 = vmax.f32 %v5171_v26, 0.0  ;;  %v5174_v48 = vmax.f32 %v5169_v6, 0.0 }
 0x9b2   : > { %v5175_v53 = vmax.f32 %v5170_v60, 0.0 }
 0x9b3   : > { %v9138_v28 = vsel %vm991_vm1, %v5176_v23, %v5297_v63 }
 0x9b4   : > { %5303 = vst [vmem:[#allocation2 + $0xc] sm:$0xff] %v9138_v28  ;;  %v5296_v2 = vrot.slane %v5175_v53, 4  ;;  %v5219_v42 = vpop.f32.mrf.mxu2  ;;  %v5166_v0 = vpop.f32.mrf.mxu0 }
 0x9b5   : > { %v5220_v47 = vadd.f32 %v5219_v42, %v4988_v10  ;;  %v5167_v12 = vadd.f32 %v5166_v0, %v8858_v3  ;;  %v5199_v44 = vpop.f32.mrf.mxu1 }
 0x9b6   : > { %v9143_v46 = vsel %vm991_vm1, %v5174_v48, %v5296_v2  ;;  %v5200_v32 = vadd.f32 %v5199_v44, %v4968_v51 }
 0x9b7   : > { %5302 = vst [vmem:[#allocation2 + $0x4] sm:$0xff] %v9143_v46  ;;  %v5173_v31 = vadd.f32 %v5167_v12, %v8984_v30  ;;  %v5283_v25 = vmax.f32 %v5220_v47, 0.0 }
 0x9b8   : > { %v5282_v20 = vmax.f32 %v5200_v32, 0.0 }
 0x9b9   : > { %v5178_v19 = vmax.f32 %v5173_v31, 0.0  ;;  %v5754_v56 = vrot.slane %v5283_v25, 4 }
 0x9bb   : > { %v5291_v21 = vsel %vm9869_vm9, %v5178_v19, 0.0  ;;  %v9150_v30 = vsel %vm991_vm1, %v5282_v20, %v5754_v56  ;;  %vm9882_vm9 = vcmp.lt.s32.totalorder %v7620_v8, 23 }
 0x9bc   : > { %5304 = vst [vmem:[#allocation2 + $0x14] sm:$0xf] %v5291_v21  ;;  %v5279_v39 = vpop.f32.mrf.mxu0 }
 0x9bd   : > { %v5259_v3 = vpop.f32.mrf.mxu1  ;;  %v5280_v1 = vadd.f32 %v5279_v39, %v5048_v15 }
 0x9be   : > { %v5305_v58 = vld [vmem:[#allocation2] sm:$0xff]  ;;  %v5306_v41 = vld [vmem:[#allocation2 + $0x8] sm:$0xff]  ;;  %v5260_v40 = vadd.f32 %v5259_v3, %v5028_v17 }
 0x9bf   : > { %5311 = vst [vmem:[#allocation1] ss:$2 sm:$0xff] %v5305_v58  ;;  %v5286_v37 = vmax.f32 %v5280_v1, 0.0 }
 0x9c0   : > { %5313 = vst [vmem:[#allocation1 + $0x10] ss:$2 sm:$0xff] %v5306_v41  ;;  %v5285_v27 = vmax.f32 %v5260_v40, 0.0 }
 0x9c1   : > { %5760 = vst [vmem:[#allocation2 + $0x4] sm:$0xff] %v9150_v30  ;;  %v5749_v4 = vsel %vm9870_vm8, %v5286_v37, 0.0  ;;  %vm9883_vm8 = vcmp.lt.s32.totalorder %v7626_v55, 23 }
 0x9c2   : > { %v5755_v16 = vrot.slane %v5285_v27, 4 }
 0x9c3   : > { %v5307_v5 = vld [vmem:[#allocation2 + $0x10] sm:$0xff] }
 0x9c4   : > { %v5514_v59 = vld [vmem:[#allocation2 + $0x14] sm:$0xf]  ;;  %5315 = vst [vmem:[#allocation1 + $0x20] ss:$2 sm:$0xff] %v5307_v5  ;;  %v9156_v22 = vsel %vm991_vm1, %v5284_v13, %v5755_v16  ;;  %vm9871_vm1 = vcmask 203776  }
 0x9c5   : > { %v9153_v57 = vld [vmem:[#allocation2 + $0x14] sm:$0xff]  ;;  %5761 = vst [vmem:[#allocation2 + $0xc] sm:$0xff] %v9156_v22  ;;  %vm9874_vm15 = vmmov %vm9871_vm1 }
 0x9c6   : > { %5762 = vst [vmem:[#allocation2 + $0x14] sm:$0xf] %v5749_v4  ;;  %v5317_v38 = vld.sshfl [vmem:[#allocation1 + $0x8] sm:$0xff pattern:$0x75316420] }
 0x9c7   : > { %5324 = vrot.lane.b32.xlu0 %v5317_v38, %s7104_s11  ;;  %v5316_v62 = vld.sshfl [vmem:[#allocation1] sm:$0xff pattern:$0x75316420]  ;;  %v9162_v9 = vld.sshfl [vmem:[#allocation1 + $0x10] sm:$0xff pattern:$0x75316420] }
 0x9c8   : > { %5322 = vrot.lane.b32.xlu2 %v5316_v62, %s7104_s11  ;;  %5361 = vst [vmem:[#allocation1 + $0x1] ss:$2 sm:$0xff] %v5305_v58  ;;  %v9165_v11 = vld.sshfl [vmem:[#allocation1 + $0x18] sm:$0xff pattern:$0x75316420]  ;;  %v5763_v40 = vld [vmem:[#allocation2] sm:$0xff] }
 0x9c9   : > { %5363 = vst [vmem:[#allocation1 + $0x11] ss:$2 sm:$0xff] %v5306_v41 }
 0x9cb   : > { %v5320_v29 = vld.sshfl [vmem:[#allocation1 + $0x20] sm:$0xff pattern:$0x75316420]  ;;  %v5321_v36 = vld.sshfl [vmem:[#allocation1 + $0x28] sm:$0xff pattern:$0x75316420] }
 0x9cc   : > { %5365 = vst [vmem:[#allocation1 + $0x21] ss:$2 sm:$0xff] %v5307_v5 }
 0x9cf   : > { %5332 = vrot.lane.b32.xlu0 %v5321_v36, %s7104_s11  ;;  %v5367_v49 = vld.sshfl [vmem:[#allocation1 + $0x8] sm:$0xff pattern:$0x75316420]  ;;  %v5366_v52 = vld.sshfl [vmem:[#allocation1] sm:$0xff pattern:$0x75316420] }
 0x9d0   : > { %5330 = vrot.lane.b32.xlu2 %v5320_v29, %s7104_s11  ;;  %5374 = vrot.lane.b32.xlu1 %v5367_v49, %s7105_s24  ;;  %5405 = vst [vmem:[#allocation1] ss:$2 sm:$0xff] %v5305_v58  ;;  %v9170_v51 = vld.sshfl [vmem:[#allocation1 + $0x10] sm:$0xff pattern:$0x75316420] }
 0x9d1   : > { %v9172_v10 = vld.sshfl [vmem:[#allocation1 + $0x18] sm:$0xff pattern:$0x75316420] }
 0x9d2   : > { %5407 = vst [vmem:[#allocation1 + $0x10] ss:$2 sm:$0xff] %v5306_v41 }
 0x9d3   : > { %v9174_v15 = vld.sshfl [vmem:[#allocation1 + $0x20] sm:$0xff pattern:$0x75316420]  ;;  %v9176_v45 = vld.sshfl [vmem:[#allocation1 + $0x28] sm:$0xff pattern:$0x75316420] }
 0x9d4   : > { %5409 = vst [vmem:[#allocation1 + $0x20] ss:$2 sm:$0xff] %v5307_v5 }
 0x9d7   : > { %5372 = vrot.lane.b32.xlu0 %v5366_v52, %s7105_s24  ;;  %v5411_v17 = vld.sshfl [vmem:[#allocation1 + $0x8] sm:$0xff pattern:$0x75316420]  ;;  %v5410_v43 = vld.sshfl [vmem:[#allocation1] sm:$0xff pattern:$0x75316420] }
 0x9d8   : > { %5418 = vrot.lane.b32.xlu2 %v5411_v17, %s7106_s18  ;;  %5416 = vrot.lane.b32.xlu1 %v5410_v43, %s7106_s18  ;;  %5454 = vst [vmem:[#allocation1] ss:$2 sm:$0xff] %v5305_v58 }
 0x9d9   : > { %v9181_v61 = vld.sshfl [vmem:[#allocation1 + $0x10] sm:$0xff pattern:$0x75316420]  ;;  %v9183_v50 = vld.sshfl [vmem:[#allocation1 + $0x18] sm:$0xff pattern:$0x75316420] }
 0x9da   : > { %5456 = vst [vmem:[#allocation1 + $0x10] ss:$2 sm:$0xff] %v5306_v41 }
 0x9db   : > { %v5414_v54 = vld.sshfl [vmem:[#allocation1 + $0x20] sm:$0xff pattern:$0x75316420]  ;;  %v5415_v35 = vld.sshfl [vmem:[#allocation1 + $0x28] sm:$0xff pattern:$0x75316420] }
 0x9dc   : > { %5458 = vst [vmem:[#allocation1 + $0x20] ss:$2 sm:$0xff] %v5307_v5  ;;  %v5764_v5 = vld [vmem:[#allocation2 + $0x8] sm:$0xff] }
 0x9df   : > { %v5460_v34 = vld.sshfl [vmem:[#allocation1 + $0x8] sm:$0xff pattern:$0x75316420]  ;;  %v5459_v33 = vld.sshfl [vmem:[#allocation1] sm:$0xff pattern:$0x75316420] }
 0x9e0   : > { %5426 = vrot.lane.b32.xlu2 %v5415_v35, %s7106_s18  ;;  %5424 = vrot.lane.b32.xlu1 %v5414_v54, %s7106_s18  ;;  %5518 = vst [vmem:[#allocation1] ss:$2 sm:$0xff] %v9143_v46 }
 0x9e1   : > { %5467 = vrot.lane.b32.xlu0 %v5460_v34, %s7107_s19  ;;  %v9189_v26 = vld.sshfl [vmem:[#allocation1 + $0x10] sm:$0xff pattern:$0x75316420]  ;;  %v9191_v6 = vld.sshfl [vmem:[#allocation1 + $0x18] sm:$0xff pattern:$0x75316420] }
 0x9e2   : > { %5520 = vst [vmem:[#allocation1 + $0x10] ss:$2 sm:$0xff] %v9138_v28 }
 0x9e3   : > { %v5463_v60 = vld.sshfl [vmem:[#allocation1 + $0x20] sm:$0xff pattern:$0x75316420]  ;;  %v5464_v63 = vld.sshfl [vmem:[#allocation1 + $0x28] sm:$0xff pattern:$0x75316420] }
 0x9e4   : > { %5522 = vst [vmem:[#allocation1 + $0x20] ss:$2 sm:$0xff] %v5514_v59 }
 0x9e7   : > { %v5523_v23 = vld.sshfl [vmem:[#allocation1] sm:$0xff pattern:$0x75316420]  ;;  %v5524_v53 = vld.sshfl [vmem:[#allocation1 + $0x8] sm:$0xff pattern:$0x75316420] }
 0x9e8   : > { %5473 = vrot.lane.b32.xlu1 %v5463_v60, %s7107_s19  ;;  %5465 = vrot.lane.b32.xlu2 %v5459_v33, %s7107_s19  ;;  %5544 = vst [vmem:[#allocation1] ss:$2 sm:$0xff] %v9143_v46 }
 0x9e9   : > { %v5525_v48 = vld.sshfl [vmem:[#allocation1 + $0x10] sm:$0xff pattern:$0x75316420]  ;;  %v5526_v2 = vld.sshfl [vmem:[#allocation1 + $0x18] sm:$0xff pattern:$0x75316420] }
 0x9ea   : > { %5546 = vst [vmem:[#allocation1 + $0x10] ss:$2 sm:$0xff] %v9138_v28 }
 0x9eb   : > { %v5527_v42 = vld.sshfl [vmem:[#allocation1 + $0x20] sm:$0xff pattern:$0x75316420]  ;;  %5535 = vst [vmem:[#allocation3 + $0x60] sm:$0xf] %v5525_v48 }
 0x9ec   : > { %5548 = vst [vmem:[#allocation1 + $0x20] ss:$2 sm:$0xff] %v9153_v57 }
 0x9ed   : > { %5537 = vst [vmem:[#allocation3 + $0x70] sm:$0xf] %v5527_v42 }
 0x9ee   : > { %5536 = vst [vmem:[#allocation3 + $0x68] sm:$0xf] %v5526_v2 }
 0x9ef   : > { %v5550_v0 = vld.sshfl [vmem:[#allocation1 + $0x8] sm:$0xff pattern:$0x75316420]  ;;  %5533 = vst [vmem:[#allocation3 + $0x50] sm:$0xf] %v5523_v23 }
 0x9f0   : > { %5475 = vrot.lane.b32.xlu2 %v5464_v63, %s7107_s19  ;;  %5557 = vrot.lane.b32.xlu0 %v5550_v0, %s7108_s27  ;;  %5534 = vst [vmem:[#allocation3 + $0x58] sm:$0xf] %v5524_v53  ;;  %v5549_v47 = vld.sshfl [vmem:[#allocation1] sm:$0xff pattern:$0x75316420] }
 0x9f1   : > { %v5551_v12 = vld.sshfl [vmem:[#allocation1 + $0x10] sm:$0xff pattern:$0x75316420]  ;;  %5608 = vst [vmem:[#allocation1] ss:$2 sm:$0xff] %v9143_v46 }
 0x9f2   : > { %5559 = vrot.lane.b32.xlu1 %v5551_v12, %s7108_s27  ;;  %v5552_v44 = vld.sshfl [vmem:[#allocation1 + $0x18] sm:$0xff pattern:$0x75316420] }
 0x9f3   : > { %v5553_v31 = vld.sshfl [vmem:[#allocation1 + $0x20] sm:$0xff pattern:$0x75316420]  ;;  %v5554_v25 = vld.sshfl [vmem:[#allocation1 + $0x28] sm:$0xff pattern:$0x75316420] }
 0x9f4   : > { %5612 = vst [vmem:[#allocation1 + $0x20] ss:$2 sm:$0xff] %v9153_v57  ;;  %v5986_v0 = vld [vmem:[#allocation2 + $0x14] sm:$0xf] }
 0x9f5   : > { %5610 = vst [vmem:[#allocation1 + $0x10] ss:$2 sm:$0xff] %v9138_v28 }
 0x9f8   : > { %5563 = vrot.lane.b32.xlu0 %v5553_v31, %s7108_s27  ;;  %5555 = vrot.lane.b32.xlu2 %v5549_v47, %s7108_s27  ;;  %v5613_v32 = vld.sshfl [vmem:[#allocation1] sm:$0xff pattern:$0x75316420]  ;;  %v5614_v19 = vld.sshfl [vmem:[#allocation1 + $0x8] sm:$0xff pattern:$0x75316420] }
 0x9f9   : > { %5658 = vst [vmem:[#allocation1 + $0x1] ss:$2 sm:$0xff] %v9143_v46 }
 0x9fa   : > { %5565 = vrot.lane.b32.xlu1 %v5554_v25, %s7108_s27 }
 0x9fb   : > { %v5617_v21 = vld.sshfl [vmem:[#allocation1 + $0x20] sm:$0xff pattern:$0x75316420]  ;;  %v5618_v56 = vld.sshfl [vmem:[#allocation1 + $0x28] sm:$0xff pattern:$0x75316420] }
 0x9fc   : > { %5662 = vst [vmem:[#allocation1 + $0x21] ss:$2 sm:$0xff] %v9153_v57  ;;  %v9210_v20 = vld.sshfl [vmem:[#allocation1 + $0x10] sm:$0xff pattern:$0x75316420] }
 0x9fd   : > { %v9212_v39 = vld.sshfl [vmem:[#allocation1 + $0x18] sm:$0xff pattern:$0x75316420] }
 0x9fe   : > { %5660 = vst [vmem:[#allocation1 + $0x11] ss:$2 sm:$0xff] %v9138_v28 }
 0xa00   : > { %5629 = vrot.lane.b32.xlu0 %v5618_v56, %s7109_s23  ;;  %5561 = vrot.lane.b32.xlu2 %v5552_v44, %s7108_s27  ;;  %v5664_v14 = vld.sshfl [vmem:[#allocation1 + $0x8] sm:$0xff pattern:$0x75316420]  ;;  %v5663_v3 = vld.sshfl [vmem:[#allocation1] sm:$0xff pattern:$0x75316420] }
 0xa01   : > { %5702 = vst [vmem:[#allocation1] ss:$2 sm:$0xff] %v9143_v46  ;;  %v5765_v46 = vld [vmem:[#allocation2 + $0x10] sm:$0xff] }
 0xa02   : > { %5619 = vrot.lane.b32.xlu1 %v5613_v32, %s7109_s23  ;;  %v9280_v56 = vld [vmem:[#allocation2 + $0x14] sm:$0xff] }
 0xa03   : > { %v5667_v1 = vld.sshfl [vmem:[#allocation1 + $0x20] sm:$0xff pattern:$0x75316420]  ;;  %v5668_v18 = vld.sshfl [vmem:[#allocation1 + $0x28] sm:$0xff pattern:$0x75316420] }
 0xa04   : > { %5706 = vst [vmem:[#allocation1 + $0x20] ss:$2 sm:$0xff] %v9153_v57 }
 0xa05   : > { %v9220_v58 = vld.sshfl [vmem:[#allocation1 + $0x10] sm:$0xff pattern:$0x75316420]  ;;  %v9222_v41 = vld.sshfl [vmem:[#allocation1 + $0x18] sm:$0xff pattern:$0x75316420] }
 0xa06   : > { %5704 = vst [vmem:[#allocation1 + $0x10] ss:$2 sm:$0xff] %v9138_v28 }
 0xa08   : > { %5621 = vrot.lane.b32.xlu2 %v5614_v19, %s7109_s23  ;;  %5669 = vrot.lane.b32.xlu0 %v5663_v3, %s7111_s25  ;;  %v5708_v27 = vld.sshfl [vmem:[#allocation1 + $0x8] sm:$0xff pattern:$0x75316420]  ;;  %v5707_v37 = vld.sshfl [vmem:[#allocation1] sm:$0xff pattern:$0x75316420] }
 0xa09   : > { %5769 = vst [vmem:[#allocation1] ss:$2 sm:$0xff] %v5763_v40 }
 0xa0a   : > { %5671 = vrot.lane.b32.xlu1 %v5664_v14, %s7111_s25 }
 0xa0b   : > { %v5712_v13 = vld.sshfl [vmem:[#allocation1 + $0x28] sm:$0xff pattern:$0x75316420]  ;;  %v5711_v16 = vld.sshfl [vmem:[#allocation1 + $0x20] sm:$0xff pattern:$0x75316420] }
 0xa0c   : > { %5773 = vst [vmem:[#allocation1 + $0x20] ss:$2 sm:$0xff] %v5765_v46 }
 0xa0d   : > { %v5710_v59 = vld.sshfl [vmem:[#allocation1 + $0x18] sm:$0xff pattern:$0x75316420]  ;;  %v5709_v57 = vld.sshfl [vmem:[#allocation1 + $0x10] sm:$0xff pattern:$0x75316420] }
 0xa0e   : > { %5771 = vst [vmem:[#allocation1 + $0x10] ss:$2 sm:$0xff] %v5764_v5 }
 0xa10   : > { %5627 = vrot.lane.b32.xlu2 %v5617_v21, %s7109_s23  ;;  %5679 = vrot.lane.b32.xlu0 %v5668_v18, %s7111_s25  ;;  %v5774_v28 = vld.sshfl [vmem:[#allocation1] sm:$0xff pattern:$0x75316420]  ;;  %v5775_v4 = vld.sshfl [vmem:[#allocation1 + $0x8] sm:$0xff pattern:$0x75316420] }
 0xa11   : > { %5833 = vst [vmem:[#allocation1] ss:$2 sm:$0xff] %v5763_v40 }
 0xa12   : > { %5715 = vrot.lane.b32.xlu1 %v5708_v27, %s7112_s21 }
 0xa13   : > { %v5779_v38 = vld.sshfl [vmem:[#allocation1 + $0x28] sm:$0xff pattern:$0x75316420]  ;;  %v9231_v62 = vld.sshfl [vmem:[#allocation1 + $0x20] sm:$0xff pattern:$0x75316420] }
 0xa14   : > { %5837 = vst [vmem:[#allocation1 + $0x20] ss:$2 sm:$0xff] %v5765_v46 }
 0xa15   : > { %v5777_v29 = vld.sshfl [vmem:[#allocation1 + $0x18] sm:$0xff pattern:$0x75316420]  ;;  %v5776_v36 = vld.sshfl [vmem:[#allocation1 + $0x10] sm:$0xff pattern:$0x75316420] }
 0xa16   : > { %5835 = vst [vmem:[#allocation1 + $0x10] ss:$2 sm:$0xff] %v5764_v5 }
 0xa18   : > { %5677 = vrot.lane.b32.xlu2 %v5667_v1, %s7111_s25  ;;  %5713 = vrot.lane.b32.xlu0 %v5707_v37, %s7112_s21  ;;  %v5839_v49 = vld.sshfl [vmem:[#allocation1 + $0x8] sm:$0xff pattern:$0x75316420]  ;;  %v5838_v52 = vld.sshfl [vmem:[#allocation1] sm:$0xff pattern:$0x75316420] }
 0xa19   : > { %5877 = vst [vmem:[#allocation1] ss:$2 sm:$0xff] %v5763_v40 }
 0xa1a   : > { %5719 = vrot.lane.b32.xlu1 %v5710_v59, %s7112_s21 }
 0xa1b   : > { %v5842_v17 = vld.sshfl [vmem:[#allocation1 + $0x20] sm:$0xff pattern:$0x75316420]  ;;  %v9236_v43 = vld.sshfl [vmem:[#allocation1 + $0x28] sm:$0xff pattern:$0x75316420] }
 0xa1c   : > { %5881 = vst [vmem:[#allocation1 + $0x20] ss:$2 sm:$0xff] %v5765_v46 }
 0xa1d   : > { %v5840_v54 = vld.sshfl [vmem:[#allocation1 + $0x10] sm:$0xff pattern:$0x75316420]  ;;  %v9238_v35 = vld.sshfl [vmem:[#allocation1 + $0x18] sm:$0xff pattern:$0x75316420] }
 0xa1e   : > { %5879 = vst [vmem:[#allocation1 + $0x10] ss:$2 sm:$0xff] %v5764_v5 }
 0xa20   : > { %5721 = vrot.lane.b32.xlu2 %v5711_v16, %s7112_s21  ;;  %5717 = vrot.lane.b32.xlu0 %v5709_v57, %s7112_s21  ;;  %v9242_v34 = vld.sshfl [vmem:[#allocation1] sm:$0xff pattern:$0x75316420]  ;;  %v9244_v33 = vld.sshfl [vmem:[#allocation1 + $0x8] sm:$0xff pattern:$0x75316420] }
 0xa21   : > { %5941 = vst [vmem:[#allocation1] ss:$2 sm:$0xff] %v5763_v40 }
 0xa22   : > { %5786 = vrot.lane.b32.xlu1 %v5777_v29, %s7104_s11  ;;  %v5323_v60 = vpop.permute.xlu2 %5322 }
 0xa23   : > { %v9247_v63 = vld.sshfl [vmem:[#allocation1 + $0x20] sm:$0xff pattern:$0x75316420]  ;;  %v9249_v23 = vld.sshfl [vmem:[#allocation1 + $0x28] sm:$0xff pattern:$0x75316420] }
 0xa24   : > { %5945 = vst [vmem:[#allocation1 + $0x20] ss:$2 sm:$0xff] %v5765_v46 }
 0xa25   : > { %v9251_v53 = vld.sshfl [vmem:[#allocation1 + $0x10] sm:$0xff pattern:$0x75316420]  ;;  %v9253_v48 = vld.sshfl [vmem:[#allocation1 + $0x18] sm:$0xff pattern:$0x75316420] }
 0xa26   : > { %5943 = vst [vmem:[#allocation1 + $0x10] ss:$2 sm:$0xff] %v5764_v5 }
 0xa28   : > { %5723 = vrot.lane.b32.xlu0 %v5712_v13, %s7112_s21  ;;  %5780 = vrot.lane.b32.xlu2 %v5774_v28, %s7104_s11  ;;  %v9257_v2 = vld.sshfl [vmem:[#allocation1 + $0x8] sm:$0xff pattern:$0x75316420]  ;;  %v9259_v42 = vld.sshfl [vmem:[#allocation1] sm:$0xff pattern:$0x75316420] }
 0xa29   : > { %5991 = vst [vmem:[#allocation1 + $0x1] ss:$2 sm:$0xff] %v9150_v30  ;;  %v9872_v13 = vld [vmem:[#allocation26_spill] sm:$0xff] }
 0xa2a   : > { %5790 = vrot.lane.b32.xlu1 %v5779_v38, %s7104_s11  ;;  %v9263_v47 = vpop.permute.xlu2 %5330  ;;  %vm9873_vm0 = vcmp.ge.s32.totalorder %v9872_v13, 1  ;;  %vm9877_vm3 = vcmp.lt.s32.totalorder %v9872_v13, 23 }
 0xa2b   : > { %v9265_v12 = vld.sshfl [vmem:[#allocation1 + $0x20] sm:$0xff pattern:$0x75316420]  ;;  %v9267_v44 = vld.sshfl [vmem:[#allocation1 + $0x28] sm:$0xff pattern:$0x75316420]  ;;  %vm9879_vm13 = vmmov %vm9873_vm0 }
 0xa2c   : > { %5995 = vst [vmem:[#allocation1 + $0x21] ss:$2 sm:$0xff] %v5986_v0  ;;  %vm9880_vm4 = vmmov %vm9877_vm3 }
 0xa2d   : > { %v9269_v31 = vld.sshfl [vmem:[#allocation1 + $0x18] sm:$0xff pattern:$0x75316420]  ;;  %v9271_v25 = vld.sshfl [vmem:[#allocation1 + $0x10] sm:$0xff pattern:$0x75316420] }
 0xa2e   : > { %5993 = vst [vmem:[#allocation1 + $0x11] ss:$2 sm:$0xff] %v9156_v22 }
 0xa30   : > { %5782 = vrot.lane.b32.xlu0 %v5775_v4, %s7104_s11  ;;  %5846 = vrot.lane.b32.xlu2 %v5839_v49, %s7105_s24  ;;  %v5996_v32 = vld.sshfl [vmem:[#allocation1] sm:$0xff pattern:$0x75316420]  ;;  %v5997_v19 = vld.sshfl [vmem:[#allocation1 + $0x8] sm:$0xff pattern:$0x75316420] }
 0xa31   : > { %6017 = vst [vmem:[#allocation1] ss:$2 sm:$0xff] %v9150_v30 }
 0xa32   : > { %5844 = vrot.lane.b32.xlu1 %v5838_v52, %s7105_s24  ;;  %v9278_v21 = vpop.permute.xlu2 %5418  ;;  %6006 = vst [vmem:[#allocation3 + $0xf0] sm:$0xf0] %v5996_v32 }
 0xa33   : > { %6007 = vst [vmem:[#allocation3 + $0xf8] sm:$0xf0] %v5997_v19  ;;  %v6000_v14 = vld.sshfl [vmem:[#allocation1 + $0x20] sm:$0xff pattern:$0x75316420] }
 0xa34   : > { %6021 = vst [vmem:[#allocation1 + $0x20] ss:$2 sm:$0xff] %v9280_v56 }
 0xa35   : > { %v5998_v3 = vld.sshfl [vmem:[#allocation1 + $0x10] sm:$0xff pattern:$0x75316420]  ;;  %v5999_v1 = vld.sshfl [vmem:[#allocation1 + $0x18] sm:$0xff pattern:$0x75316420] }
 0xa36   : > { %6019 = vst [vmem:[#allocation1 + $0x10] ss:$2 sm:$0xff] %v9156_v22 }
 0xa37   : > { %6008 = vst [vmem:[#allocation3 + $0x100] sm:$0xf0] %v5998_v3 }
 0xa38   : > { %5784 = vrot.lane.b32.xlu0 %v5776_v36, %s7104_s11  ;;  %5848 = vrot.lane.b32.xlu2 %v5840_v54, %s7105_s24  ;;  %v9286_v18 = vld.sshfl [vmem:[#allocation1] sm:$0xff pattern:$0x75316420]  ;;  %6009 = vst [vmem:[#allocation3 + $0x108] sm:$0xf0] %v5999_v1 }
 0xa39   : > { %v9288_v40 = vpop.permute.xlu0 %5324  ;;  %6010 = vst [vmem:[#allocation3 + $0x110] sm:$0xf0] %v6000_v14  ;;  %v9290_v27 = vld.sshfl [vmem:[#allocation1 + $0x8] sm:$0xff pattern:$0x75316420] }
 0xa3a   : > { %5852 = vrot.lane.b32.xlu1 %v5842_v17, %s7105_s24  ;;  %v5334_v37 = vsel %vm9871_vm1, %v5323_v60, %v9288_v40  ;;  %v5427_v46 = vpop.permute.xlu2 %5426  ;;  %6066 = vst [vmem:[#allocation1] ss:$2 sm:$0xff] %v9150_v30  ;;  %vm9884_vm1 = vcmask 859136  }
 0xa3b   : > { %v5344_v16 = vsel %vm9873_vm0, %v5334_v37, 0.0  ;;  %v9298_v5 = vld.sshfl [vmem:[#allocation1 + $0x20] sm:$0xff pattern:$0x75316420]  ;;  %vm9885_vm0 = vmmov %vm9884_vm1 }
 0xa3c   : > { %5349 = vst [vmem:[#allocation3] sm:$0xf] %v5344_v16  ;;  %v9300_v59 = vld.sshfl [vmem:[#allocation1 + $0x28] sm:$0xff pattern:$0x75316420] }
 0xa3d   : > { %v9302_v57 = vld.sshfl [vmem:[#allocation1 + $0x10] sm:$0xff pattern:$0x75316420]  ;;  %v9304_v28 = vld.sshfl [vmem:[#allocation1 + $0x18] sm:$0xff pattern:$0x75316420] }
 0xa3e   : > { %6068 = vst [vmem:[#allocation1 + $0x10] ss:$2 sm:$0xff] %v9156_v22 }
 0xa3f   : > { %6070 = vst [vmem:[#allocation1 + $0x20] ss:$2 sm:$0xff] %v9280_v56 }
 0xa40   : > { %5788 = vrot.lane.b32.xlu0 %v9231_v62, %s7104_s11  ;;  %5854 = vrot.lane.b32.xlu2 %v9236_v43, %s7105_s24 }
 0xa41   : > { %v5333_v4 = vpop.permute.xlu0 %5332  ;;  %v9312_v38 = vld.sshfl [vmem:[#allocation1 + $0x8] sm:$0xff pattern:$0x75316420]  ;;  %v9314_v29 = vld.sshfl [vmem:[#allocation1] sm:$0xff pattern:$0x75316420] }
 0xa42   : > { %5888 = vrot.lane.b32.xlu1 %v9242_v34, %s7106_s18  ;;  %v5338_v36 = vsel %vm9874_vm15, %v9263_v47, %v5333_v4  ;;  %v9320_v49 = vpop.permute.xlu1 %5374  ;;  %v5466_v52 = vpop.permute.xlu2 %5465  ;;  %6130 = vst [vmem:[#allocation1] ss:$2 sm:$0xff] %v9150_v30  ;;  %vm9886_vm15 = vmmov %vm9879_vm13 }
 0xa43   : > { %v5348_v62 = vsel %vm969_vm14, %v5338_v36, 0.0 }
 0xa44   : > { %5353 = vst [vmem:[#allocation3 + $0x20] sm:$0xf] %v5348_v62 }
 0xa45   : > { %v9325_v17 = vld.sshfl [vmem:[#allocation1 + $0x18] sm:$0xff pattern:$0x75316420]  ;;  %v9327_v43 = vld.sshfl [vmem:[#allocation1 + $0x10] sm:$0xff pattern:$0x75316420] }
 0xa46   : > { %6132 = vst [vmem:[#allocation1 + $0x10] ss:$2 sm:$0xff] %v9156_v22  ;;  %v9330_v54 = vld.sshfl [vmem:[#allocation1 + $0x20] sm:$0xff pattern:$0x75316420] }
 0xa47   : > { %v9332_v34 = vld.sshfl [vmem:[#allocation1 + $0x28] sm:$0xff pattern:$0x75316420] }
 0xa48   : > { %5850 = vrot.lane.b32.xlu0 %v9238_v35, %s7105_s24  ;;  %5890 = vrot.lane.b32.xlu2 %v9244_v33, %s7106_s18  ;;  %6134 = vst [vmem:[#allocation1 + $0x20] ss:$2 sm:$0xff] %v9280_v56 }
 0xa49   : > { %v5373_v60 = vpop.permute.xlu0 %5372  ;;  %v9339_v0 = vld.sshfl [vmem:[#allocation1] sm:$0xff pattern:$0x75316420]  ;;  %v9341_v32 = vld.sshfl [vmem:[#allocation1 + $0x8] sm:$0xff pattern:$0x75316420] }
 0xa4a   : > { %5892 = vrot.lane.b32.xlu1 %v9251_v53, %s7106_s18  ;;  %v5384_v19 = vsel %vm9875_vm10, %v5373_v60, %v9320_v49  ;;  %v5417_v14 = vpop.permute.xlu1 %5416  ;;  %v5476_v3 = vpop.permute.xlu2 %5475  ;;  %6174 = vst [vmem:[#allocation1] ss:$2 sm:$0xff] %v9150_v30  ;;  %vm9887_vm10 = vcmask 850944  }
 0xa4b   : > { %5394 = vst [vmem:[#allocation3] sm:$0xf0] %v5384_v19  ;;  %v5428_v35 = vsel %vm9876_vm11, %v5417_v14, %v9278_v21  ;;  %vm9888_vm11 = vmmov %vm9887_vm10 }
 0xa4c   : > { %v5438_v33 = vsel %vm9877_vm3, %v5428_v35, 0.0  ;;  %vm9889_vm3 = vcmask 842752  }
 0xa4d   : > { %5443 = vst [vmem:[#allocation3 + $0x28] sm:$0xf] %v5438_v33  ;;  %v9352_v1 = vld.sshfl [vmem:[#allocation1 + $0x10] sm:$0xff pattern:$0x75316420] }
 0xa4e   : > { %v9354_v37 = vld.sshfl [vmem:[#allocation1 + $0x18] sm:$0xff pattern:$0x75316420] }
 0xa4f   : > { %v9356_v53 = vld.sshfl [vmem:[#allocation1 + $0x20] sm:$0xff pattern:$0x75316420]  ;;  %6176 = vst [vmem:[#allocation1 + $0x10] ss:$2 sm:$0xff] %v9156_v22 }
 0xa50   : > { %5896 = vrot.lane.b32.xlu0 %v9247_v63, %s7106_s18  ;;  %5894 = vrot.lane.b32.xlu2 %v9253_v48, %s7106_s18  ;;  %v9363_v30 = vld.sshfl [vmem:[#allocation1 + $0x28] sm:$0xff pattern:$0x75316420] }
 0xa51   : > { %6178 = vst [vmem:[#allocation1 + $0x20] ss:$2 sm:$0xff] %v9280_v56 }
 0xa52   : > { %5898 = vrot.lane.b32.xlu1 %v9249_v23, %s7106_s18  ;;  %v9368_v16 = vpop.permute.xlu1 %5424  ;;  %v5556_v4 = vpop.permute.xlu2 %5555 }
 0xa53   : > { %v5432_v36 = vsel %vm9878_vm5, %v9368_v16, %v5427_v46  ;;  %v9372_v22 = vpop.permute.xlu0 %5467  ;;  %vm9890_vm5 = vmmov %vm9880_vm4 }
 0xa54   : > { %v5442_v63 = vsel %vm974_vm6, %v5432_v36, 0.0  ;;  %v5477_v48 = vsel %vm1174_vm7, %v5466_v52, %v9372_v22 }
 0xa55   : > { %5447 = vst [vmem:[#allocation3 + $0x48] sm:$0xf] %v5442_v63  ;;  %v5487_v56 = vsel %vm9879_vm13, %v5477_v48, 0.0  ;;  %vm9891_vm13 = vmmov %vm9889_vm3 }
 0xa56   : > { %v5497_v62 = vrot.slane %v5487_v56, 4 }
 0xa58   : > { %5507 = vst [vmem:[#allocation3 + $0x28] sm:$0xf0] %v5497_v62  ;;  %5960 = vrot.lane.b32.xlu2 %v9265_v12, %s7107_s19  ;;  %5952 = vrot.lane.b32.xlu0 %v9259_v42, %s7107_s19 }
 0xa5a   : > { %5954 = vrot.lane.b32.xlu1 %v9257_v2, %s7107_s19  ;;  %v9386_v23 = vpop.permute.xlu1 %5473  ;;  %v5562_v46 = vpop.permute.xlu2 %5561 }
 0xa5b   : > { %v5481_v52 = vsel %vm1174_vm7, %v9386_v23, %v5476_v3 }
 0xa5c   : > { %v5491_v60 = vsel %vm969_vm14, %v5481_v52, 0.0 }
 0xa5d   : > { %v5501_v19 = vrot.slane %v5491_v60, 4 }
 0xa5f   : > { %5511 = vst [vmem:[#allocation3 + $0x48] sm:$0xf0] %v5501_v19 }
 0xa60   : > { %5956 = vrot.lane.b32.xlu0 %v9271_v25, %s7107_s19  ;;  %6028 = vrot.lane.b32.xlu2 %v9286_v18, %s7108_s27 }
 0xa62   : > { %5958 = vrot.lane.b32.xlu1 %v9269_v31, %s7107_s19  ;;  %v5558_v2 = vpop.permute.xlu0 %5557  ;;  %v9398_v42 = vpop.permute.xlu2 %5621 }
 0xa63   : > { %v5567_v12 = vsel %vm1265_vm2, %v5556_v4, %v5558_v2 }
 0xa64   : > { %v5560_v14 = vpop.permute.xlu1 %5559  ;;  %v5577_v3 = vsel %vm9880_vm4, %v5567_v12, 0.0  ;;  %vm9892_vm4 = vmmov %vm9883_vm8 }
 0xa65   : > { %v5569_v35 = vsel %vm1265_vm2, %v5560_v14, %v5562_v46  ;;  %v5568_v33 = vsel %vm1265_vm2, %v5558_v2, %v5560_v14  ;;  %v5587_v25 = vrot.slane %v5577_v3, 4 }
 0xa66   : > { %v5579_v18 = vsel %vm9881_vm12, %v5569_v35, 0.0  ;;  %v5578_v31 = vsel %vm9882_vm9, %v5568_v33, 0.0  ;;  %vm9893_vm12 = vmmov %vm9889_vm3 }
 0xa67   : > { %v5589_v36 = vrot.slane %v5579_v18, 4  ;;  %v5588_v63 = vrot.slane %v5578_v31, 4  ;;  %5597 = vst [vmem:[#allocation3 + $0x50] sm:$0xf0] %v5587_v25  ;;  %vm9894_vm9 = vmmov %vm9889_vm3 }
 0xa68   : > { %5962 = vrot.lane.b32.xlu0 %v9267_v44, %s7107_s19  ;;  %6034 = vrot.lane.b32.xlu2 %v9304_v28, %s7108_s27 }
 0xa69   : > { %5599 = vst [vmem:[#allocation3 + $0x60] sm:$0xf0] %v5589_v36 }
 0xa6a   : > { %5598 = vst [vmem:[#allocation3 + $0x58] sm:$0xf0] %v5588_v63  ;;  %6032 = vrot.lane.b32.xlu1 %v9302_v57, %s7108_s27  ;;  %v5564_v4 = vpop.permute.xlu0 %5563  ;;  %v9415_v48 = vpop.permute.xlu2 %5627 }
 0xa6b   : > { %v5570_v56 = vsel %vm1265_vm2, %v5562_v46, %v5564_v4 }
 0xa6c   : > { %v5566_v62 = vpop.permute.xlu1 %5565  ;;  %v5580_v52 = vsel %vm9883_vm8, %v5570_v56, 0.0  ;;  %vm9895_vm8 = vcmask 195584  }
 0xa6d   : > { %v5571_v60 = vsel %vm1265_vm2, %v5564_v4, %v5566_v62  ;;  %v5590_v44 = vrot.slane %v5580_v52, 4  ;;  %v6179_v52 = vld.sshfl [vmem:[#allocation1] sm:$0xff pattern:$0x75316420] }
 0xa6e   : > { %v5581_v28 = vsel %vm974_vm6, %v5571_v60, 0.0 }
 0xa6f   : > { %v5591_v19 = vrot.slane %v5581_v28, 4  ;;  %5600 = vst [vmem:[#allocation3 + $0x68] sm:$0xf0] %v5590_v44 }
 0xa70   : > { %6030 = vrot.lane.b32.xlu0 %v9290_v27, %s7108_s27  ;;  %6038 = vrot.lane.b32.xlu2 %v9300_v59, %s7108_s27 }
 0xa71   : > { %5601 = vst [vmem:[#allocation3 + $0x70] sm:$0xf0] %v5591_v19 }
 0xa72   : > { %6036 = vrot.lane.b32.xlu1 %v9298_v5, %s7108_s27  ;;  %v5630_v57 = vpop.permute.xlu0 %5629  ;;  %v9429_v46 = vpop.permute.xlu2 %5677  ;;  %s9976_s27 = sld [smem:[#allocation36_spill]] }
 0xa73   : > { %v5635_v2 = vsel %vm9884_vm1, %v9415_v48, %v5630_v57  ;;  %vm9896_vm1 = vcmp.lt.s32.totalorder %v7620_v8, 23 }
 0xa74   : > { %v5645_v12 = vsel %vm969_vm14, %v5635_v2, 0.0  ;;  %v5620_v14 = vpop.permute.xlu1 %5619  ;;  %v6181_v2 = vld.sshfl [vmem:[#allocation1 + $0x10] sm:$0xff pattern:$0x75316420] }
 0xa75   : > { %5650 = vst [vmem:[#allocation3 + $0x98] sm:$0xf] %v5645_v12  ;;  %v5631_v27 = vsel %vm9885_vm0, %v5620_v14, %v9398_v42  ;;  %vm9897_vm0 = vcmp.lt.s32.totalorder %v7622_v7, 23 }
 0xa76   : > { %v5641_v59 = vsel %vm9886_vm15, %v5631_v27, 0.0  ;;  %vm9898_vm15 = vmmov %vm9889_vm3 }
 0xa77   : > { %5646 = vst [vmem:[#allocation3 + $0x78] sm:$0xf] %v5641_v59 }
 0xa78   : > { %6083 = vrot.lane.b32.xlu0 %v9325_v17, %s7109_s23  ;;  %6079 = vrot.lane.b32.xlu2 %v9312_v38, %s7109_s23 }
 0xa7a   : > { %6077 = vrot.lane.b32.xlu1 %v9314_v29, %s7109_s23  ;;  %v5722_v5 = vpop.permute.xlu2 %5721  ;;  %v5670_v3 = vpop.permute.xlu0 %5669 }
 0xa7c   : > { %v9445_v35 = vpop.permute.xlu1 %5671 }
 0xa7d   : > { %v5681_v33 = vsel %vm9887_vm10, %v5670_v3, %v9445_v35  ;;  %vm9899_vm10 = vcmask 203776  }
 0xa7e   : > { %5691 = vst [vmem:[#allocation3 + $0x78] sm:$0xf0] %v5681_v33  ;;  %v6182_v33 = vld.sshfl [vmem:[#allocation1 + $0x18] sm:$0xff pattern:$0x75316420] }
 0xa80   : > { %6081 = vrot.lane.b32.xlu2 %v9327_v43, %s7109_s23  ;;  %6141 = vrot.lane.b32.xlu0 %v9339_v0, %s7111_s25 }
 0xa82   : > { %6085 = vrot.lane.b32.xlu1 %v9330_v54, %s7109_s23  ;;  %v5680_v38 = vpop.permute.xlu0 %5679  ;;  %v5781_v17 = vpop.permute.xlu2 %5780 }
 0xa83   : > { %v5685_v29 = vsel %vm9888_vm11, %v9429_v46, %v5680_v38  ;;  %vm9900_vm11 = vcmp.ge.s32.totalorder %v9872_v13, 1 }
 0xa84   : > { %5695 = vst [vmem:[#allocation3 + $0x98] sm:$0xf0] %v5685_v29  ;;  %v5716_v25 = vpop.permute.xlu1 %5715 }
 0xa88   : > { %6087 = vrot.lane.b32.xlu2 %v9332_v34, %s7109_s23  ;;  %6145 = vrot.lane.b32.xlu0 %v9352_v1, %s7111_s25 }
 0xa8a   : > { %6143 = vrot.lane.b32.xlu1 %v9341_v32, %s7111_s25  ;;  %v5714_v43 = vpop.permute.xlu0 %5713  ;;  %v5847_v0 = vpop.permute.xlu2 %5846 }
 0xa8b   : > { %v5725_v54 = vsel %vm9889_vm3, %v5714_v43, %v5716_v25  ;;  %vm9901_vm3 = vmmov %vm9895_vm8 }
 0xa8c   : > { %v5720_v18 = vpop.permute.xlu1 %5719  ;;  %v5735_v31 = vsel %vm9890_vm5, %v5725_v54, 0.0  ;;  %vm9902_vm5 = vmmov %vm9899_vm10 }
 0xa8d   : > { %v5728_v36 = vsel %vm9891_vm13, %v5720_v18, %v5722_v5  ;;  %5740 = vst [vmem:[#allocation3 + $0xa0] sm:$0xf] %v5735_v31  ;;  %vm9903_vm13 = vmmov %vm9902_vm5 }
 0xa8e   : > { %v5738_v34 = vsel %vm9892_vm4, %v5728_v36, 0.0  ;;  %vm9904_vm4 = vcmp.ge.s32.totalorder %v7620_v8, 1 }
 0xa8f   : > { %5743 = vst [vmem:[#allocation3 + $0xb8] sm:$0xf] %v5738_v34 }
 0xa90   : > { %6149 = vrot.lane.b32.xlu2 %v9356_v53, %s7111_s25  ;;  %6151 = vrot.lane.b32.xlu0 %v9363_v30, %s7111_s25 }
 0xa92   : > { %6147 = vrot.lane.b32.xlu1 %v9354_v37, %s7111_s25  ;;  %v5718_v32 = vpop.permute.xlu0 %5717  ;;  %v9475_v1 = vpop.permute.xlu2 %5848  ;;  %v6180_v37 = vld.sshfl [vmem:[#allocation1 + $0x8] sm:$0xff pattern:$0x75316420] }
 0xa93   : > { %v5726_v63 = vsel %vm9893_vm12, %v5716_v25, %v5718_v32  ;;  %v5727_v4 = vsel %vm9894_vm9, %v5718_v32, %v5720_v18  ;;  %v5857_v56 = vsel %vm9895_vm8, %v5847_v0, %v9475_v1  ;;  %vm9905_vm12 = vcmp.ge.s32.totalorder %v7622_v7, 1  ;;  %vm9906_vm9 = vmmov %vm9901_vm3 }
 0xa94   : > { %v5787_v62 = vpop.permute.xlu1 %5786  ;;  %v5736_v53 = vsel %vm9896_vm1, %v5726_v63, 0.0  ;;  %v5737_v30 = vsel %vm9897_vm0, %v5727_v4, 0.0  ;;  %5867 = vst [vmem:[#allocation3 + $0xd0] sm:$0xf] %v5857_v56  ;;  %vm9907_vm8 = vmmov %vm9902_vm5  ;;  %vm9909_vm0 = vcmp.ge.s32.totalorder %v7626_v55, 1 }
 0xa95   : > { %5741 = vst [vmem:[#allocation3 + $0xa8] sm:$0xf] %v5736_v53  ;;  %vm9908_vm1 = vmmov %vm9902_vm5 }
 0xa96   : > { %5742 = vst [vmem:[#allocation3 + $0xb0] sm:$0xf] %v5737_v30 }
 0xa98   : > { %6187 = vrot.lane.b32.xlu0 %v6180_v37, %s7112_s21  ;;  %6185 = vrot.lane.b32.xlu2 %v6179_v52, %s7112_s21 }
 0xa9a   : > { %5625 = vrot.lane.b32.xlu1 %v9212_v39, %s7109_s23  ;;  %v5724_v60 = vpop.permute.xlu0 %5723  ;;  %v5855_v44 = vpop.permute.xlu2 %5854 }
 0xa9b   : > { %v5729_v28 = vsel %vm9898_vm15, %v5722_v5, %v5724_v60  ;;  %vm9910_vm15 = vcmask 187392  }
 0xa9c   : > { %v5791_v19 = vpop.permute.xlu1 %5790  ;;  %v5739_v57 = vsel %vm974_vm6, %v5729_v28, 0.0 }
 0xa9d   : > { %5744 = vst [vmem:[#allocation3 + $0xc0] sm:$0xf] %v5739_v57 }
 0xaa0   : > { %5623 = vrot.lane.b32.xlu0 %v9210_v20, %s7109_s23  ;;  %5380 = vrot.lane.b32.xlu2 %v9174_v15, %s7105_s24  ;;  %v6183_v20 = vld.sshfl [vmem:[#allocation1 + $0x20] sm:$0xff pattern:$0x75316420]  ;;  %v6184_v15 = vld.sshfl [vmem:[#allocation1 + $0x28] sm:$0xff pattern:$0x75316420] }
 0xaa2   : > { %6189 = vrot.lane.b32.xlu1 %v6181_v2, %s7112_s21  ;;  %v5783_v12 = vpop.permute.xlu0 %5782  ;;  %v5891_v39 = vpop.permute.xlu2 %5890 }
 0xaa3   : > { %v5792_v14 = vsel %vm9899_vm10, %v5781_v17, %v5783_v12  ;;  %vm9911_vm10 = vcmp.lt.s32.totalorder %v9872_v13, 23 }
 0xaa4   : > { %v5802_v27 = vsel %vm9900_vm11, %v5792_v14, 0.0  ;;  %v5845_v59 = vpop.permute.xlu1 %5844  ;;  %vm9912_vm11 = vmmov %vm9901_vm3 }
 0xaa5   : > { %v5812_v5 = vrot.slane %v5802_v27, 4  ;;  %v5856_v3 = vsel %vm9901_vm3, %v5845_v59, %v5847_v0 }
 0xaa6   : > { %5866 = vst [vmem:[#allocation3 + $0xc8] sm:$0xf] %v5856_v3 }
 0xaa7   : > { %5822 = vst [vmem:[#allocation3 + $0xa0] sm:$0xf0] %v5812_v5 }
 0xaa8   : > { %6193 = vrot.lane.b32.xlu0 %v6183_v20, %s7112_s21  ;;  %6191 = vrot.lane.b32.xlu2 %v6182_v33, %s7112_s21 }
 0xaaa   : > { %6195 = vrot.lane.b32.xlu1 %v6184_v15, %s7112_s21  ;;  %v5785_v38 = vpop.permute.xlu0 %5784  ;;  %v5895_v17 = vpop.permute.xlu2 %5894  ;;  %s9977_s21 = smul.u32 80, %s9981_s28 }
 0xaab   : > { %v5793_v29 = vsel %vm9902_vm5, %v5783_v12, %v5785_v38  ;;  %v5794_v25 = vsel %vm9903_vm13, %v5785_v38, %v5787_v62  ;;  %vm9913_vm5 = vmmov %vm9910_vm15 }
 0xaac   : > { %v5803_v43 = vsel %vm9904_vm4, %v5793_v29, 0.0  ;;  %v5804_v0 = vsel %vm9905_vm12, %v5794_v25, 0.0  ;;  %v5853_v54 = vpop.permute.xlu1 %5852  ;;  %vm9914_vm13 = vmmov %vm9913_vm5  ;;  %vm9915_vm4 = vcmp.lt.s32.totalorder %v7620_v8, 23  ;;  %vm9916_vm12 = vcmp.lt.s32.totalorder %v7622_v7, 23  ;;  %s664_s30 = scalar_lea.vmem %s9978_s0, %s9977_s21 }
 0xaad   : > { %v5813_v18 = vrot.slane %v5803_v43, 4  ;;  %v5814_v31 = vrot.slane %v5804_v0, 4  ;;  %v5860_v36 = vsel %vm9906_vm9, %v5853_v54, %v5855_v44  ;;  %vm9917_vm9 = vmmov %vm9913_vm5 }
 0xaae   : > { %5870 = vst [vmem:[#allocation3 + $0xe8] sm:$0xf] %v5860_v36 }
 0xaaf   : > { %5823 = vst [vmem:[#allocation3 + $0xa8] sm:$0xf0] %v5813_v18 }
 0xab0   : > { %5824 = vst [vmem:[#allocation3 + $0xb0] sm:$0xf0] %v5814_v31  ;;  %5382 = vrot.lane.b32.xlu0 %v9176_v45, %s7105_s24  ;;  %5675 = vrot.lane.b32.xlu2 %v9222_v41, %s7111_s25 }
 0xab2   : > { %5673 = vrot.lane.b32.xlu1 %v9220_v58, %s7111_s25  ;;  %v5789_v34 = vpop.permute.xlu0 %5788  ;;  %v9517_v32 = vpop.permute.xlu2 %5960 }
 0xab3   : > { %v5795_v63 = vsel %vm9907_vm8, %v5787_v62, %v5789_v34  ;;  %v5796_v4 = vsel %vm9908_vm1, %v5789_v34, %v5791_v19  ;;  %vm9918_vm8 = vcmp.lt.s32.totalorder %v7626_v55, 23  ;;  %vm9919_vm1 = vmmov %vm9913_vm5 }
 0xab4   : > { %v5805_v56 = vsel %vm9909_vm0, %v5795_v63, 0.0  ;;  %v5806_v53 = vsel %vm969_vm14, %v5796_v4, 0.0  ;;  %v5889_v45 = vpop.permute.xlu1 %5888  ;;  %vm9920_vm0 = vcmp.ge.s32.totalorder %v9872_v13, 1 }
 0xab5   : > { %v5815_v30 = vrot.slane %v5805_v56, 4  ;;  %v5816_v37 = vrot.slane %v5806_v53, 4  ;;  %v5900_v41 = vsel %vm9910_vm15, %v5889_v45, %v5891_v39  ;;  %vm9921_vm15 = vcmp.ge.s32.totalorder %v7620_v8, 1 }
 0xab6   : > { %v5910_v58 = vsel %vm9911_vm10, %v5900_v41, 0.0  ;;  %vm9922_vm10 = vcmp.ge.s32.totalorder %v7626_v55, 1 }
 0xab7   : > { %5825 = vst [vmem:[#allocation3 + $0xb8] sm:$0xf0] %v5815_v30  ;;  %v5920_v52 = vrot.slane %v5910_v58, 4 }
 0xab8   : > { %5826 = vst [vmem:[#allocation3 + $0xc0] sm:$0xf0] %v5816_v37  ;;  %5469 = vrot.lane.b32.xlu0 %v9189_v26, %s7107_s19  ;;  %5420 = vrot.lane.b32.xlu2 %v9181_v61, %s7106_s18 }
 0xab9   : > { %5930 = vst [vmem:[#allocation3 + $0xc8] sm:$0xf0] %v5920_v52 }
 0xaba   : > { %5471 = vrot.lane.b32.xlu1 %v9191_v6, %s7107_s19  ;;  %v5851_v62 = vpop.permute.xlu0 %5850  ;;  %v9534_v60 = vpop.permute.xlu2 %6028 }
 0xabb   : > { %v5858_v44 = vsel %vm9912_vm11, %v9475_v1, %v5851_v62  ;;  %v5859_v28 = vsel %vm9901_vm3, %v5851_v62, %v5853_v54  ;;  %vm9923_vm11 = vcmp.ge.s32.totalorder %v7622_v7, 1  ;;  %vm9924_vm3 = vcmask 859136  }
 0xabc   : > { %5868 = vst [vmem:[#allocation3 + $0xd8] sm:$0xf] %v5858_v44  ;;  %v5893_v19 = vpop.permute.xlu1 %5892 }
 0xabd   : > { %5869 = vst [vmem:[#allocation3 + $0xe0] sm:$0xf] %v5859_v28  ;;  %v5901_v26 = vsel %vm9913_vm5, %v5891_v39, %v5893_v19  ;;  %v5902_v57 = vsel %vm9914_vm13, %v5893_v19, %v5895_v17  ;;  %vm9925_vm5 = vmmov %vm9921_vm15 }
 0xabe   : > { %v5911_v61 = vsel %vm9915_vm4, %v5901_v26, 0.0  ;;  %v5912_v6 = vsel %vm9916_vm12, %v5902_v57, 0.0  ;;  %vm9926_vm13 = vmmov %vm9916_vm12  ;;  %vm9927_vm4 = vcmp.lt.s32.totalorder %v9872_v13, 23  ;;  %vm9928_vm12 = vcmp.lt.s32.totalorder %v7620_v8, 23 }
 0xabf   : > { %v5921_v2 = vrot.slane %v5911_v61, 4  ;;  %v5922_v12 = vrot.slane %v5912_v6, 4 }
 0xac0   : > { %5422 = vrot.lane.b32.xlu0 %v9183_v50, %s7106_s18  ;;  %5328 = vrot.lane.b32.xlu2 %v9165_v11, %s7104_s11 }
 0xac1   : > { %5931 = vst [vmem:[#allocation3 + $0xd0] sm:$0xf0] %v5921_v2 }
 0xac2   : > { %5932 = vst [vmem:[#allocation3 + $0xd8] sm:$0xf0] %v5922_v12  ;;  %5326 = vrot.lane.b32.xlu1 %v9162_v9, %s7104_s11  ;;  %v5897_v1 = vpop.permute.xlu0 %5896  ;;  %v6035_v39 = vpop.permute.xlu2 %6034 }
 0xac3   : > { %v5903_v14 = vsel %vm9917_vm9, %v5895_v17, %v5897_v1  ;;  %vm9929_vm9 = vmmov %vm9918_vm8 }
 0xac4   : > { %v5913_v27 = vsel %vm9918_vm8, %v5903_v14, 0.0  ;;  %v5899_v59 = vpop.permute.xlu1 %5898  ;;  %vm9930_vm8 = vmmov %vm9924_vm3 }
 0xac5   : > { %v5923_v5 = vrot.slane %v5913_v27, 4  ;;  %v5904_v3 = vsel %vm9919_vm1, %v5897_v1, %v5899_v59  ;;  %vm9931_vm1 = vmmov %vm9923_vm11 }
 0xac6   : > { %v5914_v50 = vsel %vm974_vm6, %v5904_v3, 0.0 }
 0xac7   : > { %5933 = vst [vmem:[#allocation3 + $0xe0] sm:$0xf0] %v5923_v5  ;;  %v5924_v11 = vrot.slane %v5914_v50, 4 }
 0xac8   : > { %5376 = vrot.lane.b32.xlu0 %v9170_v51, %s7105_s24 }
 0xac9   : > { %5934 = vst [vmem:[#allocation3 + $0xe8] sm:$0xf0] %v5924_v11 }
 0xaca   : > { %5378 = vrot.lane.b32.xlu1 %v9172_v10, %s7105_s24  ;;  %v5953_v9 = vpop.permute.xlu0 %5952  ;;  %v6039_v33 = vpop.permute.xlu2 %6038 }
 0xacc   : > { %v5955_v20 = vpop.permute.xlu1 %5954 }
 0xacd   : > { %v5964_v15 = vsel %vm1174_vm7, %v5953_v9, %v5955_v20 }
 0xace   : > { %v5974_v38 = vsel %vm9920_vm0, %v5964_v15, 0.0 }
 0xacf   : > { %5979 = vst [vmem:[#allocation3 + $0xf0] sm:$0xf] %v5974_v38 }
 0xad2   : > { %v5957_v17 = vpop.permute.xlu0 %5956  ;;  %v6080_v29 = vpop.permute.xlu2 %6079 }
 0xad3   : > { %v5965_v25 = vsel %vm1174_vm7, %v5955_v20, %v5957_v17 }
 0xad4   : > { %v5959_v43 = vpop.permute.xlu1 %5958  ;;  %v5975_v51 = vsel %vm9921_vm15, %v5965_v25, 0.0 }
 0xad5   : > { %v5967_v10 = vsel %vm1174_vm7, %v5959_v43, %v9517_v32  ;;  %v5966_v0 = vsel %vm1174_vm7, %v5957_v17, %v5959_v43  ;;  %5980 = vst [vmem:[#allocation3 + $0xf8] sm:$0xf] %v5975_v51 }
 0xad6   : > { %v5977_v54 = vsel %vm9922_vm10, %v5967_v10, 0.0  ;;  %v5976_v18 = vsel %vm9923_vm11, %v5966_v0, 0.0  ;;  %vm9935_vm11 = vcmp.ge.s32.totalorder %v7626_v55, 1 }
 0xad7   : > { %5982 = vst [vmem:[#allocation3 + $0x108] sm:$0xf] %v5977_v54 }
 0xad8   : > { %5981 = vst [vmem:[#allocation3 + $0x100] sm:$0xf] %v5976_v18 }
 0xada   : > { %v5963_v31 = vpop.permute.xlu0 %5962  ;;  %v6082_v36 = vpop.permute.xlu2 %6081 }
 0xadb   : > { %v5968_v34 = vsel %vm1174_vm7, %v9517_v32, %v5963_v31  ;;  %v6090_v63 = vsel %vm9924_vm3, %v6080_v29, %v6082_v36 }
 0xadc   : > { %v6033_v4 = vpop.permute.xlu1 %6032  ;;  %v5978_v56 = vsel %vm969_vm14, %v5968_v34, 0.0  ;;  %v6100_v53 = vsel %vm9925_vm5, %v6090_v63, 0.0 }
 0xadd   : > { %v6042_v45 = vsel %vm1265_vm2, %v6033_v4, %v6035_v39  ;;  %5983 = vst [vmem:[#allocation3 + $0x110] sm:$0xf] %v5978_v56  ;;  %v6110_v30 = vrot.slane %v6100_v53, 4 }
 0xade   : > { %v6052_v37 = vsel %vm9926_vm13, %v6042_v45, 0.0 }
 0xadf   : > { %6057 = vst [vmem:[#allocation3 + $0x128] sm:$0xf] %v6052_v37 }
 0xae0   : > { %6120 = vst [vmem:[#allocation3 + $0x120] sm:$0xf0] %v6110_v30 }
 0xae2   : > { %v6031_v41 = vpop.permute.xlu0 %6030  ;;  %v6088_v32 = vpop.permute.xlu2 %6087 }
 0xae3   : > { %v6040_v58 = vsel %vm1265_vm2, %v9534_v60, %v6031_v41  ;;  %v6041_v52 = vsel %vm1265_vm2, %v6031_v41, %v6033_v4 }
 0xae4   : > { %v6037_v62 = vpop.permute.xlu1 %6036  ;;  %v6050_v44 = vsel %vm9927_vm4, %v6040_v58, 0.0  ;;  %v6051_v28 = vsel %vm9928_vm12, %v6041_v52, 0.0  ;;  %vm9941_vm12 = vcmask 842752  }
 0xae5   : > { %v6043_v19 = vsel %vm1265_vm2, %v6035_v39, %v6037_v62  ;;  %v6044_v26 = vsel %vm1265_vm2, %v6037_v62, %v6039_v33  ;;  %6055 = vst [vmem:[#allocation3 + $0x118] sm:$0xf] %v6050_v44  ;;  %vm9932_vm2 = vmmov %vm9924_vm3  ;;  %vm9936_vm3 = vcmask 850944  }
 0xae6   : > { %v6053_v57 = vsel %vm9929_vm9, %v6043_v19, 0.0  ;;  %v6054_v60 = vsel %vm974_vm6, %v6044_v26, 0.0  ;;  %6056 = vst [vmem:[#allocation3 + $0x120] sm:$0xf] %v6051_v28  ;;  %vm9933_vm15 = vmmov %vm9932_vm2 }
 0xae7   : > { %6058 = vst [vmem:[#allocation3 + $0x130] sm:$0xf] %v6053_v57  ;;  %vm9934_vm10 = vmmov %vm9932_vm2 }
 0xae8   : > { %6059 = vst [vmem:[#allocation3 + $0x138] sm:$0xf] %v6054_v60  ;;  %vm9937_vm5 = vmmov %vm9936_vm3 }
 0xae9   : > { %vm9938_vm13 = vmmov %vm9936_vm3 }
 0xaea   : > { %v6084_v61 = vpop.permute.xlu0 %6083  ;;  %v6150_v6 = vpop.permute.xlu2 %6149  ;;  %vm9940_vm4 = vmmov %vm9936_vm3 }
 0xaeb   : > { %v6091_v2 = vsel %vm9930_vm8, %v6082_v36, %v6084_v61  ;;  %vm9942_vm9 = vmmov %vm9936_vm3  ;;  %vm9943_vm8 = vcmp.lt.s32.totalorder %v9872_v13, 23 }
 0xaec   : > { %v6101_v12 = vsel %vm9931_vm1, %v6091_v2, 0.0  ;;  %v6078_v1 = vpop.permute.xlu1 %6077  ;;  %vm9944_vm1 = vmmov %vm9932_vm2 }
 0xaed   : > { %v6111_v39 = vrot.slane %v6101_v12, 4  ;;  %v6089_v14 = vsel %vm9932_vm2, %v6078_v1, %v6080_v29  ;;  %vm9945_vm2 = vmmov %vm9935_vm11 }
 0xaee   : > { %v6099_v27 = vsel %vm9920_vm0, %v6089_v14, 0.0  ;;  %vm9946_vm0 = vmmov %vm9944_vm1  ;;  %v6263_v14 = vld [vmem:[#allocation3 + $0xf0] sm:$0xff] }
 0xaef   : > { %6121 = vst [vmem:[#allocation3 + $0x128] sm:$0xf0] %v6111_v39  ;;  %v6109_v59 = vrot.slane %v6099_v27, 4 }
 0xaf1   : > { %6119 = vst [vmem:[#allocation3 + $0x118] sm:$0xf0] %v6109_v59 }
 0xaf2   : > { %v6142_v5 = vpop.permute.xlu0 %6141  ;;  %v6186_v3 = vpop.permute.xlu2 %6185 }
 0xaf4   : > { %v6086_v50 = vpop.permute.xlu1 %6085 }
 0xaf5   : > { %v6092_v11 = vsel %vm9933_vm15, %v6084_v61, %v6086_v50  ;;  %v6093_v9 = vsel %vm9934_vm10, %v6086_v50, %v6088_v32  ;;  %vm9947_vm15 = vmmov %vm9946_vm0  ;;  %vm9948_vm10 = vcmask 187392  }
 0xaf6   : > { %v6102_v33 = vsel %vm9935_vm11, %v6092_v11, 0.0  ;;  %v6103_v20 = vsel %vm969_vm14, %v6093_v9, 0.0  ;;  %vm9939_vm14 = vmmov %vm9936_vm3  ;;  %vm9949_vm11 = vcmp.ge.s32.totalorder %v7620_v8, 1  ;;  %v6258_v11 = vld [vmem:[#allocation3 + $0xc8] sm:$0xff] }
 0xaf7   : > { %v6112_v15 = vrot.slane %v6102_v33, 4  ;;  %v6113_v38 = vrot.slane %v6103_v20, 4 }
 0xaf9   : > { %6122 = vst [vmem:[#allocation3 + $0x130] sm:$0xf0] %v6112_v15 }
 0xafa   : > { %6123 = vst [vmem:[#allocation3 + $0x138] sm:$0xf0] %v6113_v38  ;;  %v6146_v17 = vpop.permute.xlu0 %6145  ;;  %v9609_v29 = vpop.permute.xlu2 %5380  ;;  %v6248_v38 = vld [vmem:[#allocation3 + $0x78] sm:$0xff] }
 0xafc   : > { %v6144_v25 = vpop.permute.xlu1 %6143 }
 0xafd   : > { %v6153_v43 = vsel %vm9936_vm3, %v6142_v5, %v6144_v25  ;;  %v6154_v51 = vsel %vm9937_vm5, %v6144_v25, %v6146_v17  ;;  %vm9950_vm3 = vcmp.ge.s32.totalorder %v7622_v7, 1  ;;  %vm9951_vm5 = vcmp.lt.s32.totalorder %v7620_v8, 23 }
 0xafe   : > { %6163 = vst [vmem:[#allocation3 + $0x140] sm:$0xf] %v6153_v43  ;;  %v6270_v43 = vld [vmem:[#allocation3 + $0x128] sm:$0xff] }
 0xaff   : > { %6164 = vst [vmem:[#allocation3 + $0x148] sm:$0xf] %v6154_v51  ;;  %v6243_v51 = vld [vmem:[#allocation3 + $0x50] sm:$0xff] }
 0xb02   : > { %v6152_v10 = vpop.permute.xlu0 %6151  ;;  %v6192_v0 = vpop.permute.xlu2 %6191 }
 0xb03   : > { %v6157_v54 = vsel %vm9938_vm13, %v6150_v6, %v6152_v10  ;;  %vm9952_vm13 = vmmov %vm9941_vm12 }
 0xb04   : > { %v6148_v18 = vpop.permute.xlu1 %6147  ;;  %6167 = vst [vmem:[#allocation3 + $0x160] sm:$0xf] %v6157_v54 }
 0xb05   : > { %v6155_v31 = vsel %vm9939_vm14, %v6146_v17, %v6148_v18  ;;  %v6156_v36 = vsel %vm9940_vm4, %v6148_v18, %v6150_v6  ;;  %vm9953_vm14 = vmmov %vm9941_vm12  ;;  %v6268_v6 = vld [vmem:[#allocation3 + $0x118] sm:$0xff]  ;;  %v6269_v17 = vld [vmem:[#allocation3 + $0x120] sm:$0xff] }
 0xb06   : > { %6165 = vst [vmem:[#allocation3 + $0x150] sm:$0xf] %v6155_v31  ;;  %vm9954_vm4 = vmmov %vm9951_vm5  ;;  %v6265_v31 = vld [vmem:[#allocation3 + $0x100] sm:$0xff] }
 0xb07   : > { %6166 = vst [vmem:[#allocation3 + $0x158] sm:$0xf] %v6156_v36  ;;  %v6238_v36 = vld [vmem:[#allocation3 + $0x28] sm:$0xff] }
 0xb0a   : > { %v6188_v34 = vpop.permute.xlu0 %6187  ;;  %v9616_v63 = vpop.permute.xlu2 %5675 }
 0xb0b   : > { %v6197_v4 = vsel %vm9941_vm12, %v6186_v3, %v6188_v34  ;;  %v5684_v56 = vsel %vm9942_vm9, %v9616_v63, %v9429_v46  ;;  %vm9955_vm12 = vcmp.lt.s32.totalorder %v7622_v7, 23  ;;  %vm9956_vm9 = vmmov %vm9952_vm13 }
 0xb0c   : > { %v5626_v53 = vpop.permute.xlu1 %5625  ;;  %v6207_v45 = vsel %vm9943_vm8, %v6197_v4, 0.0  ;;  %5694 = vst [vmem:[#allocation3 + $0x90] sm:$0xf0] %v5684_v56  ;;  %vm9957_vm8 = vcmask 203776   ;;  %v6260_v56 = vld [vmem:[#allocation3 + $0xd8] sm:$0xff] }
 0xb0d   : > { %v5634_v30 = vsel %vm9944_vm1, %v5626_v53, %v9415_v48  ;;  %v6217_v37 = vrot.slane %v6207_v45, 4  ;;  %vm9958_vm1 = vcmp.lt.s32.totalorder %v7626_v55, 23  ;;  %v6254_v45 = vld [vmem:[#allocation3 + $0xa8] sm:$0xff] }
 0xb0e   : > { %v5644_v41 = vsel %vm9945_vm2, %v5634_v30, 0.0  ;;  %v6255_v30 = vld [vmem:[#allocation3 + $0xb0] sm:$0xff] }
 0xb0f   : > { %5649 = vst [vmem:[#allocation3 + $0x90] sm:$0xf] %v5644_v41 }
 0xb10   : > { %6227 = vst [vmem:[#allocation3 + $0x140] sm:$0xf0] %v6217_v37  ;;  %v9670_v37 = vld [vmem:[%s9745_s7] sm:$0xff] }
 0xb12   : > { %v5624_v32 = vpop.permute.xlu0 %5623  ;;  %v9628_v58 = vpop.permute.xlu2 %5420 }
 0xb13   : > { %v5632_v46 = vsel %vm9946_vm0, %v9398_v42, %v5624_v32  ;;  %v5633_v52 = vsel %vm9947_vm15, %v5624_v32, %v5626_v53  ;;  %v5429_v13 = vsel %vm9948_vm10, %v9278_v21, %v9628_v58  ;;  %vm9959_vm0 = vmmov %vm9956_vm9  ;;  %vm9960_vm15 = vcmask 195584   ;;  %v6233_v53 = vld [vmem:[#allocation3] sm:$0xff]  ;;  %v6272_v32 = vld [vmem:[#allocation3 + $0x138] sm:$0xff] }
 0xb14   : > { %v6190_v62 = vpop.permute.xlu1 %6189  ;;  %v5642_v48 = vsel %vm9949_vm11, %v5632_v46, 0.0  ;;  %v5643_v44 = vsel %vm9950_vm3, %v5633_v52, 0.0  ;;  %v5439_v28 = vsel %vm9951_vm5, %v5429_v13, 0.0  ;;  %vm6278_vm11 = vcmask 588800   ;;  %v6266_v52 = vld [vmem:[#allocation3 + $0x108] sm:$0xff]  ;;  %vm9964_vm5 = vmmov %vm9945_vm2 }
 0xb15   : > { %v6198_v19 = vsel %vm9952_vm13, %v6188_v34, %v6190_v62  ;;  %v6199_v42 = vsel %vm9953_vm14, %v6190_v62, %v6192_v0  ;;  %5647 = vst [vmem:[#allocation3 + $0x80] sm:$0xf] %v5642_v48  ;;  %v6259_v34 = vld [vmem:[#allocation3 + $0xd0] sm:$0xff]  ;;  %vm9963_vm3 = vcmp.ge.s32.totalorder %v7620_v8, 1  ;;  %vm9965_vm13 = vcmp.ge.s32.totalorder %v7622_v7, 1 }
 0xb16   : > { %v6208_v26 = vsel %vm9954_vm4, %v6198_v19, 0.0  ;;  %v6209_v21 = vsel %vm9955_vm12, %v6199_v42, 0.0  ;;  %5648 = vst [vmem:[#allocation3 + $0x88] sm:$0xf] %v5643_v44  ;;  %v6267_v48 = vld [vmem:[#allocation3 + $0x110] sm:$0xff]  ;;  %vm9968_vm4 = vmmov %vm9955_vm12 }
 0xb17   : > { %v6218_v57 = vrot.slane %v6208_v26, 4  ;;  %v6219_v60 = vrot.slane %v6209_v21, 4  ;;  %5444 = vst [vmem:[#allocation3 + $0x30] sm:$0xf] %v5439_v28  ;;  %v6273_v61 = vld [vmem:[#allocation3 + $0x140] sm:$0xff]  ;;  %vm9969_vm12 = vmmov %vm9958_vm1 }
 0xb18   : > { %6289 = vmatpush.msrb.mxu2 %v6273_v61 }
 0xb19   : > { %6228 = vst [vmem:[#allocation3 + $0x148] sm:$0xf0] %v6218_v57 }
 0xb1a   : > { %6229 = vst [vmem:[#allocation3 + $0x150] sm:$0xf0] %v6219_v60  ;;  %6290 = vmatpush.msrb.mxu2 %v6268_v6  ;;  %v6194_v2 = vpop.permute.xlu0 %6193  ;;  %v9648_v12 = vpop.permute.xlu2 %5328  ;;  %v6262_v60 = vld [vmem:[#allocation3 + $0xe8] sm:$0xff] }
 0xb1b   : > { %v6200_v1 = vsel %vm9956_vm9, %v6192_v0, %v6194_v2  ;;  %v5337_v39 = vsel %vm9957_vm8, %v9648_v12, %v9263_v47  ;;  %v6253_v47 = vld [vmem:[#allocation3 + $0xa0] sm:$0xff]  ;;  %v6264_v0 = vld [vmem:[#allocation3 + $0xf8] sm:$0xff]  ;;  %vm9970_vm9 = vmmov %vm9957_vm8 }
 0xb1c   : > { %v6196_v27 = vpop.permute.xlu1 %6195  ;;  %v6210_v59 = vsel %vm9958_vm1, %v6200_v1, 0.0  ;;  %v5347_v5 = vsel %vm9945_vm2, %v5337_v39, 0.0  ;;  %6291 = vmatpush.msrb.mxu2 %v6263_v14  ;;  %v6245_v1 = vld [vmem:[#allocation3 + $0x60] sm:$0xff]  ;;  %v6251_v14 = vld [vmem:[#allocation3 + $0x90] sm:$0xff]  ;;  %vm9971_vm1 = vmmov %vm9963_vm3 }
 0xb1d   : > { %v6201_v3 = vsel %vm9959_vm0, %v6194_v2, %v6196_v27  ;;  %v6220_v50 = vrot.slane %v6210_v59, 4  ;;  %5352 = vst [vmem:[#allocation3 + $0x18] sm:$0xf] %v5347_v5  ;;  %v6256_v2 = vld [vmem:[#allocation3 + $0xb8] sm:$0xff]  ;;  %v6257_v39 = vld [vmem:[#allocation3 + $0xc0] sm:$0xff]  ;;  %vm9972_vm2 = vmmov %vm9965_vm13 }
 0xb1e   : > { %v6211_v9 = vsel %vm974_vm6, %v6201_v3, 0.0  ;;  %6292 = vmatpush.msrb.mxu2 %v6258_v11  ;;  %vm9961_vm6 = vcmask 850944   ;;  %v6252_v59 = vld [vmem:[#allocation3 + $0x98] sm:$0xff]  ;;  %vm9973_vm0 = vmmov %vm9960_vm15 }
 0xb1f   : > { %v6221_v33 = vrot.slane %v6211_v9, 4  ;;  %6230 = vst [vmem:[#allocation3 + $0x158] sm:$0xf0] %v6220_v50  ;;  %vm9962_vm10 = vmmov %vm9961_vm6  ;;  %v6246_v50 = vld [vmem:[#allocation3 + $0x68] sm:$0xff] }
 0xb20   : > { %6293 = vmatpush.msrb.mxu2 %v6253_v47  ;;  %v6274_v20 = vld [vmem:[#allocation3 + $0x148] sm:$0xff]  ;;  %v6247_v47 = vld [vmem:[#allocation3 + $0x70] sm:$0xff] }
 0xb21   : > { %6231 = vst [vmem:[#allocation3 + $0x160] sm:$0xf0] %v6221_v33  ;;  %6309 = vmatpush.msra.mxu3 %v6274_v20  ;;  %v6275_v15 = vld [vmem:[#allocation3 + $0x150] sm:$0xff] }
 0xb22   : > { %6329 = vmatpush.msra.mxu1 %v6275_v15  ;;  %6294 = vmatpush.msrb.mxu2 %v6248_v38  ;;  %v5383_v25 = vpop.permute.xlu0 %5382  ;;  %v6242_v38 = vld [vmem:[#allocation3 + $0x48] sm:$0xff] }
 0xb23   : > { %6310 = vmatpush.msra.mxu3 %v6269_v17  ;;  %v5388_v24 = vsel %vm9960_vm15, %v9609_v29, %v5383_v25  ;;  %vm9974_vm15 = vmmov %vm9973_vm0 }
 0xb24   : > { %6330 = vmatpush.msra.mxu1 %v6270_v43  ;;  %v5674_v10 = vpop.permute.xlu1 %5673  ;;  %5398 = vst [vmem:[#allocation3 + $0x20] sm:$0xf0] %v5388_v24  ;;  %6295 = vmatpush.msrb.mxu2 %v6243_v51 }
 0xb25   : > { %v5682_v54 = vsel %vm9961_vm6, %v9445_v35, %v5674_v10  ;;  %v5683_v18 = vsel %vm9962_vm10, %v5674_v10, %v9616_v63  ;;  %6311 = vmatpush.msra.mxu3 %v6264_v0  ;;  %v6271_v63 = vld [vmem:[#allocation3 + $0x130] sm:$0xff]  ;;  %vm9975_vm6 = vmmov %vm9973_vm0  ;;  %vm6389_vm10 = vcmask 64512  }
 0xb26   : > { %5692 = vst [vmem:[#allocation3 + $0x80] sm:$0xf0] %v5682_v54  ;;  %6331 = vmatpush.msra.mxu1 %v6265_v31  ;;  %6296 = vmatpush.msrb.mxu2 %v6238_v36  ;;  %v6276_v4 = vld [vmem:[#allocation3 + $0x158] sm:$0xff] }
 0xb27   : > { %5693 = vst [vmem:[#allocation3 + $0x88] sm:$0xf0] %v5683_v18  ;;  %6312 = vmatpush.msra.mxu3 %v6259_v34  ;;  %6349 = vmatpush.msrb.mxu0 %v6276_v4  ;;  %v6387_v54 = vld [vmem:[%s9976_s27] sm:$0xff]  ;;  %v6388_v18 = vld [vmem:[%s9976_s27 + $0x8] sm:$0xff] }
 0xb28   : > { %6332 = vmatpush.msra.mxu1 %v6260_v56  ;;  %6297 = vmatpush.msrb.mxu2 %v6233_v53  ;;  %v6277_v35 = vld [vmem:[#allocation3 + $0x160] sm:$0xff] }
 0xb29   : > { %6313 = vmatpush.msra.mxu3 %v6254_v45  ;;  %6350 = vmatpush.msrb.mxu0 %v6271_v63 }
 0xb2a   : > { %6369 = vmatpush.msra.mxu2 %v6277_v35  ;;  %6333 = vmatpush.msra.mxu1 %v6255_v30  ;;  %v5470_v41 = vpop.permute.xlu0 %5469 }
 0xb2b   : > { %v5478_v46 = vsel %vm1174_vm7, %v9372_v22, %v5470_v41  ;;  %6351 = vmatpush.msrb.mxu0 %v6266_v52  ;;  %6727 = vmatmul.msk.f32.vlgmr.msrb.gmra.mxu2 %vm6278_vm11, %v9670_v37  ;;  %v6261_v22 = vld [vmem:[#allocation3 + $0xe0] sm:$0xff] }
 0xb2c   : > { %6370 = vmatpush.msra.mxu2 %v6272_v32  ;;  %v5472_v13 = vpop.permute.xlu1 %5471  ;;  %v5488_v62 = vsel %vm9963_vm3, %v5478_v46, 0.0  ;;  %v6237_v17 = vld [vmem:[#allocation3 + $0x20] sm:$0xff] }
 0xb2d   : > { %v5480_v44 = vsel %vm1174_vm7, %v5472_v13, %v9386_v23  ;;  %v5479_v28 = vsel %vm1174_vm7, %v5470_v41, %v5472_v13  ;;  %v5498_v19 = vrot.slane %v5488_v62, 4  ;;  %v6249_v42 = vld [vmem:[#allocation3 + $0x80] sm:$0xff]  ;;  %6352 = vmatpush.msrb.mxu0 %v6261_v22  ;;  %v6244_v23 = vld [vmem:[#allocation3 + $0x58] sm:$0xff]  ;;  %vm9966_vm7 = vcmask 187392  }
 0xb2e   : > { %6371 = vmatpush.msra.mxu2 %v6267_v48  ;;  %v5490_v26 = vsel %vm9964_vm5, %v5480_v44, 0.0  ;;  %v5489_v21 = vsel %vm9965_vm13, %v5479_v28, 0.0  ;;  %6314 = vmatpush.msra.mxu3 %v6249_v42  ;;  %v6250_v57 = vld [vmem:[#allocation3 + $0x88] sm:$0xff]  ;;  %vm9967_vm14 = vmmov %vm9966_vm7 }
 0xb2f   : > { %v5500_v61 = vrot.slane %v5490_v26, 4  ;;  %v5499_v6 = vrot.slane %v5489_v21, 4  ;;  %5508 = vst [vmem:[#allocation3 + $0x30] sm:$0xf0] %v5498_v19  ;;  %6334 = vmatpush.msra.mxu1 %v6250_v57  ;;  %6353 = vmatpush.msrb.mxu0 %v6256_v2 }
 0xb30   : > { %6372 = vmatpush.msra.mxu2 %v6262_v60  ;;  %6315 = vmatpush.msra.mxu3 %v6244_v23 }
 0xb31   : > { %5510 = vst [vmem:[#allocation3 + $0x40] sm:$0xf0] %v5500_v61  ;;  %6335 = vmatpush.msra.mxu1 %v6245_v1  ;;  %6354 = vmatpush.msrb.mxu0 %v6251_v14 }
 0xb32   : > { %6373 = vmatpush.msra.mxu2 %v6257_v39  ;;  %5509 = vst [vmem:[#allocation3 + $0x38] sm:$0xf0] %v5499_v6  ;;  %v5423_v27 = vpop.permute.xlu0 %5422 }
 0xb33   : > { %v5430_v5 = vsel %vm9966_vm7, %v9628_v58, %v5423_v27  ;;  %v5431_v3 = vsel %vm9967_vm14, %v5423_v27, %v9368_v16  ;;  %6355 = vmatpush.msrb.mxu0 %v6246_v50 }
 0xb34   : > { %6374 = vmatpush.msra.mxu2 %v6252_v59  ;;  %v5327_v11 = vpop.permute.xlu1 %5326  ;;  %v5440_v9 = vsel %vm9968_vm4, %v5430_v5, 0.0  ;;  %v5441_v33 = vsel %vm9969_vm12, %v5431_v3, 0.0 }
 0xb35   : > { %v5335_v20 = vsel %vm9970_vm9, %v9288_v40, %v5327_v11  ;;  %v5336_v58 = vsel %vm9957_vm8, %v5327_v11, %v9648_v12  ;;  %5445 = vst [vmem:[#allocation3 + $0x38] sm:$0xf] %v5440_v9 }
 0xb36   : > { %6375 = vmatpush.msra.mxu2 %v6247_v47  ;;  %v5345_v16 = vsel %vm9971_vm1, %v5335_v20, 0.0  ;;  %v5346_v15 = vsel %vm9972_vm2, %v5336_v58, 0.0  ;;  %5446 = vst [vmem:[#allocation3 + $0x40] sm:$0xf] %v5441_v33  ;;  %v6239_v55 = vld [vmem:[#allocation3 + $0x30] sm:$0xff] }
 0xb37   : > { %5350 = vst [vmem:[#allocation3 + $0x8] sm:$0xf] %v5345_v16  ;;  %6316 = vmatpush.msra.mxu3 %v6239_v55 }
 0xb38   : > { %6376 = vmatpush.msra.mxu2 %v6242_v38  ;;  %5351 = vst [vmem:[#allocation3 + $0x10] sm:$0xf] %v5346_v15 }
 0xb3a   : > { %6377 = vmatpush.msra.mxu2 %v6237_v17  ;;  %v5377_v40 = vpop.permute.xlu0 %5376 }
 0xb3b   : > { %6731 = vmatmul.msk.f32.vlgmr.msra.gmra.mxu2 %vm6278_vm11, %v9670_v37  ;;  %v5385_v8 = vsel %vm9973_vm0, %v9320_v49, %v5377_v40 }
 0xb3c   : > { %v5379_v12 = vpop.permute.xlu1 %5378  ;;  %5395 = vst [vmem:[#allocation3 + $0x8] sm:$0xf0] %v5385_v8  ;;  %v6240_v7 = vld [vmem:[#allocation3 + $0x38] sm:$0xff] }
 0xb3d   : > { %v5387_v25 = vsel %vm9974_vm15, %v5379_v12, %v9609_v29  ;;  %v5386_v43 = vsel %vm9975_vm6, %v5377_v40, %v5379_v12  ;;  %6336 = vmatpush.msra.mxu1 %v6240_v7  ;;  %v6241_v24 = vld [vmem:[#allocation3 + $0x40] sm:$0xff] }
 0xb3e   : > { %5397 = vst [vmem:[#allocation3 + $0x18] sm:$0xf0] %v5387_v25  ;;  %6356 = vmatpush.msrb.mxu0 %v6241_v24 }
 0xb3f   : > { %5396 = vst [vmem:[#allocation3 + $0x10] sm:$0xf0] %v5386_v43 }
 0xb43   : > { %v6234_v51 = vld [vmem:[#allocation3 + $0x8] sm:$0xff] }
 0xb44   : > { %6317 = vmatpush.msra.mxu3 %v6234_v51 }
 0xb45   : > { %v6236_v10 = vld [vmem:[#allocation3 + $0x18] sm:$0xff]  ;;  %6728 = vmatmul.msk.f32.vlgmr.msra.gmra.mxu3 %vm6278_vm11, %v9670_v37 }
 0xb46   : > { %v6235_v49 = vld [vmem:[#allocation3 + $0x10] sm:$0xff]  ;;  %6357 = vmatpush.msrb.mxu0 %v6236_v10 }
 0xb47   : > { %6337 = vmatpush.msra.mxu1 %v6235_v49  ;;  %6730 = vmatmul.msk.f32.vlgmr.msrb.gmra.mxu0 %vm6278_vm11, %v9670_v37 }
 0xb48   : > { %6729 = vmatmul.msk.f32.vlgmr.msra.gmra.mxu1 %vm6278_vm11, %v9670_v37 }
 0xbae   : > { %v6299_v29 = vpop.f32.mrf.mxu2 }
 0xbaf   : > { %v6382_v0 = vmax.f32 %v6299_v29, 0.0 }
 0xbb1   : > { %6411 = vmatpush.msrb.mxu3 %v6382_v0 }
 0xbb2   : > { %6732 = vmatmul.msk.f32.vlgmr.msrb.gmra.mxu3 %vm6389_vm10, %v6387_v54 }
 0xbba   : > { %6733 = vmatmul.msk.f32.gmra.mxu3 %vm6389_vm10, %v6388_v18 }
 0xbbe   : > { %v6379_v31 = vpop.f32.mrf.mxu2 }
 0xbbf   : > { %v6386_v36 = vmax.f32 %v6379_v31, 0.0 }
 0xbc1   : > { %6503 = vmatpush.msrb.mxu2 %v6386_v36 }
 0xbc2   : > { %6740 = vmatmul.msk.f32.vlgmr.msrb.gmra.mxu2 %vm6389_vm10, %v6387_v54 }
 0xbc4   : > { %v6359_v34 = vpop.f32.mrf.mxu0 }
 0xbc5   : > { %v6385_v4 = vmax.f32 %v6359_v34, 0.0  ;;  %v6339_v56 = vpop.f32.mrf.mxu1 }
 0xbc6   : > { %v6384_v53 = vmax.f32 %v6339_v56, 0.0 }
 0xbc7   : > { %6480 = vmatpush.msra.mxu3 %v6385_v4 }
 0xbc8   : > { %v6319_v45 = vpop.f32.mrf.mxu3  ;;  %6457 = vmatpush.msra.mxu0 %v6384_v53  ;;  %6738 = vmatmul.msk.f32.vlgmr.msra.gmra.mxu3 %vm6389_vm10, %v6387_v54 }
 0xbc9   : > { %v6383_v35 = vmax.f32 %v6319_v45, 0.0  ;;  %6736 = vmatmul.msk.f32.vlgmr.msra.gmra.mxu0 %vm6389_vm10, %v6387_v54 }
 0xbca   : > { %6741 = vmatmul.msk.f32.gmra.mxu2 %vm6389_vm10, %v6388_v18 }
 0xbcb   : > { %6434 = vmatpush.msrb.mxu1 %v6383_v35 }
 0xbcc   : > { %6734 = vmatmul.msk.f32.vlgmr.msrb.gmra.mxu1 %vm6389_vm10, %v6387_v54 }
 0xbd0   : > { %6739 = vmatmul.msk.f32.gmra.mxu3 %vm6389_vm10, %v6388_v18 }
 0xbd1   : > { %6737 = vmatmul.msk.f32.gmra.mxu0 %vm6389_vm10, %v6388_v18 }
 0xbd4   : > { %6735 = vmatmul.msk.f32.gmra.mxu1 %vm6389_vm10, %v6388_v18 }
 0xc35   : > { %v6413_v30 = vpop.f32.mrf.mxu3 }
 0xc36   : > { %v6511_v63 = vmax.f32 %v6413_v30, 0.0 }
 0xc38   : > { %6521 = vst [vmem:[%s664_s30] sm:$0xff] %v6511_v63 }
 0xc3d   : > { %v6416_v37 = vpop.f32.mrf.mxu3 }
 0xc3e   : > { %v6516_v41 = vmax.f32 %v6416_v37, 0.0 }
 0xc40   : > { %6526 = vst [vmem:[%s664_s30 + $0x28] sm:$0xff] %v6516_v41 }
 0xc45   : > { %v6505_v32 = vpop.f32.mrf.mxu2 }
 0xc46   : > { %v6515_v46 = vmax.f32 %v6505_v32, 0.0  ;;  %v6459_v52 = vpop.f32.mrf.mxu0 }
 0xc47   : > { %v6513_v13 = vmax.f32 %v6459_v52, 0.0 }
 0xc48   : > { %6525 = vst [vmem:[%s664_s30 + $0x20] sm:$0xff] %v6515_v46 }
 0xc49   : > { %v6436_v62 = vpop.f32.mrf.mxu1  ;;  %6523 = vst [vmem:[%s664_s30 + $0x10] sm:$0xff] %v6513_v13 }
 0xc4a   : > { %v6512_v48 = vmax.f32 %v6436_v62, 0.0 }
 0xc4b   : > { %v6482_v44 = vpop.f32.mrf.mxu3 }
 0xc4c   : > { %6522 = vst [vmem:[%s664_s30 + $0x8] sm:$0xff] %v6512_v48  ;;  %v6514_v28 = vmax.f32 %v6482_v44, 0.0 }
 0xc4d   : > { %v6508_v19 = vpop.f32.mrf.mxu2 }
 0xc4e   : > { %v6520_v42 = vmax.f32 %v6508_v19, 0.0  ;;  %6524 = vst [vmem:[%s664_s30 + $0x18] sm:$0xff] %v6514_v28  ;;  %v6462_v22 = vpop.f32.mrf.mxu0 }
 0xc4f   : > { %v6518_v26 = vmax.f32 %v6462_v22, 0.0 }
 0xc50   : > { %6530 = vst [vmem:[%s664_s30 + $0x48] sm:$0xff] %v6520_v42 }
 0xc51   : > { %v6439_v21 = vpop.f32.mrf.mxu1  ;;  %6528 = vst [vmem:[%s664_s30 + $0x38] sm:$0xff] %v6518_v26 }
 0xc52   : > { %v6517_v57 = vmax.f32 %v6439_v21, 0.0 }
 0xc53   : > { %v6485_v60 = vpop.f32.mrf.mxu3 }
 0xc54   : > { %6527 = vst [vmem:[%s664_s30 + $0x30] sm:$0xff] %v6517_v57  ;;  %v6519_v61 = vmax.f32 %v6485_v60, 0.0 }
 0xc56   : > { %6529 = vst [vmem:[%s664_s30 + $0x40] sm:$0xff] %v6519_v61 }
 0xc57 PF: > { %s9979_s28 = sld [smem:[#allocation19_spill]] }
 0xc5d   : > { %s31_s24 = sadd.s32 1, %s9979_s28  }
 0xc5e   : > { %p28_p7 = scmp.ge.s32.totalorder %s31_s24, 4  }
 0xc60   :  { %30 = sbr.rel (!%p28_p7) target bundleno = 11 (0xb), region = 226 }
 0xc65   :  { %6552 = vsyncpa [#allocation5], 1 }
 0xc66   :  { %6554 = vsyncpa [#allocation5 + $0x1], 1 }
 0xc67   :  { %6555 = vsyncpa [#allocation7], 1 }
 0xc68   :  { %6556 = vsyncpa [#allocation10], 1 }
 0xc69   :  { %6557 = vsyncpa [#allocation13], 1 }

</bundles_post_ra>
